<compile_context>
chip_gen: v7x
topology: tpu7x:2x2x1
jax: 0.10.0
libtpu: 0.0.40
codegen_flags: <defaults>
</compile_context>

<pallas_src>
import functools

import jax
import jax.numpy as jnp
from jax.experimental import pallas as pl
from jax.experimental.pallas import tpu as pltpu


def _round_up(x, m):
    return (x + m - 1) // m * m


FC1_TN = 256            # 2 parallel grid steps -> both v7x TCs; RHS stays small
CONV_TNS = (896, 384, 256)   # conv1/2/3 lane tiles -> 2 / 1 / 1 grid steps


# ---------------------------------------------------------------------------
# Fused GEMM (+ optional int8 weight dequant) + bias + ReLU kernels.
# The contraction dim is fully resident in VMEM (single K step), so there is
# no accumulator scratch and no init/finalize phase; the grid is 1-D over the
# lane (output column) dim.
# ---------------------------------------------------------------------------
def _gemm_bias_relu_kernel(a_ref, b_ref, bias_ref, o_ref, *, relu):
    acc = jnp.dot(a_ref[...], b_ref[...], preferred_element_type=jnp.float32)
    acc = acc + bias_ref[...]              # (Mp,1) or (1,tn) f32 bias
    if relu:
        acc = jnp.maximum(acc, 0.0)
    o_ref[...] = acc.astype(o_ref.dtype)


def _gemm_q_bias_relu_kernel(a_ref, b_ref, scale_ref, bias_ref, o_ref, *, relu):
    # Weight-only int8: HBM fetch is int8 bytes; dequant to bf16 in VMEM via
    # int8 -> f32 -> bf16 (both casts lower everywhere), MXU runs bf16 on all
    # generations, per-output-channel scale folded into the f32 epilogue.
    b = b_ref[...].astype(jnp.float32).astype(jnp.bfloat16)
    acc = jnp.dot(a_ref[...], b, preferred_element_type=jnp.float32)
    acc = acc * scale_ref[...] + bias_ref[...]
    if relu:
        acc = jnp.maximum(acc, 0.0)
    o_ref[...] = acc.astype(o_ref.dtype)


def fused_matmul(a, b, bias, *, relu, tn, out_dtype, scale=None):
    """o = a @ dequant(b) + bias (optional ReLU), tiled over output columns.

    a     : (Mp, Kp) bf16, Mp % 8 == 0, Kp % 128 == 0   (pre-padded)
    b     : (Kp, Np) bf16 or int8, Np % tn == 0          (pre-padded)
    bias  : (Mp, 1) f32 (per-row) or (1, Np) f32 (per-column)
    scale : optional (1, Np) f32 per-output-column dequant scale (int8 b)
    """
    Mp, Kp = a.shape
    Kp2, Np = b.shape
    assert Kp == Kp2 and Np % tn == 0 and Mp % 8 == 0 and Kp % 128 == 0

    if bias.shape[0] == 1:
        bias_spec = pl.BlockSpec((1, tn), lambda j: (0, j))   # per-column bias
    else:
        bias_spec = pl.BlockSpec((Mp, 1), lambda j: (0, 0))   # per-row bias

    in_specs = [
        pl.BlockSpec((Mp, Kp), lambda j: (0, 0)),   # LHS resident (fetched once)
        pl.BlockSpec((Kp, tn), lambda j: (0, j)),   # RHS column tile
    ]
    operands = [a, b]
    if scale is not None:
        in_specs.append(pl.BlockSpec((1, tn), lambda j: (0, j)))
        operands.append(scale)
        kernel = functools.partial(_gemm_q_bias_relu_kernel, relu=relu)
    else:
        kernel = functools.partial(_gemm_bias_relu_kernel, relu=relu)
    in_specs.append(bias_spec)
    operands.append(bias)

    return pl.pallas_call(
        kernel,
        out_shape=jax.ShapeDtypeStruct((Mp, Np), out_dtype),
        grid_spec=pltpu.PrefetchScalarGridSpec(
            num_scalar_prefetch=0,
            grid=(Np // tn,),
            in_specs=in_specs,
            out_specs=pl.BlockSpec((Mp, tn), lambda j: (0, j)),
        ),
        compiler_params=pltpu.CompilerParams(
            dimension_semantics=("parallel",),
            # 32 MiB: default on v6e/v7x, raised from 16 MiB on v5e so the
            # FC1 int8-dequant temporaries never brush the scoped limit.
            vmem_limit_bytes=32 * 1024 * 1024,
        ),
    )(*operands)


# ---------------------------------------------------------------------------
# Conv (valid padding) as a transposed im2col GEMM, activations in
# (C, N, H, W) bf16 layout so the patch matrix is built without moving the
# minor (spatial) dims and without any extra cast.
# ---------------------------------------------------------------------------
def conv2d_relu_t(xt, wmat_p, bias_p, *, oc, kh, kw, stride, tn):
    C, N, H, W = xt.shape
    OH = (H - kh) // stride + 1
    OW = (W - kw) // stride + 1
    patches = []
    for i in range(kh):
        for j in range(kw):
            patches.append(
                xt[:, :, i : i + stride * OH : stride, j : j + stride * OW : stride]
            )
    # (C, KH*KW, N, OH, OW) -> (C*KH*KW, N*OH*OW); K order = (C, KH, KW)
    # matches torch weight.reshape(OC, C*KH*KW).  xt is bf16, so the patch
    # matrix is bf16 from the start (no separate full-size cast op).
    p = jnp.stack(patches, axis=1).reshape(C * kh * kw, N * OH * OW)

    K = C * kh * kw
    Kp = wmat_p.shape[1]
    M = N * OH * OW
    Mp = _round_up(M, tn)
    p = jnp.pad(p, ((0, Kp - K), (0, Mp - M)))

    # TODO(synk): fold the im2col into the Pallas kernel (grid axis over the
    # kh*kw taps + f32 accumulator scratch) so the patch matrix never does a
    # round trip through HBM.
    y = fused_matmul(wmat_p, p, bias_p, relu=True, tn=tn, out_dtype=jnp.bfloat16)
    return y[:oc, :M].reshape(oc, N, OH, OW)     # = next layer's (C, N, H, W)


# ---------------------------------------------------------------------------
# Parameter init (mirrors the PyTorch module) + one-time device-ready prep.
# ---------------------------------------------------------------------------
def conv_output_hw(h, w):
    oh, ow = (h - 8) // 4 + 1, (w - 8) // 4 + 1
    oh, ow = (oh - 4) // 2 + 1, (ow - 4) // 2 + 1
    oh, ow = oh - 3 + 1, ow - 3 + 1
    return oh, ow


def init_dqn_params(key, input_shape, n_actions):
    C, H, W = input_shape
    oh, ow = conv_output_hw(H, W)
    conv_out_size = 64 * oh * ow
    ks = jax.random.split(key, 10)

    def w(k, shape, fan_in):
        return jax.random.normal(k, shape, jnp.float32) / jnp.sqrt(fan_in)

    return {
        "c1_w": w(ks[0], (32, C, 8, 8), C * 8 * 8),
        "c1_b": w(ks[1], (32,), C * 8 * 8),
        "c2_w": w(ks[2], (64, 32, 4, 4), 32 * 4 * 4),
        "c2_b": w(ks[3], (64,), 32 * 4 * 4),
        "c3_w": w(ks[4], (64, 64, 3, 3), 64 * 3 * 3),
        "c3_b": w(ks[5], (64,), 64 * 3 * 3),
        "fc1_w": w(ks[6], (512, conv_out_size), conv_out_size),
        "fc1_b": w(ks[7], (512,), conv_out_size),
        "fc2_w": w(ks[8], (n_actions, 512), 512),
        "fc2_b": w(ks[9], (n_actions,), 512),
    }


def _prep_conv(weight, bias):
    OC, C, KH, KW = weight.shape
    K = C * KH * KW
    Kp = _round_up(K, 128)
    OCp = _round_up(OC, 8)
    wmat = jnp.pad(
        weight.reshape(OC, K).astype(jnp.bfloat16), ((0, OCp - OC), (0, Kp - K))
    )
    b = jnp.pad(bias.astype(jnp.float32), (0, OCp - OC)).reshape(OCp, 1)
    return wmat, b


def _prep_fc1_int8(weight, bias, tn):
    """(512, K) torch layout -> int8 GEMM RHS (Kp, Np) + per-output-channel
    f32 dequant scale (1, Np) + column bias (1, Np)."""
    n_out, K = weight.shape
    Kp, Np = _round_up(K, 128), _round_up(n_out, tn)
    w = weight.T.astype(jnp.float32)                               # (K, n_out)
    scale = jnp.maximum(jnp.max(jnp.abs(w), axis=0, keepdims=True), 1e-8) / 127.0
    w_q = jnp.clip(jnp.round(w / scale), -127.0, 127.0).astype(jnp.int8)
    w_q = jnp.pad(w_q, ((0, Kp - K), (0, Np - n_out)))
    scale = jnp.pad(scale, ((0, 0), (0, Np - n_out)), constant_values=1.0)
    b = jnp.pad(bias.astype(jnp.float32), (0, Np - n_out)).reshape(1, Np)
    return w_q, scale, b


def prepare_dqn_params(params):
    """Pad / transpose / quantize / cast weights once (not per forward call)."""
    prepped = {}
    prepped["c1_w"], prepped["c1_b"] = _prep_conv(params["c1_w"], params["c1_b"])
    prepped["c2_w"], prepped["c2_b"] = _prep_conv(params["c2_w"], params["c2_b"])
    prepped["c3_w"], prepped["c3_b"] = _prep_conv(params["c3_w"], params["c3_b"])

    prepped["fc1_w"], prepped["fc1_s"], prepped["fc1_b"] = _prep_fc1_int8(
        params["fc1_w"], params["fc1_b"], FC1_TN
    )

    # FC2 stays in plain XLA (n_actions=4: lane padding to 128 would waste
    # >95% of a Pallas tile; dispatch overhead would dominate the math).
    prepped["fc2_w"] = params["fc2_w"].T.astype(jnp.float32)  # (512, n_actions)
    prepped["fc2_b"] = params["fc2_b"].astype(jnp.float32)
    return prepped


def dqn_forward(x, prepped, fc1_out=512):
    # forward(): x = x.float() / 255.0, then cast ONCE to bf16 -> all conv
    # activations and im2col patch matrices travel as bf16 (half the HBM
    # bytes); bias/ReLU epilogues stay f32 inside the kernels.
    x = (x.astype(jnp.float32) * (1.0 / 255.0)).astype(jnp.bfloat16)
    # (N, C, H, W) -> (C, N, H, W): only leading axes move; spatial dims stay
    # contiguous for the strided im2col slicing.
    xt = jnp.transpose(x, (1, 0, 2, 3))
    xt = conv2d_relu_t(xt, prepped["c1_w"], prepped["c1_b"],
                       oc=32, kh=8, kw=8, stride=4, tn=CONV_TNS[0])
    xt = conv2d_relu_t(xt, prepped["c2_w"], prepped["c2_b"],
                       oc=64, kh=4, kw=4, stride=2, tn=CONV_TNS[1])
    xt = conv2d_relu_t(xt, prepped["c3_w"], prepped["c3_b"],
                       oc=64, kh=3, kw=3, stride=1, tn=CONV_TNS[2])

    # nn.Flatten on NCHW: feature order = (C, OH, OW)
    C, N, OH, OW = xt.shape
    xf = jnp.transpose(xt, (1, 0, 2, 3)).reshape(N, C * OH * OW)

    # FC1 (Pallas): bf16 activations x int8 weight (dequant in-kernel), f32
    # scale + bias + ReLU epilogue, f32 output for FC2.
    Kp, Np = prepped["fc1_w"].shape
    Mp = _round_up(N, 8)
    xp = jnp.pad(xf, ((0, Mp - N), (0, Kp - C * OH * OW)))
    h = fused_matmul(xp, prepped["fc1_w"], prepped["fc1_b"], relu=True,
                     tn=FC1_TN, out_dtype=jnp.float32, scale=prepped["fc1_s"])
    h = h[:N, :fc1_out]

    # FC2: plain XLA dot.
    # TODO(synk): could be fused into the FC1 epilogue if it ever matters.
    return h @ prepped["fc2_w"] + prepped["fc2_b"]


if __name__ == "__main__":
    key = jax.random.PRNGKey(0)
    k_x, k_p = jax.random.split(key)

    # preprocess() resizes to 160x90 and transposes to CHW -> input_shape=(3,90,160)
    # TODO(synk): at training time, call this at the replay-buffer batch size
    # (e.g. 32) — at batch=2 every layer is HBM/dispatch bound.
    batch = 2
    input_shape = (3, 90, 160)
    n_actions = 4

    x = jax.random.uniform(
        k_x, (batch,) + input_shape, jnp.float32, minval=0.0, maxval=255.0
    )
    params = init_dqn_params(k_p, input_shape, n_actions)
    prepped = prepare_dqn_params(params)

    fwd = jax.jit(dqn_forward)
    q_values = fwd(x, prepped)
    jax.block_until_ready(q_values)
    assert q_values.shape == (batch, n_actions)
    print("KERNEL_OK")
</pallas_src>

<mosaic_0001>
module attributes {stable_mosaic.version = 11 : i64} {
  func.func @_gemm_bias_relu_kernel(%arg0: i32, %arg1: memref<32x256xbf16, #tpu.memory_space<vmem>>, %arg2: memref<256x896xbf16, #tpu.memory_space<vmem>>, %arg3: memref<32x1xf32, #tpu.memory_space<vmem>>, %arg4: memref<32x896xbf16, #tpu.memory_space<vmem>>) attributes {dimension_semantics = [#tpu.dimension_semantics<parallel>], iteration_bounds = array<i64: 2>, scalar_prefetch = 0 : i64, scratch_operands = 0 : i64, tpu.core_type = #tpu.core_type<tc>, window_params = [{pipeline_mode = #tpu.pipeline_mode<synchronous>, transform_indices = @transform_0, window_bounds = array<i64: 32, 256>}, {transform_indices = @transform_1, window_bounds = array<i64: 256, 896>}, {pipeline_mode = #tpu.pipeline_mode<synchronous>, transform_indices = @transform_2, window_bounds = array<i64: 32, 1>}, {transform_indices = @transform_3, window_bounds = array<i64: 32, 896>}]} {
    %c0 = arith.constant 0 : index
    %c0_0 = arith.constant 0 : index
    %0 = vector.load %arg1[%c0, %c0_0] : memref<32x256xbf16, #tpu.memory_space<vmem>>, vector<32x256xbf16>
    %c0_1 = arith.constant 0 : index
    %c0_2 = arith.constant 0 : index
    %1 = vector.load %arg2[%c0_1, %c0_2] : memref<256x896xbf16, #tpu.memory_space<vmem>>, vector<256x896xbf16>
    %cst = arith.constant dense<0.000000e+00> : vector<32x896xf32>
    %2 = tpu.matmul %0, %1, %cst {dimension_numbers = #tpu.dot_dimension_numbers<[1], [0], [0], [1], [0, 0, 1, 1], [], []>} : vector<32x256xbf16>, vector<256x896xbf16>, vector<32x896xf32> -> vector<32x896xf32>
    %c0_3 = arith.constant 0 : index
    %c0_4 = arith.constant 0 : index
    %3 = vector.load %arg3[%c0_3, %c0_4] : memref<32x1xf32, #tpu.memory_space<vmem>>, vector<32x1xf32>
    %4 = vector.broadcast %3 : vector<32x1xf32> to vector<32x896xf32>
    %5 = arith.addf %2, %4 : vector<32x896xf32>
    %cst_5 = arith.constant 0.000000e+00 : f32
    %6 = vector.broadcast %cst_5 : f32 to vector<32x896xf32>
    %7 = arith.maximumf %5, %6 : vector<32x896xf32>
    %8 = arith.truncf %7 : vector<32x896xf32> to vector<32x896xbf16>
    %c0_6 = arith.constant 0 : index
    %c0_7 = arith.constant 0 : index
    %9 = vector.load %arg4[%c0_6, %c0_7] : memref<32x896xbf16, #tpu.memory_space<vmem>>, vector<32x896xbf16>
    tpu.vector_store %arg4[%c0_6, %c0_7], %8 {strides = array<i32>} : memref<32x896xbf16, #tpu.memory_space<vmem>>, vector<32x896xbf16>,
    return
  }
  func.func @transform_0(%arg0: i32) -> (i32, i32) {
    %c0_i32 = arith.constant 0 : i32
    %c0_i32_0 = arith.constant 0 : i32
    %c0_i32_1 = arith.constant 0 : i32
    return %c0_i32, %c0_i32_0 : i32, i32
  }
  func.func @transform_1(%arg0: i32) -> (i32, i32) {
    %c0_i32 = arith.constant 0 : i32
    %c0_i32_0 = arith.constant 0 : i32
    return %c0_i32, %arg0 : i32, i32
  }
  func.func @transform_2(%arg0: i32) -> (i32, i32) {
    %c0_i32 = arith.constant 0 : i32
    %c0_i32_0 = arith.constant 0 : i32
    %c0_i32_1 = arith.constant 0 : i32
    return %c0_i32, %c0_i32_0 : i32, i32
  }
  func.func @transform_3(%arg0: i32) -> (i32, i32) {
    %c0_i32 = arith.constant 0 : i32
    %c0_i32_0 = arith.constant 0 : i32
    return %c0_i32, %arg0 : i32, i32
  }
}

module attributes {stable_mosaic.version = 11 : i64} {
  func.func @_gemm_bias_relu_kernel(%arg0: i32, %arg1: memref<64x512xbf16, #tpu.memory_space<vmem>>, %arg2: memref<512x384xbf16, #tpu.memory_space<vmem>>, %arg3: memref<64x1xf32, #tpu.memory_space<vmem>>, %arg4: memref<64x384xbf16, #tpu.memory_space<vmem>>) attributes {dimension_semantics = [#tpu.dimension_semantics<parallel>], iteration_bounds = array<i64: 1>, scalar_prefetch = 0 : i64, scratch_operands = 0 : i64, tpu.core_type = #tpu.core_type<tc>, window_params = [{pipeline_mode = #tpu.pipeline_mode<synchronous>, transform_indices = @transform_0, window_bounds = array<i64: 64, 512>}, {transform_indices = @transform_1, window_bounds = array<i64: 512, 384>}, {pipeline_mode = #tpu.pipeline_mode<synchronous>, transform_indices = @transform_2, window_bounds = array<i64: 64, 1>}, {transform_indices = @transform_3, window_bounds = array<i64: 64, 384>}]} {
    %c0 = arith.constant 0 : index
    %c0_0 = arith.constant 0 : index
    %0 = vector.load %arg1[%c0, %c0_0] : memref<64x512xbf16, #tpu.memory_space<vmem>>, vector<64x512xbf16>
    %c0_1 = arith.constant 0 : index
    %c0_2 = arith.constant 0 : index
    %1 = vector.load %arg2[%c0_1, %c0_2] : memref<512x384xbf16, #tpu.memory_space<vmem>>, vector<512x384xbf16>
    %cst = arith.constant dense<0.000000e+00> : vector<64x384xf32>
    %2 = tpu.matmul %0, %1, %cst {dimension_numbers = #tpu.dot_dimension_numbers<[1], [0], [0], [1], [0, 0, 1, 1], [], []>} : vector<64x512xbf16>, vector<512x384xbf16>, vector<64x384xf32> -> vector<64x384xf32>
    %c0_3 = arith.constant 0 : index
    %c0_4 = arith.constant 0 : index
    %3 = vector.load %arg3[%c0_3, %c0_4] : memref<64x1xf32, #tpu.memory_space<vmem>>, vector<64x1xf32>
    %4 = vector.broadcast %3 : vector<64x1xf32> to vector<64x384xf32>
    %5 = arith.addf %2, %4 : vector<64x384xf32>
    %cst_5 = arith.constant 0.000000e+00 : f32
    %6 = vector.broadcast %cst_5 : f32 to vector<64x384xf32>
    %7 = arith.maximumf %5, %6 : vector<64x384xf32>
    %8 = arith.truncf %7 : vector<64x384xf32> to vector<64x384xbf16>
    %c0_6 = arith.constant 0 : index
    %c0_7 = arith.constant 0 : index
    %9 = vector.load %arg4[%c0_6, %c0_7] : memref<64x384xbf16, #tpu.memory_space<vmem>>, vector<64x384xbf16>
    tpu.vector_store %arg4[%c0_6, %c0_7], %8 {strides = array<i32>} : memref<64x384xbf16, #tpu.memory_space<vmem>>, vector<64x384xbf16>,
    return
  }
  func.func @transform_0(%arg0: i32) -> (i32, i32) {
    %c0_i32 = arith.constant 0 : i32
    %c0_i32_0 = arith.constant 0 : i32
    %c0_i32_1 = arith.constant 0 : i32
    return %c0_i32, %c0_i32_0 : i32, i32
  }
  func.func @transform_1(%arg0: i32) -> (i32, i32) {
    %c0_i32 = arith.constant 0 : i32
    %c0_i32_0 = arith.constant 0 : i32
    return %c0_i32, %arg0 : i32, i32
  }
  func.func @transform_2(%arg0: i32) -> (i32, i32) {
    %c0_i32 = arith.constant 0 : i32
    %c0_i32_0 = arith.constant 0 : i32
    %c0_i32_1 = arith.constant 0 : i32
    return %c0_i32, %c0_i32_0 : i32, i32
  }
  func.func @transform_3(%arg0: i32) -> (i32, i32) {
    %c0_i32 = arith.constant 0 : i32
    %c0_i32_0 = arith.constant 0 : i32
    return %c0_i32, %arg0 : i32, i32
  }
}

module attributes {stable_mosaic.version = 11 : i64} {
  func.func @_gemm_bias_relu_kernel(%arg0: i32, %arg1: memref<64x640xbf16, #tpu.memory_space<vmem>>, %arg2: memref<640x256xbf16, #tpu.memory_space<vmem>>, %arg3: memref<64x1xf32, #tpu.memory_space<vmem>>, %arg4: memref<64x256xbf16, #tpu.memory_space<vmem>>) attributes {dimension_semantics = [#tpu.dimension_semantics<parallel>], iteration_bounds = array<i64: 1>, scalar_prefetch = 0 : i64, scratch_operands = 0 : i64, tpu.core_type = #tpu.core_type<tc>, window_params = [{pipeline_mode = #tpu.pipeline_mode<synchronous>, transform_indices = @transform_0, window_bounds = array<i64: 64, 640>}, {transform_indices = @transform_1, window_bounds = array<i64: 640, 256>}, {pipeline_mode = #tpu.pipeline_mode<synchronous>, transform_indices = @transform_2, window_bounds = array<i64: 64, 1>}, {transform_indices = @transform_3, window_bounds = array<i64: 64, 256>}]} {
    %c0 = arith.constant 0 : index
    %c0_0 = arith.constant 0 : index
    %0 = vector.load %arg1[%c0, %c0_0] : memref<64x640xbf16, #tpu.memory_space<vmem>>, vector<64x640xbf16>
    %c0_1 = arith.constant 0 : index
    %c0_2 = arith.constant 0 : index
    %1 = vector.load %arg2[%c0_1, %c0_2] : memref<640x256xbf16, #tpu.memory_space<vmem>>, vector<640x256xbf16>
    %cst = arith.constant dense<0.000000e+00> : vector<64x256xf32>
    %2 = tpu.matmul %0, %1, %cst {dimension_numbers = #tpu.dot_dimension_numbers<[1], [0], [0], [1], [0, 0, 1, 1], [], []>} : vector<64x640xbf16>, vector<640x256xbf16>, vector<64x256xf32> -> vector<64x256xf32>
    %c0_3 = arith.constant 0 : index
    %c0_4 = arith.constant 0 : index
    %3 = vector.load %arg3[%c0_3, %c0_4] : memref<64x1xf32, #tpu.memory_space<vmem>>, vector<64x1xf32>
    %4 = vector.broadcast %3 : vector<64x1xf32> to vector<64x256xf32>
    %5 = arith.addf %2, %4 : vector<64x256xf32>
    %cst_5 = arith.constant 0.000000e+00 : f32
    %6 = vector.broadcast %cst_5 : f32 to vector<64x256xf32>
    %7 = arith.maximumf %5, %6 : vector<64x256xf32>
    %8 = arith.truncf %7 : vector<64x256xf32> to vector<64x256xbf16>
    %c0_6 = arith.constant 0 : index
    %c0_7 = arith.constant 0 : index
    %9 = vector.load %arg4[%c0_6, %c0_7] : memref<64x256xbf16, #tpu.memory_space<vmem>>, vector<64x256xbf16>
    tpu.vector_store %arg4[%c0_6, %c0_7], %8 {strides = array<i32>} : memref<64x256xbf16, #tpu.memory_space<vmem>>, vector<64x256xbf16>,
    return
  }
  func.func @transform_0(%arg0: i32) -> (i32, i32) {
    %c0_i32 = arith.constant 0 : i32
    %c0_i32_0 = arith.constant 0 : i32
    %c0_i32_1 = arith.constant 0 : i32
    return %c0_i32, %c0_i32_0 : i32, i32
  }
  func.func @transform_1(%arg0: i32) -> (i32, i32) {
    %c0_i32 = arith.constant 0 : i32
    %c0_i32_0 = arith.constant 0 : i32
    return %c0_i32, %arg0 : i32, i32
  }
  func.func @transform_2(%arg0: i32) -> (i32, i32) {
    %c0_i32 = arith.constant 0 : i32
    %c0_i32_0 = arith.constant 0 : i32
    %c0_i32_1 = arith.constant 0 : i32
    return %c0_i32, %c0_i32_0 : i32, i32
  }
  func.func @transform_3(%arg0: i32) -> (i32, i32) {
    %c0_i32 = arith.constant 0 : i32
    %c0_i32_0 = arith.constant 0 : i32
    return %c0_i32, %arg0 : i32, i32
  }
}

module attributes {stable_mosaic.version = 11 : i64} {
  func.func @_gemm_q_bias_relu_kernel(%arg0: i32, %arg1: memref<8x7168xbf16, #tpu.memory_space<vmem>>, %arg2: memref<7168x256xi8, #tpu.memory_space<vmem>>, %arg3: memref<1x256xf32, #tpu.memory_space<vmem>>, %arg4: memref<1x256xf32, #tpu.memory_space<vmem>>, %arg5: memref<8x256xf32, #tpu.memory_space<vmem>>) attributes {dimension_semantics = [#tpu.dimension_semantics<parallel>], iteration_bounds = array<i64: 2>, scalar_prefetch = 0 : i64, scratch_operands = 0 : i64, tpu.core_type = #tpu.core_type<tc>, window_params = [{pipeline_mode = #tpu.pipeline_mode<synchronous>, transform_indices = @transform_0, window_bounds = array<i64: 8, 7168>}, {transform_indices = @transform_1, window_bounds = array<i64: 7168, 256>}, {transform_indices = @transform_2, window_bounds = array<i64: 1, 256>}, {transform_indices = @transform_3, window_bounds = array<i64: 1, 256>}, {transform_indices = @transform_4, window_bounds = array<i64: 8, 256>}]} {
    %c0 = arith.constant 0 : index
    %c0_0 = arith.constant 0 : index
    %0 = vector.load %arg2[%c0, %c0_0] : memref<7168x256xi8, #tpu.memory_space<vmem>>, vector<7168x256xi8>
    %1 = arith.sitofp %0 : vector<7168x256xi8> to vector<7168x256xf32>
    %2 = arith.truncf %1 : vector<7168x256xf32> to vector<7168x256xbf16>
    %c0_1 = arith.constant 0 : index
    %c0_2 = arith.constant 0 : index
    %3 = vector.load %arg1[%c0_1, %c0_2] : memref<8x7168xbf16, #tpu.memory_space<vmem>>, vector<8x7168xbf16>
    %cst = arith.constant dense<0.000000e+00> : vector<8x256xf32>
    %4 = tpu.matmul %3, %2, %cst {dimension_numbers = #tpu.dot_dimension_numbers<[1], [0], [0], [1], [0, 0, 1, 1], [], []>} : vector<8x7168xbf16>, vector<7168x256xbf16>, vector<8x256xf32> -> vector<8x256xf32>
    %c0_3 = arith.constant 0 : index
    %c0_4 = arith.constant 0 : index
    %5 = vector.load %arg3[%c0_3, %c0_4] : memref<1x256xf32, #tpu.memory_space<vmem>>, vector<1x256xf32>
    %6 = vector.broadcast %5 : vector<1x256xf32> to vector<8x256xf32>
    %7 = arith.mulf %4, %6 : vector<8x256xf32>
    %c0_5 = arith.constant 0 : index
    %c0_6 = arith.constant 0 : index
    %8 = vector.load %arg4[%c0_5, %c0_6] : memref<1x256xf32, #tpu.memory_space<vmem>>, vector<1x256xf32>
    %9 = vector.broadcast %8 : vector<1x256xf32> to vector<8x256xf32>
    %10 = arith.addf %7, %9 : vector<8x256xf32>
    %cst_7 = arith.constant 0.000000e+00 : f32
    %11 = vector.broadcast %cst_7 : f32 to vector<8x256xf32>
    %12 = arith.maximumf %10, %11 : vector<8x256xf32>
    %c0_8 = arith.constant 0 : index
    %c0_9 = arith.constant 0 : index
    %13 = vector.load %arg5[%c0_8, %c0_9] : memref<8x256xf32, #tpu.memory_space<vmem>>, vector<8x256xf32>
    tpu.vector_store %arg5[%c0_8, %c0_9], %12 {strides = array<i32>} : memref<8x256xf32, #tpu.memory_space<vmem>>, vector<8x256xf32>,
    return
  }
  func.func @transform_0(%arg0: i32) -> (i32, i32) {
    %c0_i32 = arith.constant 0 : i32
    %c0_i32_0 = arith.constant 0 : i32
    %c0_i32_1 = arith.constant 0 : i32
    return %c0_i32, %c0_i32_0 : i32, i32
  }
  func.func @transform_1(%arg0: i32) -> (i32, i32) {
    %c0_i32 = arith.constant 0 : i32
    %c0_i32_0 = arith.constant 0 : i32
    return %c0_i32, %arg0 : i32, i32
  }
  func.func @transform_2(%arg0: i32) -> (i32, i32) {
    %c0_i32 = arith.constant 0 : i32
    %c0_i32_0 = arith.constant 0 : i32
    return %c0_i32, %arg0 : i32, i32
  }
  func.func @transform_3(%arg0: i32) -> (i32, i32) {
    %c0_i32 = arith.constant 0 : i32
    %c0_i32_0 = arith.constant 0 : i32
    return %c0_i32, %arg0 : i32, i32
  }
  func.func @transform_4(%arg0: i32) -> (i32, i32) {
    %c0_i32 = arith.constant 0 : i32
    %c0_i32_0 = arith.constant 0 : i32
    return %c0_i32, %arg0 : i32, i32
  }
}

</mosaic_0001>

<bundles_post_ra>
// kernel: dqn_forward.4
= control target key start
LH: loop header
LB: loop body
LE: loop exit
PB: predicated region body
PF: predicated region fallthrough
CT: control target
= control target key end

     0   :  { %s2173_s12 = smov 0   ;;  %s2175_s13 = smov 0   ;;  %s2729_s0 = inlined_call_operand.vmem [shape: bf16[32,256], index: 0, kind: input, shape index: {}]   ;;  %s2730_s1 = inlined_call_operand.vmem [shape: bf16[256,1792], index: 1, kind: input, shape index: {}]   ;;  %s2731_s2 = inlined_call_operand.vmem [shape: f32[32,1], index: 2, kind: input, shape index: {}]   ;;  %s2732_s3 = inlined_call_operand.vmem [shape: bf16[32,1792], index: 3, kind: output, shape index: {}]  }
   0x1   :  { %s2177_s14 = smov 0  }
   0x2 LB: > { %s1673_s15 = sadd.s32 4294967295, %s2150_s14   ;;  %s2190_s16 = sadd.s32 1, %s2150_s14   ;;  %s2150_s14 = sphi %s2177_s14, %s2736_s14   ;;  %s2146_s13 = sphi %s2175_s13, %s2735_s13   ;;  %s2142_s12 = sphi %s2173_s12, %s2734_s12  }
   0x3   : > { %s38_s17 = ssub.s32 %s2150_s14, %s2190_s16  ;;  %s41_s18 = sadd.s32 1, %s2146_s13 }
   0x4   : > { %p39_p0 = scmp.eq.s32.totalorder %s38_s17, 0  ;;  %p48_p1 = scmp.ne.s32.totalorder %s2146_s13, %s2142_s12 }
   0x5   : > { %p49_p2 = scmp.eq.s32.totalorder %s2150_s14, 0  ;;  %p99_p3 = scmp.eq.s32.totalorder %s1673_s15, 1 }
   0x6   : > { %s2201_s19 = scalar_select %p39_p0, %s2146_s13, %s41_s18  }
   0x7   : > { %p50_p4 = por %p49_p2, %p48_p1  ;;  %p2203_p5 = por %p99_p3, %p48_p1 }
   0x8   : > { %p1676_p6 = scmp.ge.s32.totalorder %s2150_s14, 2 }
   0xa   : > { %127 = sbr.rel (%p1676_p6) target bundleno = 91 (0x5b), region = 24 }
  0x11   : > { %130 = sbr.rel (!%p50_p4) target bundleno = 91 (0x5b), region = 28  ;;  %s132_s21 = sand.u32 (%p50_p4), 1, %s2146_s13  }
  0x12   : > { %s1886_s22 = smul.u32 (%p50_p4), 28, %s2150_s14 }
  0x13   : > { %s1932_s23 = smul.u32 (%p50_p4), 896, %s132_s21 }
  0x14   : > { %s2213_s26 = scalar_lea.vmem (%p50_p4), %s2730_s1, %s1886_s22 }
  0x15   : > { %v152_v0 = vld [vmem:[%s2213_s26] sm:$0xff] (%p50_p4)  ;;  %v154_v1 = vld [vmem:[%s2213_s26 + $0x8] sm:$0xff] (%p50_p4)  ;;  %v156_v2 = vld [vmem:[%s2213_s26 + $0x10] sm:$0xff] (%p50_p4)  ;;  %s2218_s27 = scalar_lea.vmem (%p50_p4), [#allocation2], %s1932_s23 }
  0x16   : > { %153 = vst [vmem:[%s2218_s27] sm:$0xff] (%p50_p4), %v152_v0  ;;  %155 = vst [vmem:[%s2218_s27 + $0x8] sm:$0xff] (%p50_p4), %v154_v1  ;;  %v158_v3 = vld [vmem:[%s2213_s26 + $0x38] sm:$0xff] (%p50_p4)  ;;  %v160_v4 = vld [vmem:[%s2213_s26 + $0x40] sm:$0xff] (%p50_p4) }
  0x17   : > { %157 = vst [vmem:[%s2218_s27 + $0x10] sm:$0xff] (%p50_p4), %v156_v2  ;;  %v162_v5 = vld [vmem:[%s2213_s26 + $0x48] sm:$0xff] (%p50_p4)  ;;  %159 = vst [vmem:[%s2218_s27 + $0x1c] sm:$0xff] (%p50_p4), %v158_v3  ;;  %v164_v6 = vld [vmem:[%s2213_s26 + $0x70] sm:$0xff] (%p50_p4) }
  0x18   : > { %161 = vst [vmem:[%s2218_s27 + $0x24] sm:$0xff] %v160_v4  ;;  %163 = vst [vmem:[%s2218_s27 + $0x2c] sm:$0xff] %v162_v5  ;;  %v166_v7 = vld [vmem:[%s2213_s26 + $0x78] sm:$0xff]  ;;  %v168_v8 = vld [vmem:[%s2213_s26 + $0x80] sm:$0xff] }
  0x19   : > { %165 = vst [vmem:[%s2218_s27 + $0x38] sm:$0xff] %v164_v6  ;;  %167 = vst [vmem:[%s2218_s27 + $0x40] sm:$0xff] %v166_v7  ;;  %v170_v9 = vld [vmem:[%s2213_s26 + $0xa8] sm:$0xff]  ;;  %v172_v10 = vld [vmem:[%s2213_s26 + $0xb0] sm:$0xff] }
  0x1a   : > { %169 = vst [vmem:[%s2218_s27 + $0x48] sm:$0xff] %v168_v8  ;;  %v174_v11 = vld [vmem:[%s2213_s26 + $0xb8] sm:$0xff]  ;;  %171 = vst [vmem:[%s2218_s27 + $0x54] sm:$0xff] %v170_v9  ;;  %v176_v12 = vld [vmem:[%s2213_s26 + $0xe0] sm:$0xff] }
  0x1b   : > { %173 = vst [vmem:[%s2218_s27 + $0x5c] sm:$0xff] %v172_v10  ;;  %175 = vst [vmem:[%s2218_s27 + $0x64] sm:$0xff] %v174_v11  ;;  %v178_v13 = vld [vmem:[%s2213_s26 + $0xe8] sm:$0xff]  ;;  %v180_v14 = vld [vmem:[%s2213_s26 + $0xf0] sm:$0xff] }
  0x1c   : > { %177 = vst [vmem:[%s2218_s27 + $0x70] sm:$0xff] %v176_v12  ;;  %179 = vst [vmem:[%s2218_s27 + $0x78] sm:$0xff] %v178_v13  ;;  %v182_v15 = vld [vmem:[%s2213_s26 + $0x118] sm:$0xff]  ;;  %v184_v16 = vld [vmem:[%s2213_s26 + $0x120] sm:$0xff] }
  0x1d   : > { %181 = vst [vmem:[%s2218_s27 + $0x80] sm:$0xff] %v180_v14  ;;  %v186_v17 = vld [vmem:[%s2213_s26 + $0x128] sm:$0xff]  ;;  %183 = vst [vmem:[%s2218_s27 + $0x8c] sm:$0xff] %v182_v15  ;;  %v188_v18 = vld [vmem:[%s2213_s26 + $0x150] sm:$0xff] }
  0x1e   : > { %185 = vst [vmem:[%s2218_s27 + $0x94] sm:$0xff] %v184_v16  ;;  %187 = vst [vmem:[%s2218_s27 + $0x9c] sm:$0xff] %v186_v17  ;;  %v190_v19 = vld [vmem:[%s2213_s26 + $0x158] sm:$0xff]  ;;  %v192_v20 = vld [vmem:[%s2213_s26 + $0x160] sm:$0xff] }
  0x1f   : > { %189 = vst [vmem:[%s2218_s27 + $0xa8] sm:$0xff] %v188_v18  ;;  %191 = vst [vmem:[%s2218_s27 + $0xb0] sm:$0xff] %v190_v19  ;;  %v194_v21 = vld [vmem:[%s2213_s26 + $0x188] sm:$0xff]  ;;  %v196_v22 = vld [vmem:[%s2213_s26 + $0x190] sm:$0xff] }
  0x20   : > { %193 = vst [vmem:[%s2218_s27 + $0xb8] sm:$0xff] %v192_v20  ;;  %v198_v23 = vld [vmem:[%s2213_s26 + $0x198] sm:$0xff]  ;;  %195 = vst [vmem:[%s2218_s27 + $0xc4] sm:$0xff] %v194_v21  ;;  %v200_v24 = vld [vmem:[%s2213_s26 + $0x1c0] sm:$0xff] }
  0x21   : > { %197 = vst [vmem:[%s2218_s27 + $0xcc] sm:$0xff] %v196_v22  ;;  %199 = vst [vmem:[%s2218_s27 + $0xd4] sm:$0xff] %v198_v23  ;;  %v202_v25 = vld [vmem:[%s2213_s26 + $0x1c8] sm:$0xff]  ;;  %v204_v26 = vld [vmem:[%s2213_s26 + $0x1d0] sm:$0xff] }
  0x22   : > { %201 = vst [vmem:[%s2218_s27 + $0xe0] sm:$0xff] %v200_v24  ;;  %203 = vst [vmem:[%s2218_s27 + $0xe8] sm:$0xff] %v202_v25  ;;  %v206_v27 = vld [vmem:[%s2213_s26 + $0x1f8] sm:$0xff]  ;;  %v208_v28 = vld [vmem:[%s2213_s26 + $0x200] sm:$0xff] }
  0x23   : > { %205 = vst [vmem:[%s2218_s27 + $0xf0] sm:$0xff] %v204_v26  ;;  %v210_v29 = vld [vmem:[%s2213_s26 + $0x208] sm:$0xff]  ;;  %207 = vst [vmem:[%s2218_s27 + $0xfc] sm:$0xff] %v206_v27  ;;  %v212_v30 = vld [vmem:[%s2213_s26 + $0x230] sm:$0xff] }
  0x24   : > { %209 = vst [vmem:[%s2218_s27 + $0x104] sm:$0xff] %v208_v28  ;;  %211 = vst [vmem:[%s2218_s27 + $0x10c] sm:$0xff] %v210_v29  ;;  %v214_v31 = vld [vmem:[%s2213_s26 + $0x238] sm:$0xff]  ;;  %v216_v32 = vld [vmem:[%s2213_s26 + $0x240] sm:$0xff] }
  0x25   : > { %213 = vst [vmem:[%s2218_s27 + $0x118] sm:$0xff] %v212_v30  ;;  %215 = vst [vmem:[%s2218_s27 + $0x120] sm:$0xff] %v214_v31  ;;  %v218_v33 = vld [vmem:[%s2213_s26 + $0x268] sm:$0xff]  ;;  %v220_v34 = vld [vmem:[%s2213_s26 + $0x270] sm:$0xff] }
  0x26   : > { %217 = vst [vmem:[%s2218_s27 + $0x128] sm:$0xff] %v216_v32  ;;  %v222_v35 = vld [vmem:[%s2213_s26 + $0x278] sm:$0xff]  ;;  %219 = vst [vmem:[%s2218_s27 + $0x134] sm:$0xff] %v218_v33  ;;  %v224_v36 = vld [vmem:[%s2213_s26 + $0x2a0] sm:$0xff] }
  0x27   : > { %221 = vst [vmem:[%s2218_s27 + $0x13c] sm:$0xff] %v220_v34  ;;  %223 = vst [vmem:[%s2218_s27 + $0x144] sm:$0xff] %v222_v35  ;;  %v226_v37 = vld [vmem:[%s2213_s26 + $0x2a8] sm:$0xff]  ;;  %v228_v38 = vld [vmem:[%s2213_s26 + $0x2b0] sm:$0xff] }
  0x28   : > { %225 = vst [vmem:[%s2218_s27 + $0x150] sm:$0xff] %v224_v36  ;;  %227 = vst [vmem:[%s2218_s27 + $0x158] sm:$0xff] %v226_v37  ;;  %v230_v39 = vld [vmem:[%s2213_s26 + $0x2d8] sm:$0xff]  ;;  %v232_v40 = vld [vmem:[%s2213_s26 + $0x2e0] sm:$0xff] }
  0x29   : > { %229 = vst [vmem:[%s2218_s27 + $0x160] sm:$0xff] %v228_v38  ;;  %v234_v41 = vld [vmem:[%s2213_s26 + $0x2e8] sm:$0xff]  ;;  %231 = vst [vmem:[%s2218_s27 + $0x16c] sm:$0xff] %v230_v39  ;;  %v236_v42 = vld [vmem:[%s2213_s26 + $0x310] sm:$0xff] }
  0x2a   : > { %233 = vst [vmem:[%s2218_s27 + $0x174] sm:$0xff] %v232_v40  ;;  %235 = vst [vmem:[%s2218_s27 + $0x17c] sm:$0xff] %v234_v41  ;;  %v238_v43 = vld [vmem:[%s2213_s26 + $0x318] sm:$0xff]  ;;  %v240_v44 = vld [vmem:[%s2213_s26 + $0x320] sm:$0xff] }
  0x2b   : > { %237 = vst [vmem:[%s2218_s27 + $0x188] sm:$0xff] %v236_v42  ;;  %239 = vst [vmem:[%s2218_s27 + $0x190] sm:$0xff] %v238_v43  ;;  %v242_v45 = vld [vmem:[%s2213_s26 + $0x348] sm:$0xff]  ;;  %v244_v46 = vld [vmem:[%s2213_s26 + $0x350] sm:$0xff] }
  0x2c   : > { %241 = vst [vmem:[%s2218_s27 + $0x198] sm:$0xff] %v240_v44  ;;  %v246_v47 = vld [vmem:[%s2213_s26 + $0x358] sm:$0xff]  ;;  %243 = vst [vmem:[%s2218_s27 + $0x1a4] sm:$0xff] %v242_v45  ;;  %v248_v48 = vld [vmem:[%s2213_s26 + $0x380] sm:$0xff] }
  0x2d   : > { %245 = vst [vmem:[%s2218_s27 + $0x1ac] sm:$0xff] %v244_v46  ;;  %247 = vst [vmem:[%s2218_s27 + $0x1b4] sm:$0xff] %v246_v47  ;;  %v250_v49 = vld [vmem:[%s2213_s26 + $0x388] sm:$0xff]  ;;  %v252_v50 = vld [vmem:[%s2213_s26 + $0x390] sm:$0xff] }
  0x2e   : > { %249 = vst [vmem:[%s2218_s27 + $0x1c0] sm:$0xff] %v248_v48  ;;  %251 = vst [vmem:[%s2218_s27 + $0x1c8] sm:$0xff] %v250_v49  ;;  %v254_v51 = vld [vmem:[%s2213_s26 + $0x3b8] sm:$0xff]  ;;  %v256_v52 = vld [vmem:[%s2213_s26 + $0x3c0] sm:$0xff] }
  0x2f   : > { %253 = vst [vmem:[%s2218_s27 + $0x1d0] sm:$0xff] %v252_v50  ;;  %v258_v53 = vld [vmem:[%s2213_s26 + $0x3c8] sm:$0xff]  ;;  %255 = vst [vmem:[%s2218_s27 + $0x1dc] sm:$0xff] %v254_v51  ;;  %v260_v54 = vld [vmem:[%s2213_s26 + $0x3f0] sm:$0xff] }
  0x30   : > { %257 = vst [vmem:[%s2218_s27 + $0x1e4] sm:$0xff] %v256_v52  ;;  %259 = vst [vmem:[%s2218_s27 + $0x1ec] sm:$0xff] %v258_v53  ;;  %v262_v55 = vld [vmem:[%s2213_s26 + $0x3f8] sm:$0xff]  ;;  %v264_v56 = vld [vmem:[%s2213_s26 + $0x400] sm:$0xff] }
  0x31   : > { %261 = vst [vmem:[%s2218_s27 + $0x1f8] sm:$0xff] %v260_v54  ;;  %263 = vst [vmem:[%s2218_s27 + $0x200] sm:$0xff] %v262_v55  ;;  %v266_v57 = vld [vmem:[%s2213_s26 + $0x428] sm:$0xff]  ;;  %v268_v58 = vld [vmem:[%s2213_s26 + $0x430] sm:$0xff] }
  0x32   : > { %265 = vst [vmem:[%s2218_s27 + $0x208] sm:$0xff] %v264_v56  ;;  %v270_v59 = vld [vmem:[%s2213_s26 + $0x438] sm:$0xff]  ;;  %267 = vst [vmem:[%s2218_s27 + $0x214] sm:$0xff] %v266_v57  ;;  %v272_v60 = vld [vmem:[%s2213_s26 + $0x460] sm:$0xff] }
  0x33   : > { %269 = vst [vmem:[%s2218_s27 + $0x21c] sm:$0xff] %v268_v58  ;;  %271 = vst [vmem:[%s2218_s27 + $0x224] sm:$0xff] %v270_v59  ;;  %v274_v61 = vld [vmem:[%s2213_s26 + $0x468] sm:$0xff]  ;;  %v276_v62 = vld [vmem:[%s2213_s26 + $0x470] sm:$0xff] }
  0x34   : > { %273 = vst [vmem:[%s2218_s27 + $0x230] sm:$0xff] %v272_v60  ;;  %275 = vst [vmem:[%s2218_s27 + $0x238] sm:$0xff] %v274_v61  ;;  %v278_v63 = vld [vmem:[%s2213_s26 + $0x498] sm:$0xff]  ;;  %v280_v0 = vld [vmem:[%s2213_s26 + $0x4a0] sm:$0xff] }
  0x35   : > { %277 = vst [vmem:[%s2218_s27 + $0x240] sm:$0xff] %v276_v62  ;;  %v282_v1 = vld [vmem:[%s2213_s26 + $0x4a8] sm:$0xff]  ;;  %279 = vst [vmem:[%s2218_s27 + $0x24c] sm:$0xff] %v278_v63  ;;  %v284_v2 = vld [vmem:[%s2213_s26 + $0x4d0] sm:$0xff] }
  0x36   : > { %281 = vst [vmem:[%s2218_s27 + $0x254] sm:$0xff] %v280_v0  ;;  %283 = vst [vmem:[%s2218_s27 + $0x25c] sm:$0xff] %v282_v1  ;;  %v286_v3 = vld [vmem:[%s2213_s26 + $0x4d8] sm:$0xff]  ;;  %v288_v4 = vld [vmem:[%s2213_s26 + $0x4e0] sm:$0xff] }
  0x37   : > { %285 = vst [vmem:[%s2218_s27 + $0x268] sm:$0xff] %v284_v2  ;;  %287 = vst [vmem:[%s2218_s27 + $0x270] sm:$0xff] %v286_v3  ;;  %v290_v5 = vld [vmem:[%s2213_s26 + $0x508] sm:$0xff]  ;;  %v292_v6 = vld [vmem:[%s2213_s26 + $0x510] sm:$0xff] }
  0x38   : > { %289 = vst [vmem:[%s2218_s27 + $0x278] sm:$0xff] %v288_v4  ;;  %v294_v7 = vld [vmem:[%s2213_s26 + $0x518] sm:$0xff]  ;;  %291 = vst [vmem:[%s2218_s27 + $0x284] sm:$0xff] %v290_v5  ;;  %v296_v8 = vld [vmem:[%s2213_s26 + $0x540] sm:$0xff] }
  0x39   : > { %293 = vst [vmem:[%s2218_s27 + $0x28c] sm:$0xff] %v292_v6  ;;  %295 = vst [vmem:[%s2218_s27 + $0x294] sm:$0xff] %v294_v7  ;;  %v298_v9 = vld [vmem:[%s2213_s26 + $0x548] sm:$0xff]  ;;  %v300_v10 = vld [vmem:[%s2213_s26 + $0x550] sm:$0xff] }
  0x3a   : > { %297 = vst [vmem:[%s2218_s27 + $0x2a0] sm:$0xff] %v296_v8  ;;  %299 = vst [vmem:[%s2218_s27 + $0x2a8] sm:$0xff] %v298_v9  ;;  %v302_v11 = vld [vmem:[%s2213_s26 + $0x578] sm:$0xff]  ;;  %v304_v12 = vld [vmem:[%s2213_s26 + $0x580] sm:$0xff] }
  0x3b   : > { %301 = vst [vmem:[%s2218_s27 + $0x2b0] sm:$0xff] %v300_v10  ;;  %v306_v13 = vld [vmem:[%s2213_s26 + $0x588] sm:$0xff]  ;;  %303 = vst [vmem:[%s2218_s27 + $0x2bc] sm:$0xff] %v302_v11  ;;  %v308_v14 = vld [vmem:[%s2213_s26 + $0x5b0] sm:$0xff] }
  0x3c   : > { %305 = vst [vmem:[%s2218_s27 + $0x2c4] sm:$0xff] %v304_v12  ;;  %307 = vst [vmem:[%s2218_s27 + $0x2cc] sm:$0xff] %v306_v13  ;;  %v310_v15 = vld [vmem:[%s2213_s26 + $0x5b8] sm:$0xff]  ;;  %v312_v16 = vld [vmem:[%s2213_s26 + $0x5c0] sm:$0xff] }
  0x3d   : > { %309 = vst [vmem:[%s2218_s27 + $0x2d8] sm:$0xff] %v308_v14  ;;  %311 = vst [vmem:[%s2218_s27 + $0x2e0] sm:$0xff] %v310_v15  ;;  %v314_v17 = vld [vmem:[%s2213_s26 + $0x5e8] sm:$0xff]  ;;  %v316_v18 = vld [vmem:[%s2213_s26 + $0x5f0] sm:$0xff] }
  0x3e   : > { %313 = vst [vmem:[%s2218_s27 + $0x2e8] sm:$0xff] %v312_v16  ;;  %v318_v19 = vld [vmem:[%s2213_s26 + $0x5f8] sm:$0xff]  ;;  %315 = vst [vmem:[%s2218_s27 + $0x2f4] sm:$0xff] %v314_v17  ;;  %v320_v20 = vld [vmem:[%s2213_s26 + $0x620] sm:$0xff] }
  0x3f   : > { %317 = vst [vmem:[%s2218_s27 + $0x2fc] sm:$0xff] %v316_v18  ;;  %319 = vst [vmem:[%s2218_s27 + $0x304] sm:$0xff] %v318_v19  ;;  %v322_v21 = vld [vmem:[%s2213_s26 + $0x628] sm:$0xff]  ;;  %v324_v22 = vld [vmem:[%s2213_s26 + $0x630] sm:$0xff] }
  0x40   : > { %321 = vst [vmem:[%s2218_s27 + $0x310] sm:$0xff] %v320_v20  ;;  %323 = vst [vmem:[%s2218_s27 + $0x318] sm:$0xff] %v322_v21  ;;  %v326_v23 = vld [vmem:[%s2213_s26 + $0x658] sm:$0xff]  ;;  %v328_v24 = vld [vmem:[%s2213_s26 + $0x660] sm:$0xff] }
  0x41   : > { %325 = vst [vmem:[%s2218_s27 + $0x320] sm:$0xff] %v324_v22  ;;  %v330_v25 = vld [vmem:[%s2213_s26 + $0x668] sm:$0xff]  ;;  %327 = vst [vmem:[%s2218_s27 + $0x32c] sm:$0xff] %v326_v23  ;;  %v332_v26 = vld [vmem:[%s2213_s26 + $0x690] sm:$0xff] }
  0x42   : > { %329 = vst [vmem:[%s2218_s27 + $0x334] sm:$0xff] %v328_v24  ;;  %331 = vst [vmem:[%s2218_s27 + $0x33c] sm:$0xff] %v330_v25  ;;  %v334_v27 = vld [vmem:[%s2213_s26 + $0x698] sm:$0xff]  ;;  %v336_v28 = vld [vmem:[%s2213_s26 + $0x6a0] sm:$0xff] }
  0x43   : > { %333 = vst [vmem:[%s2218_s27 + $0x348] sm:$0xff] %v332_v26  ;;  %335 = vst [vmem:[%s2218_s27 + $0x350] sm:$0xff] %v334_v27  ;;  %v338_v29 = vld [vmem:[%s2213_s26 + $0x6c8] sm:$0xff]  ;;  %v340_v30 = vld [vmem:[%s2213_s26 + $0x6d0] sm:$0xff] }
  0x44   : > { %337 = vst [vmem:[%s2218_s27 + $0x358] sm:$0xff] %v336_v28  ;;  %v342_v31 = vld [vmem:[%s2213_s26 + $0x6d8] sm:$0xff]  ;;  %339 = vst [vmem:[%s2218_s27 + $0x364] sm:$0xff] %v338_v29  ;;  %v1680_v33 = vld [vmem:[%s2213_s26 + $0x50] sm:$0xf] }
  0x45   : > { %341 = vst [vmem:[%s2218_s27 + $0x36c] sm:$0xff] %v340_v30  ;;  %343 = vst [vmem:[%s2218_s27 + $0x374] sm:$0xff] %v342_v31  ;;  %v1678_v32 = vld [vmem:[%s2213_s26 + $0x18] sm:$0xf]  ;;  %v1682_v34 = vld [vmem:[%s2213_s26 + $0x88] sm:$0xf] }
  0x46   : > { %1679 = vst [vmem:[%s2218_s27 + $0x18] sm:$0xf] %v1678_v32  ;;  %1681 = vst [vmem:[%s2218_s27 + $0x34] sm:$0xf] %v1680_v33  ;;  %v1684_v35 = vld [vmem:[%s2213_s26 + $0xc0] sm:$0xf] }
  0x47   : > { %1683 = vst [vmem:[%s2218_s27 + $0x50] sm:$0xf] %v1682_v34  ;;  %v1686_v36 = vld [vmem:[%s2213_s26 + $0xf8] sm:$0xf]  ;;  %v1688_v37 = vld [vmem:[%s2213_s26 + $0x130] sm:$0xf] }
  0x48   : > { %1685 = vst [vmem:[%s2218_s27 + $0x6c] sm:$0xf] %v1684_v35  ;;  %1687 = vst [vmem:[%s2218_s27 + $0x88] sm:$0xf] %v1686_v36  ;;  %v1690_v38 = vld [vmem:[%s2213_s26 + $0x168] sm:$0xf] }
  0x49   : > { %1689 = vst [vmem:[%s2218_s27 + $0xa4] sm:$0xf] %v1688_v37  ;;  %v1692_v39 = vld [vmem:[%s2213_s26 + $0x1a0] sm:$0xf]  ;;  %v1694_v40 = vld [vmem:[%s2213_s26 + $0x1d8] sm:$0xf] }
  0x4a   : > { %1691 = vst [vmem:[%s2218_s27 + $0xc0] sm:$0xf] %v1690_v38  ;;  %1693 = vst [vmem:[%s2218_s27 + $0xdc] sm:$0xf] %v1692_v39  ;;  %v1696_v41 = vld [vmem:[%s2213_s26 + $0x210] sm:$0xf] }
  0x4b   : > { %1695 = vst [vmem:[%s2218_s27 + $0xf8] sm:$0xf] %v1694_v40  ;;  %v1698_v42 = vld [vmem:[%s2213_s26 + $0x248] sm:$0xf]  ;;  %v1700_v43 = vld [vmem:[%s2213_s26 + $0x280] sm:$0xf] }
  0x4c   : > { %1697 = vst [vmem:[%s2218_s27 + $0x114] sm:$0xf] %v1696_v41  ;;  %1699 = vst [vmem:[%s2218_s27 + $0x130] sm:$0xf] %v1698_v42  ;;  %v1702_v44 = vld [vmem:[%s2213_s26 + $0x2b8] sm:$0xf] }
  0x4d   : > { %1701 = vst [vmem:[%s2218_s27 + $0x14c] sm:$0xf] %v1700_v43  ;;  %v1704_v45 = vld [vmem:[%s2213_s26 + $0x2f0] sm:$0xf]  ;;  %v1706_v46 = vld [vmem:[%s2213_s26 + $0x328] sm:$0xf] }
  0x4e   : > { %1703 = vst [vmem:[%s2218_s27 + $0x168] sm:$0xf] %v1702_v44  ;;  %1705 = vst [vmem:[%s2218_s27 + $0x184] sm:$0xf] %v1704_v45  ;;  %v1708_v47 = vld [vmem:[%s2213_s26 + $0x360] sm:$0xf] }
  0x4f   : > { %1707 = vst [vmem:[%s2218_s27 + $0x1a0] sm:$0xf] %v1706_v46  ;;  %v1710_v48 = vld [vmem:[%s2213_s26 + $0x398] sm:$0xf]  ;;  %v1712_v49 = vld [vmem:[%s2213_s26 + $0x3d0] sm:$0xf] }
  0x50   : > { %1709 = vst [vmem:[%s2218_s27 + $0x1bc] sm:$0xf] %v1708_v47  ;;  %1711 = vst [vmem:[%s2218_s27 + $0x1d8] sm:$0xf] %v1710_v48  ;;  %v1714_v50 = vld [vmem:[%s2213_s26 + $0x408] sm:$0xf] }
  0x51   : > { %1713 = vst [vmem:[%s2218_s27 + $0x1f4] sm:$0xf] %v1712_v49  ;;  %v1716_v51 = vld [vmem:[%s2213_s26 + $0x440] sm:$0xf]  ;;  %v1718_v52 = vld [vmem:[%s2213_s26 + $0x478] sm:$0xf] }
  0x52   : > { %1715 = vst [vmem:[%s2218_s27 + $0x210] sm:$0xf] %v1714_v50  ;;  %1717 = vst [vmem:[%s2218_s27 + $0x22c] sm:$0xf] %v1716_v51  ;;  %v1720_v53 = vld [vmem:[%s2213_s26 + $0x4b0] sm:$0xf] }
  0x53   : > { %1719 = vst [vmem:[%s2218_s27 + $0x248] sm:$0xf] %v1718_v52  ;;  %v1722_v54 = vld [vmem:[%s2213_s26 + $0x4e8] sm:$0xf]  ;;  %v1724_v55 = vld [vmem:[%s2213_s26 + $0x520] sm:$0xf] }
  0x54   : > { %1721 = vst [vmem:[%s2218_s27 + $0x264] sm:$0xf] %v1720_v53  ;;  %1723 = vst [vmem:[%s2218_s27 + $0x280] sm:$0xf] %v1722_v54  ;;  %v1726_v56 = vld [vmem:[%s2213_s26 + $0x558] sm:$0xf] }
  0x55   : > { %1725 = vst [vmem:[%s2218_s27 + $0x29c] sm:$0xf] %v1724_v55  ;;  %v1728_v57 = vld [vmem:[%s2213_s26 + $0x590] sm:$0xf]  ;;  %v1730_v58 = vld [vmem:[%s2213_s26 + $0x5c8] sm:$0xf] }
  0x56   : > { %1727 = vst [vmem:[%s2218_s27 + $0x2b8] sm:$0xf] %v1726_v56  ;;  %1729 = vst [vmem:[%s2218_s27 + $0x2d4] sm:$0xf] %v1728_v57  ;;  %v1732_v59 = vld [vmem:[%s2213_s26 + $0x600] sm:$0xf] }
  0x57   : > { %1731 = vst [vmem:[%s2218_s27 + $0x2f0] sm:$0xf] %v1730_v58  ;;  %v1734_v60 = vld [vmem:[%s2213_s26 + $0x638] sm:$0xf]  ;;  %v1736_v61 = vld [vmem:[%s2213_s26 + $0x670] sm:$0xf] }
  0x58   : > { %1733 = vst [vmem:[%s2218_s27 + $0x30c] sm:$0xf] %v1732_v59  ;;  %1735 = vst [vmem:[%s2218_s27 + $0x328] sm:$0xf] %v1734_v60  ;;  %v1738_v62 = vld [vmem:[%s2213_s26 + $0x6a8] sm:$0xf] }
  0x59   : > { %1737 = vst [vmem:[%s2218_s27 + $0x344] sm:$0xf] %v1736_v61  ;;  %v1740_v63 = vld [vmem:[%s2213_s26 + $0x6e0] sm:$0xf]  ;;  %1739 = vst [vmem:[%s2218_s27 + $0x360] sm:$0xf] %v1738_v62 }
  0x5a   : > { %1741 = vst [vmem:[%s2218_s27 + $0x37c] sm:$0xf] %v1740_v63 }
  0x5b PF: > { %p1742_p7 = scmp.ge.s32.totalorder %s2150_s14, 1  ;;  %p419_p8 = scmp.lt.s32.totalorder %s2150_s14, 3 }
  0x5d   : > { %p420_p9 = pnand %p1742_p7, %p419_p8 }
  0x5e   : > { %s426_s28 = sand.u32 (!%p420_p9), 1, %s2142_s12   ;;  %v2479_v0 = vld [vmem:[%s2729_s0 + $0x4] ss:$8 sps:$4 sm:$0xff] (!%p420_p9)   ;;  %v2152_v12 = vmov (!%p420_p9), 0   ;;  %v2550_v62 = vld [vmem:[%s2729_s0] ss:$8 sps:$4 sm:$0xff] (!%p420_p9)  }
  0x5f   : > { %423 = sbr.rel (%p420_p9) target bundleno = 466 (0x1d2), region = 54  ;;  %1235 = vmatprep.mubr.bf16.mxu0 (!%p420_p9), %v2479_v0  ;;  %1288 = vmatprep.mubr.bf16.mxu1 (!%p420_p9), %v2479_v0 }
  0x60   : > { %s1933_s4 = smul.u32 (!%p420_p9), 896, %s426_s28  ;;  %1960 = vset.pattern.permute.xlu0 (!%p420_p9), %v2152_v12  ;;  %1961 = vset.pattern.permute.xlu1 (!%p420_p9), %v2152_v12  ;;  %v2573_v12 = vld [vmem:[%s2729_s0 + $0x10] ss:$8 sps:$4 sm:$0xff] (!%p420_p9)  }
  0x61   : > { %s1934_s27 = smul.u32 (!%p420_p9), 112, %s426_s28 }
  0x62   : > { %s2485_s5 = scalar_lea.vmem (!%p420_p9), [#allocation2], %s1933_s4 }
  0x63   : > { %v1962_v1 = vld [vmem:[%s2485_s5 + $0x4] ss:$28 sps:$4 sm:$0xff] (!%p420_p9)   ;;  %v1965_v3 = vld [vmem:[%s2485_s5 + $0x3c] ss:$28 sps:$4 sm:$0xff] (!%p420_p9)   ;;  %v1968_v5 = vld [vmem:[%s2485_s5 + $0x74] ss:$28 sps:$4 sm:$0xff] (!%p420_p9)  }
  0x64   : > { %v1964_v2 = vld [vmem:[%s2485_s5] ss:$28 sps:$4 sm:$0xff] (!%p420_p9)   ;;  %1203 = vmatprep.subr.bf16.mxu0 (!%p420_p9), %v1962_v1  ;;  %v1967_v4 = vld [vmem:[%s2485_s5 + $0x38] ss:$28 sps:$4 sm:$0xff] (!%p420_p9)   ;;  %v1970_v6 = vld [vmem:[%s2485_s5 + $0x70] ss:$28 sps:$4 sm:$0xff] (!%p420_p9)  }
  0x65   : > { %1204 = vmatpush1.bf16.msra.mxu0 (!%p420_p9), %v1964_v2  ;;  %v1971_v7 = vld [vmem:[%s2485_s5 + $0xac] ss:$28 sps:$4 sm:$0xff] (!%p420_p9)   ;;  %v1974_v11 = vld [vmem:[%s2485_s5 + $0xe4] ss:$28 sps:$4 sm:$0xff] (!%p420_p9)   ;;  %v1995_v16 = vld [vmem:[%s2485_s5 + $0x7c] ss:$28 sps:$4 sm:$0xff] (!%p420_p9)  }
  0x66   : > { %1205 = vmatprep.subr.bf16.mxu0 %v1965_v3  ;;  %v1983_v8 = vld [vmem:[%s2485_s5 + $0xc] ss:$28 sps:$4 sm:$0xff]   ;;  %v1989_v13 = vld [vmem:[%s2485_s5 + $0x44] ss:$28 sps:$4 sm:$0xff]   ;;  %v1977_v17 = vld [vmem:[%s2485_s5 + $0x11c] ss:$28 sps:$4 sm:$0xff]  }
  0x67   : > { %v1985_v9 = vld [vmem:[%s2485_s5 + $0x8] ss:$28 sps:$4 sm:$0xff]   ;;  %1256 = vmatprep.subr.bf16.mxu1 %v1983_v8  ;;  %v1991_v14 = vld [vmem:[%s2485_s5 + $0x40] ss:$28 sps:$4 sm:$0xff]   ;;  %v1997_v18 = vld [vmem:[%s2485_s5 + $0x78] ss:$28 sps:$4 sm:$0xff]  }
  0x68   : > { %v1973_v10 = vld [vmem:[%s2485_s5 + $0xa8] ss:$28 sps:$4 sm:$0xff]   ;;  %1257 = vmatpush1.bf16.msra.mxu1 %v1985_v9  ;;  %v1976_v15 = vld [vmem:[%s2485_s5 + $0xe0] ss:$28 sps:$4 sm:$0xff]   ;;  %v2001_v19 = vld [vmem:[%s2485_s5 + $0xb4] ss:$28 sps:$4 sm:$0xff]  }
  0x69   : > { %1206 = vmatpush1.bf16.msra.mxu0 %v1967_v4  ;;  %1258 = vmatprep.subr.bf16.mxu1 %v1989_v13  ;;  %v1979_v20 = vld [vmem:[%s2485_s5 + $0x118] ss:$28 sps:$4 sm:$0xff]   ;;  %v2003_v22 = vld [vmem:[%s2485_s5 + $0xb0] ss:$28 sps:$4 sm:$0xff]   ;;  %v2009_v26 = vld [vmem:[%s2485_s5 + $0xe8] ss:$28 sps:$4 sm:$0xff]  }
  0x6a   : > { %1207 = vmatprep.subr.bf16.mxu0 %v1968_v5  ;;  %v1980_v21 = vld [vmem:[%s2485_s5 + $0x154] ss:$28 sps:$4 sm:$0xff]   ;;  %v2007_v23 = vld [vmem:[%s2485_s5 + $0xec] ss:$28 sps:$4 sm:$0xff]   ;;  %v2013_v27 = vld [vmem:[%s2485_s5 + $0x124] ss:$28 sps:$4 sm:$0xff]  }
  0x6b   : > { %v1982_v24 = vld [vmem:[%s2485_s5 + $0x150] ss:$28 sps:$4 sm:$0xff]   ;;  %v1988_v28 = vld [vmem:[%s2485_s5 + $0x188] ss:$28 sps:$4 sm:$0xff]   ;;  %v2015_v30 = vld [vmem:[%s2485_s5 + $0x120] ss:$28 sps:$4 sm:$0xff]  }
  0x6c   : > { %1259 = vmatpush1.bf16.msra.mxu1 %v1991_v14  ;;  %v1986_v25 = vld [vmem:[%s2485_s5 + $0x18c] ss:$28 sps:$4 sm:$0xff]   ;;  %v1992_v29 = vld [vmem:[%s2485_s5 + $0x1c4] ss:$28 sps:$4 sm:$0xff]   ;;  %v2019_v31 = vld [vmem:[%s2485_s5 + $0x15c] ss:$28 sps:$4 sm:$0xff]  }
  0x6d   : > { %1208 = vmatpush1.bf16.msra.mxu0 %v1970_v6  ;;  %1260 = vmatprep.subr.bf16.mxu1 %v1995_v16  ;;  %v1994_v32 = vld [vmem:[%s2485_s5 + $0x1c0] ss:$28 sps:$4 sm:$0xff]   ;;  %v2021_v34 = vld [vmem:[%s2485_s5 + $0x158] ss:$28 sps:$4 sm:$0xff]   ;;  %v2027_v38 = vld [vmem:[%s2485_s5 + $0x190] ss:$28 sps:$4 sm:$0xff]  }
  0x6e   : > { %1209 = vmatprep.subr.bf16.mxu0 %v1971_v7  ;;  %v1998_v33 = vld [vmem:[%s2485_s5 + $0x1fc] ss:$28 sps:$4 sm:$0xff]   ;;  %v2025_v35 = vld [vmem:[%s2485_s5 + $0x194] ss:$28 sps:$4 sm:$0xff]   ;;  %v2031_v39 = vld [vmem:[%s2485_s5 + $0x1cc] ss:$28 sps:$4 sm:$0xff]  }
  0x6f   : > { %v2000_v36 = vld [vmem:[%s2485_s5 + $0x1f8] ss:$28 sps:$4 sm:$0xff]   ;;  %v2006_v40 = vld [vmem:[%s2485_s5 + $0x230] ss:$28 sps:$4 sm:$0xff]   ;;  %v2033_v42 = vld [vmem:[%s2485_s5 + $0x1c8] ss:$28 sps:$4 sm:$0xff]  }
  0x70   : > { %1261 = vmatpush1.bf16.msra.mxu1 %v1997_v18  ;;  %v2004_v37 = vld [vmem:[%s2485_s5 + $0x234] ss:$28 sps:$4 sm:$0xff]   ;;  %v2010_v41 = vld [vmem:[%s2485_s5 + $0x26c] ss:$28 sps:$4 sm:$0xff]   ;;  %v2037_v43 = vld [vmem:[%s2485_s5 + $0x204] ss:$28 sps:$4 sm:$0xff]  }
  0x71   : > { %1210 = vmatpush1.bf16.msra.mxu0 %v1973_v10  ;;  %1262 = vmatprep.subr.bf16.mxu1 %v2001_v19  ;;  %v2012_v44 = vld [vmem:[%s2485_s5 + $0x268] ss:$28 sps:$4 sm:$0xff]   ;;  %v2041_v46 = vld [vmem:[%s2485_s5 + $0x200] ss:$28 sps:$4 sm:$0xff]   ;;  %v2048_v50 = vld [vmem:[%s2485_s5 + $0x238] ss:$28 sps:$4 sm:$0xff]  }
  0x72   : > { %1211 = vmatprep.subr.bf16.mxu0 %v1974_v11  ;;  %v2016_v45 = vld [vmem:[%s2485_s5 + $0x2a4] ss:$28 sps:$4 sm:$0xff]   ;;  %v2046_v47 = vld [vmem:[%s2485_s5 + $0x23c] ss:$28 sps:$4 sm:$0xff]   ;;  %v2052_v51 = vld [vmem:[%s2485_s5 + $0x274] ss:$28 sps:$4 sm:$0xff]  }
  0x73   : > { %v2018_v48 = vld [vmem:[%s2485_s5 + $0x2a0] ss:$28 sps:$4 sm:$0xff]   ;;  %v2024_v52 = vld [vmem:[%s2485_s5 + $0x2d8] ss:$28 sps:$4 sm:$0xff]   ;;  %v2054_v54 = vld [vmem:[%s2485_s5 + $0x270] ss:$28 sps:$4 sm:$0xff]  }
  0x74   : > { %1263 = vmatpush1.bf16.msra.mxu1 %v2003_v22  ;;  %v2022_v49 = vld [vmem:[%s2485_s5 + $0x2dc] ss:$28 sps:$4 sm:$0xff]   ;;  %v2028_v53 = vld [vmem:[%s2485_s5 + $0x314] ss:$28 sps:$4 sm:$0xff]   ;;  %v2058_v55 = vld [vmem:[%s2485_s5 + $0x2ac] ss:$28 sps:$4 sm:$0xff]  }
  0x75   : > { %1212 = vmatpush1.bf16.msra.mxu0 %v1976_v15  ;;  %1264 = vmatprep.subr.bf16.mxu1 %v2007_v23  ;;  %v2030_v56 = vld [vmem:[%s2485_s5 + $0x310] ss:$28 sps:$4 sm:$0xff]   ;;  %v2060_v58 = vld [vmem:[%s2485_s5 + $0x2a8] ss:$28 sps:$4 sm:$0xff]   ;;  %v2066_v63 = vld [vmem:[%s2485_s5 + $0x2e0] ss:$28 sps:$4 sm:$0xff]  }
  0x76   : > { %1213 = vmatprep.subr.bf16.mxu0 %v1977_v17  ;;  %v2034_v57 = vld [vmem:[%s2485_s5 + $0x34c] ss:$28 sps:$4 sm:$0xff]   ;;  %v2064_v59 = vld [vmem:[%s2485_s5 + $0x2e4] ss:$28 sps:$4 sm:$0xff]   ;;  %v2045_v61 = vld [vmem:[%s2485_s5 + $0x14] ss:$28 sps:$4 sm:$0xff]  }
  0x77   : > { %v2036_v60 = vld [vmem:[%s2485_s5 + $0x348] ss:$28 sps:$4 sm:$0xff]   ;;  %v2070_v1 = vld [vmem:[%s2485_s5 + $0x31c] ss:$28 sps:$4 sm:$0xff]   ;;  %v2043_v2 = vld [vmem:[%s2485_s5 + $0x10] ss:$28 sps:$4 sm:$0xff]  }
  0x78   : > { %1265 = vmatpush1.bf16.msra.mxu1 %v2009_v26  ;;  %v2558_v3 = vld [vmem:[%s2729_s0 + $0x14] ss:$8 sps:$4 sm:$0xff]   ;;  %v2051_v4 = vld [vmem:[%s2485_s5 + $0x4c] ss:$28 sps:$4 sm:$0xff]   ;;  %v2057_v8 = vld [vmem:[%s2485_s5 + $0x84] ss:$28 sps:$4 sm:$0xff]  }
  0x79   : > { %1214 = vmatpush1.bf16.msra.mxu0 %v1979_v20  ;;  %1266 = vmatprep.subr.bf16.mxu1 %v2013_v27  ;;  %v2072_v5 = vld [vmem:[%s2485_s5 + $0x318] ss:$28 sps:$4 sm:$0xff]   ;;  %v2049_v7 = vld [vmem:[%s2485_s5 + $0x48] ss:$28 sps:$4 sm:$0xff]   ;;  %v2078_v9 = vld [vmem:[%s2485_s5 + $0x350] ss:$28 sps:$4 sm:$0xff]  }
  0x7a   : > { %1215 = vmatprep.subr.bf16.mxu0 %v1980_v21  ;;  %v2076_v6 = vld [vmem:[%s2485_s5 + $0x354] ss:$28 sps:$4 sm:$0xff]   ;;  %v2055_v11 = vld [vmem:[%s2485_s5 + $0x80] ss:$28 sps:$4 sm:$0xff]   ;;  %v2092_v19 = vld [vmem:[%s2485_s5 + $0x248] ss:$28 sps:$4 sm:$0xff]  }
  0x7b   : > { %v2082_v10 = vld [vmem:[%s2485_s5 + $0x1d8] ss:$28 sps:$4 sm:$0xff]   ;;  %v2087_v15 = vld [vmem:[%s2485_s5 + $0x210] ss:$28 sps:$4 sm:$0xff]   ;;  %v583_v22 = vld [vmem:[%s2731_s2] sm:$0xff]  ;;  %s2652_s29 = scalar_lea.vmem [#allocation3], %s1934_s27 }
  0x7c   : > { %1267 = vmatpush1.bf16.msra.mxu1 %v2015_v30  ;;  %v2063_v13 = vld [vmem:[%s2485_s5 + $0xbc] ss:$28 sps:$4 sm:$0xff]   ;;  %v2069_v17 = vld [vmem:[%s2485_s5 + $0xf4] ss:$28 sps:$4 sm:$0xff]   ;;  %v2075_v21 = vld [vmem:[%s2485_s5 + $0x12c] ss:$28 sps:$4 sm:$0xff]   ;;  %589 = vperm.xlu0 %1960, %v583_v22  }
  0x7d   : > { %1216 = vmatpush1.bf16.msra.mxu0 %v1982_v24  ;;  %1268 = vmatprep.subr.bf16.mxu1 %v2019_v31  ;;  %v2083_v14 = vld [vmem:[%s2485_s5 + $0x18] ss:$28 sps:$4 sm:$0xff]   ;;  %v2088_v18 = vld [vmem:[%s2485_s5 + $0x50] ss:$28 sps:$4 sm:$0xff]   ;;  %v2093_v24 = vld [vmem:[%s2485_s5 + $0x88] ss:$28 sps:$4 sm:$0xff]  }
  0x7e   : > { %1217 = vmatprep.subr.bf16.mxu0 %v1986_v25  ;;  %v2061_v16 = vld [vmem:[%s2485_s5 + $0xb8] ss:$28 sps:$4 sm:$0xff]   ;;  %v2067_v20 = vld [vmem:[%s2485_s5 + $0xf0] ss:$28 sps:$4 sm:$0xff]   ;;  %v2097_v25 = vld [vmem:[%s2485_s5 + $0x280] ss:$28 sps:$4 sm:$0xff]  }
  0x7f   : > { %v585_v23 = vld [vmem:[%s2731_s2 + $0x10] sm:$0xff]  ;;  %v2073_v26 = vld [vmem:[%s2485_s5 + $0x128] ss:$28 sps:$4 sm:$0xff]   ;;  %v2098_v30 = vld [vmem:[%s2485_s5 + $0xc0] ss:$28 sps:$4 sm:$0xff]   ;;  %s1903_s12 = smul.u32 (%p2203_p5), 28, %s1673_s15 }
  0x80   : > { %1269 = vmatpush1.bf16.msra.mxu1 %v2021_v34  ;;  %599 = vperm.xlu1 %1961, %v585_v23   ;;  %v584_v27 = vld [vmem:[%s2731_s2 + $0x8] sm:$0xff]  ;;  %v2102_v31 = vld [vmem:[%s2485_s5 + $0x2b8] ss:$28 sps:$4 sm:$0xff]  }
  0x81   : > { %1218 = vmatpush1.bf16.msra.mxu0 %v1988_v28  ;;  %1270 = vmatprep.subr.bf16.mxu1 %v2025_v35  ;;  %v2081_v28 = vld [vmem:[%s2485_s5 + $0x164] ss:$28 sps:$4 sm:$0xff]   ;;  %v2103_v34 = vld [vmem:[%s2485_s5 + $0xf8] ss:$28 sps:$4 sm:$0xff]   ;;  %v2107_v35 = vld [vmem:[%s2485_s5 + $0x2f0] ss:$28 sps:$4 sm:$0xff]   ;;  %s1552_s28 = scalar_lea.vmem (%p2203_p5), %s2732_s3, %s1903_s12 }
  0x82   : > { %1219 = vmatprep.subr.bf16.mxu0 %v1992_v29  ;;  %v586_v29 = vld [vmem:[%s2731_s2 + $0x18] sm:$0xff]  ;;  %594 = vperm.xlu0 %1960, %v584_v27  }
  0x84   : > { %1271 = vmatpush1.bf16.msra.mxu1 %v2027_v38  ;;  %604 = vperm.xlu1 %1961, %v586_v29   ;;  %v2115_v38 = vld [vmem:[%s2485_s5 + $0x328] ss:$28 sps:$4 sm:$0xff]  }
  0x85   : > { %1220 = vmatpush1.bf16.msra.mxu0 %v1994_v32  ;;  %1272 = vmatprep.subr.bf16.mxu1 %v2031_v39  ;;  %v2079_v32 = vld [vmem:[%s2485_s5 + $0x160] ss:$28 sps:$4 sm:$0xff]   ;;  %v2089_v39 = vld [vmem:[%s2485_s5 + $0x1d0] ss:$28 sps:$4 sm:$0xff]  }
  0x86   : > { %1221 = vmatprep.subr.bf16.mxu0 %v1998_v33  ;;  %v2086_v33 = vld [vmem:[%s2485_s5 + $0x19c] ss:$28 sps:$4 sm:$0xff]  }
  0x88   : > { %1273 = vmatpush1.bf16.msra.mxu1 %v2033_v42  ;;  %v2120_v42 = vld [vmem:[%s2485_s5 + $0x360] ss:$28 sps:$4 sm:$0xff]  }
  0x89   : > { %1222 = vmatpush1.bf16.msra.mxu0 %v2000_v36  ;;  %1274 = vmatprep.subr.bf16.mxu1 %v2037_v43  ;;  %v2091_v36 = vld [vmem:[%s2485_s5 + $0x1d4] ss:$28 sps:$4 sm:$0xff]   ;;  %v2094_v43 = vld [vmem:[%s2485_s5 + $0x208] ss:$28 sps:$4 sm:$0xff]  }
  0x8a   : > { %1223 = vmatprep.subr.bf16.mxu0 %v2004_v37  ;;  %v2108_v37 = vld [vmem:[%s2485_s5 + $0x130] ss:$28 sps:$4 sm:$0xff]  }
  0x8c   : > { %1275 = vmatpush1.bf16.msra.mxu1 %v2041_v46  ;;  %v2099_v46 = vld [vmem:[%s2485_s5 + $0x240] ss:$28 sps:$4 sm:$0xff]  }
  0x8d   : > { %1224 = vmatpush1.bf16.msra.mxu0 %v2006_v40  ;;  %1276 = vmatprep.subr.bf16.mxu1 %v2046_v47  ;;  %v2096_v40 = vld [vmem:[%s2485_s5 + $0x20c] ss:$28 sps:$4 sm:$0xff]   ;;  %v2106_v47 = vld [vmem:[%s2485_s5 + $0x27c] ss:$28 sps:$4 sm:$0xff]  }
  0x8e   : > { %1225 = vmatprep.subr.bf16.mxu0 %v2010_v41  ;;  %v2116_v41 = vld [vmem:[%s2485_s5 + $0x168] ss:$28 sps:$4 sm:$0xff]  }
  0x90   : > { %1277 = vmatpush1.bf16.msra.mxu1 %v2048_v50  ;;  %v2109_v50 = vld [vmem:[%s2485_s5 + $0x2b0] ss:$28 sps:$4 sm:$0xff]  }
  0x91   : > { %1226 = vmatpush1.bf16.msra.mxu0 %v2012_v44  ;;  %1278 = vmatprep.subr.bf16.mxu1 %v2052_v51  ;;  %v2101_v44 = vld [vmem:[%s2485_s5 + $0x244] ss:$28 sps:$4 sm:$0xff]   ;;  %v2119_v51 = vld [vmem:[%s2485_s5 + $0x2ec] ss:$28 sps:$4 sm:$0xff]  }
  0x92   : > { %1227 = vmatprep.subr.bf16.mxu0 %v2016_v45  ;;  %v2121_v45 = vld [vmem:[%s2485_s5 + $0x1a0] ss:$28 sps:$4 sm:$0xff]  }
  0x94   : > { %1279 = vmatpush1.bf16.msra.mxu1 %v2054_v54  ;;  %v2122_v54 = vld [vmem:[%s2485_s5 + $0x320] ss:$28 sps:$4 sm:$0xff]  }
  0x95   : > { %1228 = vmatpush1.bf16.msra.mxu0 %v2018_v48  ;;  %1280 = vmatprep.subr.bf16.mxu1 %v2058_v55  ;;  %v2104_v48 = vld [vmem:[%s2485_s5 + $0x278] ss:$28 sps:$4 sm:$0xff]  }
  0x96   : > { %1229 = vmatprep.subr.bf16.mxu0 %v2022_v49  ;;  %v2111_v49 = vld [vmem:[%s2485_s5 + $0x2b4] ss:$28 sps:$4 sm:$0xff]   ;;  %v2127_v55 = vld [vmem:[%s2485_s5 + $0x35c] ss:$28 sps:$4 sm:$0xff]  }
  0x98   : > { %1281 = vmatpush1.bf16.msra.mxu1 %v2060_v58 }
  0x99   : > { %1230 = vmatpush1.bf16.msra.mxu0 %v2024_v52  ;;  %1282 = vmatprep.subr.bf16.mxu1 %v2064_v59  ;;  %v2117_v52 = vld [vmem:[%s2485_s5 + $0x2e8] ss:$28 sps:$4 sm:$0xff]  }
  0x9a   : > { %1231 = vmatprep.subr.bf16.mxu0 %v2028_v53  ;;  %v2124_v53 = vld [vmem:[%s2485_s5 + $0x324] ss:$28 sps:$4 sm:$0xff]  }
  0x9c   : > { %1283 = vmatpush1.bf16.msra.mxu1 %v2066_v63 }
  0x9d   : > { %1232 = vmatpush1.bf16.msra.mxu0 %v2030_v56  ;;  %1284 = vmatprep.subr.bf16.mxu1 %v2070_v1  ;;  %v2125_v56 = vld [vmem:[%s2485_s5 + $0x358] ss:$28 sps:$4 sm:$0xff]  }
  0x9e   : > { %1233 = vmatprep.subr.bf16.mxu0 %v2034_v57 }
  0xa0   : > { %1285 = vmatpush1.bf16.msra.mxu1 %v2072_v5 }
  0xa1   : > { %1234 = vmatpush1.bf16.msra.mxu0 %v2036_v60  ;;  %1286 = vmatprep.subr.bf16.mxu1 %v2076_v6 }
  0xa2   : > { %1309 = vmatprep.subr.bf16.mxu0 %v2045_v61 }
  0xa4   : > { %1236 = vmatmul.mubr.bf16.vlgmr.msra.gmra.mrb[0].mxu0 %v2550_v62  ;;  %1287 = vmatpush1.bf16.msra.mxu1 %v2078_v9 }
  0xa5   : > { %1310 = vmatpush1.bf16.msra.mxu0 %v2043_v2  ;;  %1245 = vmatprep.mubr.bf16.mxu0 %v2558_v3 }
  0xa6   : > { %1311 = vmatprep.subr.bf16.mxu0 %v2051_v4  ;;  %1904 = vmatprep.subr.bf16.mxu1 %v2082_v10 }
  0xa7   : > { %1289 = vmatmul.mubr.bf16.vlgmr.msra.gmra.mrb[0].mxu1 %v2550_v62 }
  0xa8   : > { %1905 = vmatpush3.bf16.msra.mxu1 %v2083_v14  ;;  %1298 = vmatprep.mubr.bf16.mxu1 %v2558_v3 }
  0xa9   : > { %1312 = vmatpush1.bf16.msra.mxu0 %v2049_v7  ;;  %1906 = vmatprep.subr.bf16.mxu1 %v2087_v15 }
  0xaa   : > { %1313 = vmatprep.subr.bf16.mxu0 %v2057_v8 }
  0xac   : > { %1246 = vmatmul.mubr.bf16.gmra.mrb[4].mxu0 %v2573_v12  ;;  %1907 = vmatpush3.bf16.msra.mxu1 %v2088_v18 }
  0xad   : > { %1314 = vmatpush1.bf16.msra.mxu0 %v2055_v11  ;;  %1341 = vmatprep.mubr.bf16.mxu0 %v2479_v0 }
  0xae   : > { %1315 = vmatprep.subr.bf16.mxu0 %v2063_v13  ;;  %1908 = vmatprep.subr.bf16.mxu1 %v2092_v19 }
  0xaf   : > { %1299 = vmatmul.mubr.bf16.gmra.mrb[4].mxu1 %v2573_v12 }
  0xb0   : > { %1909 = vmatpush3.bf16.msra.mxu1 %v2093_v24  ;;  %1394 = vmatprep.mubr.bf16.mxu1 %v2479_v0  ;;  %v2084_v0 = vld [vmem:[%s2485_s5 + $0x198] ss:$28 sps:$4 sm:$0xff]  }
  0xb1   : > { %1316 = vmatpush1.bf16.msra.mxu0 %v2061_v16  ;;  %1910 = vmatprep.subr.bf16.mxu1 %v2097_v25 }
  0xb2   : > { %1317 = vmatprep.subr.bf16.mxu0 %v2069_v17 }
  0xb4   : > { %1911 = vmatpush3.bf16.msra.mxu1 %v2098_v30 }
  0xb5   : > { %1318 = vmatpush1.bf16.msra.mxu0 %v2067_v20  ;;  %1912 = vmatprep.subr.bf16.mxu1 %v2102_v31 }
  0xb6   : > { %1319 = vmatprep.subr.bf16.mxu0 %v2075_v21 }
  0xb8   : > { %1913 = vmatpush3.bf16.msra.mxu1 %v2103_v34 }
  0xb9   : > { %1320 = vmatpush1.bf16.msra.mxu0 %v2073_v26  ;;  %1914 = vmatprep.subr.bf16.mxu1 %v2107_v35 }
  0xba   : > { %1321 = vmatprep.subr.bf16.mxu0 %v2081_v28 }
  0xbc   : > { %1915 = vmatpush3.bf16.msra.mxu1 %v2108_v37 }
  0xbd   : > { %1322 = vmatpush1.bf16.msra.mxu0 %v2079_v32  ;;  %1916 = vmatprep.subr.bf16.mxu1 %v2115_v38 }
  0xbe   : > { %1323 = vmatprep.subr.bf16.mxu0 %v2086_v33 }
  0xc0   : > { %1917 = vmatpush3.bf16.msra.mxu1 %v2116_v41 }
  0xc1   : > { %1324 = vmatpush1.bf16.msra.mxu0 %v2084_v0  ;;  %1918 = vmatprep.subr.bf16.mxu1 %v2120_v42 }
  0xc2   : > { %1325 = vmatprep.subr.bf16.mxu0 %v2091_v36 }
  0xc4   : > { %1919 = vmatpush3.bf16.msra.mxu1 %v2121_v45 }
  0xc5   : > { %1326 = vmatpush1.bf16.msra.mxu0 %v2089_v39 }
  0xc6   : > { %1327 = vmatprep.subr.bf16.mxu0 %v2096_v40 }
  0xc7   : > { %1395 = vmatmul.mubr.bf16.vlgmr.msra.gmra.mrb[8].mxu1 %v2550_v62 }
  0xc8   : > { %1402 = vmatprep.mubr.bf16.mxu1 %v2558_v3 }
  0xc9   : > { %1328 = vmatpush1.bf16.msra.mxu0 %v2094_v43 }
  0xca   : > { %1329 = vmatprep.subr.bf16.mxu0 %v2101_v44 }
  0xcd   : > { %1330 = vmatpush1.bf16.msra.mxu0 %v2099_v46 }
  0xce   : > { %1331 = vmatprep.subr.bf16.mxu0 %v2106_v47 }
  0xcf   : > { %1403 = vmatmul.mubr.bf16.gmra.mrb[12].mxu1 %v2573_v12 }
  0xd1   : > { %1332 = vmatpush1.bf16.msra.mxu0 %v2104_v48 }
  0xd2   : > { %1333 = vmatprep.subr.bf16.mxu0 %v2111_v49 }
  0xd5   : > { %1334 = vmatpush1.bf16.msra.mxu0 %v2109_v50 }
  0xd6   : > { %1335 = vmatprep.subr.bf16.mxu0 %v2119_v51 }
  0xd9   : > { %1336 = vmatpush1.bf16.msra.mxu0 %v2117_v52 }
  0xda   : > { %1337 = vmatprep.subr.bf16.mxu0 %v2124_v53 }
  0xdd   : > { %1338 = vmatpush1.bf16.msra.mxu0 %v2122_v54 }
  0xde   : > { %1339 = vmatprep.subr.bf16.mxu0 %v2127_v55 }
  0xe1   : > { %1340 = vmatpush1.bf16.msra.mxu0 %v2125_v56 }
  0xe4   : > { %1342 = vmatmul.mubr.bf16.vlgmr.msra.gmra.mrb[8].mxu0 %v2550_v62 }
  0xe5   : > { %1351 = vmatprep.mubr.bf16.mxu0 %v2558_v3 }
  0xec   : > { %1352 = vmatmul.mubr.bf16.gmra.mrb[12].mxu0 %v2573_v12 }
  0xfb   : > { %v2640_v57 = vpop.permute.xlu0 %589 }
  0xff   : > { %v2649_v3 = vpop.permute.xlu1 %599 }
 0x101   : > { %v2642_v59 = vpop.permute.xlu0 %594 }
 0x103   : > { %v2656_v13 = vpop.permute.xlu1 %604 }
 0x177   : > { %v1237_v58 = vpop.f32.mrb[0].mxu0 }
 0x178   : > { %v1238_v60 = vadd.f32 %v1237_v58, %v2640_v57  ;;  %v1239_v61 = vpop.f32.mrb[1].mxu0 }
 0x179   : > { %v1240_v63 = vadd.f32 %v1239_v61, %v2640_v57  ;;  %v1241_v1 = vpop.f32.mrb[2].mxu0 }
 0x17a   : > { %v1411_v2 = vmax.f32 %v1238_v60, 0.0  ;;  %v1242_v62 = vadd.f32 %v1241_v1, %v2642_v59  ;;  %v1243_v4 = vpop.f32.mrb[3].mxu0  ;;  %v1290_v15 = vpop.f32.mrb[0].mxu1 }
 0x17b   : > { %v1412_v5 = vmax.f32 %v1240_v63, 0.0  ;;  %v1244_v6 = vadd.f32 %v1243_v4, %v2642_v59  ;;  %v1291_v18 = vadd.f32 %v1290_v15, %v2640_v57  ;;  %v1292_v19 = vpop.f32.mrb[1].mxu1 }
 0x17c   : > { %v1418_v7 = vmax.f32 %v1242_v62, 0.0  ;;  %v1293_v23 = vadd.f32 %v1292_v19, %v2640_v57  ;;  %v1294_v24 = vpop.f32.mrb[2].mxu1 }
 0x17d   : > { %v1887_v8 = vpack.c.bf16 %v1412_v5, %v1411_v2  ;;  %v1419_v9 = vmax.f32 %v1244_v6, 0.0  ;;  %v1413_v27 = vmax.f32 %v1291_v18, 0.0  ;;  %v1295_v28 = vadd.f32 %v1294_v24, %v2642_v59  ;;  %v1296_v29 = vpop.f32.mrb[3].mxu1 }
 0x17e   : > { %v1414_v31 = vmax.f32 %v1293_v23, 0.0  ;;  %v1297_v32 = vadd.f32 %v1296_v29, %v2642_v59 }
 0x17f   : > { %1527 = vst [vmem:[%s2652_s29] sm:$0xff] %v1887_v8  ;;  %v1891_v10 = vpack.c.bf16 %v1419_v9, %v1418_v7  ;;  %v1247_v11 = vpop.f32.mrb[4].mxu0  ;;  %v1420_v35 = vmax.f32 %v1295_v28, 0.0 }
 0x180   : > { %v1248_v12 = vadd.f32 %v1247_v11, %v2649_v3  ;;  %v1249_v14 = vpop.f32.mrb[5].mxu0  ;;  %v1888_v0 = vpack.c.bf16 %v1414_v31, %v1413_v27  ;;  %v1421_v36 = vmax.f32 %v1297_v32, 0.0 }
 0x181   : > { %1531 = vst [vmem:[%s2652_s29 + $0x1c] sm:$0xff] %v1891_v10  ;;  %v1250_v16 = vadd.f32 %v1249_v14, %v2649_v3  ;;  %v1251_v17 = vpop.f32.mrb[6].mxu0 }
 0x182   : > { %v1425_v20 = vmax.f32 %v1248_v12, 0.0  ;;  %v1252_v21 = vadd.f32 %v1251_v17, %v2656_v13  ;;  %v1253_v22 = vpop.f32.mrb[7].mxu0  ;;  %1528 = vst [vmem:[%s2652_s29 + $0x8] sm:$0xff] %v1888_v0  ;;  %v1892_v38 = vpack.c.bf16 %v1421_v36, %v1420_v35  ;;  %v1300_v39 = vpop.f32.mrb[4].mxu1 }
 0x183   : > { %v1426_v25 = vmax.f32 %v1250_v16, 0.0  ;;  %v1254_v26 = vadd.f32 %v1253_v22, %v2656_v13  ;;  %v1301_v40 = vadd.f32 %v1300_v39, %v2649_v3  ;;  %v1302_v41 = vpop.f32.mrb[5].mxu1 }
 0x184   : > { %v1432_v30 = vmax.f32 %v1252_v21, 0.0  ;;  %1532 = vst [vmem:[%s2652_s29 + $0x24] sm:$0xff] %v1892_v38  ;;  %v1303_v42 = vadd.f32 %v1302_v41, %v2649_v3  ;;  %v1304_v43 = vpop.f32.mrb[6].mxu1 }
 0x185   : > { %v1895_v33 = vpack.c.bf16 %v1426_v25, %v1425_v20  ;;  %v1433_v34 = vmax.f32 %v1254_v26, 0.0  ;;  %v1427_v44 = vmax.f32 %v1301_v40, 0.0  ;;  %v1305_v45 = vadd.f32 %v1304_v43, %v2656_v13  ;;  %v1306_v46 = vpop.f32.mrb[7].mxu1 }
 0x186   : > { %v1428_v47 = vmax.f32 %v1303_v42, 0.0  ;;  %v1307_v48 = vadd.f32 %v1306_v46, %v2656_v13 }
 0x187   : > { %1535 = vst [vmem:[%s2652_s29 + $0x38] sm:$0xff] %v1895_v33  ;;  %v1899_v37 = vpack.c.bf16 %v1433_v34, %v1432_v30  ;;  %v1434_v49 = vmax.f32 %v1305_v45, 0.0 }
 0x188   : > { %v1896_v50 = vpack.c.bf16 %v1428_v47, %v1427_v44  ;;  %v1435_v51 = vmax.f32 %v1307_v48, 0.0  ;;  %v1573_v44 = vld [vmem:[%s2652_s29 + $0x1c] sm:$0xff] (%p2203_p5) }
 0x189   : > { %1539 = vst [vmem:[%s2652_s29 + $0x54] sm:$0xff] %v1899_v37  ;;  %1574 = vst [vmem:[%s1552_s28 + $0x38] sm:$0xff] (%p2203_p5), %v1573_v44 }
 0x18a   : > { %1536 = vst [vmem:[%s2652_s29 + $0x40] sm:$0xff] %v1896_v50  ;;  %v1900_v52 = vpack.c.bf16 %v1435_v51, %v1434_v49 }
 0x18b   : > { %v1575_v45 = vld [vmem:[%s2652_s29 + $0x24] sm:$0xff] (%p2203_p5) }
 0x18c   : > { %1540 = vst [vmem:[%s2652_s29 + $0x5c] sm:$0xff] %v1900_v52  ;;  %1576 = vst [vmem:[%s1552_s28 + $0x40] sm:$0xff] (%p2203_p5), %v1575_v45 }
 0x18e   : > { %v1579_v47 = vld [vmem:[%s2652_s29 + $0x38] sm:$0xff] (%p2203_p5) }
 0x18f   : > { %1580 = vst [vmem:[%s1552_s28 + $0x70] sm:$0xff] (%p2203_p5), %v1579_v47 }
 0x190   : > { %v1585_v50 = vld [vmem:[%s2652_s29 + $0x54] sm:$0xff] (%p2203_p5) }
 0x191   : > { %v1581_v48 = vld [vmem:[%s2652_s29 + $0x40] sm:$0xff] (%p2203_p5)  ;;  %1586 = vst [vmem:[%s1552_s28 + $0xa8] sm:$0xff] (%p2203_p5), %v1585_v50 }
 0x192   : > { %1582 = vst [vmem:[%s1552_s28 + $0x78] sm:$0xff] (%p2203_p5), %v1581_v48 }
 0x193   : > { %v1587_v51 = vld [vmem:[%s2652_s29 + $0x5c] sm:$0xff] (%p2203_p5) }
 0x194   : > { %1588 = vst [vmem:[%s1552_s28 + $0xb0] sm:$0xff] (%p2203_p5), %v1587_v51 }
 0x19a   : > { %v1920_v53 = vpop.f32.mrb[8].mxu1 }
 0x19b   : > { %v1921_v54 = vpop.f32.mrb[9].mxu1 }
 0x19c   : > { %v1922_v55 = vadd.f32 %v1921_v54, %v1920_v53  ;;  %v1923_v56 = vpop.f32.mrb[10].mxu1 }
 0x19d   : > { %v1924_v58 = vpop.f32.mrb[11].mxu1 }
 0x19e   : > { %v1397_v60 = vadd.f32 %v1922_v55, %v2640_v57  ;;  %v1925_v61 = vadd.f32 %v1924_v58, %v1923_v56 }
 0x1a0   : > { %v1417_v63 = vmax.f32 %v1397_v60, 0.0  ;;  %v1400_v1 = vadd.f32 %v1925_v61, %v2642_v59 }
 0x1a2   : > { %v1890_v2 = vpack.c.bf16 %v1417_v63, %v1417_v63  ;;  %v1424_v62 = vmax.f32 %v1400_v1, 0.0  ;;  %v1926_v4 = vpop.f32.mrb[12].mxu1 }
 0x1a3   : > { %v1927_v5 = vpop.f32.mrb[13].mxu1 }
 0x1a4   : > { %1530 = vst [vmem:[%s2652_s29 + $0x18] sm:$0xf] %v1890_v2  ;;  %v1894_v6 = vpack.c.bf16 %v1424_v62, %v1424_v62  ;;  %v1928_v7 = vadd.f32 %v1927_v5, %v1926_v4  ;;  %v1929_v8 = vpop.f32.mrb[14].mxu1 }
 0x1a5   : > { %v1930_v9 = vpop.f32.mrb[15].mxu1 }
 0x1a6   : > { %1534 = vst [vmem:[%s2652_s29 + $0x34] sm:$0xf] %v1894_v6  ;;  %v1405_v10 = vadd.f32 %v1928_v7, %v2649_v3  ;;  %v1931_v11 = vadd.f32 %v1930_v9, %v1929_v8 }
 0x1a8   : > { %v1431_v12 = vmax.f32 %v1405_v10, 0.0  ;;  %v1408_v14 = vadd.f32 %v1931_v11, %v2656_v13 }
 0x1aa   : > { %v1898_v15 = vpack.c.bf16 %v1431_v12, %v1431_v12  ;;  %v1438_v16 = vmax.f32 %v1408_v14, 0.0 }
 0x1ab   : > { %v1876_v53 = vld [vmem:[%s2652_s29 + $0x18] sm:$0xf] (%p2203_p5) }
 0x1ac   : > { %1538 = vst [vmem:[%s2652_s29 + $0x50] sm:$0xf] %v1898_v15  ;;  %v1902_v17 = vpack.c.bf16 %v1438_v16, %v1438_v16  ;;  %1877 = vst [vmem:[%s1552_s28 + $0x18] sm:$0xf] (%p2203_p5), %v1876_v53 }
 0x1ad   : > { %v1878_v54 = vld [vmem:[%s2652_s29 + $0x34] sm:$0xf] (%p2203_p5) }
 0x1ae   : > { %1542 = vst [vmem:[%s2652_s29 + $0x6c] sm:$0xf] %v1902_v17  ;;  %1879 = vst [vmem:[%s1552_s28 + $0x50] sm:$0xf] (%p2203_p5), %v1878_v54 }
 0x1b3   : > { %v1880_v55 = vld [vmem:[%s2652_s29 + $0x50] sm:$0xf] (%p2203_p5) }
 0x1b4   : > { %1881 = vst [vmem:[%s1552_s28 + $0x88] sm:$0xf] (%p2203_p5), %v1880_v55 }
 0x1b5   : > { %v1882_v56 = vld [vmem:[%s2652_s29 + $0x6c] sm:$0xf] (%p2203_p5) }
 0x1b6   : > { %1883 = vst [vmem:[%s1552_s28 + $0xc0] sm:$0xf] (%p2203_p5), %v1882_v56 }
 0x1b7   : > { %v1343_v18 = vpop.f32.mrb[8].mxu0 }
 0x1b8   : > { %v1344_v19 = vadd.f32 %v1343_v18, %v2640_v57  ;;  %v1345_v20 = vpop.f32.mrb[9].mxu0 }
 0x1b9   : > { %v1346_v21 = vadd.f32 %v1345_v20, %v2640_v57  ;;  %v1347_v22 = vpop.f32.mrb[10].mxu0 }
 0x1ba   : > { %v1415_v23 = vmax.f32 %v1344_v19, 0.0  ;;  %v1348_v24 = vadd.f32 %v1347_v22, %v2642_v59  ;;  %v1349_v25 = vpop.f32.mrb[11].mxu0 }
 0x1bb   : > { %v1416_v26 = vmax.f32 %v1346_v21, 0.0  ;;  %v1350_v27 = vadd.f32 %v1349_v25, %v2642_v59 }
 0x1bc   : > { %v1422_v28 = vmax.f32 %v1348_v24, 0.0 }
 0x1bd   : > { %v1889_v29 = vpack.c.bf16 %v1416_v26, %v1415_v23  ;;  %v1423_v30 = vmax.f32 %v1350_v27, 0.0 }
 0x1bf   : > { %1529 = vst [vmem:[%s2652_s29 + $0x10] sm:$0xff] %v1889_v29  ;;  %v1893_v31 = vpack.c.bf16 %v1423_v30, %v1422_v28  ;;  %v1353_v32 = vpop.f32.mrb[12].mxu0 }
 0x1c0   : > { %v1354_v33 = vadd.f32 %v1353_v32, %v2649_v3  ;;  %v1355_v34 = vpop.f32.mrb[13].mxu0 }
 0x1c1   : > { %1533 = vst [vmem:[%s2652_s29 + $0x2c] sm:$0xff] %v1893_v31  ;;  %v1356_v57 = vadd.f32 %v1355_v34, %v2649_v3  ;;  %v1357_v35 = vpop.f32.mrb[14].mxu0  ;;  %v1567_v3 = vld [vmem:[%s2652_s29] sm:$0xff] (%p2203_p5) }
 0x1c2   : > { %v1429_v0 = vmax.f32 %v1354_v33, 0.0  ;;  %v1358_v36 = vadd.f32 %v1357_v35, %v2656_v13  ;;  %v1359_v37 = vpop.f32.mrb[15].mxu0  ;;  %1568 = vst [vmem:[%s1552_s28] sm:$0xff] (%p2203_p5), %v1567_v3 }
 0x1c3   : > { %v1430_v59 = vmax.f32 %v1356_v57, 0.0  ;;  %v1360_v38 = vadd.f32 %v1359_v37, %v2656_v13  ;;  %1549 = sbr.rel (!%p2203_p5) target bundleno = 466 (0x1d2), region = 62  ;;  %v1569_v13 = vld [vmem:[%s2652_s29 + $0x8] sm:$0xff] (%p2203_p5) }
 0x1c4   : > { %v1436_v39 = vmax.f32 %v1358_v36, 0.0  ;;  %1570 = vst [vmem:[%s1552_s28 + $0x8] sm:$0xff] (%p2203_p5), %v1569_v13 }
 0x1c5   : > { %v1897_v40 = vpack.c.bf16 %v1430_v59, %v1429_v0  ;;  %v1437_v41 = vmax.f32 %v1360_v38, 0.0 }
 0x1c6   : > { %v1571_v43 = vld [vmem:[%s2652_s29 + $0x10] sm:$0xff] (%p2203_p5) }
 0x1c7   : > { %1537 = vst [vmem:[%s2652_s29 + $0x48] sm:$0xff] %v1897_v40  ;;  %v1901_v42 = vpack.c.bf16 %v1437_v41, %v1436_v39  ;;  %1572 = vst [vmem:[%s1552_s28 + $0x10] sm:$0xff] (%p2203_p5), %v1571_v43 }
 0x1c8   : > { %v1577_v46 = vld [vmem:[%s2652_s29 + $0x2c] sm:$0xff] (%p2203_p5) }
 0x1c9   : > { %1541 = vst [vmem:[%s2652_s29 + $0x64] sm:$0xff] %v1901_v42  ;;  %1578 = vst [vmem:[%s1552_s28 + $0x48] sm:$0xff] (%p2203_p5), %v1577_v46 }
 0x1ce   : > { %v1583_v49 = vld [vmem:[%s2652_s29 + $0x48] sm:$0xff] }
 0x1cf   : > { %1584 = vst [vmem:[%s1552_s28 + $0x80] sm:$0xff] %v1583_v49 }
 0x1d0   : > { %v1589_v52 = vld [vmem:[%s2652_s29 + $0x64] sm:$0xff] }
 0x1d1   : > { %1590 = vst [vmem:[%s1552_s28 + $0xb8] sm:$0xff] %v1589_v52 }
 0x1d2 PF: > { %p10_p10 = scmp.ge.s32.totalorder %s2190_s16, 4   ;;  %s2734_s12 = smov %s2146_s13 }
 0x1d3   : > { %s2735_s13 = smov %s2201_s19  ;;  %s2736_s14 = smov %s2190_s16 }
 0x1d4   :  { %12 = sbr.rel (!%p10_p10) target bundleno = 2 (0x2), region = 131 }

// kernel: dqn_forward.5
= control target key start
LH: loop header
LB: loop body
LE: loop exit
PB: predicated region body
PF: predicated region fallthrough
CT: control target
= control target key end

     0   :  { %v1610_v28 = vmov 0   ;;  %s2095_s1 = inlined_call_operand.vmem [shape: bf16[512,384], index: 1, kind: input, shape index: {}]   ;;  %s2096_s0 = inlined_call_operand.vmem [shape: bf16[64,512], index: 0, kind: input, shape index: {}]   ;;  %s2097_s2 = inlined_call_operand.vmem [shape: f32[64,1], index: 2, kind: input, shape index: {}]   ;;  %s2098_s3 = inlined_call_operand.vmem [shape: bf16[64,384], index: 3, kind: output, shape index: {}]  }
   0x1   :  { %v1458_v0 = vld [vmem:[%s2095_s1 + $0x4] ss:$12 sps:$4 sm:$0xff]   ;;  %v1460_v1 = vld [vmem:[%s2095_s1] ss:$12 sps:$4 sm:$0xff]   ;;  %v1461_v2 = vld [vmem:[%s2095_s1 + $0x1c] ss:$12 sps:$4 sm:$0xff]   ;;  %1456 = vset.pattern.permute.xlu0 %v1610_v28  ;;  %1457 = vset.pattern.permute.xlu1 %v1610_v28 }
   0x2   :  { %799 = vmatprep.subr.bf16.mxu0 %v1458_v0  ;;  %v1463_v3 = vld [vmem:[%s2095_s1 + $0x18] ss:$12 sps:$4 sm:$0xff]   ;;  %v1464_v4 = vld [vmem:[%s2095_s1 + $0x34] ss:$12 sps:$4 sm:$0xff]   ;;  %v1466_v5 = vld [vmem:[%s2095_s1 + $0x30] ss:$12 sps:$4 sm:$0xff]  }
   0x3   :  { %800 = vmatpush1.bf16.msra.mxu0 %v1460_v1  ;;  %v1467_v6 = vld [vmem:[%s2095_s1 + $0x4c] ss:$12 sps:$4 sm:$0xff]   ;;  %v1469_v7 = vld [vmem:[%s2095_s1 + $0x48] ss:$12 sps:$4 sm:$0xff]   ;;  %v1470_v8 = vld [vmem:[%s2095_s1 + $0x64] ss:$12 sps:$4 sm:$0xff]  }
   0x4   :  { %801 = vmatprep.subr.bf16.mxu0 %v1461_v2  ;;  %v1482_v9 = vld [vmem:[%s2095_s1 + $0xc8] ss:$12 sps:$4 sm:$0xff]   ;;  %v1472_v11 = vld [vmem:[%s2095_s1 + $0x60] ss:$12 sps:$4 sm:$0xff]   ;;  %v1475_v15 = vld [vmem:[%s2095_s1 + $0x78] ss:$12 sps:$4 sm:$0xff]  }
   0x5   :  { %v1483_v10 = vld [vmem:[%s2095_s1 + $0x8] ss:$12 sps:$4 sm:$0xff]   ;;  %1343 = vmatprep.subr.bf16.mxu1 %v1482_v9  ;;  %v1487_v12 = vld [vmem:[%s2095_s1 + $0xe0] ss:$12 sps:$4 sm:$0xff]   ;;  %v1492_v16 = vld [vmem:[%s2095_s1 + $0xf8] ss:$12 sps:$4 sm:$0xff]  }
   0x6   :  { %1344 = vmatpush3.bf16.msra.mxu1 %v1483_v10  ;;  %v1488_v13 = vld [vmem:[%s2095_s1 + $0x20] ss:$12 sps:$4 sm:$0xff]   ;;  %v1473_v14 = vld [vmem:[%s2095_s1 + $0x7c] ss:$12 sps:$4 sm:$0xff]   ;;  %v1493_v17 = vld [vmem:[%s2095_s1 + $0x38] ss:$12 sps:$4 sm:$0xff]  }
   0x7   :  { %802 = vmatpush1.bf16.msra.mxu0 %v1463_v3  ;;  %1345 = vmatprep.subr.bf16.mxu1 %v1487_v12  ;;  %v1476_v18 = vld [vmem:[%s2095_s1 + $0x94] ss:$12 sps:$4 sm:$0xff]   ;;  %v1497_v19 = vld [vmem:[%s2095_s1 + $0x110] ss:$12 sps:$4 sm:$0xff]   ;;  %v1479_v22 = vld [vmem:[%s2095_s1 + $0xac] ss:$12 sps:$4 sm:$0xff]  }
   0x8   :  { %803 = vmatprep.subr.bf16.mxu0 %v1464_v4  ;;  %v1498_v20 = vld [vmem:[%s2095_s1 + $0x50] ss:$12 sps:$4 sm:$0xff]   ;;  %v1502_v23 = vld [vmem:[%s2095_s1 + $0x128] ss:$12 sps:$4 sm:$0xff]   ;;  %v1507_v27 = vld [vmem:[%s2095_s1 + $0x140] ss:$12 sps:$4 sm:$0xff]  }
   0x9   :  { %v1478_v21 = vld [vmem:[%s2095_s1 + $0x90] ss:$12 sps:$4 sm:$0xff]   ;;  %v1481_v24 = vld [vmem:[%s2095_s1 + $0xa8] ss:$12 sps:$4 sm:$0xff]   ;;  %v1486_v29 = vld [vmem:[%s2095_s1 + $0xc0] ss:$12 sps:$4 sm:$0xff]  }
   0xa   :  { %1346 = vmatpush3.bf16.msra.mxu1 %v1488_v13  ;;  %v1503_v25 = vld [vmem:[%s2095_s1 + $0x68] ss:$12 sps:$4 sm:$0xff]   ;;  %v1484_v26 = vld [vmem:[%s2095_s1 + $0xc4] ss:$12 sps:$4 sm:$0xff]   ;;  %v1508_v30 = vld [vmem:[%s2095_s1 + $0x80] ss:$12 sps:$4 sm:$0xff]  }
   0xb   :  { %804 = vmatpush1.bf16.msra.mxu0 %v1466_v5  ;;  %1347 = vmatprep.subr.bf16.mxu1 %v1492_v16  ;;  %v1512_v31 = vld [vmem:[%s2095_s1 + $0x158] ss:$12 sps:$4 sm:$0xff]   ;;  %v1489_v32 = vld [vmem:[%s2095_s1 + $0xdc] ss:$12 sps:$4 sm:$0xff]   ;;  %v1494_v36 = vld [vmem:[%s2095_s1 + $0xf4] ss:$12 sps:$4 sm:$0xff]  }
   0xc   :  { %805 = vmatprep.subr.bf16.mxu0 %v1467_v6  ;;  %v1491_v33 = vld [vmem:[%s2095_s1 + $0xd8] ss:$12 sps:$4 sm:$0xff]   ;;  %v1517_v35 = vld [vmem:[%s2095_s1 + $0x170] ss:$12 sps:$4 sm:$0xff]   ;;  %v1525_v40 = vld [vmem:[%s2095_s1 + $0x248] ss:$12 sps:$4 sm:$0xff]  }
   0xd   :  { %v1513_v34 = vld [vmem:[%s2095_s1 + $0x98] ss:$12 sps:$4 sm:$0xff]   ;;  %v1496_v37 = vld [vmem:[%s2095_s1 + $0xf0] ss:$12 sps:$4 sm:$0xff]   ;;  %v1501_v42 = vld [vmem:[%s2095_s1 + $0x108] ss:$12 sps:$4 sm:$0xff]  }
   0xe   :  { %1348 = vmatpush3.bf16.msra.mxu1 %v1493_v17  ;;  %v1518_v38 = vld [vmem:[%s2095_s1 + $0xb0] ss:$12 sps:$4 sm:$0xff]   ;;  %v1523_v39 = vld [vmem:[%s2096_s0 + $0x4] ss:$16 sps:$4 sm:$0xff]   ;;  %v1499_v41 = vld [vmem:[%s2095_s1 + $0x10c] ss:$12 sps:$4 sm:$0xff]  }
   0xf   :  { %806 = vmatpush1.bf16.msra.mxu0 %v1469_v7  ;;  %1349 = vmatprep.subr.bf16.mxu1 %v1497_v19  ;;  %v1521_v43 = vld [vmem:[%s2096_s0] ss:$16 sps:$4 sm:$0xff]   ;;  %v1526_v44 = vld [vmem:[%s2095_s1 + $0x188] ss:$12 sps:$4 sm:$0xff]   ;;  %v1538_v50 = vld [vmem:[%s2095_s1 + $0x278] ss:$12 sps:$4 sm:$0xff]  }
  0x10   :  { %807 = vmatprep.subr.bf16.mxu0 %v1470_v8  ;;  %977 = vmatprep.mubr.bf16.mxu1 %v1523_v39  ;;  %v1530_v45 = vld [vmem:[%s2095_s1 + $0x260] ss:$12 sps:$4 sm:$0xff]   ;;  %v1504_v46 = vld [vmem:[%s2095_s1 + $0x124] ss:$12 sps:$4 sm:$0xff]   ;;  %v1509_v51 = vld [vmem:[%s2095_s1 + $0x13c] ss:$12 sps:$4 sm:$0xff]  }
  0x11   :  { %831 = vmatprep.mubr.bf16.mxu0 %v1523_v39  ;;  %v1506_v47 = vld [vmem:[%s2095_s1 + $0x120] ss:$12 sps:$4 sm:$0xff]   ;;  %v1535_v49 = vld [vmem:[%s2096_s0 + $0x24] ss:$16 sps:$4 sm:$0xff]   ;;  %v1543_v55 = vld [vmem:[%s2095_s1 + $0x290] ss:$12 sps:$4 sm:$0xff]  }
  0x12   :  { %1350 = vmatpush3.bf16.msra.mxu1 %v1498_v20  ;;  %v1531_v48 = vld [vmem:[%s2095_s1 + $0x1a0] ss:$12 sps:$4 sm:$0xff]   ;;  %v1511_v52 = vld [vmem:[%s2095_s1 + $0x138] ss:$12 sps:$4 sm:$0xff]   ;;  %v1516_v57 = vld [vmem:[%s2095_s1 + $0x150] ss:$12 sps:$4 sm:$0xff]  }
  0x13   :  { %808 = vmatpush1.bf16.msra.mxu0 %v1472_v11  ;;  %1351 = vmatprep.subr.bf16.mxu1 %v1502_v23  ;;  %v1537_v53 = vld [vmem:[%s2096_s0 + $0x20] ss:$16 sps:$4 sm:$0xff]   ;;  %v1539_v54 = vld [vmem:[%s2095_s1 + $0x1b8] ss:$12 sps:$4 sm:$0xff]   ;;  %v1551_v60 = vld [vmem:[%s2095_s1 + $0x2a8] ss:$12 sps:$4 sm:$0xff]  }
  0x14   :  { %809 = vmatprep.subr.bf16.mxu0 %v1473_v14  ;;  %v1514_v56 = vld [vmem:[%s2095_s1 + $0x154] ss:$12 sps:$4 sm:$0xff]   ;;  %v1544_v58 = vld [vmem:[%s2095_s1 + $0x1d0] ss:$12 sps:$4 sm:$0xff]   ;;  %v1519_v61 = vld [vmem:[%s2095_s1 + $0x16c] ss:$12 sps:$4 sm:$0xff]  }
  0x15   :  { %v1548_v59 = vld [vmem:[%s2096_s0 + $0x44] ss:$16 sps:$4 sm:$0xff]   ;;  %v1550_v63 = vld [vmem:[%s2096_s0 + $0x40] ss:$16 sps:$4 sm:$0xff]   ;;  %v1534_v7 = vld [vmem:[%s2095_s1 + $0x19c] ss:$12 sps:$4 sm:$0xff]  }
  0x16   :  { %1352 = vmatpush3.bf16.msra.mxu1 %v1503_v25  ;;  %v1524_v62 = vld [vmem:[%s2095_s1 + $0x168] ss:$12 sps:$4 sm:$0xff]   ;;  %v1556_v1 = vld [vmem:[%s2095_s1 + $0x2c0] ss:$12 sps:$4 sm:$0xff]   ;;  %v1529_v2 = vld [vmem:[%s2095_s1 + $0x184] ss:$12 sps:$4 sm:$0xff]  }
  0x17   :  { %810 = vmatpush1.bf16.msra.mxu0 %v1475_v15  ;;  %1353 = vmatprep.subr.bf16.mxu1 %v1507_v27  ;;  %v1552_v0 = vld [vmem:[%s2095_s1 + $0x1e8] ss:$12 sps:$4 sm:$0xff]   ;;  %v1527_v3 = vld [vmem:[%s2095_s1 + $0x180] ss:$12 sps:$4 sm:$0xff]   ;;  %v1564_v6 = vld [vmem:[%s2095_s1 + $0x2d8] ss:$12 sps:$4 sm:$0xff]  }
  0x18   :  { %811 = vmatprep.subr.bf16.mxu0 %v1476_v18  ;;  %v1557_v4 = vld [vmem:[%s2095_s1 + $0x200] ss:$12 sps:$4 sm:$0xff]   ;;  %v1561_v5 = vld [vmem:[%s2096_s0 + $0x64] ss:$16 sps:$4 sm:$0xff]   ;;  %v1569_v11 = vld [vmem:[%s2095_s1 + $0x2f0] ss:$12 sps:$4 sm:$0xff]  }
  0x19   :  { %v1532_v8 = vld [vmem:[%s2095_s1 + $0x198] ss:$12 sps:$4 sm:$0xff]   ;;  %v1563_v9 = vld [vmem:[%s2096_s0 + $0x60] ss:$16 sps:$4 sm:$0xff]   ;;  %v1576_v14 = vld [vmem:[%s2096_s0 + $0xc] ss:$16 sps:$4 sm:$0xff]  }
  0x1a   :  { %1354 = vmatpush3.bf16.msra.mxu1 %v1508_v30  ;;  %v1565_v10 = vld [vmem:[%s2095_s1 + $0x218] ss:$12 sps:$4 sm:$0xff]   ;;  %v1542_v12 = vld [vmem:[%s2095_s1 + $0x1b4] ss:$12 sps:$4 sm:$0xff]   ;;  %v1570_v13 = vld [vmem:[%s2095_s1 + $0x230] ss:$12 sps:$4 sm:$0xff]  }
  0x1b   :  { %812 = vmatpush1.bf16.msra.mxu0 %v1478_v21  ;;  %1355 = vmatprep.subr.bf16.mxu1 %v1512_v31  ;;  %v1540_v15 = vld [vmem:[%s2095_s1 + $0x1b0] ss:$12 sps:$4 sm:$0xff]   ;;  %v1547_v16 = vld [vmem:[%s2095_s1 + $0x1cc] ss:$12 sps:$4 sm:$0xff]   ;;  %v1545_v19 = vld [vmem:[%s2095_s1 + $0x1c8] ss:$12 sps:$4 sm:$0xff]  }
  0x1c   :  { %813 = vmatprep.subr.bf16.mxu0 %v1479_v22  ;;  %v1874_v17 = vld [vmem:[%s2096_s0 + $0x8] ss:$16 sps:$4 sm:$0xff]   ;;  %v1879_v18 = vld [vmem:[%s2096_s0 + $0x2c] ss:$16 sps:$4 sm:$0xff]   ;;  %v1555_v20 = vld [vmem:[%s2095_s1 + $0x1e4] ss:$12 sps:$4 sm:$0xff]  }
  0x1d   :  { %v1553_v21 = vld [vmem:[%s2095_s1 + $0x1e0] ss:$12 sps:$4 sm:$0xff]   ;;  %v1560_v22 = vld [vmem:[%s2095_s1 + $0x1fc] ss:$12 sps:$4 sm:$0xff]   ;;  %v1558_v25 = vld [vmem:[%s2095_s1 + $0x1f8] ss:$12 sps:$4 sm:$0xff]  }
  0x1e   :  { %1356 = vmatpush3.bf16.msra.mxu1 %v1513_v34  ;;  %v1898_v23 = vld [vmem:[%s2096_s0 + $0x28] ss:$16 sps:$4 sm:$0xff]   ;;  %v159_v27 = vld [vmem:[%s2097_s2] sm:$0xff]  ;;  %v161_v28 = vld [vmem:[%s2097_s2 + $0x10] sm:$0xff] }
  0x1f   :  { %814 = vmatpush1.bf16.msra.mxu0 %v1481_v24  ;;  %1357 = vmatprep.subr.bf16.mxu1 %v1517_v35  ;;  %v1903_v24 = vld [vmem:[%s2096_s0 + $0x4c] ss:$16 sps:$4 sm:$0xff]   ;;  %v1571_v35 = vld [vmem:[%s2095_s1 + $0x228] ss:$12 sps:$4 sm:$0xff]  }
  0x20   :  { %815 = vmatprep.subr.bf16.mxu0 %v1484_v26  ;;  %v1568_v26 = vld [vmem:[%s2095_s1 + $0x214] ss:$12 sps:$4 sm:$0xff]   ;;  %169 = vperm.xlu0 %1456, %v159_v27   ;;  %v160_v30 = vld [vmem:[%s2097_s2 + $0x8] sm:$0xff] }
  0x21   :  { %179 = vperm.xlu1 %1457, %v161_v28   ;;  %v1573_v31 = vld [vmem:[%s2095_s1 + $0x22c] ss:$12 sps:$4 sm:$0xff]  }
  0x22   :  { %1358 = vmatpush3.bf16.msra.mxu1 %v1518_v38  ;;  %v1601_v34 = vld [vmem:[%s2096_s0 + $0x6c] ss:$16 sps:$4 sm:$0xff]  }
  0x23   :  { %816 = vmatpush1.bf16.msra.mxu0 %v1486_v29  ;;  %1383 = vmatprep.subr.bf16.mxu1 %v1525_v40  ;;  %v1566_v29 = vld [vmem:[%s2095_s1 + $0x210] ss:$12 sps:$4 sm:$0xff]   ;;  %v164_v38 = vld [vmem:[%s2097_s2 + $0x28] sm:$0xff] }
  0x24   :  { %817 = vmatprep.subr.bf16.mxu0 %v1489_v32  ;;  %v1594_v32 = vld [vmem:[%s2096_s0 + $0x48] ss:$16 sps:$4 sm:$0xff]   ;;  %174 = vperm.xlu0 %1456, %v160_v30   ;;  %v1577_v39 = vld [vmem:[%s2095_s1 + $0x240] ss:$12 sps:$4 sm:$0xff]   ;;  %v165_v40 = vld [vmem:[%s2097_s2 + $0x30] sm:$0xff] }
  0x25   :  { %978 = vmatmul.mubr.bf16.vlgmr.msra.gmra.mrb[0].mxu1 %v1521_v43 }
  0x26   :  { %1384 = vmatpush3.bf16.msra.mxu1 %v1526_v44  ;;  %985 = vmatprep.mubr.bf16.mxu1 %v1535_v49  ;;  %v1580_v44 = vld [vmem:[%s2095_s1 + $0x258] ss:$12 sps:$4 sm:$0xff]  }
  0x27   :  { %818 = vmatpush1.bf16.msra.mxu0 %v1491_v33  ;;  %1385 = vmatprep.subr.bf16.mxu1 %v1530_v45  ;;  %v162_v33 = vld [vmem:[%s2097_s2 + $0x18] sm:$0xff]  ;;  %v1588_v45 = vld [vmem:[%s2095_s1 + $0x274] ss:$12 sps:$4 sm:$0xff]  }
  0x28   :  { %819 = vmatprep.subr.bf16.mxu0 %v1494_v36  ;;  %v163_v36 = vld [vmem:[%s2097_s2 + $0x20] sm:$0xff]  ;;  %184 = vperm.xlu1 %1457, %v162_v33  }
  0x29   :  { %189 = vperm.xlu0 %1456, %v163_v36  }
  0x2a   :  { %1386 = vmatpush3.bf16.msra.mxu1 %v1531_v48  ;;  %v1589_v48 = vld [vmem:[%s2095_s1 + $0x288] ss:$12 sps:$4 sm:$0xff]  }
  0x2b   :  { %820 = vmatpush1.bf16.msra.mxu0 %v1496_v37  ;;  %1387 = vmatprep.subr.bf16.mxu1 %v1538_v50  ;;  %v1579_v37 = vld [vmem:[%s2095_s1 + $0x244] ss:$12 sps:$4 sm:$0xff]   ;;  %v1595_v50 = vld [vmem:[%s2095_s1 + $0x2a0] ss:$12 sps:$4 sm:$0xff]  }
  0x2c   :  { %821 = vmatprep.subr.bf16.mxu0 %v1499_v41  ;;  %v1582_v41 = vld [vmem:[%s2095_s1 + $0x25c] ss:$12 sps:$4 sm:$0xff]   ;;  %194 = vperm.xlu1 %1457, %v164_v38  }
  0x2d   :  { %986 = vmatmul.mubr.bf16.gmra.mrb[4].mxu1 %v1537_v53  ;;  %199 = vperm.xlu0 %1456, %v165_v40  }
  0x2e   :  { %1388 = vmatpush3.bf16.msra.mxu1 %v1539_v54  ;;  %993 = vmatprep.mubr.bf16.mxu1 %v1548_v59  ;;  %v1604_v54 = vld [vmem:[%s2095_s1 + $0x2d0] ss:$12 sps:$4 sm:$0xff]  }
  0x2f   :  { %822 = vmatpush1.bf16.msra.mxu0 %v1501_v42  ;;  %1389 = vmatprep.subr.bf16.mxu1 %v1543_v55  ;;  %v1603_v42 = vld [vmem:[%s2096_s0 + $0x68] ss:$16 sps:$4 sm:$0xff]  }
  0x30   :  { %823 = vmatprep.subr.bf16.mxu0 %v1504_v46  ;;  %v1586_v46 = vld [vmem:[%s2095_s1 + $0x270] ss:$12 sps:$4 sm:$0xff]   ;;  %v1609_v55 = vld [vmem:[%s2095_s1 + $0x2ec] ss:$12 sps:$4 sm:$0xff]  }
  0x32   :  { %1390 = vmatpush3.bf16.msra.mxu1 %v1544_v58 }
  0x33   :  { %824 = vmatpush1.bf16.msra.mxu0 %v1506_v47  ;;  %1391 = vmatprep.subr.bf16.mxu1 %v1551_v60  ;;  %v1591_v47 = vld [vmem:[%s2095_s1 + $0x28c] ss:$12 sps:$4 sm:$0xff]  }
  0x34   :  { %825 = vmatprep.subr.bf16.mxu0 %v1509_v51  ;;  %v1600_v51 = vld [vmem:[%s2095_s1 + $0x2bc] ss:$12 sps:$4 sm:$0xff]  }
  0x35   :  { %994 = vmatmul.mubr.bf16.gmra.mrb[8].mxu1 %v1550_v63 }
  0x36   :  { %1392 = vmatpush3.bf16.msra.mxu1 %v1552_v0  ;;  %1001 = vmatprep.mubr.bf16.mxu1 %v1561_v5 }
  0x37   :  { %826 = vmatpush1.bf16.msra.mxu0 %v1511_v52  ;;  %1393 = vmatprep.subr.bf16.mxu1 %v1556_v1  ;;  %v1598_v52 = vld [vmem:[%s2095_s1 + $0x2b8] ss:$12 sps:$4 sm:$0xff]  }
  0x38   :  { %827 = vmatprep.subr.bf16.mxu0 %v1514_v56  ;;  %v1607_v56 = vld [vmem:[%s2095_s1 + $0x2e8] ss:$12 sps:$4 sm:$0xff]  }
  0x3a   :  { %1394 = vmatpush3.bf16.msra.mxu1 %v1557_v4 }
  0x3b   :  { %828 = vmatpush1.bf16.msra.mxu0 %v1516_v57  ;;  %1395 = vmatprep.subr.bf16.mxu1 %v1564_v6 }
  0x3c   :  { %829 = vmatprep.subr.bf16.mxu0 %v1519_v61 }
  0x3d   :  { %1002 = vmatmul.mubr.bf16.gmra.mrb[12].mxu1 %v1563_v9 }
  0x3e   :  { %1396 = vmatpush3.bf16.msra.mxu1 %v1565_v10  ;;  %1042 = vmatprep.mubr.bf16.mxu1 %v1576_v14 }
  0x3f   :  { %830 = vmatpush1.bf16.msra.mxu0 %v1524_v62  ;;  %1397 = vmatprep.subr.bf16.mxu1 %v1569_v11 }
  0x40   :  { %872 = vmatprep.subr.bf16.mxu0 %v1529_v2 }
  0x42   :  { %832 = vmatmul.mubr.bf16.vlgmr.msra.gmra.mrb[0].mxu0 %v1521_v43  ;;  %1398 = vmatpush3.bf16.msra.mxu1 %v1570_v13  ;;  %v166_v43 = vld [vmem:[%s2097_s2 + $0x38] sm:$0xff] }
  0x43   :  { %873 = vmatpush1.bf16.msra.mxu0 %v1527_v3  ;;  %841 = vmatprep.mubr.bf16.mxu0 %v1535_v49  ;;  %v1597_v49 = vld [vmem:[%s2095_s1 + $0x2a4] ss:$12 sps:$4 sm:$0xff]  }
  0x44   :  { %874 = vmatprep.subr.bf16.mxu0 %v1534_v7  ;;  %204 = vperm.xlu1 %1457, %v166_v43  }
  0x45   :  { %1043 = vmatmul.mubr.bf16.vlgmr.msra.gmra.mrb[16].mxu1 %v1874_v17 }
  0x46   :  { %1050 = vmatprep.mubr.bf16.mxu1 %v1879_v18 }
  0x47   :  { %875 = vmatpush1.bf16.msra.mxu0 %v1532_v8 }
  0x48   :  { %876 = vmatprep.subr.bf16.mxu0 %v1542_v12 }
  0x4a   :  { %842 = vmatmul.mubr.bf16.gmra.mrb[4].mxu0 %v1537_v53  ;;  %v1606_v53 = vld [vmem:[%s2095_s1 + $0x2d4] ss:$12 sps:$4 sm:$0xff]  }
  0x4b   :  { %877 = vmatpush1.bf16.msra.mxu0 %v1540_v15  ;;  %851 = vmatprep.mubr.bf16.mxu0 %v1548_v59 }
  0x4c   :  { %878 = vmatprep.subr.bf16.mxu0 %v1547_v16 }
  0x4d   :  { %1051 = vmatmul.mubr.bf16.gmra.mrb[20].mxu1 %v1898_v23 }
  0x4e   :  { %1058 = vmatprep.mubr.bf16.mxu1 %v1903_v24 }
  0x4f   :  { %879 = vmatpush1.bf16.msra.mxu0 %v1545_v19 }
  0x50   :  { %880 = vmatprep.subr.bf16.mxu0 %v1555_v20 }
  0x52   :  { %852 = vmatmul.mubr.bf16.gmra.mrb[8].mxu0 %v1550_v63 }
  0x53   :  { %881 = vmatpush1.bf16.msra.mxu0 %v1553_v21  ;;  %861 = vmatprep.mubr.bf16.mxu0 %v1561_v5 }
  0x54   :  { %882 = vmatprep.subr.bf16.mxu0 %v1560_v22 }
  0x55   :  { %1059 = vmatmul.mubr.bf16.gmra.mrb[24].mxu1 %v1594_v32 }
  0x56   :  { %1066 = vmatprep.mubr.bf16.mxu1 %v1601_v34 }
  0x57   :  { %883 = vmatpush1.bf16.msra.mxu0 %v1558_v25 }
  0x58   :  { %884 = vmatprep.subr.bf16.mxu0 %v1568_v26 }
  0x5a   :  { %862 = vmatmul.mubr.bf16.gmra.mrb[12].mxu0 %v1563_v9 }
  0x5b   :  { %885 = vmatpush1.bf16.msra.mxu0 %v1566_v29  ;;  %904 = vmatprep.mubr.bf16.mxu0 %v1576_v14 }
  0x5c   :  { %886 = vmatprep.subr.bf16.mxu0 %v1573_v31 }
  0x5d   :  { %1067 = vmatmul.mubr.bf16.gmra.mrb[28].mxu1 %v1603_v42 }
  0x5f   :  { %887 = vmatpush1.bf16.msra.mxu0 %v1571_v35 }
  0x60   :  { %888 = vmatprep.subr.bf16.mxu0 %v1579_v37 }
  0x63   :  { %889 = vmatpush1.bf16.msra.mxu0 %v1577_v39 }
  0x64   :  { %890 = vmatprep.subr.bf16.mxu0 %v1582_v41 }
  0x67   :  { %891 = vmatpush1.bf16.msra.mxu0 %v1580_v44 }
  0x68   :  { %892 = vmatprep.subr.bf16.mxu0 %v1588_v45 }
  0x6b   :  { %893 = vmatpush1.bf16.msra.mxu0 %v1586_v46 }
  0x6c   :  { %894 = vmatprep.subr.bf16.mxu0 %v1591_v47 }
  0x6f   :  { %895 = vmatpush1.bf16.msra.mxu0 %v1589_v48 }
  0x70   :  { %896 = vmatprep.subr.bf16.mxu0 %v1597_v49 }
  0x73   :  { %897 = vmatpush1.bf16.msra.mxu0 %v1595_v50 }
  0x74   :  { %898 = vmatprep.subr.bf16.mxu0 %v1600_v51 }
  0x77   :  { %899 = vmatpush1.bf16.msra.mxu0 %v1598_v52 }
  0x78   :  { %900 = vmatprep.subr.bf16.mxu0 %v1606_v53 }
  0x7b   :  { %901 = vmatpush1.bf16.msra.mxu0 %v1604_v54 }
  0x7c   :  { %902 = vmatprep.subr.bf16.mxu0 %v1609_v55 }
  0x7f   :  { %903 = vmatpush1.bf16.msra.mxu0 %v1607_v56 }
  0x82   :  { %905 = vmatmul.mubr.bf16.vlgmr.msra.gmra.mrb[0].mxu0 %v1874_v17 }
  0x83   :  { %914 = vmatprep.mubr.bf16.mxu0 %v1879_v18 }
  0x8a   :  { %915 = vmatmul.mubr.bf16.gmra.mrb[4].mxu0 %v1898_v23 }
  0x8b   :  { %924 = vmatprep.mubr.bf16.mxu0 %v1903_v24 }
  0x92   :  { %925 = vmatmul.mubr.bf16.gmra.mrb[8].mxu0 %v1594_v32 }
  0x93   :  { %934 = vmatprep.mubr.bf16.mxu0 %v1601_v34 }
  0x9a   :  { %935 = vmatmul.mubr.bf16.gmra.mrb[12].mxu0 %v1603_v42 }
  0x9f   :  { %v2007_v13 = vpop.permute.xlu0 %169 }
  0xa0   :  { %v2012_v22 = vpop.permute.xlu1 %179 }
  0xa3   :  { %v2009_v18 = vpop.permute.xlu0 %174 }
  0xa7   :  { %v2015_v31 = vpop.permute.xlu1 %184 }
  0xa8   :  { %v2025_v44 = vpop.permute.xlu0 %189 }
  0xab   :  { %v2027_v47 = vpop.permute.xlu1 %194 }
  0xf8   :  { %v1359_v57 = vpop.f32.mrb[0].mxu1 }
  0xf9   :  { %v1360_v58 = vpop.f32.mrb[1].mxu1 }
  0xfa   :  { %v1361_v59 = vadd.f32 %v1360_v58, %v1359_v57  ;;  %v1362_v60 = vpop.f32.mrb[2].mxu1 }
  0xfb   :  { %v1363_v61 = vpop.f32.mrb[3].mxu1 }
  0xfc   :  { %v1364_v62 = vadd.f32 %v1363_v61, %v1362_v60  ;;  %v980_v19 = vadd.f32 %v1361_v59, %v2007_v13  ;;  %v2037_v60 = vpop.permute.xlu0 %199 }
  0xfe   :  { %v983_v25 = vadd.f32 %v1364_v62, %v2009_v18 }
 0x100   :  { %v1365_v63 = vpop.f32.mrb[4].mxu1 }
 0x101   :  { %v1366_v0 = vpop.f32.mrb[5].mxu1 }
 0x102   :  { %v1367_v1 = vadd.f32 %v1366_v0, %v1365_v63  ;;  %v1368_v2 = vpop.f32.mrb[6].mxu1  ;;  %v2039_v63 = vpop.permute.xlu1 %204 }
 0x103   :  { %v1369_v3 = vpop.f32.mrb[7].mxu1 }
 0x104   :  { %v1370_v4 = vadd.f32 %v1369_v3, %v1368_v2  ;;  %v988_v34 = vadd.f32 %v1367_v1, %v2012_v22 }
 0x106   :  { %v991_v40 = vadd.f32 %v1370_v4, %v2015_v31 }
 0x108   :  { %v1371_v5 = vpop.f32.mrb[8].mxu1 }
 0x109   :  { %v1372_v6 = vpop.f32.mrb[9].mxu1 }
 0x10a   :  { %v1373_v7 = vadd.f32 %v1372_v6, %v1371_v5  ;;  %v1374_v8 = vpop.f32.mrb[10].mxu1 }
 0x10b   :  { %v1375_v9 = vpop.f32.mrb[11].mxu1 }
 0x10c   :  { %v1376_v10 = vadd.f32 %v1375_v9, %v1374_v8  ;;  %v996_v51 = vadd.f32 %v1373_v7, %v2025_v44 }
 0x10e   :  { %v999_v56 = vadd.f32 %v1376_v10, %v2027_v47 }
 0x110   :  { %v1377_v11 = vpop.f32.mrb[12].mxu1 }
 0x111   :  { %v1378_v12 = vpop.f32.mrb[13].mxu1 }
 0x112   :  { %v1379_v14 = vadd.f32 %v1378_v12, %v1377_v11  ;;  %v1380_v15 = vpop.f32.mrb[14].mxu1 }
 0x113   :  { %v1381_v16 = vpop.f32.mrb[15].mxu1 }
 0x114   :  { %v1382_v17 = vadd.f32 %v1381_v16, %v1380_v15  ;;  %v1004_v3 = vadd.f32 %v1379_v14, %v2037_v60 }
 0x116   :  { %v1007_v8 = vadd.f32 %v1382_v17, %v2039_v63 }
 0x118   :  { %v1399_v20 = vpop.f32.mrb[16].mxu1 }
 0x119   :  { %v1400_v21 = vpop.f32.mrb[17].mxu1 }
 0x11a   :  { %v1401_v23 = vadd.f32 %v1400_v21, %v1399_v20  ;;  %v1402_v24 = vpop.f32.mrb[18].mxu1 }
 0x11b   :  { %v1403_v26 = vpop.f32.mrb[19].mxu1 }
 0x11c   :  { %v1045_v27 = vadd.f32 %v1401_v23, %v980_v19  ;;  %v1404_v28 = vadd.f32 %v1403_v26, %v1402_v24 }
 0x11e   :  { %v1077_v29 = vmax.f32 %v1045_v27, 0.0  ;;  %v1048_v30 = vadd.f32 %v1404_v28, %v983_v25 }
 0x120   :  { %v1328_v32 = vpack.c.bf16 %v1077_v29, %v1077_v29  ;;  %v1080_v33 = vmax.f32 %v1048_v30, 0.0  ;;  %v1405_v35 = vpop.f32.mrb[20].mxu1 }
 0x121   :  { %v1406_v36 = vpop.f32.mrb[21].mxu1 }
 0x122   :  { %1180 = vst [vmem:[%s2098_s3 + $0x8] sm:$0xf] %v1328_v32  ;;  %v1330_v37 = vpack.c.bf16 %v1080_v33, %v1080_v33  ;;  %v1407_v38 = vadd.f32 %v1406_v36, %v1405_v35  ;;  %v1408_v39 = vpop.f32.mrb[22].mxu1 }
 0x123   :  { %v1409_v41 = vpop.f32.mrb[23].mxu1 }
 0x124   :  { %1182 = vst [vmem:[%s2098_s3 + $0x14] sm:$0xf] %v1330_v37  ;;  %v1053_v42 = vadd.f32 %v1407_v38, %v988_v34  ;;  %v1410_v43 = vadd.f32 %v1409_v41, %v1408_v39 }
 0x126   :  { %v1083_v45 = vmax.f32 %v1053_v42, 0.0  ;;  %v1056_v46 = vadd.f32 %v1410_v43, %v991_v40 }
 0x128   :  { %v1332_v48 = vpack.c.bf16 %v1083_v45, %v1083_v45  ;;  %v1086_v49 = vmax.f32 %v1056_v46, 0.0  ;;  %v1411_v50 = vpop.f32.mrb[24].mxu1 }
 0x129   :  { %v1412_v52 = vpop.f32.mrb[25].mxu1 }
 0x12a   :  { %1184 = vst [vmem:[%s2098_s3 + $0x20] sm:$0xf] %v1332_v48  ;;  %v1334_v53 = vpack.c.bf16 %v1086_v49, %v1086_v49  ;;  %v1413_v54 = vadd.f32 %v1412_v52, %v1411_v50  ;;  %v1414_v55 = vpop.f32.mrb[26].mxu1 }
 0x12b   :  { %v1415_v57 = vpop.f32.mrb[27].mxu1 }
 0x12c   :  { %1186 = vst [vmem:[%s2098_s3 + $0x2c] sm:$0xf] %v1334_v53  ;;  %v1061_v58 = vadd.f32 %v1413_v54, %v996_v51  ;;  %v1416_v59 = vadd.f32 %v1415_v57, %v1414_v55 }
 0x12e   :  { %v1089_v61 = vmax.f32 %v1061_v58, 0.0  ;;  %v1064_v62 = vadd.f32 %v1416_v59, %v999_v56 }
 0x130   :  { %v1336_v0 = vpack.c.bf16 %v1089_v61, %v1089_v61  ;;  %v1092_v1 = vmax.f32 %v1064_v62, 0.0  ;;  %v1417_v2 = vpop.f32.mrb[28].mxu1 }
 0x131   :  { %v1418_v4 = vpop.f32.mrb[29].mxu1 }
 0x132   :  { %1188 = vst [vmem:[%s2098_s3 + $0x38] sm:$0xf] %v1336_v0  ;;  %v1338_v5 = vpack.c.bf16 %v1092_v1, %v1092_v1  ;;  %v1419_v6 = vadd.f32 %v1418_v4, %v1417_v2  ;;  %v1420_v7 = vpop.f32.mrb[30].mxu1 }
 0x133   :  { %v1421_v9 = vpop.f32.mrb[31].mxu1 }
 0x134   :  { %1190 = vst [vmem:[%s2098_s3 + $0x44] sm:$0xf] %v1338_v5  ;;  %v1069_v10 = vadd.f32 %v1419_v6, %v1004_v3  ;;  %v1422_v11 = vadd.f32 %v1421_v9, %v1420_v7 }
 0x136   :  { %v1095_v12 = vmax.f32 %v1069_v10, 0.0  ;;  %v1072_v15 = vadd.f32 %v1422_v11, %v1007_v8 }
 0x138   :  { %v1340_v14 = vpack.c.bf16 %v1095_v12, %v1095_v12  ;;  %v1098_v16 = vmax.f32 %v1072_v15, 0.0 }
 0x13a   :  { %1192 = vst [vmem:[%s2098_s3 + $0x50] sm:$0xf] %v1340_v14  ;;  %v1342_v19 = vpack.c.bf16 %v1098_v16, %v1098_v16 }
 0x13c   :  { %1194 = vst [vmem:[%s2098_s3 + $0x5c] sm:$0xf] %v1342_v19 }
 0x155   :  { %v906_v17 = vpop.f32.mrb[0].mxu0 }
 0x156   :  { %v1423_v20 = vadd.f32 %v906_v17, %v2007_v13  ;;  %v908_v21 = vpop.f32.mrb[1].mxu0 }
 0x157   :  { %v1424_v23 = vadd.f32 %v908_v21, %v2007_v13  ;;  %v910_v24 = vpop.f32.mrb[2].mxu0 }
 0x158   :  { %v1075_v25 = vmax.f32 %v1423_v20, 0.0  ;;  %v1425_v26 = vadd.f32 %v910_v24, %v2009_v18  ;;  %v912_v27 = vpop.f32.mrb[3].mxu0 }
 0x159   :  { %v1076_v28 = vmax.f32 %v1424_v23, 0.0  ;;  %v1426_v29 = vadd.f32 %v912_v27, %v2009_v18 }
 0x15a   :  { %v1078_v30 = vmax.f32 %v1425_v26, 0.0 }
 0x15b   :  { %v1327_v32 = vpack.c.bf16 %v1076_v28, %v1075_v25  ;;  %v1079_v33 = vmax.f32 %v1426_v29, 0.0 }
 0x15d   :  { %1179 = vst [vmem:[%s2098_s3] sm:$0xff] %v1327_v32  ;;  %v1329_v34 = vpack.c.bf16 %v1079_v33, %v1078_v30  ;;  %v916_v35 = vpop.f32.mrb[4].mxu0 }
 0x15e   :  { %v1427_v36 = vadd.f32 %v916_v35, %v2012_v22  ;;  %v918_v13 = vpop.f32.mrb[5].mxu0 }
 0x15f   :  { %1181 = vst [vmem:[%s2098_s3 + $0xc] sm:$0xff] %v1329_v34  ;;  %v1428_v37 = vadd.f32 %v918_v13, %v2012_v22  ;;  %v920_v38 = vpop.f32.mrb[6].mxu0 }
 0x160   :  { %v1081_v18 = vmax.f32 %v1427_v36, 0.0  ;;  %v1429_v39 = vadd.f32 %v920_v38, %v2015_v31  ;;  %v922_v40 = vpop.f32.mrb[7].mxu0 }
 0x161   :  { %v1082_v41 = vmax.f32 %v1428_v37, 0.0  ;;  %v1430_v42 = vadd.f32 %v922_v40, %v2015_v31 }
 0x162   :  { %v1084_v43 = vmax.f32 %v1429_v39, 0.0 }
 0x163   :  { %v1331_v45 = vpack.c.bf16 %v1082_v41, %v1081_v18  ;;  %v1085_v46 = vmax.f32 %v1430_v42, 0.0 }
 0x165   :  { %1183 = vst [vmem:[%s2098_s3 + $0x18] sm:$0xff] %v1331_v45  ;;  %v1333_v48 = vpack.c.bf16 %v1085_v46, %v1084_v43  ;;  %v926_v49 = vpop.f32.mrb[8].mxu0 }
 0x166   :  { %v1431_v50 = vadd.f32 %v926_v49, %v2025_v44  ;;  %v928_v22 = vpop.f32.mrb[9].mxu0 }
 0x167   :  { %1185 = vst [vmem:[%s2098_s3 + $0x24] sm:$0xff] %v1333_v48  ;;  %v1432_v51 = vadd.f32 %v928_v22, %v2025_v44  ;;  %v930_v52 = vpop.f32.mrb[10].mxu0 }
 0x168   :  { %v1087_v31 = vmax.f32 %v1431_v50, 0.0  ;;  %v1433_v53 = vadd.f32 %v930_v52, %v2027_v47  ;;  %v932_v54 = vpop.f32.mrb[11].mxu0 }
 0x169   :  { %v1088_v55 = vmax.f32 %v1432_v51, 0.0  ;;  %v1434_v56 = vadd.f32 %v932_v54, %v2027_v47 }
 0x16a   :  { %v1090_v57 = vmax.f32 %v1433_v53, 0.0 }
 0x16b   :  { %v1335_v58 = vpack.c.bf16 %v1088_v55, %v1087_v31  ;;  %v1091_v59 = vmax.f32 %v1434_v56, 0.0 }
 0x16d   :  { %1187 = vst [vmem:[%s2098_s3 + $0x30] sm:$0xff] %v1335_v58  ;;  %v1337_v61 = vpack.c.bf16 %v1091_v59, %v1090_v57  ;;  %v936_v62 = vpop.f32.mrb[12].mxu0 }
 0x16e   :  { %v1435_v0 = vadd.f32 %v936_v62, %v2037_v60  ;;  %v938_v44 = vpop.f32.mrb[13].mxu0 }
 0x16f   :  { %1189 = vst [vmem:[%s2098_s3 + $0x3c] sm:$0xff] %v1337_v61  ;;  %v1436_v1 = vadd.f32 %v938_v44, %v2037_v60  ;;  %v940_v2 = vpop.f32.mrb[14].mxu0 }
 0x170   :  { %v1093_v47 = vmax.f32 %v1435_v0, 0.0  ;;  %v1437_v3 = vadd.f32 %v940_v2, %v2039_v63  ;;  %v942_v4 = vpop.f32.mrb[15].mxu0 }
 0x171   :  { %v1094_v5 = vmax.f32 %v1436_v1, 0.0  ;;  %v1438_v6 = vadd.f32 %v942_v4, %v2039_v63 }
 0x172   :  { %v1096_v7 = vmax.f32 %v1437_v3, 0.0 }
 0x173   :  { %v1339_v8 = vpack.c.bf16 %v1094_v5, %v1093_v47  ;;  %v1097_v9 = vmax.f32 %v1438_v6, 0.0 }
 0x175   :  { %1191 = vst [vmem:[%s2098_s3 + $0x48] sm:$0xff] %v1339_v8  ;;  %v1341_v10 = vpack.c.bf16 %v1097_v9, %v1096_v7 }
 0x177   :  { %1193 = vst [vmem:[%s2098_s3 + $0x54] sm:$0xff] %v1341_v10 }

// kernel: dqn_forward.6
= control target key start
LH: loop header
LB: loop body
LE: loop exit
PB: predicated region body
PF: predicated region fallthrough
CT: control target
= control target key end

     0   :  { %v1297_v1 = vmov 0   ;;  %s1687_s1 = inlined_call_operand.vmem [shape: bf16[640,256], index: 1, kind: input, shape index: {}]   ;;  %s1688_s0 = inlined_call_operand.vmem [shape: bf16[64,640], index: 0, kind: input, shape index: {}]   ;;  %s1689_s2 = inlined_call_operand.vmem [shape: f32[64,1], index: 2, kind: input, shape index: {}]   ;;  %s1690_s3 = inlined_call_operand.vmem [shape: bf16[64,256], index: 3, kind: output, shape index: {}]  }
   0x1   :  { %v1149_v0 = vld [vmem:[%s1687_s1 + $0x4] ss:$8 sps:$4 sm:$0xff]   ;;  %1147 = vset.pattern.permute.xlu0 %v1297_v1  ;;  %1148 = vset.pattern.permute.xlu1 %v1297_v1  ;;  %v1153_v3 = vld [vmem:[%s1687_s1] ss:$8 sps:$4 sm:$0xff]   ;;  %v1155_v5 = vld [vmem:[%s1687_s1 + $0x14] ss:$8 sps:$4 sm:$0xff]  }
   0x2   :  { %v1151_v2 = vld [vmem:[%s1687_s1 + $0x104] ss:$8 sps:$4 sm:$0xff]   ;;  %671 = vmatprep.subr.bf16.mxu1 %v1149_v0  ;;  %v1154_v4 = vld [vmem:[%s1687_s1 + $0x100] ss:$8 sps:$4 sm:$0xff]   ;;  %v1157_v6 = vld [vmem:[%s1687_s1 + $0x114] ss:$8 sps:$4 sm:$0xff]  }
   0x3   :  { %744 = vmatprep.subr.bf16.mxu0 %v1151_v2  ;;  %672 = vmatpush1.bf16.msra.mxu1 %v1153_v3  ;;  %v1159_v7 = vld [vmem:[%s1687_s1 + $0x10] ss:$8 sps:$4 sm:$0xff]   ;;  %v1161_v9 = vld [vmem:[%s1687_s1 + $0x24] ss:$8 sps:$4 sm:$0xff]   ;;  %v1165_v11 = vld [vmem:[%s1687_s1 + $0x20] ss:$8 sps:$4 sm:$0xff]  }
   0x4   :  { %745 = vmatpush1.bf16.msra.mxu0 %v1154_v4  ;;  %673 = vmatprep.subr.bf16.mxu1 %v1155_v5  ;;  %v1160_v8 = vld [vmem:[%s1687_s1 + $0x110] ss:$8 sps:$4 sm:$0xff]   ;;  %v1163_v10 = vld [vmem:[%s1687_s1 + $0x124] ss:$8 sps:$4 sm:$0xff]   ;;  %v1166_v12 = vld [vmem:[%s1687_s1 + $0x120] ss:$8 sps:$4 sm:$0xff]  }
   0x5   :  { %746 = vmatprep.subr.bf16.mxu0 %v1157_v6  ;;  %v1167_v13 = vld [vmem:[%s1687_s1 + $0x34] ss:$8 sps:$4 sm:$0xff]   ;;  %v1171_v15 = vld [vmem:[%s1687_s1 + $0x30] ss:$8 sps:$4 sm:$0xff]   ;;  %v1173_v17 = vld [vmem:[%s1687_s1 + $0x44] ss:$8 sps:$4 sm:$0xff]  }
   0x6   :  { %v1169_v14 = vld [vmem:[%s1687_s1 + $0x134] ss:$8 sps:$4 sm:$0xff]   ;;  %v1172_v16 = vld [vmem:[%s1687_s1 + $0x130] ss:$8 sps:$4 sm:$0xff]   ;;  %v1175_v18 = vld [vmem:[%s1687_s1 + $0x144] ss:$8 sps:$4 sm:$0xff]  }
   0x7   :  { %674 = vmatpush1.bf16.msra.mxu1 %v1159_v7  ;;  %v1177_v19 = vld [vmem:[%s1687_s1 + $0x40] ss:$8 sps:$4 sm:$0xff]   ;;  %v1179_v21 = vld [vmem:[%s1687_s1 + $0x54] ss:$8 sps:$4 sm:$0xff]   ;;  %v1183_v23 = vld [vmem:[%s1687_s1 + $0x50] ss:$8 sps:$4 sm:$0xff]  }
   0x8   :  { %747 = vmatpush1.bf16.msra.mxu0 %v1160_v8  ;;  %675 = vmatprep.subr.bf16.mxu1 %v1161_v9  ;;  %v1178_v20 = vld [vmem:[%s1687_s1 + $0x140] ss:$8 sps:$4 sm:$0xff]   ;;  %v1181_v22 = vld [vmem:[%s1687_s1 + $0x154] ss:$8 sps:$4 sm:$0xff]   ;;  %v1184_v24 = vld [vmem:[%s1687_s1 + $0x150] ss:$8 sps:$4 sm:$0xff]  }
   0x9   :  { %748 = vmatprep.subr.bf16.mxu0 %v1163_v10  ;;  %v1185_v25 = vld [vmem:[%s1687_s1 + $0x64] ss:$8 sps:$4 sm:$0xff]   ;;  %v1189_v27 = vld [vmem:[%s1687_s1 + $0x60] ss:$8 sps:$4 sm:$0xff]   ;;  %v1191_v29 = vld [vmem:[%s1687_s1 + $0x74] ss:$8 sps:$4 sm:$0xff]  }
   0xa   :  { %v1187_v26 = vld [vmem:[%s1687_s1 + $0x164] ss:$8 sps:$4 sm:$0xff]   ;;  %v1190_v28 = vld [vmem:[%s1687_s1 + $0x160] ss:$8 sps:$4 sm:$0xff]   ;;  %v1193_v30 = vld [vmem:[%s1687_s1 + $0x174] ss:$8 sps:$4 sm:$0xff]  }
   0xb   :  { %676 = vmatpush1.bf16.msra.mxu1 %v1165_v11  ;;  %v1195_v31 = vld [vmem:[%s1687_s1 + $0x70] ss:$8 sps:$4 sm:$0xff]   ;;  %v1197_v33 = vld [vmem:[%s1687_s1 + $0x84] ss:$8 sps:$4 sm:$0xff]   ;;  %v1201_v35 = vld [vmem:[%s1687_s1 + $0x80] ss:$8 sps:$4 sm:$0xff]  }
   0xc   :  { %749 = vmatpush1.bf16.msra.mxu0 %v1166_v12  ;;  %677 = vmatprep.subr.bf16.mxu1 %v1167_v13  ;;  %v1196_v32 = vld [vmem:[%s1687_s1 + $0x170] ss:$8 sps:$4 sm:$0xff]   ;;  %v1199_v34 = vld [vmem:[%s1687_s1 + $0x184] ss:$8 sps:$4 sm:$0xff]   ;;  %v1202_v36 = vld [vmem:[%s1687_s1 + $0x180] ss:$8 sps:$4 sm:$0xff]  }
   0xd   :  { %750 = vmatprep.subr.bf16.mxu0 %v1169_v14  ;;  %v1203_v37 = vld [vmem:[%s1687_s1 + $0x94] ss:$8 sps:$4 sm:$0xff]   ;;  %v1207_v39 = vld [vmem:[%s1687_s1 + $0x90] ss:$8 sps:$4 sm:$0xff]   ;;  %v1209_v41 = vld [vmem:[%s1687_s1 + $0xa4] ss:$8 sps:$4 sm:$0xff]  }
   0xe   :  { %v1205_v38 = vld [vmem:[%s1687_s1 + $0x194] ss:$8 sps:$4 sm:$0xff]   ;;  %v1208_v40 = vld [vmem:[%s1687_s1 + $0x190] ss:$8 sps:$4 sm:$0xff]   ;;  %v1211_v42 = vld [vmem:[%s1687_s1 + $0x1a4] ss:$8 sps:$4 sm:$0xff]  }
   0xf   :  { %678 = vmatpush1.bf16.msra.mxu1 %v1171_v15  ;;  %v1213_v43 = vld [vmem:[%s1687_s1 + $0xa0] ss:$8 sps:$4 sm:$0xff]   ;;  %v1215_v45 = vld [vmem:[%s1687_s1 + $0xb4] ss:$8 sps:$4 sm:$0xff]   ;;  %v1219_v47 = vld [vmem:[%s1687_s1 + $0xb0] ss:$8 sps:$4 sm:$0xff]  }
  0x10   :  { %751 = vmatpush1.bf16.msra.mxu0 %v1172_v16  ;;  %679 = vmatprep.subr.bf16.mxu1 %v1173_v17  ;;  %v1214_v44 = vld [vmem:[%s1687_s1 + $0x1a0] ss:$8 sps:$4 sm:$0xff]   ;;  %v1217_v46 = vld [vmem:[%s1687_s1 + $0x1b4] ss:$8 sps:$4 sm:$0xff]   ;;  %v1220_v48 = vld [vmem:[%s1687_s1 + $0x1b0] ss:$8 sps:$4 sm:$0xff]  }
  0x11   :  { %752 = vmatprep.subr.bf16.mxu0 %v1175_v18  ;;  %v1221_v49 = vld [vmem:[%s1687_s1 + $0xc4] ss:$8 sps:$4 sm:$0xff]   ;;  %v1225_v53 = vld [vmem:[%s1687_s1 + $0xc0] ss:$8 sps:$4 sm:$0xff]   ;;  %v1227_v55 = vld [vmem:[%s1687_s1 + $0xd4] ss:$8 sps:$4 sm:$0xff]  }
  0x12   :  { %v1247_v50 = vld [vmem:[%s1688_s0 + $0x4] ss:$20 sps:$4 sm:$0xff]   ;;  %v1250_v52 = vld [vmem:[%s1688_s0 + $0xc] ss:$20 sps:$4 sm:$0xff]   ;;  %v1229_v56 = vld [vmem:[%s1687_s1 + $0x1d4] ss:$8 sps:$4 sm:$0xff]  }
  0x13   :  { %680 = vmatpush1.bf16.msra.mxu1 %v1177_v19  ;;  %v1223_v51 = vld [vmem:[%s1687_s1 + $0x1c4] ss:$8 sps:$4 sm:$0xff]   ;;  %703 = vmatprep.mubr.bf16.mxu1 %v1247_v50  ;;  %v1226_v54 = vld [vmem:[%s1687_s1 + $0x1c0] ss:$8 sps:$4 sm:$0xff]   ;;  %v1231_v57 = vld [vmem:[%s1687_s1 + $0xd0] ss:$8 sps:$4 sm:$0xff]  }
  0x14   :  { %753 = vmatpush1.bf16.msra.mxu0 %v1178_v20  ;;  %681 = vmatprep.subr.bf16.mxu1 %v1179_v21  ;;  %v1232_v58 = vld [vmem:[%s1687_s1 + $0x1d0] ss:$8 sps:$4 sm:$0xff]   ;;  %v1233_v59 = vld [vmem:[%s1687_s1 + $0xe4] ss:$8 sps:$4 sm:$0xff]   ;;  %v1237_v61 = vld [vmem:[%s1687_s1 + $0xe0] ss:$8 sps:$4 sm:$0xff]  }
  0x15   :  { %754 = vmatprep.subr.bf16.mxu0 %v1181_v22  ;;  %776 = vmatprep.mubr.bf16.mxu0 %v1250_v52  ;;  %v1235_v60 = vld [vmem:[%s1687_s1 + $0x1e4] ss:$8 sps:$4 sm:$0xff]   ;;  %v1238_v62 = vld [vmem:[%s1687_s1 + $0x1e0] ss:$8 sps:$4 sm:$0xff]   ;;  %v1239_v63 = vld [vmem:[%s1687_s1 + $0xf4] ss:$8 sps:$4 sm:$0xff]  }
  0x16   :  { %v1241_v0 = vld [vmem:[%s1687_s1 + $0x1f4] ss:$8 sps:$4 sm:$0xff]   ;;  %v1243_v2 = vld [vmem:[%s1687_s1 + $0xf0] ss:$8 sps:$4 sm:$0xff]   ;;  %v1253_v4 = vld [vmem:[%s1687_s1 + $0x204] ss:$8 sps:$4 sm:$0xff]  }
  0x17   :  { %682 = vmatpush1.bf16.msra.mxu1 %v1183_v23  ;;  %v1244_v3 = vld [vmem:[%s1687_s1 + $0x1f0] ss:$8 sps:$4 sm:$0xff]   ;;  %v1245_v5 = vld [vmem:[%s1688_s0] ss:$20 sps:$4 sm:$0xff]   ;;  %v1248_v6 = vld [vmem:[%s1688_s0 + $0x8] ss:$20 sps:$4 sm:$0xff]  }
  0x18   :  { %755 = vmatpush1.bf16.msra.mxu0 %v1184_v24  ;;  %683 = vmatprep.subr.bf16.mxu1 %v1185_v25  ;;  %v1251_v7 = vld [vmem:[%s1687_s1 + $0x200] ss:$8 sps:$4 sm:$0xff]   ;;  %v1256_v8 = vld [vmem:[%s1687_s1 + $0x214] ss:$8 sps:$4 sm:$0xff]   ;;  %v1254_v11 = vld [vmem:[%s1687_s1 + $0x210] ss:$8 sps:$4 sm:$0xff]  }
  0x19   :  { %756 = vmatprep.subr.bf16.mxu0 %v1187_v26  ;;  %v1257_v9 = vld [vmem:[%s1688_s0 + $0x2c] ss:$20 sps:$4 sm:$0xff]   ;;  %v1259_v10 = vld [vmem:[%s1688_s0 + $0x34] ss:$20 sps:$4 sm:$0xff]   ;;  %v1262_v16 = vld [vmem:[%s1688_s0 + $0x30] ss:$20 sps:$4 sm:$0xff]  }
  0x1a   :  { %v123_v12 = vld [vmem:[%s1689_s2 + $0x20] sm:$0xff]  ;;  %v125_v13 = vld [vmem:[%s1689_s2 + $0x30] sm:$0xff]  ;;  %v1261_v15 = vld [vmem:[%s1688_s0 + $0x28] ss:$20 sps:$4 sm:$0xff]  }
  0x1b   :  { %684 = vmatpush1.bf16.msra.mxu1 %v1189_v27  ;;  %v1265_v14 = vld [vmem:[%s1687_s1 + $0x224] ss:$8 sps:$4 sm:$0xff]   ;;  %149 = vperm.xlu0 %1147, %v123_v12   ;;  %v1263_v17 = vld [vmem:[%s1687_s1 + $0x220] ss:$8 sps:$4 sm:$0xff]   ;;  %v1268_v18 = vld [vmem:[%s1687_s1 + $0x234] ss:$8 sps:$4 sm:$0xff]  }
  0x1c   :  { %757 = vmatpush1.bf16.msra.mxu0 %v1190_v28  ;;  %685 = vmatprep.subr.bf16.mxu1 %v1191_v29  ;;  %v1269_v19 = vld [vmem:[%s1688_s0 + $0x54] ss:$20 sps:$4 sm:$0xff]   ;;  %v1271_v20 = vld [vmem:[%s1688_s0 + $0x5c] ss:$20 sps:$4 sm:$0xff]   ;;  %v1277_v24 = vld [vmem:[%s1687_s1 + $0x244] ss:$8 sps:$4 sm:$0xff]  }
  0x1d   :  { %758 = vmatprep.subr.bf16.mxu0 %v1193_v30  ;;  %159 = vperm.xlu1 %1148, %v125_v13   ;;  %v1266_v21 = vld [vmem:[%s1687_s1 + $0x230] ss:$8 sps:$4 sm:$0xff]   ;;  %v124_v22 = vld [vmem:[%s1689_s2 + $0x28] sm:$0xff]  ;;  %v1280_v28 = vld [vmem:[%s1687_s1 + $0x254] ss:$8 sps:$4 sm:$0xff]  }
  0x1e   :  { %v126_v23 = vld [vmem:[%s1689_s2 + $0x38] sm:$0xff]  ;;  %v1273_v25 = vld [vmem:[%s1688_s0 + $0x50] ss:$20 sps:$4 sm:$0xff]   ;;  %v1275_v27 = vld [vmem:[%s1687_s1 + $0x240] ss:$8 sps:$4 sm:$0xff]  }
  0x1f   :  { %686 = vmatpush1.bf16.msra.mxu1 %v1195_v31  ;;  %v1274_v26 = vld [vmem:[%s1688_s0 + $0x58] ss:$20 sps:$4 sm:$0xff]   ;;  %154 = vperm.xlu0 %1147, %v124_v22   ;;  %v1281_v29 = vld [vmem:[%s1688_s0 + $0x7c] ss:$20 sps:$4 sm:$0xff]  }
  0x20   :  { %759 = vmatpush1.bf16.msra.mxu0 %v1196_v32  ;;  %687 = vmatprep.subr.bf16.mxu1 %v1197_v33  ;;  %v1283_v30 = vld [vmem:[%s1688_s0 + $0x84] ss:$20 sps:$4 sm:$0xff]   ;;  %v120_v33 = vld [vmem:[%s1689_s2 + $0x8] sm:$0xff] }
  0x21   :  { %760 = vmatprep.subr.bf16.mxu0 %v1199_v34  ;;  %164 = vperm.xlu1 %1148, %v126_v23   ;;  %v1278_v31 = vld [vmem:[%s1687_s1 + $0x250] ss:$8 sps:$4 sm:$0xff]   ;;  %v119_v32 = vld [vmem:[%s1689_s2] sm:$0xff] }
  0x22   :  { %v1289_v34 = vld [vmem:[%s1687_s1 + $0x264] ss:$8 sps:$4 sm:$0xff]  }
  0x23   :  { %688 = vmatpush1.bf16.msra.mxu1 %v1201_v35  ;;  %v1285_v35 = vld [vmem:[%s1688_s0 + $0x78] ss:$20 sps:$4 sm:$0xff]   ;;  %129 = vperm.xlu0 %1147, %v119_v32  }
  0x24   :  { %761 = vmatpush1.bf16.msra.mxu0 %v1202_v36  ;;  %689 = vmatprep.subr.bf16.mxu1 %v1203_v37  ;;  %v1286_v36 = vld [vmem:[%s1688_s0 + $0x80] ss:$20 sps:$4 sm:$0xff]  }
  0x25   :  { %762 = vmatprep.subr.bf16.mxu0 %v1205_v38  ;;  %134 = vperm.xlu1 %1148, %v120_v33   ;;  %v1287_v37 = vld [vmem:[%s1687_s1 + $0x260] ss:$8 sps:$4 sm:$0xff]   ;;  %v1292_v38 = vld [vmem:[%s1687_s1 + $0x274] ss:$8 sps:$4 sm:$0xff]  }
  0x27   :  { %690 = vmatpush1.bf16.msra.mxu1 %v1207_v39  ;;  %v1290_v39 = vld [vmem:[%s1687_s1 + $0x270] ss:$8 sps:$4 sm:$0xff]  }
  0x28   :  { %763 = vmatpush1.bf16.msra.mxu0 %v1208_v40  ;;  %691 = vmatprep.subr.bf16.mxu1 %v1209_v41  ;;  %v121_v40 = vld [vmem:[%s1689_s2 + $0x10] sm:$0xff]  ;;  %v122_v41 = vld [vmem:[%s1689_s2 + $0x18] sm:$0xff] }
  0x29   :  { %764 = vmatprep.subr.bf16.mxu0 %v1211_v42  ;;  %v1293_v42 = vld [vmem:[%s1688_s0 + $0x10] ss:$20 sps:$4 sm:$0xff]   ;;  %139 = vperm.xlu0 %1147, %v121_v40  }
  0x2a   :  { %144 = vperm.xlu1 %1148, %v122_v41  }
  0x2b   :  { %692 = vmatpush1.bf16.msra.mxu1 %v1213_v43  ;;  %v1294_v43 = vld [vmem:[%s1688_s0 + $0x60] ss:$20 sps:$4 sm:$0xff]  }
  0x2c   :  { %765 = vmatpush1.bf16.msra.mxu0 %v1214_v44  ;;  %693 = vmatprep.subr.bf16.mxu1 %v1215_v45  ;;  %v1295_v44 = vld [vmem:[%s1688_s0 + $0x38] ss:$20 sps:$4 sm:$0xff]   ;;  %v1296_v45 = vld [vmem:[%s1688_s0 + $0x88] ss:$20 sps:$4 sm:$0xff]  }
  0x2d   :  { %766 = vmatprep.subr.bf16.mxu0 %v1217_v46 }
  0x2f   :  { %694 = vmatpush1.bf16.msra.mxu1 %v1219_v47 }
  0x30   :  { %767 = vmatpush1.bf16.msra.mxu0 %v1220_v48  ;;  %695 = vmatprep.subr.bf16.mxu1 %v1221_v49 }
  0x31   :  { %768 = vmatprep.subr.bf16.mxu0 %v1223_v51 }
  0x33   :  { %696 = vmatpush1.bf16.msra.mxu1 %v1225_v53 }
  0x34   :  { %769 = vmatpush1.bf16.msra.mxu0 %v1226_v54  ;;  %697 = vmatprep.subr.bf16.mxu1 %v1227_v55 }
  0x35   :  { %770 = vmatprep.subr.bf16.mxu0 %v1229_v56 }
  0x37   :  { %698 = vmatpush1.bf16.msra.mxu1 %v1231_v57 }
  0x38   :  { %771 = vmatpush1.bf16.msra.mxu0 %v1232_v58  ;;  %699 = vmatprep.subr.bf16.mxu1 %v1233_v59 }
  0x39   :  { %772 = vmatprep.subr.bf16.mxu0 %v1235_v60 }
  0x3b   :  { %700 = vmatpush1.bf16.msra.mxu1 %v1237_v61 }
  0x3c   :  { %773 = vmatpush1.bf16.msra.mxu0 %v1238_v62  ;;  %701 = vmatprep.subr.bf16.mxu1 %v1239_v63 }
  0x3d   :  { %774 = vmatprep.subr.bf16.mxu0 %v1241_v0 }
  0x3f   :  { %702 = vmatpush1.bf16.msra.mxu1 %v1243_v2 }
  0x40   :  { %775 = vmatpush1.bf16.msra.mxu0 %v1244_v3  ;;  %1082 = vmatprep.subr.bf16.mxu1 %v1253_v4 }
  0x41   :  { %817 = vmatprep.subr.bf16.mxu0 %v1253_v4 }
  0x42   :  { %704 = vmatmul.mubr.bf16.vlgmr.msra.gmra.mrb[0].mxu1 %v1245_v5 }
  0x43   :  { %777 = vmatmul.mubr.bf16.vlgmr.msra.gmra.mrb[0].mxu0 %v1248_v6  ;;  %1090 = vmatpush1.bf16.msra.mxu1 %v1251_v7 }
  0x44   :  { %818 = vmatpush1.bf16.msra.mxu0 %v1251_v7  ;;  %1083 = vmatprep.subr.bf16.mxu1 %v1256_v8 }
  0x45   :  { %819 = vmatprep.subr.bf16.mxu0 %v1256_v8  ;;  %713 = vmatprep.mubr.bf16.mxu1 %v1257_v9 }
  0x46   :  { %786 = vmatprep.mubr.bf16.mxu0 %v1259_v10 }
  0x47   :  { %1091 = vmatpush1.bf16.msra.mxu1 %v1254_v11 }
  0x48   :  { %820 = vmatpush1.bf16.msra.mxu0 %v1254_v11  ;;  %1084 = vmatprep.subr.bf16.mxu1 %v1265_v14 }
  0x49   :  { %821 = vmatprep.subr.bf16.mxu0 %v1265_v14 }
  0x4a   :  { %714 = vmatmul.mubr.bf16.gmra.mrb[4].mxu1 %v1261_v15 }
  0x4b   :  { %787 = vmatmul.mubr.bf16.gmra.mrb[4].mxu0 %v1262_v16  ;;  %1092 = vmatpush1.bf16.msra.mxu1 %v1263_v17 }
  0x4c   :  { %822 = vmatpush1.bf16.msra.mxu0 %v1263_v17  ;;  %1085 = vmatprep.subr.bf16.mxu1 %v1268_v18 }
  0x4d   :  { %823 = vmatprep.subr.bf16.mxu0 %v1268_v18  ;;  %723 = vmatprep.mubr.bf16.mxu1 %v1269_v19 }
  0x4e   :  { %796 = vmatprep.mubr.bf16.mxu0 %v1271_v20 }
  0x4f   :  { %1093 = vmatpush1.bf16.msra.mxu1 %v1266_v21 }
  0x50   :  { %824 = vmatpush1.bf16.msra.mxu0 %v1266_v21  ;;  %1086 = vmatprep.subr.bf16.mxu1 %v1277_v24 }
  0x51   :  { %825 = vmatprep.subr.bf16.mxu0 %v1277_v24 }
  0x52   :  { %724 = vmatmul.mubr.bf16.gmra.mrb[8].mxu1 %v1273_v25 }
  0x53   :  { %797 = vmatmul.mubr.bf16.gmra.mrb[8].mxu0 %v1274_v26  ;;  %1094 = vmatpush1.bf16.msra.mxu1 %v1275_v27 }
  0x54   :  { %826 = vmatpush1.bf16.msra.mxu0 %v1275_v27  ;;  %1087 = vmatprep.subr.bf16.mxu1 %v1280_v28 }
  0x55   :  { %827 = vmatprep.subr.bf16.mxu0 %v1280_v28  ;;  %733 = vmatprep.mubr.bf16.mxu1 %v1281_v29 }
  0x56   :  { %806 = vmatprep.mubr.bf16.mxu0 %v1283_v30 }
  0x57   :  { %1095 = vmatpush1.bf16.msra.mxu1 %v1278_v31 }
  0x58   :  { %828 = vmatpush1.bf16.msra.mxu0 %v1278_v31  ;;  %1088 = vmatprep.subr.bf16.mxu1 %v1289_v34 }
  0x59   :  { %829 = vmatprep.subr.bf16.mxu0 %v1289_v34 }
  0x5a   :  { %734 = vmatmul.mubr.bf16.gmra.mrb[12].mxu1 %v1285_v35 }
  0x5b   :  { %807 = vmatmul.mubr.bf16.gmra.mrb[12].mxu0 %v1286_v36  ;;  %1096 = vmatpush1.bf16.msra.mxu1 %v1287_v37 }
  0x5c   :  { %830 = vmatpush1.bf16.msra.mxu0 %v1287_v37  ;;  %1089 = vmatprep.subr.bf16.mxu1 %v1292_v38 }
  0x5d   :  { %831 = vmatprep.subr.bf16.mxu0 %v1292_v38  ;;  %849 = vmatprep.mubr.bf16.mxu0 %v1297_v1 }
  0x5e   :  { %869 = vmatprep.mubr.bf16.mxu1 %v1297_v1 }
  0x5f   :  { %1097 = vmatpush1.bf16.msra.mxu1 %v1290_v39 }
  0x60   :  { %832 = vmatpush1.bf16.msra.mxu0 %v1290_v39 }
  0x62   :  { %870 = vmatmul.mubr.bf16.vlgmr.msra.gmra.mrb[16].mxu1 %v1294_v43 }
  0x63   :  { %850 = vmatmul.mubr.bf16.vlgmr.msra.gmra.mrb[0].mxu0 %v1293_v42  ;;  %879 = vmatprep.mubr.bf16.mxu1 %v1297_v1 }
  0x64   :  { %859 = vmatprep.mubr.bf16.mxu0 %v1297_v1 }
  0x6a   :  { %880 = vmatmul.mubr.bf16.gmra.mrb[20].mxu1 %v1296_v45 }
  0x6b   :  { %860 = vmatmul.mubr.bf16.gmra.mrb[4].mxu0 %v1295_v44 }
  0x9a   :  { %v150_v51 = vpop.permute.xlu0 %149 }
  0x9c   :  { %v160_v54 = vpop.permute.xlu1 %159 }
  0x9e   :  { %v155_v55 = vpop.permute.xlu0 %154 }
  0xa0   :  { %v165_v9 = vpop.permute.xlu1 %164 }
  0xa2   :  { %v130_v22 = vpop.permute.xlu0 %129 }
  0xa4   :  { %v135_v26 = vpop.permute.xlu1 %134 }
 0x115   :  { %v705_v46 = vpop.f32.mrb[0].mxu1 }
 0x116   :  { %v707_v47 = vpop.f32.mrb[1].mxu1  ;;  %v706_v28 = vadd.f32 %v705_v46, %v130_v22  ;;  %v140_v46 = vpop.permute.xlu0 %139 }
 0x117   :  { %v709_v48 = vpop.f32.mrb[2].mxu1  ;;  %v708_v29 = vadd.f32 %v707_v47, %v130_v22 }
 0x118   :  { %v711_v49 = vpop.f32.mrb[3].mxu1  ;;  %v710_v32 = vadd.f32 %v709_v48, %v135_v26 }
 0x119   :  { %v712_v37 = vadd.f32 %v711_v49, %v135_v26 }
 0x11d   :  { %v1648_v50 = vpop.f32.mrb[4].mxu1 }
 0x11e   :  { %v1650_v52 = vpop.f32.mrb[5].mxu1 }
 0x11f   :  { %v1652_v1 = vpop.f32.mrb[6].mxu1 }
 0x120   :  { %v1654_v53 = vpop.f32.mrb[7].mxu1 }
 0x125   :  { %v725_v56 = vpop.f32.mrb[8].mxu1 }
 0x126   :  { %v798_v57 = vpop.f32.mrb[8].mxu0  ;;  %v726_v58 = vadd.f32 %v725_v56, %v150_v51  ;;  %v727_v59 = vpop.f32.mrb[9].mxu1 }
 0x127   :  { %v800_v60 = vpop.f32.mrb[9].mxu0  ;;  %v728_v61 = vadd.f32 %v727_v59, %v150_v51  ;;  %v729_v62 = vpop.f32.mrb[10].mxu1 }
 0x128   :  { %v802_v63 = vpop.f32.mrb[10].mxu0  ;;  %v799_v0 = vadd.f32 %v798_v57, %v726_v58  ;;  %v730_v2 = vadd.f32 %v729_v62, %v155_v55  ;;  %v731_v3 = vpop.f32.mrb[11].mxu1 }
 0x129   :  { %v804_v4 = vpop.f32.mrb[11].mxu0  ;;  %v801_v5 = vadd.f32 %v800_v60, %v728_v61  ;;  %v732_v6 = vadd.f32 %v731_v3, %v155_v55  ;;  %v145_v59 = vpop.permute.xlu1 %144 }
 0x12a   :  { %v803_v7 = vadd.f32 %v802_v63, %v730_v2  ;;  %v716_v63 = vadd.f32 %v1648_v50, %v140_v46 }
 0x12b   :  { %v805_v8 = vadd.f32 %v804_v4, %v732_v6  ;;  %v720_v6 = vadd.f32 %v1652_v1, %v145_v59 }
 0x12d   :  { %v735_v10 = vpop.f32.mrb[12].mxu1 }
 0x12e   :  { %v808_v11 = vpop.f32.mrb[12].mxu0  ;;  %v736_v12 = vadd.f32 %v735_v10, %v160_v54  ;;  %v737_v13 = vpop.f32.mrb[13].mxu1 }
 0x12f   :  { %v810_v14 = vpop.f32.mrb[13].mxu0  ;;  %v738_v15 = vadd.f32 %v737_v13, %v160_v54  ;;  %v739_v16 = vpop.f32.mrb[14].mxu1 }
 0x130   :  { %v812_v17 = vpop.f32.mrb[14].mxu0  ;;  %v809_v18 = vadd.f32 %v808_v11, %v736_v12  ;;  %v740_v19 = vadd.f32 %v739_v16, %v165_v9  ;;  %v741_v20 = vpop.f32.mrb[15].mxu1 }
 0x131   :  { %v814_v21 = vpop.f32.mrb[15].mxu0  ;;  %v811_v23 = vadd.f32 %v810_v14, %v738_v15  ;;  %v742_v24 = vadd.f32 %v741_v20, %v165_v9 }
 0x132   :  { %v813_v25 = vadd.f32 %v812_v17, %v740_v19 }
 0x133   :  { %v1656_v27 = vadd.f32 %v814_v21, %v742_v24 }
 0x135   :  { %v871_v31 = vpop.f32.mrb[16].mxu1 }
 0x136   :  { %v851_v30 = vpop.f32.mrb[0].mxu0  ;;  %v872_v34 = vadd.f32 %v871_v31, %v799_v0  ;;  %v873_v36 = vpop.f32.mrb[17].mxu1  ;;  %v718_v0 = vadd.f32 %v1650_v52, %v140_v46  ;;  %v722_v52 = vadd.f32 %v1654_v53, %v145_v59 }
 0x137   :  { %v1099_v33 = vadd.f32 %v851_v30, %v706_v28  ;;  %v853_v35 = vpop.f32.mrb[1].mxu0  ;;  %v874_v39 = vadd.f32 %v873_v36, %v801_v5  ;;  %v875_v41 = vpop.f32.mrb[18].mxu1 }
 0x138   :  { %v1101_v38 = vadd.f32 %v853_v35, %v708_v29  ;;  %v855_v40 = vpop.f32.mrb[2].mxu0  ;;  %v898_v43 = vmax.f32 %v872_v34, 0.0  ;;  %v876_v45 = vadd.f32 %v875_v41, %v803_v7  ;;  %v877_v54 = vpop.f32.mrb[19].mxu1 }
 0x139   :  { %v890_v42 = vmax.f32 %v1099_v33, 0.0  ;;  %v1103_v44 = vadd.f32 %v855_v40, %v710_v32  ;;  %v857_v51 = vpop.f32.mrb[3].mxu0  ;;  %v899_v55 = vmax.f32 %v874_v39, 0.0  ;;  %v878_v48 = vadd.f32 %v877_v54, %v805_v8 }
 0x13a   :  { %v891_v47 = vmax.f32 %v1101_v38, 0.0  ;;  %v1105_v56 = vadd.f32 %v857_v51, %v712_v37  ;;  %v900_v58 = vmax.f32 %v876_v45, 0.0 }
 0x13b   :  { %v892_v57 = vmax.f32 %v1103_v44, 0.0  ;;  %v1078_v49 = vpack.c.bf16 %v899_v55, %v898_v43  ;;  %v901_v62 = vmax.f32 %v878_v48, 0.0 }
 0x13c   :  { %v1074_v60 = vpack.c.bf16 %v891_v47, %v890_v42  ;;  %v893_v61 = vmax.f32 %v1105_v56, 0.0 }
 0x13d   :  { %958 = vst [vmem:[%s1690_s3 + $0x20] sm:$0xff] %v1078_v49  ;;  %v1079_v3 = vpack.c.bf16 %v901_v62, %v900_v58  ;;  %v881_v5 = vpop.f32.mrb[20].mxu1 }
 0x13e   :  { %954 = vst [vmem:[%s1690_s3] sm:$0xff] %v1074_v60  ;;  %v1075_v2 = vpack.c.bf16 %v893_v61, %v892_v57  ;;  %v861_v4 = vpop.f32.mrb[4].mxu0  ;;  %v882_v8 = vadd.f32 %v881_v5, %v809_v18  ;;  %v883_v50 = vpop.f32.mrb[21].mxu1 }
 0x13f   :  { %v1107_v7 = vadd.f32 %v861_v4, %v716_v63  ;;  %v863_v9 = vpop.f32.mrb[5].mxu0  ;;  %959 = vst [vmem:[%s1690_s3 + $0x28] sm:$0xff] %v1079_v3  ;;  %v884_v11 = vadd.f32 %v883_v50, %v811_v23  ;;  %v885_v13 = vpop.f32.mrb[22].mxu1 }
 0x140   :  { %955 = vst [vmem:[%s1690_s3 + $0x8] sm:$0xff] %v1075_v2  ;;  %v1109_v10 = vadd.f32 %v863_v9, %v718_v0  ;;  %v865_v12 = vpop.f32.mrb[6].mxu0  ;;  %v902_v1 = vmax.f32 %v882_v8, 0.0  ;;  %v886_v16 = vadd.f32 %v885_v13, %v813_v25  ;;  %v887_v18 = vpop.f32.mrb[23].mxu1 }
 0x141   :  { %v894_v14 = vmax.f32 %v1107_v7, 0.0  ;;  %v1111_v15 = vadd.f32 %v865_v12, %v720_v6  ;;  %v867_v17 = vpop.f32.mrb[7].mxu0  ;;  %v903_v53 = vmax.f32 %v884_v11, 0.0  ;;  %v888_v21 = vadd.f32 %v887_v18, %v1656_v27 }
 0x142   :  { %v895_v19 = vmax.f32 %v1109_v10, 0.0  ;;  %v1113_v20 = vadd.f32 %v867_v17, %v722_v52  ;;  %v904_v24 = vmax.f32 %v886_v16, 0.0 }
 0x143   :  { %v896_v22 = vmax.f32 %v1111_v15, 0.0  ;;  %v1080_v28 = vpack.c.bf16 %v903_v53, %v902_v1  ;;  %v905_v30 = vmax.f32 %v888_v21, 0.0 }
 0x144   :  { %v1076_v26 = vpack.c.bf16 %v895_v19, %v894_v14  ;;  %v897_v29 = vmax.f32 %v1113_v20, 0.0 }
 0x145   :  { %960 = vst [vmem:[%s1690_s3 + $0x30] sm:$0xff] %v1080_v28  ;;  %v1081_v25 = vpack.c.bf16 %v905_v30, %v904_v24 }
 0x146   :  { %956 = vst [vmem:[%s1690_s3 + $0x10] sm:$0xff] %v1076_v26  ;;  %v1077_v23 = vpack.c.bf16 %v897_v29, %v896_v22 }
 0x147   :  { %961 = vst [vmem:[%s1690_s3 + $0x38] sm:$0xff] %v1081_v25 }
 0x148   :  { %957 = vst [vmem:[%s1690_s3 + $0x18] sm:$0xff] %v1077_v23 }

// kernel: dqn_forward.7
= control target key start
LH: loop header
LB: loop body
LE: loop exit
PB: predicated region body
PF: predicated region fallthrough
CT: control target
= control target key end

     0   :  { %s4287_s15 = smov 0   ;;  %s4289_s16 = smov 0   ;;  %s5947_s0 = inlined_call_operand.vmem [shape: bf16[8,7168], index: 0, kind: input, shape index: {}]   ;;  %s5948_s1 = inlined_call_operand.vmem [shape: s8[7168,512], index: 1, kind: input, shape index: {}]   ;;  %s5949_s2 = inlined_call_operand.vmem [shape: f32[1,512], index: 2, kind: input, shape index: {}]   ;;  %s5950_s3 = inlined_call_operand.vmem [shape: f32[1,512], index: 3, kind: input, shape index: {}]   ;;  %s5951_s4 = inlined_call_operand.vmem [shape: f32[8,512], index: 4, kind: output, shape index: {}]  }
   0x1   :  { %s4291_s17 = smov 0  }
   0x2 LB: > { %s3980_s18 = sadd.s32 4294967295, %s4260_s17   ;;  %s4304_s19 = sadd.s32 1, %s4260_s17   ;;  %s4260_s17 = sphi %s4291_s17, %s5954_s17   ;;  %s4256_s16 = sphi %s4289_s16, %s5953_s16   ;;  %s4252_s15 = sphi %s4287_s15, %s5952_s15  }
   0x3   : > { %s39_s20 = ssub.s32 %s4260_s17, %s4304_s19  ;;  %s42_s21 = sadd.s32 1, %s4256_s16 }
   0x4   : > { %p40_p0 = scmp.eq.s32.totalorder %s39_s20, 0  ;;  %p49_p1 = scmp.ne.s32.totalorder %s4256_s16, %s4252_s15 }
   0x5   : > { %p50_p2 = scmp.eq.s32.totalorder %s4260_s17, 0  ;;  %p3983_p4 = scmp.ge.s32.totalorder %s4260_s17, 2 }
   0x6   : > { %s4313_s22 = scalar_select %p40_p0, %s4256_s16, %s42_s21  }
   0x7   : > { %p51_p3 = por %p50_p2, %p49_p1  ;;  %156 = sbr.rel (%p3983_p4) target bundleno = 242 (0xf2), region = 20 }
   0xe   : > { %159 = sbr.rel (!%p51_p3) target bundleno = 242 (0xf2), region = 24  ;;  %s161_s23 = sand.u32 (%p51_p3), 1, %s4256_s16  }
   0xf   : > { %s4049_s24 = sshll.u32 (%p51_p3), %s4260_s17, 4  ;;  %s4156_s25 = smul.u32 (%p51_p3), 3584, %s161_s23 }
  0x10   : > { %s4321_s28 = scalar_lea.vmem (%p51_p3), %s5948_s1, %s4049_s24 }
  0x11   : > { %v179_v0 = vld [vmem:[%s4321_s28] sm:$0xff] (%p51_p3)  ;;  %v181_v1 = vld [vmem:[%s4321_s28 + $0x8] sm:$0xff] (%p51_p3)  ;;  %s4329_s29 = scalar_lea.vmem (%p51_p3), [#allocation2], %s4156_s25 }
  0x12   : > { %v183_v2 = vld [vmem:[%s4321_s28 + $0x20] sm:$0xff] (%p51_p3)  ;;  %v185_v3 = vld [vmem:[%s4321_s28 + $0x28] sm:$0xff] (%p51_p3)  ;;  %180 = vst [vmem:[%s4329_s29] sm:$0xff] (%p51_p3), %v179_v0  ;;  %182 = vst [vmem:[%s4329_s29 + $0x8] sm:$0xff] (%p51_p3), %v181_v1 }
  0x13   : > { %v187_v4 = vld [vmem:[%s4321_s28 + $0x40] sm:$0xff] (%p51_p3)  ;;  %v189_v5 = vld [vmem:[%s4321_s28 + $0x48] sm:$0xff] (%p51_p3)  ;;  %184 = vst [vmem:[%s4329_s29 + $0x10] sm:$0xff] (%p51_p3), %v183_v2  ;;  %186 = vst [vmem:[%s4329_s29 + $0x18] sm:$0xff] (%p51_p3), %v185_v3 }
  0x14   : > { %188 = vst [vmem:[%s4329_s29 + $0x20] sm:$0xff] (%p51_p3), %v187_v4  ;;  %190 = vst [vmem:[%s4329_s29 + $0x28] sm:$0xff] (%p51_p3), %v189_v5  ;;  %v191_v6 = vld [vmem:[%s4321_s28 + $0x60] sm:$0xff] (%p51_p3)  ;;  %v193_v7 = vld [vmem:[%s4321_s28 + $0x68] sm:$0xff] (%p51_p3) }
  0x15   : > { %v195_v8 = vld [vmem:[%s4321_s28 + $0x80] sm:$0xff]  ;;  %192 = vst [vmem:[%s4329_s29 + $0x30] sm:$0xff] %v191_v6  ;;  %194 = vst [vmem:[%s4329_s29 + $0x38] sm:$0xff] %v193_v7  ;;  %v197_v9 = vld [vmem:[%s4321_s28 + $0x88] sm:$0xff] }
  0x16   : > { %196 = vst [vmem:[%s4329_s29 + $0x40] sm:$0xff] %v195_v8  ;;  %v199_v10 = vld [vmem:[%s4321_s28 + $0xa0] sm:$0xff]  ;;  %v201_v11 = vld [vmem:[%s4321_s28 + $0xa8] sm:$0xff]  ;;  %198 = vst [vmem:[%s4329_s29 + $0x48] sm:$0xff] %v197_v9 }
  0x17   : > { %200 = vst [vmem:[%s4329_s29 + $0x50] sm:$0xff] %v199_v10  ;;  %202 = vst [vmem:[%s4329_s29 + $0x58] sm:$0xff] %v201_v11  ;;  %v203_v12 = vld [vmem:[%s4321_s28 + $0xc0] sm:$0xff]  ;;  %v205_v13 = vld [vmem:[%s4321_s28 + $0xc8] sm:$0xff] }
  0x18   : > { %v207_v14 = vld [vmem:[%s4321_s28 + $0xe0] sm:$0xff]  ;;  %204 = vst [vmem:[%s4329_s29 + $0x60] sm:$0xff] %v203_v12  ;;  %206 = vst [vmem:[%s4329_s29 + $0x68] sm:$0xff] %v205_v13  ;;  %v209_v15 = vld [vmem:[%s4321_s28 + $0xe8] sm:$0xff] }
  0x19   : > { %208 = vst [vmem:[%s4329_s29 + $0x70] sm:$0xff] %v207_v14  ;;  %v211_v16 = vld [vmem:[%s4321_s28 + $0x100] sm:$0xff]  ;;  %v213_v17 = vld [vmem:[%s4321_s28 + $0x108] sm:$0xff]  ;;  %210 = vst [vmem:[%s4329_s29 + $0x78] sm:$0xff] %v209_v15 }
  0x1a   : > { %212 = vst [vmem:[%s4329_s29 + $0x80] sm:$0xff] %v211_v16  ;;  %214 = vst [vmem:[%s4329_s29 + $0x88] sm:$0xff] %v213_v17  ;;  %v215_v18 = vld [vmem:[%s4321_s28 + $0x120] sm:$0xff]  ;;  %v217_v19 = vld [vmem:[%s4321_s28 + $0x128] sm:$0xff] }
  0x1b   : > { %v219_v20 = vld [vmem:[%s4321_s28 + $0x140] sm:$0xff]  ;;  %216 = vst [vmem:[%s4329_s29 + $0x90] sm:$0xff] %v215_v18  ;;  %218 = vst [vmem:[%s4329_s29 + $0x98] sm:$0xff] %v217_v19  ;;  %v221_v21 = vld [vmem:[%s4321_s28 + $0x148] sm:$0xff] }
  0x1c   : > { %220 = vst [vmem:[%s4329_s29 + $0xa0] sm:$0xff] %v219_v20  ;;  %v223_v22 = vld [vmem:[%s4321_s28 + $0x160] sm:$0xff]  ;;  %v225_v23 = vld [vmem:[%s4321_s28 + $0x168] sm:$0xff]  ;;  %222 = vst [vmem:[%s4329_s29 + $0xa8] sm:$0xff] %v221_v21 }
  0x1d   : > { %224 = vst [vmem:[%s4329_s29 + $0xb0] sm:$0xff] %v223_v22  ;;  %226 = vst [vmem:[%s4329_s29 + $0xb8] sm:$0xff] %v225_v23  ;;  %v227_v24 = vld [vmem:[%s4321_s28 + $0x180] sm:$0xff]  ;;  %v229_v25 = vld [vmem:[%s4321_s28 + $0x188] sm:$0xff] }
  0x1e   : > { %v231_v26 = vld [vmem:[%s4321_s28 + $0x1a0] sm:$0xff]  ;;  %228 = vst [vmem:[%s4329_s29 + $0xc0] sm:$0xff] %v227_v24  ;;  %230 = vst [vmem:[%s4329_s29 + $0xc8] sm:$0xff] %v229_v25  ;;  %v233_v27 = vld [vmem:[%s4321_s28 + $0x1a8] sm:$0xff] }
  0x1f   : > { %232 = vst [vmem:[%s4329_s29 + $0xd0] sm:$0xff] %v231_v26  ;;  %v235_v28 = vld [vmem:[%s4321_s28 + $0x1c0] sm:$0xff]  ;;  %v237_v29 = vld [vmem:[%s4321_s28 + $0x1c8] sm:$0xff]  ;;  %234 = vst [vmem:[%s4329_s29 + $0xd8] sm:$0xff] %v233_v27 }
  0x20   : > { %236 = vst [vmem:[%s4329_s29 + $0xe0] sm:$0xff] %v235_v28  ;;  %238 = vst [vmem:[%s4329_s29 + $0xe8] sm:$0xff] %v237_v29  ;;  %v239_v30 = vld [vmem:[%s4321_s28 + $0x1e0] sm:$0xff]  ;;  %v241_v31 = vld [vmem:[%s4321_s28 + $0x1e8] sm:$0xff] }
  0x21   : > { %v243_v32 = vld [vmem:[%s4321_s28 + $0x200] sm:$0xff]  ;;  %240 = vst [vmem:[%s4329_s29 + $0xf0] sm:$0xff] %v239_v30  ;;  %242 = vst [vmem:[%s4329_s29 + $0xf8] sm:$0xff] %v241_v31  ;;  %v245_v33 = vld [vmem:[%s4321_s28 + $0x208] sm:$0xff] }
  0x22   : > { %244 = vst [vmem:[%s4329_s29 + $0x100] sm:$0xff] %v243_v32  ;;  %v247_v34 = vld [vmem:[%s4321_s28 + $0x220] sm:$0xff]  ;;  %v249_v35 = vld [vmem:[%s4321_s28 + $0x228] sm:$0xff]  ;;  %246 = vst [vmem:[%s4329_s29 + $0x108] sm:$0xff] %v245_v33 }
  0x23   : > { %248 = vst [vmem:[%s4329_s29 + $0x110] sm:$0xff] %v247_v34  ;;  %250 = vst [vmem:[%s4329_s29 + $0x118] sm:$0xff] %v249_v35  ;;  %v251_v36 = vld [vmem:[%s4321_s28 + $0x240] sm:$0xff]  ;;  %v253_v37 = vld [vmem:[%s4321_s28 + $0x248] sm:$0xff] }
  0x24   : > { %v255_v38 = vld [vmem:[%s4321_s28 + $0x260] sm:$0xff]  ;;  %252 = vst [vmem:[%s4329_s29 + $0x120] sm:$0xff] %v251_v36  ;;  %254 = vst [vmem:[%s4329_s29 + $0x128] sm:$0xff] %v253_v37  ;;  %v257_v39 = vld [vmem:[%s4321_s28 + $0x268] sm:$0xff] }
  0x25   : > { %256 = vst [vmem:[%s4329_s29 + $0x130] sm:$0xff] %v255_v38  ;;  %v259_v40 = vld [vmem:[%s4321_s28 + $0x280] sm:$0xff]  ;;  %v261_v41 = vld [vmem:[%s4321_s28 + $0x288] sm:$0xff]  ;;  %258 = vst [vmem:[%s4329_s29 + $0x138] sm:$0xff] %v257_v39 }
  0x26   : > { %260 = vst [vmem:[%s4329_s29 + $0x140] sm:$0xff] %v259_v40  ;;  %262 = vst [vmem:[%s4329_s29 + $0x148] sm:$0xff] %v261_v41  ;;  %v263_v42 = vld [vmem:[%s4321_s28 + $0x2a0] sm:$0xff]  ;;  %v265_v43 = vld [vmem:[%s4321_s28 + $0x2a8] sm:$0xff] }
  0x27   : > { %v267_v44 = vld [vmem:[%s4321_s28 + $0x2c0] sm:$0xff]  ;;  %264 = vst [vmem:[%s4329_s29 + $0x150] sm:$0xff] %v263_v42  ;;  %266 = vst [vmem:[%s4329_s29 + $0x158] sm:$0xff] %v265_v43  ;;  %v269_v45 = vld [vmem:[%s4321_s28 + $0x2c8] sm:$0xff] }
  0x28   : > { %268 = vst [vmem:[%s4329_s29 + $0x160] sm:$0xff] %v267_v44  ;;  %v271_v46 = vld [vmem:[%s4321_s28 + $0x2e0] sm:$0xff]  ;;  %v273_v47 = vld [vmem:[%s4321_s28 + $0x2e8] sm:$0xff]  ;;  %270 = vst [vmem:[%s4329_s29 + $0x168] sm:$0xff] %v269_v45 }
  0x29   : > { %272 = vst [vmem:[%s4329_s29 + $0x170] sm:$0xff] %v271_v46  ;;  %274 = vst [vmem:[%s4329_s29 + $0x178] sm:$0xff] %v273_v47  ;;  %v275_v48 = vld [vmem:[%s4321_s28 + $0x300] sm:$0xff]  ;;  %v277_v49 = vld [vmem:[%s4321_s28 + $0x308] sm:$0xff] }
  0x2a   : > { %v279_v50 = vld [vmem:[%s4321_s28 + $0x320] sm:$0xff]  ;;  %276 = vst [vmem:[%s4329_s29 + $0x180] sm:$0xff] %v275_v48  ;;  %278 = vst [vmem:[%s4329_s29 + $0x188] sm:$0xff] %v277_v49  ;;  %v281_v51 = vld [vmem:[%s4321_s28 + $0x328] sm:$0xff] }
  0x2b   : > { %280 = vst [vmem:[%s4329_s29 + $0x190] sm:$0xff] %v279_v50  ;;  %v283_v52 = vld [vmem:[%s4321_s28 + $0x340] sm:$0xff]  ;;  %v285_v53 = vld [vmem:[%s4321_s28 + $0x348] sm:$0xff]  ;;  %282 = vst [vmem:[%s4329_s29 + $0x198] sm:$0xff] %v281_v51 }
  0x2c   : > { %284 = vst [vmem:[%s4329_s29 + $0x1a0] sm:$0xff] %v283_v52  ;;  %286 = vst [vmem:[%s4329_s29 + $0x1a8] sm:$0xff] %v285_v53  ;;  %v287_v54 = vld [vmem:[%s4321_s28 + $0x360] sm:$0xff]  ;;  %v289_v55 = vld [vmem:[%s4321_s28 + $0x368] sm:$0xff] }
  0x2d   : > { %v291_v56 = vld [vmem:[%s4321_s28 + $0x380] sm:$0xff]  ;;  %288 = vst [vmem:[%s4329_s29 + $0x1b0] sm:$0xff] %v287_v54  ;;  %290 = vst [vmem:[%s4329_s29 + $0x1b8] sm:$0xff] %v289_v55  ;;  %v293_v57 = vld [vmem:[%s4321_s28 + $0x388] sm:$0xff] }
  0x2e   : > { %292 = vst [vmem:[%s4329_s29 + $0x1c0] sm:$0xff] %v291_v56  ;;  %v295_v58 = vld [vmem:[%s4321_s28 + $0x3a0] sm:$0xff]  ;;  %v297_v59 = vld [vmem:[%s4321_s28 + $0x3a8] sm:$0xff]  ;;  %294 = vst [vmem:[%s4329_s29 + $0x1c8] sm:$0xff] %v293_v57 }
  0x2f   : > { %296 = vst [vmem:[%s4329_s29 + $0x1d0] sm:$0xff] %v295_v58  ;;  %298 = vst [vmem:[%s4329_s29 + $0x1d8] sm:$0xff] %v297_v59  ;;  %v299_v60 = vld [vmem:[%s4321_s28 + $0x3c0] sm:$0xff]  ;;  %v301_v61 = vld [vmem:[%s4321_s28 + $0x3c8] sm:$0xff] }
  0x30   : > { %v303_v62 = vld [vmem:[%s4321_s28 + $0x3e0] sm:$0xff]  ;;  %300 = vst [vmem:[%s4329_s29 + $0x1e0] sm:$0xff] %v299_v60  ;;  %302 = vst [vmem:[%s4329_s29 + $0x1e8] sm:$0xff] %v301_v61  ;;  %v305_v63 = vld [vmem:[%s4321_s28 + $0x3e8] sm:$0xff] }
  0x31   : > { %304 = vst [vmem:[%s4329_s29 + $0x1f0] sm:$0xff] %v303_v62  ;;  %v307_v0 = vld [vmem:[%s4321_s28 + $0x400] sm:$0xff]  ;;  %v309_v1 = vld [vmem:[%s4321_s28 + $0x408] sm:$0xff]  ;;  %306 = vst [vmem:[%s4329_s29 + $0x1f8] sm:$0xff] %v305_v63 }
  0x32   : > { %308 = vst [vmem:[%s4329_s29 + $0x200] sm:$0xff] %v307_v0  ;;  %310 = vst [vmem:[%s4329_s29 + $0x208] sm:$0xff] %v309_v1  ;;  %v311_v2 = vld [vmem:[%s4321_s28 + $0x420] sm:$0xff]  ;;  %v313_v3 = vld [vmem:[%s4321_s28 + $0x428] sm:$0xff] }
  0x33   : > { %v315_v4 = vld [vmem:[%s4321_s28 + $0x440] sm:$0xff]  ;;  %312 = vst [vmem:[%s4329_s29 + $0x210] sm:$0xff] %v311_v2  ;;  %314 = vst [vmem:[%s4329_s29 + $0x218] sm:$0xff] %v313_v3  ;;  %v317_v5 = vld [vmem:[%s4321_s28 + $0x448] sm:$0xff] }
  0x34   : > { %316 = vst [vmem:[%s4329_s29 + $0x220] sm:$0xff] %v315_v4  ;;  %v319_v6 = vld [vmem:[%s4321_s28 + $0x460] sm:$0xff]  ;;  %v321_v7 = vld [vmem:[%s4321_s28 + $0x468] sm:$0xff]  ;;  %318 = vst [vmem:[%s4329_s29 + $0x228] sm:$0xff] %v317_v5 }
  0x35   : > { %320 = vst [vmem:[%s4329_s29 + $0x230] sm:$0xff] %v319_v6  ;;  %322 = vst [vmem:[%s4329_s29 + $0x238] sm:$0xff] %v321_v7  ;;  %v323_v8 = vld [vmem:[%s4321_s28 + $0x480] sm:$0xff]  ;;  %v325_v9 = vld [vmem:[%s4321_s28 + $0x488] sm:$0xff] }
  0x36   : > { %v327_v10 = vld [vmem:[%s4321_s28 + $0x4a0] sm:$0xff]  ;;  %324 = vst [vmem:[%s4329_s29 + $0x240] sm:$0xff] %v323_v8  ;;  %326 = vst [vmem:[%s4329_s29 + $0x248] sm:$0xff] %v325_v9  ;;  %v329_v11 = vld [vmem:[%s4321_s28 + $0x4a8] sm:$0xff] }
  0x37   : > { %328 = vst [vmem:[%s4329_s29 + $0x250] sm:$0xff] %v327_v10  ;;  %v331_v12 = vld [vmem:[%s4321_s28 + $0x4c0] sm:$0xff]  ;;  %v333_v13 = vld [vmem:[%s4321_s28 + $0x4c8] sm:$0xff]  ;;  %330 = vst [vmem:[%s4329_s29 + $0x258] sm:$0xff] %v329_v11 }
  0x38   : > { %332 = vst [vmem:[%s4329_s29 + $0x260] sm:$0xff] %v331_v12  ;;  %334 = vst [vmem:[%s4329_s29 + $0x268] sm:$0xff] %v333_v13  ;;  %v335_v14 = vld [vmem:[%s4321_s28 + $0x4e0] sm:$0xff]  ;;  %v337_v15 = vld [vmem:[%s4321_s28 + $0x4e8] sm:$0xff] }
  0x39   : > { %v339_v16 = vld [vmem:[%s4321_s28 + $0x500] sm:$0xff]  ;;  %336 = vst [vmem:[%s4329_s29 + $0x270] sm:$0xff] %v335_v14  ;;  %338 = vst [vmem:[%s4329_s29 + $0x278] sm:$0xff] %v337_v15  ;;  %v341_v17 = vld [vmem:[%s4321_s28 + $0x508] sm:$0xff] }
  0x3a   : > { %340 = vst [vmem:[%s4329_s29 + $0x280] sm:$0xff] %v339_v16  ;;  %v343_v18 = vld [vmem:[%s4321_s28 + $0x520] sm:$0xff]  ;;  %v345_v19 = vld [vmem:[%s4321_s28 + $0x528] sm:$0xff]  ;;  %342 = vst [vmem:[%s4329_s29 + $0x288] sm:$0xff] %v341_v17 }
  0x3b   : > { %344 = vst [vmem:[%s4329_s29 + $0x290] sm:$0xff] %v343_v18  ;;  %346 = vst [vmem:[%s4329_s29 + $0x298] sm:$0xff] %v345_v19  ;;  %v347_v20 = vld [vmem:[%s4321_s28 + $0x540] sm:$0xff]  ;;  %v349_v21 = vld [vmem:[%s4321_s28 + $0x548] sm:$0xff] }
  0x3c   : > { %v351_v22 = vld [vmem:[%s4321_s28 + $0x560] sm:$0xff]  ;;  %348 = vst [vmem:[%s4329_s29 + $0x2a0] sm:$0xff] %v347_v20  ;;  %350 = vst [vmem:[%s4329_s29 + $0x2a8] sm:$0xff] %v349_v21  ;;  %v353_v23 = vld [vmem:[%s4321_s28 + $0x568] sm:$0xff] }
  0x3d   : > { %352 = vst [vmem:[%s4329_s29 + $0x2b0] sm:$0xff] %v351_v22  ;;  %v355_v24 = vld [vmem:[%s4321_s28 + $0x580] sm:$0xff]  ;;  %v357_v25 = vld [vmem:[%s4321_s28 + $0x588] sm:$0xff]  ;;  %354 = vst [vmem:[%s4329_s29 + $0x2b8] sm:$0xff] %v353_v23 }
  0x3e   : > { %356 = vst [vmem:[%s4329_s29 + $0x2c0] sm:$0xff] %v355_v24  ;;  %358 = vst [vmem:[%s4329_s29 + $0x2c8] sm:$0xff] %v357_v25  ;;  %v359_v26 = vld [vmem:[%s4321_s28 + $0x5a0] sm:$0xff]  ;;  %v361_v27 = vld [vmem:[%s4321_s28 + $0x5a8] sm:$0xff] }
  0x3f   : > { %v363_v28 = vld [vmem:[%s4321_s28 + $0x5c0] sm:$0xff]  ;;  %360 = vst [vmem:[%s4329_s29 + $0x2d0] sm:$0xff] %v359_v26  ;;  %362 = vst [vmem:[%s4329_s29 + $0x2d8] sm:$0xff] %v361_v27  ;;  %v365_v29 = vld [vmem:[%s4321_s28 + $0x5c8] sm:$0xff] }
  0x40   : > { %364 = vst [vmem:[%s4329_s29 + $0x2e0] sm:$0xff] %v363_v28  ;;  %v367_v30 = vld [vmem:[%s4321_s28 + $0x5e0] sm:$0xff]  ;;  %v369_v31 = vld [vmem:[%s4321_s28 + $0x5e8] sm:$0xff]  ;;  %366 = vst [vmem:[%s4329_s29 + $0x2e8] sm:$0xff] %v365_v29 }
  0x41   : > { %368 = vst [vmem:[%s4329_s29 + $0x2f0] sm:$0xff] %v367_v30  ;;  %370 = vst [vmem:[%s4329_s29 + $0x2f8] sm:$0xff] %v369_v31  ;;  %v371_v32 = vld [vmem:[%s4321_s28 + $0x600] sm:$0xff]  ;;  %v373_v33 = vld [vmem:[%s4321_s28 + $0x608] sm:$0xff] }
  0x42   : > { %v375_v34 = vld [vmem:[%s4321_s28 + $0x620] sm:$0xff]  ;;  %372 = vst [vmem:[%s4329_s29 + $0x300] sm:$0xff] %v371_v32  ;;  %374 = vst [vmem:[%s4329_s29 + $0x308] sm:$0xff] %v373_v33  ;;  %v377_v35 = vld [vmem:[%s4321_s28 + $0x628] sm:$0xff] }
  0x43   : > { %376 = vst [vmem:[%s4329_s29 + $0x310] sm:$0xff] %v375_v34  ;;  %v379_v36 = vld [vmem:[%s4321_s28 + $0x640] sm:$0xff]  ;;  %v381_v37 = vld [vmem:[%s4321_s28 + $0x648] sm:$0xff]  ;;  %378 = vst [vmem:[%s4329_s29 + $0x318] sm:$0xff] %v377_v35 }
  0x44   : > { %380 = vst [vmem:[%s4329_s29 + $0x320] sm:$0xff] %v379_v36  ;;  %382 = vst [vmem:[%s4329_s29 + $0x328] sm:$0xff] %v381_v37  ;;  %v383_v38 = vld [vmem:[%s4321_s28 + $0x660] sm:$0xff]  ;;  %v385_v39 = vld [vmem:[%s4321_s28 + $0x668] sm:$0xff] }
  0x45   : > { %v387_v40 = vld [vmem:[%s4321_s28 + $0x680] sm:$0xff]  ;;  %384 = vst [vmem:[%s4329_s29 + $0x330] sm:$0xff] %v383_v38  ;;  %386 = vst [vmem:[%s4329_s29 + $0x338] sm:$0xff] %v385_v39  ;;  %v389_v41 = vld [vmem:[%s4321_s28 + $0x688] sm:$0xff] }
  0x46   : > { %388 = vst [vmem:[%s4329_s29 + $0x340] sm:$0xff] %v387_v40  ;;  %v391_v42 = vld [vmem:[%s4321_s28 + $0x6a0] sm:$0xff]  ;;  %v393_v43 = vld [vmem:[%s4321_s28 + $0x6a8] sm:$0xff]  ;;  %390 = vst [vmem:[%s4329_s29 + $0x348] sm:$0xff] %v389_v41 }
  0x47   : > { %392 = vst [vmem:[%s4329_s29 + $0x350] sm:$0xff] %v391_v42  ;;  %394 = vst [vmem:[%s4329_s29 + $0x358] sm:$0xff] %v393_v43  ;;  %v395_v44 = vld [vmem:[%s4321_s28 + $0x6c0] sm:$0xff]  ;;  %v397_v45 = vld [vmem:[%s4321_s28 + $0x6c8] sm:$0xff] }
  0x48   : > { %v399_v46 = vld [vmem:[%s4321_s28 + $0x6e0] sm:$0xff]  ;;  %396 = vst [vmem:[%s4329_s29 + $0x360] sm:$0xff] %v395_v44  ;;  %398 = vst [vmem:[%s4329_s29 + $0x368] sm:$0xff] %v397_v45  ;;  %v401_v47 = vld [vmem:[%s4321_s28 + $0x6e8] sm:$0xff] }
  0x49   : > { %400 = vst [vmem:[%s4329_s29 + $0x370] sm:$0xff] %v399_v46  ;;  %v403_v48 = vld [vmem:[%s4321_s28 + $0x700] sm:$0xff]  ;;  %v405_v49 = vld [vmem:[%s4321_s28 + $0x708] sm:$0xff]  ;;  %402 = vst [vmem:[%s4329_s29 + $0x378] sm:$0xff] %v401_v47 }
  0x4a   : > { %404 = vst [vmem:[%s4329_s29 + $0x380] sm:$0xff] %v403_v48  ;;  %406 = vst [vmem:[%s4329_s29 + $0x388] sm:$0xff] %v405_v49  ;;  %v407_v50 = vld [vmem:[%s4321_s28 + $0x720] sm:$0xff]  ;;  %v409_v51 = vld [vmem:[%s4321_s28 + $0x728] sm:$0xff] }
  0x4b   : > { %v411_v52 = vld [vmem:[%s4321_s28 + $0x740] sm:$0xff]  ;;  %408 = vst [vmem:[%s4329_s29 + $0x390] sm:$0xff] %v407_v50  ;;  %410 = vst [vmem:[%s4329_s29 + $0x398] sm:$0xff] %v409_v51  ;;  %v413_v53 = vld [vmem:[%s4321_s28 + $0x748] sm:$0xff] }
  0x4c   : > { %412 = vst [vmem:[%s4329_s29 + $0x3a0] sm:$0xff] %v411_v52  ;;  %v415_v54 = vld [vmem:[%s4321_s28 + $0x760] sm:$0xff]  ;;  %v417_v55 = vld [vmem:[%s4321_s28 + $0x768] sm:$0xff]  ;;  %414 = vst [vmem:[%s4329_s29 + $0x3a8] sm:$0xff] %v413_v53 }
  0x4d   : > { %416 = vst [vmem:[%s4329_s29 + $0x3b0] sm:$0xff] %v415_v54  ;;  %418 = vst [vmem:[%s4329_s29 + $0x3b8] sm:$0xff] %v417_v55  ;;  %v419_v56 = vld [vmem:[%s4321_s28 + $0x780] sm:$0xff]  ;;  %v421_v57 = vld [vmem:[%s4321_s28 + $0x788] sm:$0xff] }
  0x4e   : > { %v423_v58 = vld [vmem:[%s4321_s28 + $0x7a0] sm:$0xff]  ;;  %420 = vst [vmem:[%s4329_s29 + $0x3c0] sm:$0xff] %v419_v56  ;;  %422 = vst [vmem:[%s4329_s29 + $0x3c8] sm:$0xff] %v421_v57  ;;  %v425_v59 = vld [vmem:[%s4321_s28 + $0x7a8] sm:$0xff] }
  0x4f   : > { %424 = vst [vmem:[%s4329_s29 + $0x3d0] sm:$0xff] %v423_v58  ;;  %v427_v60 = vld [vmem:[%s4321_s28 + $0x7c0] sm:$0xff]  ;;  %v429_v61 = vld [vmem:[%s4321_s28 + $0x7c8] sm:$0xff]  ;;  %426 = vst [vmem:[%s4329_s29 + $0x3d8] sm:$0xff] %v425_v59 }
  0x50   : > { %428 = vst [vmem:[%s4329_s29 + $0x3e0] sm:$0xff] %v427_v60  ;;  %430 = vst [vmem:[%s4329_s29 + $0x3e8] sm:$0xff] %v429_v61  ;;  %v431_v62 = vld [vmem:[%s4321_s28 + $0x7e0] sm:$0xff]  ;;  %v433_v63 = vld [vmem:[%s4321_s28 + $0x7e8] sm:$0xff] }
  0x51   : > { %v435_v0 = vld [vmem:[%s4321_s28 + $0x800] sm:$0xff]  ;;  %432 = vst [vmem:[%s4329_s29 + $0x3f0] sm:$0xff] %v431_v62  ;;  %434 = vst [vmem:[%s4329_s29 + $0x3f8] sm:$0xff] %v433_v63  ;;  %v437_v1 = vld [vmem:[%s4321_s28 + $0x808] sm:$0xff] }
  0x52   : > { %436 = vst [vmem:[%s4329_s29 + $0x400] sm:$0xff] %v435_v0  ;;  %v439_v2 = vld [vmem:[%s4321_s28 + $0x820] sm:$0xff]  ;;  %v441_v3 = vld [vmem:[%s4321_s28 + $0x828] sm:$0xff]  ;;  %438 = vst [vmem:[%s4329_s29 + $0x408] sm:$0xff] %v437_v1 }
  0x53   : > { %440 = vst [vmem:[%s4329_s29 + $0x410] sm:$0xff] %v439_v2  ;;  %442 = vst [vmem:[%s4329_s29 + $0x418] sm:$0xff] %v441_v3  ;;  %v443_v4 = vld [vmem:[%s4321_s28 + $0x840] sm:$0xff]  ;;  %v445_v5 = vld [vmem:[%s4321_s28 + $0x848] sm:$0xff] }
  0x54   : > { %v447_v6 = vld [vmem:[%s4321_s28 + $0x860] sm:$0xff]  ;;  %444 = vst [vmem:[%s4329_s29 + $0x420] sm:$0xff] %v443_v4  ;;  %446 = vst [vmem:[%s4329_s29 + $0x428] sm:$0xff] %v445_v5  ;;  %v449_v7 = vld [vmem:[%s4321_s28 + $0x868] sm:$0xff] }
  0x55   : > { %448 = vst [vmem:[%s4329_s29 + $0x430] sm:$0xff] %v447_v6  ;;  %v451_v8 = vld [vmem:[%s4321_s28 + $0x880] sm:$0xff]  ;;  %v453_v9 = vld [vmem:[%s4321_s28 + $0x888] sm:$0xff]  ;;  %450 = vst [vmem:[%s4329_s29 + $0x438] sm:$0xff] %v449_v7 }
  0x56   : > { %452 = vst [vmem:[%s4329_s29 + $0x440] sm:$0xff] %v451_v8  ;;  %454 = vst [vmem:[%s4329_s29 + $0x448] sm:$0xff] %v453_v9  ;;  %v455_v10 = vld [vmem:[%s4321_s28 + $0x8a0] sm:$0xff]  ;;  %v457_v11 = vld [vmem:[%s4321_s28 + $0x8a8] sm:$0xff] }
  0x57   : > { %v459_v12 = vld [vmem:[%s4321_s28 + $0x8c0] sm:$0xff]  ;;  %456 = vst [vmem:[%s4329_s29 + $0x450] sm:$0xff] %v455_v10  ;;  %458 = vst [vmem:[%s4329_s29 + $0x458] sm:$0xff] %v457_v11  ;;  %v461_v13 = vld [vmem:[%s4321_s28 + $0x8c8] sm:$0xff] }
  0x58   : > { %460 = vst [vmem:[%s4329_s29 + $0x460] sm:$0xff] %v459_v12  ;;  %v463_v14 = vld [vmem:[%s4321_s28 + $0x8e0] sm:$0xff]  ;;  %v465_v15 = vld [vmem:[%s4321_s28 + $0x8e8] sm:$0xff]  ;;  %462 = vst [vmem:[%s4329_s29 + $0x468] sm:$0xff] %v461_v13 }
  0x59   : > { %464 = vst [vmem:[%s4329_s29 + $0x470] sm:$0xff] %v463_v14  ;;  %466 = vst [vmem:[%s4329_s29 + $0x478] sm:$0xff] %v465_v15  ;;  %v467_v16 = vld [vmem:[%s4321_s28 + $0x900] sm:$0xff]  ;;  %v469_v17 = vld [vmem:[%s4321_s28 + $0x908] sm:$0xff] }
  0x5a   : > { %v471_v18 = vld [vmem:[%s4321_s28 + $0x920] sm:$0xff]  ;;  %468 = vst [vmem:[%s4329_s29 + $0x480] sm:$0xff] %v467_v16  ;;  %470 = vst [vmem:[%s4329_s29 + $0x488] sm:$0xff] %v469_v17  ;;  %v473_v19 = vld [vmem:[%s4321_s28 + $0x928] sm:$0xff] }
  0x5b   : > { %472 = vst [vmem:[%s4329_s29 + $0x490] sm:$0xff] %v471_v18  ;;  %v475_v20 = vld [vmem:[%s4321_s28 + $0x940] sm:$0xff]  ;;  %v477_v21 = vld [vmem:[%s4321_s28 + $0x948] sm:$0xff]  ;;  %474 = vst [vmem:[%s4329_s29 + $0x498] sm:$0xff] %v473_v19 }
  0x5c   : > { %476 = vst [vmem:[%s4329_s29 + $0x4a0] sm:$0xff] %v475_v20  ;;  %478 = vst [vmem:[%s4329_s29 + $0x4a8] sm:$0xff] %v477_v21  ;;  %v479_v22 = vld [vmem:[%s4321_s28 + $0x960] sm:$0xff]  ;;  %v481_v23 = vld [vmem:[%s4321_s28 + $0x968] sm:$0xff] }
  0x5d   : > { %v483_v24 = vld [vmem:[%s4321_s28 + $0x980] sm:$0xff]  ;;  %480 = vst [vmem:[%s4329_s29 + $0x4b0] sm:$0xff] %v479_v22  ;;  %482 = vst [vmem:[%s4329_s29 + $0x4b8] sm:$0xff] %v481_v23  ;;  %v485_v25 = vld [vmem:[%s4321_s28 + $0x988] sm:$0xff] }
  0x5e   : > { %484 = vst [vmem:[%s4329_s29 + $0x4c0] sm:$0xff] %v483_v24  ;;  %v487_v26 = vld [vmem:[%s4321_s28 + $0x9a0] sm:$0xff]  ;;  %v489_v27 = vld [vmem:[%s4321_s28 + $0x9a8] sm:$0xff]  ;;  %486 = vst [vmem:[%s4329_s29 + $0x4c8] sm:$0xff] %v485_v25 }
  0x5f   : > { %488 = vst [vmem:[%s4329_s29 + $0x4d0] sm:$0xff] %v487_v26  ;;  %490 = vst [vmem:[%s4329_s29 + $0x4d8] sm:$0xff] %v489_v27  ;;  %v491_v28 = vld [vmem:[%s4321_s28 + $0x9c0] sm:$0xff]  ;;  %v493_v29 = vld [vmem:[%s4321_s28 + $0x9c8] sm:$0xff] }
  0x60   : > { %v495_v30 = vld [vmem:[%s4321_s28 + $0x9e0] sm:$0xff]  ;;  %492 = vst [vmem:[%s4329_s29 + $0x4e0] sm:$0xff] %v491_v28  ;;  %494 = vst [vmem:[%s4329_s29 + $0x4e8] sm:$0xff] %v493_v29  ;;  %v497_v31 = vld [vmem:[%s4321_s28 + $0x9e8] sm:$0xff] }
  0x61   : > { %496 = vst [vmem:[%s4329_s29 + $0x4f0] sm:$0xff] %v495_v30  ;;  %v499_v32 = vld [vmem:[%s4321_s28 + $0xa00] sm:$0xff]  ;;  %v501_v33 = vld [vmem:[%s4321_s28 + $0xa08] sm:$0xff]  ;;  %498 = vst [vmem:[%s4329_s29 + $0x4f8] sm:$0xff] %v497_v31 }
  0x62   : > { %500 = vst [vmem:[%s4329_s29 + $0x500] sm:$0xff] %v499_v32  ;;  %502 = vst [vmem:[%s4329_s29 + $0x508] sm:$0xff] %v501_v33  ;;  %v503_v34 = vld [vmem:[%s4321_s28 + $0xa20] sm:$0xff]  ;;  %v505_v35 = vld [vmem:[%s4321_s28 + $0xa28] sm:$0xff] }
  0x63   : > { %v507_v36 = vld [vmem:[%s4321_s28 + $0xa40] sm:$0xff]  ;;  %504 = vst [vmem:[%s4329_s29 + $0x510] sm:$0xff] %v503_v34  ;;  %506 = vst [vmem:[%s4329_s29 + $0x518] sm:$0xff] %v505_v35  ;;  %v509_v37 = vld [vmem:[%s4321_s28 + $0xa48] sm:$0xff] }
  0x64   : > { %508 = vst [vmem:[%s4329_s29 + $0x520] sm:$0xff] %v507_v36  ;;  %v511_v38 = vld [vmem:[%s4321_s28 + $0xa60] sm:$0xff]  ;;  %v513_v39 = vld [vmem:[%s4321_s28 + $0xa68] sm:$0xff]  ;;  %510 = vst [vmem:[%s4329_s29 + $0x528] sm:$0xff] %v509_v37 }
  0x65   : > { %512 = vst [vmem:[%s4329_s29 + $0x530] sm:$0xff] %v511_v38  ;;  %514 = vst [vmem:[%s4329_s29 + $0x538] sm:$0xff] %v513_v39  ;;  %v515_v40 = vld [vmem:[%s4321_s28 + $0xa80] sm:$0xff]  ;;  %v517_v41 = vld [vmem:[%s4321_s28 + $0xa88] sm:$0xff] }
  0x66   : > { %v519_v42 = vld [vmem:[%s4321_s28 + $0xaa0] sm:$0xff]  ;;  %516 = vst [vmem:[%s4329_s29 + $0x540] sm:$0xff] %v515_v40  ;;  %518 = vst [vmem:[%s4329_s29 + $0x548] sm:$0xff] %v517_v41  ;;  %v521_v43 = vld [vmem:[%s4321_s28 + $0xaa8] sm:$0xff] }
  0x67   : > { %520 = vst [vmem:[%s4329_s29 + $0x550] sm:$0xff] %v519_v42  ;;  %v523_v44 = vld [vmem:[%s4321_s28 + $0xac0] sm:$0xff]  ;;  %v525_v45 = vld [vmem:[%s4321_s28 + $0xac8] sm:$0xff]  ;;  %522 = vst [vmem:[%s4329_s29 + $0x558] sm:$0xff] %v521_v43 }
  0x68   : > { %524 = vst [vmem:[%s4329_s29 + $0x560] sm:$0xff] %v523_v44  ;;  %526 = vst [vmem:[%s4329_s29 + $0x568] sm:$0xff] %v525_v45  ;;  %v527_v46 = vld [vmem:[%s4321_s28 + $0xae0] sm:$0xff]  ;;  %v529_v47 = vld [vmem:[%s4321_s28 + $0xae8] sm:$0xff] }
  0x69   : > { %v531_v48 = vld [vmem:[%s4321_s28 + $0xb00] sm:$0xff]  ;;  %528 = vst [vmem:[%s4329_s29 + $0x570] sm:$0xff] %v527_v46  ;;  %530 = vst [vmem:[%s4329_s29 + $0x578] sm:$0xff] %v529_v47  ;;  %v533_v49 = vld [vmem:[%s4321_s28 + $0xb08] sm:$0xff] }
  0x6a   : > { %532 = vst [vmem:[%s4329_s29 + $0x580] sm:$0xff] %v531_v48  ;;  %v535_v50 = vld [vmem:[%s4321_s28 + $0xb20] sm:$0xff]  ;;  %v537_v51 = vld [vmem:[%s4321_s28 + $0xb28] sm:$0xff]  ;;  %534 = vst [vmem:[%s4329_s29 + $0x588] sm:$0xff] %v533_v49 }
  0x6b   : > { %536 = vst [vmem:[%s4329_s29 + $0x590] sm:$0xff] %v535_v50  ;;  %538 = vst [vmem:[%s4329_s29 + $0x598] sm:$0xff] %v537_v51  ;;  %v539_v52 = vld [vmem:[%s4321_s28 + $0xb40] sm:$0xff]  ;;  %v541_v53 = vld [vmem:[%s4321_s28 + $0xb48] sm:$0xff] }
  0x6c   : > { %v543_v54 = vld [vmem:[%s4321_s28 + $0xb60] sm:$0xff]  ;;  %540 = vst [vmem:[%s4329_s29 + $0x5a0] sm:$0xff] %v539_v52  ;;  %542 = vst [vmem:[%s4329_s29 + $0x5a8] sm:$0xff] %v541_v53  ;;  %v545_v55 = vld [vmem:[%s4321_s28 + $0xb68] sm:$0xff] }
  0x6d   : > { %544 = vst [vmem:[%s4329_s29 + $0x5b0] sm:$0xff] %v543_v54  ;;  %v547_v56 = vld [vmem:[%s4321_s28 + $0xb80] sm:$0xff]  ;;  %v549_v57 = vld [vmem:[%s4321_s28 + $0xb88] sm:$0xff]  ;;  %546 = vst [vmem:[%s4329_s29 + $0x5b8] sm:$0xff] %v545_v55 }
  0x6e   : > { %548 = vst [vmem:[%s4329_s29 + $0x5c0] sm:$0xff] %v547_v56  ;;  %550 = vst [vmem:[%s4329_s29 + $0x5c8] sm:$0xff] %v549_v57  ;;  %v551_v58 = vld [vmem:[%s4321_s28 + $0xba0] sm:$0xff]  ;;  %v553_v59 = vld [vmem:[%s4321_s28 + $0xba8] sm:$0xff] }
  0x6f   : > { %v555_v60 = vld [vmem:[%s4321_s28 + $0xbc0] sm:$0xff]  ;;  %552 = vst [vmem:[%s4329_s29 + $0x5d0] sm:$0xff] %v551_v58  ;;  %554 = vst [vmem:[%s4329_s29 + $0x5d8] sm:$0xff] %v553_v59  ;;  %v557_v61 = vld [vmem:[%s4321_s28 + $0xbc8] sm:$0xff] }
  0x70   : > { %556 = vst [vmem:[%s4329_s29 + $0x5e0] sm:$0xff] %v555_v60  ;;  %v559_v62 = vld [vmem:[%s4321_s28 + $0xbe0] sm:$0xff]  ;;  %v561_v63 = vld [vmem:[%s4321_s28 + $0xbe8] sm:$0xff]  ;;  %558 = vst [vmem:[%s4329_s29 + $0x5e8] sm:$0xff] %v557_v61 }
  0x71   : > { %560 = vst [vmem:[%s4329_s29 + $0x5f0] sm:$0xff] %v559_v62  ;;  %562 = vst [vmem:[%s4329_s29 + $0x5f8] sm:$0xff] %v561_v63  ;;  %v563_v0 = vld [vmem:[%s4321_s28 + $0xc00] sm:$0xff]  ;;  %v565_v1 = vld [vmem:[%s4321_s28 + $0xc08] sm:$0xff] }
  0x72   : > { %v567_v2 = vld [vmem:[%s4321_s28 + $0xc20] sm:$0xff]  ;;  %564 = vst [vmem:[%s4329_s29 + $0x600] sm:$0xff] %v563_v0  ;;  %566 = vst [vmem:[%s4329_s29 + $0x608] sm:$0xff] %v565_v1  ;;  %v569_v3 = vld [vmem:[%s4321_s28 + $0xc28] sm:$0xff] }
  0x73   : > { %568 = vst [vmem:[%s4329_s29 + $0x610] sm:$0xff] %v567_v2  ;;  %v571_v4 = vld [vmem:[%s4321_s28 + $0xc40] sm:$0xff]  ;;  %v573_v5 = vld [vmem:[%s4321_s28 + $0xc48] sm:$0xff]  ;;  %570 = vst [vmem:[%s4329_s29 + $0x618] sm:$0xff] %v569_v3 }
  0x74   : > { %572 = vst [vmem:[%s4329_s29 + $0x620] sm:$0xff] %v571_v4  ;;  %574 = vst [vmem:[%s4329_s29 + $0x628] sm:$0xff] %v573_v5  ;;  %v575_v6 = vld [vmem:[%s4321_s28 + $0xc60] sm:$0xff]  ;;  %v577_v7 = vld [vmem:[%s4321_s28 + $0xc68] sm:$0xff] }
  0x75   : > { %v579_v8 = vld [vmem:[%s4321_s28 + $0xc80] sm:$0xff]  ;;  %576 = vst [vmem:[%s4329_s29 + $0x630] sm:$0xff] %v575_v6  ;;  %578 = vst [vmem:[%s4329_s29 + $0x638] sm:$0xff] %v577_v7  ;;  %v581_v9 = vld [vmem:[%s4321_s28 + $0xc88] sm:$0xff] }
  0x76   : > { %580 = vst [vmem:[%s4329_s29 + $0x640] sm:$0xff] %v579_v8  ;;  %v583_v10 = vld [vmem:[%s4321_s28 + $0xca0] sm:$0xff]  ;;  %v585_v11 = vld [vmem:[%s4321_s28 + $0xca8] sm:$0xff]  ;;  %582 = vst [vmem:[%s4329_s29 + $0x648] sm:$0xff] %v581_v9 }
  0x77   : > { %584 = vst [vmem:[%s4329_s29 + $0x650] sm:$0xff] %v583_v10  ;;  %586 = vst [vmem:[%s4329_s29 + $0x658] sm:$0xff] %v585_v11  ;;  %v587_v12 = vld [vmem:[%s4321_s28 + $0xcc0] sm:$0xff]  ;;  %v589_v13 = vld [vmem:[%s4321_s28 + $0xcc8] sm:$0xff] }
  0x78   : > { %v591_v14 = vld [vmem:[%s4321_s28 + $0xce0] sm:$0xff]  ;;  %588 = vst [vmem:[%s4329_s29 + $0x660] sm:$0xff] %v587_v12  ;;  %590 = vst [vmem:[%s4329_s29 + $0x668] sm:$0xff] %v589_v13  ;;  %v593_v15 = vld [vmem:[%s4321_s28 + $0xce8] sm:$0xff] }
  0x79   : > { %592 = vst [vmem:[%s4329_s29 + $0x670] sm:$0xff] %v591_v14  ;;  %v595_v16 = vld [vmem:[%s4321_s28 + $0xd00] sm:$0xff]  ;;  %v597_v17 = vld [vmem:[%s4321_s28 + $0xd08] sm:$0xff]  ;;  %594 = vst [vmem:[%s4329_s29 + $0x678] sm:$0xff] %v593_v15 }
  0x7a   : > { %596 = vst [vmem:[%s4329_s29 + $0x680] sm:$0xff] %v595_v16  ;;  %598 = vst [vmem:[%s4329_s29 + $0x688] sm:$0xff] %v597_v17  ;;  %v599_v18 = vld [vmem:[%s4321_s28 + $0xd20] sm:$0xff]  ;;  %v601_v19 = vld [vmem:[%s4321_s28 + $0xd28] sm:$0xff] }
  0x7b   : > { %v603_v20 = vld [vmem:[%s4321_s28 + $0xd40] sm:$0xff]  ;;  %600 = vst [vmem:[%s4329_s29 + $0x690] sm:$0xff] %v599_v18  ;;  %602 = vst [vmem:[%s4329_s29 + $0x698] sm:$0xff] %v601_v19  ;;  %v605_v21 = vld [vmem:[%s4321_s28 + $0xd48] sm:$0xff] }
  0x7c   : > { %604 = vst [vmem:[%s4329_s29 + $0x6a0] sm:$0xff] %v603_v20  ;;  %v607_v22 = vld [vmem:[%s4321_s28 + $0xd60] sm:$0xff]  ;;  %v609_v23 = vld [vmem:[%s4321_s28 + $0xd68] sm:$0xff]  ;;  %606 = vst [vmem:[%s4329_s29 + $0x6a8] sm:$0xff] %v605_v21 }
  0x7d   : > { %608 = vst [vmem:[%s4329_s29 + $0x6b0] sm:$0xff] %v607_v22  ;;  %610 = vst [vmem:[%s4329_s29 + $0x6b8] sm:$0xff] %v609_v23  ;;  %v611_v24 = vld [vmem:[%s4321_s28 + $0xd80] sm:$0xff]  ;;  %v613_v25 = vld [vmem:[%s4321_s28 + $0xd88] sm:$0xff] }
  0x7e   : > { %v615_v26 = vld [vmem:[%s4321_s28 + $0xda0] sm:$0xff]  ;;  %612 = vst [vmem:[%s4329_s29 + $0x6c0] sm:$0xff] %v611_v24  ;;  %614 = vst [vmem:[%s4329_s29 + $0x6c8] sm:$0xff] %v613_v25  ;;  %v617_v27 = vld [vmem:[%s4321_s28 + $0xda8] sm:$0xff] }
  0x7f   : > { %616 = vst [vmem:[%s4329_s29 + $0x6d0] sm:$0xff] %v615_v26  ;;  %v619_v28 = vld [vmem:[%s4321_s28 + $0xdc0] sm:$0xff]  ;;  %v621_v29 = vld [vmem:[%s4321_s28 + $0xdc8] sm:$0xff]  ;;  %618 = vst [vmem:[%s4329_s29 + $0x6d8] sm:$0xff] %v617_v27 }
  0x80   : > { %620 = vst [vmem:[%s4329_s29 + $0x6e0] sm:$0xff] %v619_v28  ;;  %622 = vst [vmem:[%s4329_s29 + $0x6e8] sm:$0xff] %v621_v29  ;;  %v623_v30 = vld [vmem:[%s4321_s28 + $0xde0] sm:$0xff]  ;;  %v625_v31 = vld [vmem:[%s4321_s28 + $0xde8] sm:$0xff] }
  0x81   : > { %v627_v32 = vld [vmem:[%s4321_s28 + $0xe00] sm:$0xff]  ;;  %624 = vst [vmem:[%s4329_s29 + $0x6f0] sm:$0xff] %v623_v30  ;;  %626 = vst [vmem:[%s4329_s29 + $0x6f8] sm:$0xff] %v625_v31  ;;  %v629_v33 = vld [vmem:[%s4321_s28 + $0xe08] sm:$0xff] }
  0x82   : > { %628 = vst [vmem:[%s4329_s29 + $0x700] sm:$0xff] %v627_v32  ;;  %v631_v34 = vld [vmem:[%s4321_s28 + $0xe20] sm:$0xff]  ;;  %v633_v35 = vld [vmem:[%s4321_s28 + $0xe28] sm:$0xff]  ;;  %630 = vst [vmem:[%s4329_s29 + $0x708] sm:$0xff] %v629_v33 }
  0x83   : > { %632 = vst [vmem:[%s4329_s29 + $0x710] sm:$0xff] %v631_v34  ;;  %634 = vst [vmem:[%s4329_s29 + $0x718] sm:$0xff] %v633_v35  ;;  %v635_v36 = vld [vmem:[%s4321_s28 + $0xe40] sm:$0xff]  ;;  %v637_v37 = vld [vmem:[%s4321_s28 + $0xe48] sm:$0xff] }
  0x84   : > { %v639_v38 = vld [vmem:[%s4321_s28 + $0xe60] sm:$0xff]  ;;  %636 = vst [vmem:[%s4329_s29 + $0x720] sm:$0xff] %v635_v36  ;;  %638 = vst [vmem:[%s4329_s29 + $0x728] sm:$0xff] %v637_v37  ;;  %v641_v39 = vld [vmem:[%s4321_s28 + $0xe68] sm:$0xff] }
  0x85   : > { %640 = vst [vmem:[%s4329_s29 + $0x730] sm:$0xff] %v639_v38  ;;  %v643_v40 = vld [vmem:[%s4321_s28 + $0xe80] sm:$0xff]  ;;  %v645_v41 = vld [vmem:[%s4321_s28 + $0xe88] sm:$0xff]  ;;  %642 = vst [vmem:[%s4329_s29 + $0x738] sm:$0xff] %v641_v39 }
  0x86   : > { %644 = vst [vmem:[%s4329_s29 + $0x740] sm:$0xff] %v643_v40  ;;  %646 = vst [vmem:[%s4329_s29 + $0x748] sm:$0xff] %v645_v41  ;;  %v647_v42 = vld [vmem:[%s4321_s28 + $0xea0] sm:$0xff]  ;;  %v649_v43 = vld [vmem:[%s4321_s28 + $0xea8] sm:$0xff] }
  0x87   : > { %v651_v44 = vld [vmem:[%s4321_s28 + $0xec0] sm:$0xff]  ;;  %648 = vst [vmem:[%s4329_s29 + $0x750] sm:$0xff] %v647_v42  ;;  %650 = vst [vmem:[%s4329_s29 + $0x758] sm:$0xff] %v649_v43  ;;  %v653_v45 = vld [vmem:[%s4321_s28 + $0xec8] sm:$0xff] }
  0x88   : > { %652 = vst [vmem:[%s4329_s29 + $0x760] sm:$0xff] %v651_v44  ;;  %v655_v46 = vld [vmem:[%s4321_s28 + $0xee0] sm:$0xff]  ;;  %v657_v47 = vld [vmem:[%s4321_s28 + $0xee8] sm:$0xff]  ;;  %654 = vst [vmem:[%s4329_s29 + $0x768] sm:$0xff] %v653_v45 }
  0x89   : > { %656 = vst [vmem:[%s4329_s29 + $0x770] sm:$0xff] %v655_v46  ;;  %658 = vst [vmem:[%s4329_s29 + $0x778] sm:$0xff] %v657_v47  ;;  %v659_v48 = vld [vmem:[%s4321_s28 + $0xf00] sm:$0xff]  ;;  %v661_v49 = vld [vmem:[%s4321_s28 + $0xf08] sm:$0xff] }
  0x8a   : > { %v663_v50 = vld [vmem:[%s4321_s28 + $0xf20] sm:$0xff]  ;;  %660 = vst [vmem:[%s4329_s29 + $0x780] sm:$0xff] %v659_v48  ;;  %662 = vst [vmem:[%s4329_s29 + $0x788] sm:$0xff] %v661_v49  ;;  %v665_v51 = vld [vmem:[%s4321_s28 + $0xf28] sm:$0xff] }
  0x8b   : > { %664 = vst [vmem:[%s4329_s29 + $0x790] sm:$0xff] %v663_v50  ;;  %v667_v52 = vld [vmem:[%s4321_s28 + $0xf40] sm:$0xff]  ;;  %v669_v53 = vld [vmem:[%s4321_s28 + $0xf48] sm:$0xff]  ;;  %666 = vst [vmem:[%s4329_s29 + $0x798] sm:$0xff] %v665_v51 }
  0x8c   : > { %668 = vst [vmem:[%s4329_s29 + $0x7a0] sm:$0xff] %v667_v52  ;;  %670 = vst [vmem:[%s4329_s29 + $0x7a8] sm:$0xff] %v669_v53  ;;  %v671_v54 = vld [vmem:[%s4321_s28 + $0xf60] sm:$0xff]  ;;  %v673_v55 = vld [vmem:[%s4321_s28 + $0xf68] sm:$0xff] }
  0x8d   : > { %v675_v56 = vld [vmem:[%s4321_s28 + $0xf80] sm:$0xff]  ;;  %672 = vst [vmem:[%s4329_s29 + $0x7b0] sm:$0xff] %v671_v54  ;;  %674 = vst [vmem:[%s4329_s29 + $0x7b8] sm:$0xff] %v673_v55  ;;  %v677_v57 = vld [vmem:[%s4321_s28 + $0xf88] sm:$0xff] }
  0x8e   : > { %676 = vst [vmem:[%s4329_s29 + $0x7c0] sm:$0xff] %v675_v56  ;;  %v679_v58 = vld [vmem:[%s4321_s28 + $0xfa0] sm:$0xff]  ;;  %v681_v59 = vld [vmem:[%s4321_s28 + $0xfa8] sm:$0xff]  ;;  %678 = vst [vmem:[%s4329_s29 + $0x7c8] sm:$0xff] %v677_v57 }
  0x8f   : > { %680 = vst [vmem:[%s4329_s29 + $0x7d0] sm:$0xff] %v679_v58  ;;  %682 = vst [vmem:[%s4329_s29 + $0x7d8] sm:$0xff] %v681_v59  ;;  %v683_v60 = vld [vmem:[%s4321_s28 + $0xfc0] sm:$0xff]  ;;  %v685_v61 = vld [vmem:[%s4321_s28 + $0xfc8] sm:$0xff] }
  0x90   : > { %v687_v62 = vld [vmem:[%s4321_s28 + $0xfe0] sm:$0xff]  ;;  %684 = vst [vmem:[%s4329_s29 + $0x7e0] sm:$0xff] %v683_v60  ;;  %686 = vst [vmem:[%s4329_s29 + $0x7e8] sm:$0xff] %v685_v61  ;;  %v689_v63 = vld [vmem:[%s4321_s28 + $0xfe8] sm:$0xff] }
  0x91   : > { %688 = vst [vmem:[%s4329_s29 + $0x7f0] sm:$0xff] %v687_v62  ;;  %v691_v0 = vld [vmem:[%s4321_s28 + $0x1000] sm:$0xff]  ;;  %v693_v1 = vld [vmem:[%s4321_s28 + $0x1008] sm:$0xff]  ;;  %690 = vst [vmem:[%s4329_s29 + $0x7f8] sm:$0xff] %v689_v63 }
  0x92   : > { %692 = vst [vmem:[%s4329_s29 + $0x800] sm:$0xff] %v691_v0  ;;  %694 = vst [vmem:[%s4329_s29 + $0x808] sm:$0xff] %v693_v1  ;;  %v695_v2 = vld [vmem:[%s4321_s28 + $0x1020] sm:$0xff]  ;;  %v697_v3 = vld [vmem:[%s4321_s28 + $0x1028] sm:$0xff] }
  0x93   : > { %v699_v4 = vld [vmem:[%s4321_s28 + $0x1040] sm:$0xff]  ;;  %696 = vst [vmem:[%s4329_s29 + $0x810] sm:$0xff] %v695_v2  ;;  %698 = vst [vmem:[%s4329_s29 + $0x818] sm:$0xff] %v697_v3  ;;  %v701_v5 = vld [vmem:[%s4321_s28 + $0x1048] sm:$0xff] }
  0x94   : > { %700 = vst [vmem:[%s4329_s29 + $0x820] sm:$0xff] %v699_v4  ;;  %v703_v6 = vld [vmem:[%s4321_s28 + $0x1060] sm:$0xff]  ;;  %v705_v7 = vld [vmem:[%s4321_s28 + $0x1068] sm:$0xff]  ;;  %702 = vst [vmem:[%s4329_s29 + $0x828] sm:$0xff] %v701_v5 }
  0x95   : > { %704 = vst [vmem:[%s4329_s29 + $0x830] sm:$0xff] %v703_v6  ;;  %706 = vst [vmem:[%s4329_s29 + $0x838] sm:$0xff] %v705_v7  ;;  %v707_v8 = vld [vmem:[%s4321_s28 + $0x1080] sm:$0xff]  ;;  %v709_v9 = vld [vmem:[%s4321_s28 + $0x1088] sm:$0xff] }
  0x96   : > { %v711_v10 = vld [vmem:[%s4321_s28 + $0x10a0] sm:$0xff]  ;;  %708 = vst [vmem:[%s4329_s29 + $0x840] sm:$0xff] %v707_v8  ;;  %710 = vst [vmem:[%s4329_s29 + $0x848] sm:$0xff] %v709_v9  ;;  %v713_v11 = vld [vmem:[%s4321_s28 + $0x10a8] sm:$0xff] }
  0x97   : > { %712 = vst [vmem:[%s4329_s29 + $0x850] sm:$0xff] %v711_v10  ;;  %v715_v12 = vld [vmem:[%s4321_s28 + $0x10c0] sm:$0xff]  ;;  %v717_v13 = vld [vmem:[%s4321_s28 + $0x10c8] sm:$0xff]  ;;  %714 = vst [vmem:[%s4329_s29 + $0x858] sm:$0xff] %v713_v11 }
  0x98   : > { %716 = vst [vmem:[%s4329_s29 + $0x860] sm:$0xff] %v715_v12  ;;  %718 = vst [vmem:[%s4329_s29 + $0x868] sm:$0xff] %v717_v13  ;;  %v719_v14 = vld [vmem:[%s4321_s28 + $0x10e0] sm:$0xff]  ;;  %v721_v15 = vld [vmem:[%s4321_s28 + $0x10e8] sm:$0xff] }
  0x99   : > { %v723_v16 = vld [vmem:[%s4321_s28 + $0x1100] sm:$0xff]  ;;  %720 = vst [vmem:[%s4329_s29 + $0x870] sm:$0xff] %v719_v14  ;;  %722 = vst [vmem:[%s4329_s29 + $0x878] sm:$0xff] %v721_v15  ;;  %v725_v17 = vld [vmem:[%s4321_s28 + $0x1108] sm:$0xff] }
  0x9a   : > { %724 = vst [vmem:[%s4329_s29 + $0x880] sm:$0xff] %v723_v16  ;;  %v727_v18 = vld [vmem:[%s4321_s28 + $0x1120] sm:$0xff]  ;;  %v729_v19 = vld [vmem:[%s4321_s28 + $0x1128] sm:$0xff]  ;;  %726 = vst [vmem:[%s4329_s29 + $0x888] sm:$0xff] %v725_v17 }
  0x9b   : > { %728 = vst [vmem:[%s4329_s29 + $0x890] sm:$0xff] %v727_v18  ;;  %730 = vst [vmem:[%s4329_s29 + $0x898] sm:$0xff] %v729_v19  ;;  %v731_v20 = vld [vmem:[%s4321_s28 + $0x1140] sm:$0xff]  ;;  %v733_v21 = vld [vmem:[%s4321_s28 + $0x1148] sm:$0xff] }
  0x9c   : > { %v735_v22 = vld [vmem:[%s4321_s28 + $0x1160] sm:$0xff]  ;;  %732 = vst [vmem:[%s4329_s29 + $0x8a0] sm:$0xff] %v731_v20  ;;  %734 = vst [vmem:[%s4329_s29 + $0x8a8] sm:$0xff] %v733_v21  ;;  %v737_v23 = vld [vmem:[%s4321_s28 + $0x1168] sm:$0xff] }
  0x9d   : > { %736 = vst [vmem:[%s4329_s29 + $0x8b0] sm:$0xff] %v735_v22  ;;  %v739_v24 = vld [vmem:[%s4321_s28 + $0x1180] sm:$0xff]  ;;  %v741_v25 = vld [vmem:[%s4321_s28 + $0x1188] sm:$0xff]  ;;  %738 = vst [vmem:[%s4329_s29 + $0x8b8] sm:$0xff] %v737_v23 }
  0x9e   : > { %740 = vst [vmem:[%s4329_s29 + $0x8c0] sm:$0xff] %v739_v24  ;;  %742 = vst [vmem:[%s4329_s29 + $0x8c8] sm:$0xff] %v741_v25  ;;  %v743_v26 = vld [vmem:[%s4321_s28 + $0x11a0] sm:$0xff]  ;;  %v745_v27 = vld [vmem:[%s4321_s28 + $0x11a8] sm:$0xff] }
  0x9f   : > { %v747_v28 = vld [vmem:[%s4321_s28 + $0x11c0] sm:$0xff]  ;;  %744 = vst [vmem:[%s4329_s29 + $0x8d0] sm:$0xff] %v743_v26  ;;  %746 = vst [vmem:[%s4329_s29 + $0x8d8] sm:$0xff] %v745_v27  ;;  %v749_v29 = vld [vmem:[%s4321_s28 + $0x11c8] sm:$0xff] }
  0xa0   : > { %748 = vst [vmem:[%s4329_s29 + $0x8e0] sm:$0xff] %v747_v28  ;;  %v751_v30 = vld [vmem:[%s4321_s28 + $0x11e0] sm:$0xff]  ;;  %v753_v31 = vld [vmem:[%s4321_s28 + $0x11e8] sm:$0xff]  ;;  %750 = vst [vmem:[%s4329_s29 + $0x8e8] sm:$0xff] %v749_v29 }
  0xa1   : > { %752 = vst [vmem:[%s4329_s29 + $0x8f0] sm:$0xff] %v751_v30  ;;  %754 = vst [vmem:[%s4329_s29 + $0x8f8] sm:$0xff] %v753_v31  ;;  %v755_v32 = vld [vmem:[%s4321_s28 + $0x1200] sm:$0xff]  ;;  %v757_v33 = vld [vmem:[%s4321_s28 + $0x1208] sm:$0xff] }
  0xa2   : > { %v759_v34 = vld [vmem:[%s4321_s28 + $0x1220] sm:$0xff]  ;;  %756 = vst [vmem:[%s4329_s29 + $0x900] sm:$0xff] %v755_v32  ;;  %758 = vst [vmem:[%s4329_s29 + $0x908] sm:$0xff] %v757_v33  ;;  %v761_v35 = vld [vmem:[%s4321_s28 + $0x1228] sm:$0xff] }
  0xa3   : > { %760 = vst [vmem:[%s4329_s29 + $0x910] sm:$0xff] %v759_v34  ;;  %v763_v36 = vld [vmem:[%s4321_s28 + $0x1240] sm:$0xff]  ;;  %v765_v37 = vld [vmem:[%s4321_s28 + $0x1248] sm:$0xff]  ;;  %762 = vst [vmem:[%s4329_s29 + $0x918] sm:$0xff] %v761_v35 }
  0xa4   : > { %764 = vst [vmem:[%s4329_s29 + $0x920] sm:$0xff] %v763_v36  ;;  %766 = vst [vmem:[%s4329_s29 + $0x928] sm:$0xff] %v765_v37  ;;  %v767_v38 = vld [vmem:[%s4321_s28 + $0x1260] sm:$0xff]  ;;  %v769_v39 = vld [vmem:[%s4321_s28 + $0x1268] sm:$0xff] }
  0xa5   : > { %v771_v40 = vld [vmem:[%s4321_s28 + $0x1280] sm:$0xff]  ;;  %768 = vst [vmem:[%s4329_s29 + $0x930] sm:$0xff] %v767_v38  ;;  %770 = vst [vmem:[%s4329_s29 + $0x938] sm:$0xff] %v769_v39  ;;  %v773_v41 = vld [vmem:[%s4321_s28 + $0x1288] sm:$0xff] }
  0xa6   : > { %772 = vst [vmem:[%s4329_s29 + $0x940] sm:$0xff] %v771_v40  ;;  %v775_v42 = vld [vmem:[%s4321_s28 + $0x12a0] sm:$0xff]  ;;  %v777_v43 = vld [vmem:[%s4321_s28 + $0x12a8] sm:$0xff]  ;;  %774 = vst [vmem:[%s4329_s29 + $0x948] sm:$0xff] %v773_v41 }
  0xa7   : > { %776 = vst [vmem:[%s4329_s29 + $0x950] sm:$0xff] %v775_v42  ;;  %778 = vst [vmem:[%s4329_s29 + $0x958] sm:$0xff] %v777_v43  ;;  %v779_v44 = vld [vmem:[%s4321_s28 + $0x12c0] sm:$0xff]  ;;  %v781_v45 = vld [vmem:[%s4321_s28 + $0x12c8] sm:$0xff] }
  0xa8   : > { %v783_v46 = vld [vmem:[%s4321_s28 + $0x12e0] sm:$0xff]  ;;  %780 = vst [vmem:[%s4329_s29 + $0x960] sm:$0xff] %v779_v44  ;;  %782 = vst [vmem:[%s4329_s29 + $0x968] sm:$0xff] %v781_v45  ;;  %v785_v47 = vld [vmem:[%s4321_s28 + $0x12e8] sm:$0xff] }
  0xa9   : > { %784 = vst [vmem:[%s4329_s29 + $0x970] sm:$0xff] %v783_v46  ;;  %v787_v48 = vld [vmem:[%s4321_s28 + $0x1300] sm:$0xff]  ;;  %v789_v49 = vld [vmem:[%s4321_s28 + $0x1308] sm:$0xff]  ;;  %786 = vst [vmem:[%s4329_s29 + $0x978] sm:$0xff] %v785_v47 }
  0xaa   : > { %788 = vst [vmem:[%s4329_s29 + $0x980] sm:$0xff] %v787_v48  ;;  %790 = vst [vmem:[%s4329_s29 + $0x988] sm:$0xff] %v789_v49  ;;  %v791_v50 = vld [vmem:[%s4321_s28 + $0x1320] sm:$0xff]  ;;  %v793_v51 = vld [vmem:[%s4321_s28 + $0x1328] sm:$0xff] }
  0xab   : > { %v795_v52 = vld [vmem:[%s4321_s28 + $0x1340] sm:$0xff]  ;;  %792 = vst [vmem:[%s4329_s29 + $0x990] sm:$0xff] %v791_v50  ;;  %794 = vst [vmem:[%s4329_s29 + $0x998] sm:$0xff] %v793_v51  ;;  %v797_v53 = vld [vmem:[%s4321_s28 + $0x1348] sm:$0xff] }
  0xac   : > { %796 = vst [vmem:[%s4329_s29 + $0x9a0] sm:$0xff] %v795_v52  ;;  %v799_v54 = vld [vmem:[%s4321_s28 + $0x1360] sm:$0xff]  ;;  %v801_v55 = vld [vmem:[%s4321_s28 + $0x1368] sm:$0xff]  ;;  %798 = vst [vmem:[%s4329_s29 + $0x9a8] sm:$0xff] %v797_v53 }
  0xad   : > { %800 = vst [vmem:[%s4329_s29 + $0x9b0] sm:$0xff] %v799_v54  ;;  %802 = vst [vmem:[%s4329_s29 + $0x9b8] sm:$0xff] %v801_v55  ;;  %v803_v56 = vld [vmem:[%s4321_s28 + $0x1380] sm:$0xff]  ;;  %v805_v57 = vld [vmem:[%s4321_s28 + $0x1388] sm:$0xff] }
  0xae   : > { %v807_v58 = vld [vmem:[%s4321_s28 + $0x13a0] sm:$0xff]  ;;  %804 = vst [vmem:[%s4329_s29 + $0x9c0] sm:$0xff] %v803_v56  ;;  %806 = vst [vmem:[%s4329_s29 + $0x9c8] sm:$0xff] %v805_v57  ;;  %v809_v59 = vld [vmem:[%s4321_s28 + $0x13a8] sm:$0xff] }
  0xaf   : > { %808 = vst [vmem:[%s4329_s29 + $0x9d0] sm:$0xff] %v807_v58  ;;  %v811_v60 = vld [vmem:[%s4321_s28 + $0x13c0] sm:$0xff]  ;;  %v813_v61 = vld [vmem:[%s4321_s28 + $0x13c8] sm:$0xff]  ;;  %810 = vst [vmem:[%s4329_s29 + $0x9d8] sm:$0xff] %v809_v59 }
  0xb0   : > { %812 = vst [vmem:[%s4329_s29 + $0x9e0] sm:$0xff] %v811_v60  ;;  %814 = vst [vmem:[%s4329_s29 + $0x9e8] sm:$0xff] %v813_v61  ;;  %v815_v62 = vld [vmem:[%s4321_s28 + $0x13e0] sm:$0xff]  ;;  %v817_v63 = vld [vmem:[%s4321_s28 + $0x13e8] sm:$0xff] }
  0xb1   : > { %v819_v0 = vld [vmem:[%s4321_s28 + $0x1400] sm:$0xff]  ;;  %816 = vst [vmem:[%s4329_s29 + $0x9f0] sm:$0xff] %v815_v62  ;;  %818 = vst [vmem:[%s4329_s29 + $0x9f8] sm:$0xff] %v817_v63  ;;  %v821_v1 = vld [vmem:[%s4321_s28 + $0x1408] sm:$0xff] }
  0xb2   : > { %820 = vst [vmem:[%s4329_s29 + $0xa00] sm:$0xff] %v819_v0  ;;  %v823_v2 = vld [vmem:[%s4321_s28 + $0x1420] sm:$0xff]  ;;  %v825_v3 = vld [vmem:[%s4321_s28 + $0x1428] sm:$0xff]  ;;  %822 = vst [vmem:[%s4329_s29 + $0xa08] sm:$0xff] %v821_v1 }
  0xb3   : > { %824 = vst [vmem:[%s4329_s29 + $0xa10] sm:$0xff] %v823_v2  ;;  %826 = vst [vmem:[%s4329_s29 + $0xa18] sm:$0xff] %v825_v3  ;;  %v827_v4 = vld [vmem:[%s4321_s28 + $0x1440] sm:$0xff]  ;;  %v829_v5 = vld [vmem:[%s4321_s28 + $0x1448] sm:$0xff] }
  0xb4   : > { %v831_v6 = vld [vmem:[%s4321_s28 + $0x1460] sm:$0xff]  ;;  %828 = vst [vmem:[%s4329_s29 + $0xa20] sm:$0xff] %v827_v4  ;;  %830 = vst [vmem:[%s4329_s29 + $0xa28] sm:$0xff] %v829_v5  ;;  %v833_v7 = vld [vmem:[%s4321_s28 + $0x1468] sm:$0xff] }
  0xb5   : > { %832 = vst [vmem:[%s4329_s29 + $0xa30] sm:$0xff] %v831_v6  ;;  %v835_v8 = vld [vmem:[%s4321_s28 + $0x1480] sm:$0xff]  ;;  %v837_v9 = vld [vmem:[%s4321_s28 + $0x1488] sm:$0xff]  ;;  %834 = vst [vmem:[%s4329_s29 + $0xa38] sm:$0xff] %v833_v7 }
  0xb6   : > { %836 = vst [vmem:[%s4329_s29 + $0xa40] sm:$0xff] %v835_v8  ;;  %838 = vst [vmem:[%s4329_s29 + $0xa48] sm:$0xff] %v837_v9  ;;  %v839_v10 = vld [vmem:[%s4321_s28 + $0x14a0] sm:$0xff]  ;;  %v841_v11 = vld [vmem:[%s4321_s28 + $0x14a8] sm:$0xff] }
  0xb7   : > { %v843_v12 = vld [vmem:[%s4321_s28 + $0x14c0] sm:$0xff]  ;;  %840 = vst [vmem:[%s4329_s29 + $0xa50] sm:$0xff] %v839_v10  ;;  %842 = vst [vmem:[%s4329_s29 + $0xa58] sm:$0xff] %v841_v11  ;;  %v845_v13 = vld [vmem:[%s4321_s28 + $0x14c8] sm:$0xff] }
  0xb8   : > { %844 = vst [vmem:[%s4329_s29 + $0xa60] sm:$0xff] %v843_v12  ;;  %v847_v14 = vld [vmem:[%s4321_s28 + $0x14e0] sm:$0xff]  ;;  %v849_v15 = vld [vmem:[%s4321_s28 + $0x14e8] sm:$0xff]  ;;  %846 = vst [vmem:[%s4329_s29 + $0xa68] sm:$0xff] %v845_v13 }
  0xb9   : > { %848 = vst [vmem:[%s4329_s29 + $0xa70] sm:$0xff] %v847_v14  ;;  %850 = vst [vmem:[%s4329_s29 + $0xa78] sm:$0xff] %v849_v15  ;;  %v851_v16 = vld [vmem:[%s4321_s28 + $0x1500] sm:$0xff]  ;;  %v853_v17 = vld [vmem:[%s4321_s28 + $0x1508] sm:$0xff] }
  0xba   : > { %v855_v18 = vld [vmem:[%s4321_s28 + $0x1520] sm:$0xff]  ;;  %852 = vst [vmem:[%s4329_s29 + $0xa80] sm:$0xff] %v851_v16  ;;  %854 = vst [vmem:[%s4329_s29 + $0xa88] sm:$0xff] %v853_v17  ;;  %v857_v19 = vld [vmem:[%s4321_s28 + $0x1528] sm:$0xff] }
  0xbb   : > { %856 = vst [vmem:[%s4329_s29 + $0xa90] sm:$0xff] %v855_v18  ;;  %v859_v20 = vld [vmem:[%s4321_s28 + $0x1540] sm:$0xff]  ;;  %v861_v21 = vld [vmem:[%s4321_s28 + $0x1548] sm:$0xff]  ;;  %858 = vst [vmem:[%s4329_s29 + $0xa98] sm:$0xff] %v857_v19 }
  0xbc   : > { %860 = vst [vmem:[%s4329_s29 + $0xaa0] sm:$0xff] %v859_v20  ;;  %862 = vst [vmem:[%s4329_s29 + $0xaa8] sm:$0xff] %v861_v21  ;;  %v863_v22 = vld [vmem:[%s4321_s28 + $0x1560] sm:$0xff]  ;;  %v865_v23 = vld [vmem:[%s4321_s28 + $0x1568] sm:$0xff] }
  0xbd   : > { %v867_v24 = vld [vmem:[%s4321_s28 + $0x1580] sm:$0xff]  ;;  %864 = vst [vmem:[%s4329_s29 + $0xab0] sm:$0xff] %v863_v22  ;;  %866 = vst [vmem:[%s4329_s29 + $0xab8] sm:$0xff] %v865_v23  ;;  %v869_v25 = vld [vmem:[%s4321_s28 + $0x1588] sm:$0xff] }
  0xbe   : > { %868 = vst [vmem:[%s4329_s29 + $0xac0] sm:$0xff] %v867_v24  ;;  %v871_v26 = vld [vmem:[%s4321_s28 + $0x15a0] sm:$0xff]  ;;  %v873_v27 = vld [vmem:[%s4321_s28 + $0x15a8] sm:$0xff]  ;;  %870 = vst [vmem:[%s4329_s29 + $0xac8] sm:$0xff] %v869_v25 }
  0xbf   : > { %872 = vst [vmem:[%s4329_s29 + $0xad0] sm:$0xff] %v871_v26  ;;  %874 = vst [vmem:[%s4329_s29 + $0xad8] sm:$0xff] %v873_v27  ;;  %v875_v28 = vld [vmem:[%s4321_s28 + $0x15c0] sm:$0xff]  ;;  %v877_v29 = vld [vmem:[%s4321_s28 + $0x15c8] sm:$0xff] }
  0xc0   : > { %v879_v30 = vld [vmem:[%s4321_s28 + $0x15e0] sm:$0xff]  ;;  %876 = vst [vmem:[%s4329_s29 + $0xae0] sm:$0xff] %v875_v28  ;;  %878 = vst [vmem:[%s4329_s29 + $0xae8] sm:$0xff] %v877_v29  ;;  %v881_v31 = vld [vmem:[%s4321_s28 + $0x15e8] sm:$0xff] }
  0xc1   : > { %880 = vst [vmem:[%s4329_s29 + $0xaf0] sm:$0xff] %v879_v30  ;;  %v883_v32 = vld [vmem:[%s4321_s28 + $0x1600] sm:$0xff]  ;;  %v885_v33 = vld [vmem:[%s4321_s28 + $0x1608] sm:$0xff]  ;;  %882 = vst [vmem:[%s4329_s29 + $0xaf8] sm:$0xff] %v881_v31 }
  0xc2   : > { %884 = vst [vmem:[%s4329_s29 + $0xb00] sm:$0xff] %v883_v32  ;;  %886 = vst [vmem:[%s4329_s29 + $0xb08] sm:$0xff] %v885_v33  ;;  %v887_v34 = vld [vmem:[%s4321_s28 + $0x1620] sm:$0xff]  ;;  %v889_v35 = vld [vmem:[%s4321_s28 + $0x1628] sm:$0xff] }
  0xc3   : > { %v891_v36 = vld [vmem:[%s4321_s28 + $0x1640] sm:$0xff]  ;;  %888 = vst [vmem:[%s4329_s29 + $0xb10] sm:$0xff] %v887_v34  ;;  %890 = vst [vmem:[%s4329_s29 + $0xb18] sm:$0xff] %v889_v35  ;;  %v893_v37 = vld [vmem:[%s4321_s28 + $0x1648] sm:$0xff] }
  0xc4   : > { %892 = vst [vmem:[%s4329_s29 + $0xb20] sm:$0xff] %v891_v36  ;;  %v895_v38 = vld [vmem:[%s4321_s28 + $0x1660] sm:$0xff]  ;;  %v897_v39 = vld [vmem:[%s4321_s28 + $0x1668] sm:$0xff]  ;;  %894 = vst [vmem:[%s4329_s29 + $0xb28] sm:$0xff] %v893_v37 }
  0xc5   : > { %896 = vst [vmem:[%s4329_s29 + $0xb30] sm:$0xff] %v895_v38  ;;  %898 = vst [vmem:[%s4329_s29 + $0xb38] sm:$0xff] %v897_v39  ;;  %v899_v40 = vld [vmem:[%s4321_s28 + $0x1680] sm:$0xff]  ;;  %v901_v41 = vld [vmem:[%s4321_s28 + $0x1688] sm:$0xff] }
  0xc6   : > { %v903_v42 = vld [vmem:[%s4321_s28 + $0x16a0] sm:$0xff]  ;;  %900 = vst [vmem:[%s4329_s29 + $0xb40] sm:$0xff] %v899_v40  ;;  %902 = vst [vmem:[%s4329_s29 + $0xb48] sm:$0xff] %v901_v41  ;;  %v905_v43 = vld [vmem:[%s4321_s28 + $0x16a8] sm:$0xff] }
  0xc7   : > { %904 = vst [vmem:[%s4329_s29 + $0xb50] sm:$0xff] %v903_v42  ;;  %v907_v44 = vld [vmem:[%s4321_s28 + $0x16c0] sm:$0xff]  ;;  %v909_v45 = vld [vmem:[%s4321_s28 + $0x16c8] sm:$0xff]  ;;  %906 = vst [vmem:[%s4329_s29 + $0xb58] sm:$0xff] %v905_v43 }
  0xc8   : > { %908 = vst [vmem:[%s4329_s29 + $0xb60] sm:$0xff] %v907_v44  ;;  %910 = vst [vmem:[%s4329_s29 + $0xb68] sm:$0xff] %v909_v45  ;;  %v911_v46 = vld [vmem:[%s4321_s28 + $0x16e0] sm:$0xff]  ;;  %v913_v47 = vld [vmem:[%s4321_s28 + $0x16e8] sm:$0xff] }
  0xc9   : > { %v915_v48 = vld [vmem:[%s4321_s28 + $0x1700] sm:$0xff]  ;;  %912 = vst [vmem:[%s4329_s29 + $0xb70] sm:$0xff] %v911_v46  ;;  %914 = vst [vmem:[%s4329_s29 + $0xb78] sm:$0xff] %v913_v47  ;;  %v917_v49 = vld [vmem:[%s4321_s28 + $0x1708] sm:$0xff] }
  0xca   : > { %916 = vst [vmem:[%s4329_s29 + $0xb80] sm:$0xff] %v915_v48  ;;  %v919_v50 = vld [vmem:[%s4321_s28 + $0x1720] sm:$0xff]  ;;  %v921_v51 = vld [vmem:[%s4321_s28 + $0x1728] sm:$0xff]  ;;  %918 = vst [vmem:[%s4329_s29 + $0xb88] sm:$0xff] %v917_v49 }
  0xcb   : > { %920 = vst [vmem:[%s4329_s29 + $0xb90] sm:$0xff] %v919_v50  ;;  %922 = vst [vmem:[%s4329_s29 + $0xb98] sm:$0xff] %v921_v51  ;;  %v923_v52 = vld [vmem:[%s4321_s28 + $0x1740] sm:$0xff]  ;;  %v925_v53 = vld [vmem:[%s4321_s28 + $0x1748] sm:$0xff] }
  0xcc   : > { %v927_v54 = vld [vmem:[%s4321_s28 + $0x1760] sm:$0xff]  ;;  %924 = vst [vmem:[%s4329_s29 + $0xba0] sm:$0xff] %v923_v52  ;;  %926 = vst [vmem:[%s4329_s29 + $0xba8] sm:$0xff] %v925_v53  ;;  %v929_v55 = vld [vmem:[%s4321_s28 + $0x1768] sm:$0xff] }
  0xcd   : > { %928 = vst [vmem:[%s4329_s29 + $0xbb0] sm:$0xff] %v927_v54  ;;  %v931_v56 = vld [vmem:[%s4321_s28 + $0x1780] sm:$0xff]  ;;  %v933_v57 = vld [vmem:[%s4321_s28 + $0x1788] sm:$0xff]  ;;  %930 = vst [vmem:[%s4329_s29 + $0xbb8] sm:$0xff] %v929_v55 }
  0xce   : > { %932 = vst [vmem:[%s4329_s29 + $0xbc0] sm:$0xff] %v931_v56  ;;  %934 = vst [vmem:[%s4329_s29 + $0xbc8] sm:$0xff] %v933_v57  ;;  %v935_v58 = vld [vmem:[%s4321_s28 + $0x17a0] sm:$0xff]  ;;  %v937_v59 = vld [vmem:[%s4321_s28 + $0x17a8] sm:$0xff] }
  0xcf   : > { %v939_v60 = vld [vmem:[%s4321_s28 + $0x17c0] sm:$0xff]  ;;  %936 = vst [vmem:[%s4329_s29 + $0xbd0] sm:$0xff] %v935_v58  ;;  %938 = vst [vmem:[%s4329_s29 + $0xbd8] sm:$0xff] %v937_v59  ;;  %v941_v61 = vld [vmem:[%s4321_s28 + $0x17c8] sm:$0xff] }
  0xd0   : > { %940 = vst [vmem:[%s4329_s29 + $0xbe0] sm:$0xff] %v939_v60  ;;  %v943_v62 = vld [vmem:[%s4321_s28 + $0x17e0] sm:$0xff]  ;;  %v945_v63 = vld [vmem:[%s4321_s28 + $0x17e8] sm:$0xff]  ;;  %942 = vst [vmem:[%s4329_s29 + $0xbe8] sm:$0xff] %v941_v61 }
  0xd1   : > { %944 = vst [vmem:[%s4329_s29 + $0xbf0] sm:$0xff] %v943_v62  ;;  %946 = vst [vmem:[%s4329_s29 + $0xbf8] sm:$0xff] %v945_v63  ;;  %v947_v0 = vld [vmem:[%s4321_s28 + $0x1800] sm:$0xff]  ;;  %v949_v1 = vld [vmem:[%s4321_s28 + $0x1808] sm:$0xff] }
  0xd2   : > { %v951_v2 = vld [vmem:[%s4321_s28 + $0x1820] sm:$0xff]  ;;  %948 = vst [vmem:[%s4329_s29 + $0xc00] sm:$0xff] %v947_v0  ;;  %950 = vst [vmem:[%s4329_s29 + $0xc08] sm:$0xff] %v949_v1  ;;  %v953_v3 = vld [vmem:[%s4321_s28 + $0x1828] sm:$0xff] }
  0xd3   : > { %952 = vst [vmem:[%s4329_s29 + $0xc10] sm:$0xff] %v951_v2  ;;  %v955_v4 = vld [vmem:[%s4321_s28 + $0x1840] sm:$0xff]  ;;  %v957_v5 = vld [vmem:[%s4321_s28 + $0x1848] sm:$0xff]  ;;  %954 = vst [vmem:[%s4329_s29 + $0xc18] sm:$0xff] %v953_v3 }
  0xd4   : > { %956 = vst [vmem:[%s4329_s29 + $0xc20] sm:$0xff] %v955_v4  ;;  %958 = vst [vmem:[%s4329_s29 + $0xc28] sm:$0xff] %v957_v5  ;;  %v959_v6 = vld [vmem:[%s4321_s28 + $0x1860] sm:$0xff]  ;;  %v961_v7 = vld [vmem:[%s4321_s28 + $0x1868] sm:$0xff] }
  0xd5   : > { %v963_v8 = vld [vmem:[%s4321_s28 + $0x1880] sm:$0xff]  ;;  %960 = vst [vmem:[%s4329_s29 + $0xc30] sm:$0xff] %v959_v6  ;;  %962 = vst [vmem:[%s4329_s29 + $0xc38] sm:$0xff] %v961_v7  ;;  %v965_v9 = vld [vmem:[%s4321_s28 + $0x1888] sm:$0xff] }
  0xd6   : > { %964 = vst [vmem:[%s4329_s29 + $0xc40] sm:$0xff] %v963_v8  ;;  %v967_v10 = vld [vmem:[%s4321_s28 + $0x18a0] sm:$0xff]  ;;  %v969_v11 = vld [vmem:[%s4321_s28 + $0x18a8] sm:$0xff]  ;;  %966 = vst [vmem:[%s4329_s29 + $0xc48] sm:$0xff] %v965_v9 }
  0xd7   : > { %968 = vst [vmem:[%s4329_s29 + $0xc50] sm:$0xff] %v967_v10  ;;  %970 = vst [vmem:[%s4329_s29 + $0xc58] sm:$0xff] %v969_v11  ;;  %v971_v12 = vld [vmem:[%s4321_s28 + $0x18c0] sm:$0xff]  ;;  %v973_v13 = vld [vmem:[%s4321_s28 + $0x18c8] sm:$0xff] }
  0xd8   : > { %v975_v14 = vld [vmem:[%s4321_s28 + $0x18e0] sm:$0xff]  ;;  %972 = vst [vmem:[%s4329_s29 + $0xc60] sm:$0xff] %v971_v12  ;;  %974 = vst [vmem:[%s4329_s29 + $0xc68] sm:$0xff] %v973_v13  ;;  %v977_v15 = vld [vmem:[%s4321_s28 + $0x18e8] sm:$0xff] }
  0xd9   : > { %976 = vst [vmem:[%s4329_s29 + $0xc70] sm:$0xff] %v975_v14  ;;  %v979_v16 = vld [vmem:[%s4321_s28 + $0x1900] sm:$0xff]  ;;  %v981_v17 = vld [vmem:[%s4321_s28 + $0x1908] sm:$0xff]  ;;  %978 = vst [vmem:[%s4329_s29 + $0xc78] sm:$0xff] %v977_v15 }
  0xda   : > { %980 = vst [vmem:[%s4329_s29 + $0xc80] sm:$0xff] %v979_v16  ;;  %982 = vst [vmem:[%s4329_s29 + $0xc88] sm:$0xff] %v981_v17  ;;  %v983_v18 = vld [vmem:[%s4321_s28 + $0x1920] sm:$0xff]  ;;  %v985_v19 = vld [vmem:[%s4321_s28 + $0x1928] sm:$0xff] }
  0xdb   : > { %v987_v20 = vld [vmem:[%s4321_s28 + $0x1940] sm:$0xff]  ;;  %984 = vst [vmem:[%s4329_s29 + $0xc90] sm:$0xff] %v983_v18  ;;  %986 = vst [vmem:[%s4329_s29 + $0xc98] sm:$0xff] %v985_v19  ;;  %v989_v21 = vld [vmem:[%s4321_s28 + $0x1948] sm:$0xff] }
  0xdc   : > { %988 = vst [vmem:[%s4329_s29 + $0xca0] sm:$0xff] %v987_v20  ;;  %v991_v22 = vld [vmem:[%s4321_s28 + $0x1960] sm:$0xff]  ;;  %v993_v23 = vld [vmem:[%s4321_s28 + $0x1968] sm:$0xff]  ;;  %990 = vst [vmem:[%s4329_s29 + $0xca8] sm:$0xff] %v989_v21 }
  0xdd   : > { %992 = vst [vmem:[%s4329_s29 + $0xcb0] sm:$0xff] %v991_v22  ;;  %994 = vst [vmem:[%s4329_s29 + $0xcb8] sm:$0xff] %v993_v23  ;;  %v995_v24 = vld [vmem:[%s4321_s28 + $0x1980] sm:$0xff]  ;;  %v997_v25 = vld [vmem:[%s4321_s28 + $0x1988] sm:$0xff] }
  0xde   : > { %v999_v26 = vld [vmem:[%s4321_s28 + $0x19a0] sm:$0xff]  ;;  %996 = vst [vmem:[%s4329_s29 + $0xcc0] sm:$0xff] %v995_v24  ;;  %998 = vst [vmem:[%s4329_s29 + $0xcc8] sm:$0xff] %v997_v25  ;;  %v1001_v27 = vld [vmem:[%s4321_s28 + $0x19a8] sm:$0xff] }
  0xdf   : > { %1000 = vst [vmem:[%s4329_s29 + $0xcd0] sm:$0xff] %v999_v26  ;;  %v1003_v28 = vld [vmem:[%s4321_s28 + $0x19c0] sm:$0xff]  ;;  %v1005_v29 = vld [vmem:[%s4321_s28 + $0x19c8] sm:$0xff]  ;;  %1002 = vst [vmem:[%s4329_s29 + $0xcd8] sm:$0xff] %v1001_v27 }
  0xe0   : > { %1004 = vst [vmem:[%s4329_s29 + $0xce0] sm:$0xff] %v1003_v28  ;;  %1006 = vst [vmem:[%s4329_s29 + $0xce8] sm:$0xff] %v1005_v29  ;;  %v1007_v30 = vld [vmem:[%s4321_s28 + $0x19e0] sm:$0xff]  ;;  %v1009_v31 = vld [vmem:[%s4321_s28 + $0x19e8] sm:$0xff] }
  0xe1   : > { %v1011_v32 = vld [vmem:[%s4321_s28 + $0x1a00] sm:$0xff]  ;;  %1008 = vst [vmem:[%s4329_s29 + $0xcf0] sm:$0xff] %v1007_v30  ;;  %1010 = vst [vmem:[%s4329_s29 + $0xcf8] sm:$0xff] %v1009_v31  ;;  %v1013_v33 = vld [vmem:[%s4321_s28 + $0x1a08] sm:$0xff] }
  0xe2   : > { %1012 = vst [vmem:[%s4329_s29 + $0xd00] sm:$0xff] %v1011_v32  ;;  %v1015_v34 = vld [vmem:[%s4321_s28 + $0x1a20] sm:$0xff]  ;;  %v1017_v35 = vld [vmem:[%s4321_s28 + $0x1a28] sm:$0xff]  ;;  %1014 = vst [vmem:[%s4329_s29 + $0xd08] sm:$0xff] %v1013_v33 }
  0xe3   : > { %1016 = vst [vmem:[%s4329_s29 + $0xd10] sm:$0xff] %v1015_v34  ;;  %1018 = vst [vmem:[%s4329_s29 + $0xd18] sm:$0xff] %v1017_v35  ;;  %v1019_v36 = vld [vmem:[%s4321_s28 + $0x1a40] sm:$0xff]  ;;  %v1021_v37 = vld [vmem:[%s4321_s28 + $0x1a48] sm:$0xff] }
  0xe4   : > { %v1023_v38 = vld [vmem:[%s4321_s28 + $0x1a60] sm:$0xff]  ;;  %1020 = vst [vmem:[%s4329_s29 + $0xd20] sm:$0xff] %v1019_v36  ;;  %1022 = vst [vmem:[%s4329_s29 + $0xd28] sm:$0xff] %v1021_v37  ;;  %v1025_v39 = vld [vmem:[%s4321_s28 + $0x1a68] sm:$0xff] }
  0xe5   : > { %1024 = vst [vmem:[%s4329_s29 + $0xd30] sm:$0xff] %v1023_v38  ;;  %v1027_v40 = vld [vmem:[%s4321_s28 + $0x1a80] sm:$0xff]  ;;  %v1029_v41 = vld [vmem:[%s4321_s28 + $0x1a88] sm:$0xff]  ;;  %1026 = vst [vmem:[%s4329_s29 + $0xd38] sm:$0xff] %v1025_v39 }
  0xe6   : > { %1028 = vst [vmem:[%s4329_s29 + $0xd40] sm:$0xff] %v1027_v40  ;;  %1030 = vst [vmem:[%s4329_s29 + $0xd48] sm:$0xff] %v1029_v41  ;;  %v1031_v42 = vld [vmem:[%s4321_s28 + $0x1aa0] sm:$0xff]  ;;  %v1033_v43 = vld [vmem:[%s4321_s28 + $0x1aa8] sm:$0xff] }
  0xe7   : > { %v1035_v44 = vld [vmem:[%s4321_s28 + $0x1ac0] sm:$0xff]  ;;  %1032 = vst [vmem:[%s4329_s29 + $0xd50] sm:$0xff] %v1031_v42  ;;  %1034 = vst [vmem:[%s4329_s29 + $0xd58] sm:$0xff] %v1033_v43  ;;  %v1037_v45 = vld [vmem:[%s4321_s28 + $0x1ac8] sm:$0xff] }
  0xe8   : > { %1036 = vst [vmem:[%s4329_s29 + $0xd60] sm:$0xff] %v1035_v44  ;;  %v1039_v46 = vld [vmem:[%s4321_s28 + $0x1ae0] sm:$0xff]  ;;  %v1041_v47 = vld [vmem:[%s4321_s28 + $0x1ae8] sm:$0xff]  ;;  %1038 = vst [vmem:[%s4329_s29 + $0xd68] sm:$0xff] %v1037_v45 }
  0xe9   : > { %1040 = vst [vmem:[%s4329_s29 + $0xd70] sm:$0xff] %v1039_v46  ;;  %1042 = vst [vmem:[%s4329_s29 + $0xd78] sm:$0xff] %v1041_v47  ;;  %v1043_v48 = vld [vmem:[%s4321_s28 + $0x1b00] sm:$0xff]  ;;  %v1045_v49 = vld [vmem:[%s4321_s28 + $0x1b08] sm:$0xff] }
  0xea   : > { %v1047_v50 = vld [vmem:[%s4321_s28 + $0x1b20] sm:$0xff]  ;;  %1044 = vst [vmem:[%s4329_s29 + $0xd80] sm:$0xff] %v1043_v48  ;;  %1046 = vst [vmem:[%s4329_s29 + $0xd88] sm:$0xff] %v1045_v49  ;;  %v1049_v51 = vld [vmem:[%s4321_s28 + $0x1b28] sm:$0xff] }
  0xeb   : > { %1048 = vst [vmem:[%s4329_s29 + $0xd90] sm:$0xff] %v1047_v50  ;;  %v1051_v52 = vld [vmem:[%s4321_s28 + $0x1b40] sm:$0xff]  ;;  %v1053_v53 = vld [vmem:[%s4321_s28 + $0x1b48] sm:$0xff]  ;;  %1050 = vst [vmem:[%s4329_s29 + $0xd98] sm:$0xff] %v1049_v51 }
  0xec   : > { %1052 = vst [vmem:[%s4329_s29 + $0xda0] sm:$0xff] %v1051_v52  ;;  %1054 = vst [vmem:[%s4329_s29 + $0xda8] sm:$0xff] %v1053_v53  ;;  %v1055_v54 = vld [vmem:[%s4321_s28 + $0x1b60] sm:$0xff]  ;;  %v1057_v55 = vld [vmem:[%s4321_s28 + $0x1b68] sm:$0xff] }
  0xed   : > { %v1059_v56 = vld [vmem:[%s4321_s28 + $0x1b80] sm:$0xff]  ;;  %1056 = vst [vmem:[%s4329_s29 + $0xdb0] sm:$0xff] %v1055_v54  ;;  %1058 = vst [vmem:[%s4329_s29 + $0xdb8] sm:$0xff] %v1057_v55  ;;  %v1061_v57 = vld [vmem:[%s4321_s28 + $0x1b88] sm:$0xff] }
  0xee   : > { %1060 = vst [vmem:[%s4329_s29 + $0xdc0] sm:$0xff] %v1059_v56  ;;  %v1063_v58 = vld [vmem:[%s4321_s28 + $0x1ba0] sm:$0xff]  ;;  %v1065_v59 = vld [vmem:[%s4321_s28 + $0x1ba8] sm:$0xff]  ;;  %1062 = vst [vmem:[%s4329_s29 + $0xdc8] sm:$0xff] %v1061_v57 }
  0xef   : > { %1064 = vst [vmem:[%s4329_s29 + $0xdd0] sm:$0xff] %v1063_v58  ;;  %1066 = vst [vmem:[%s4329_s29 + $0xdd8] sm:$0xff] %v1065_v59  ;;  %v1067_v60 = vld [vmem:[%s4321_s28 + $0x1bc0] sm:$0xff]  ;;  %v1069_v61 = vld [vmem:[%s4321_s28 + $0x1bc8] sm:$0xff] }
  0xf0   : > { %v1071_v62 = vld [vmem:[%s4321_s28 + $0x1be0] sm:$0xff]  ;;  %1068 = vst [vmem:[%s4329_s29 + $0xde0] sm:$0xff] %v1067_v60  ;;  %1070 = vst [vmem:[%s4329_s29 + $0xde8] sm:$0xff] %v1069_v61  ;;  %v1073_v63 = vld [vmem:[%s4321_s28 + $0x1be8] sm:$0xff] }
  0xf1   : > { %1072 = vst [vmem:[%s4329_s29 + $0xdf0] sm:$0xff] %v1071_v62  ;;  %1074 = vst [vmem:[%s4329_s29 + $0xdf8] sm:$0xff] %v1073_v63 }
  0xf2 PF: > { %p3986_p5 = scmp.ge.s32.totalorder %s4260_s17, 1  ;;  %p1095_p6 = scmp.lt.s32.totalorder %s4260_s17, 3 }
  0xf4   : > { %p1096_p7 = pnand %p3986_p5, %p1095_p6 }
  0xf5   : > { %s1102_s30 = sand.u32 (!%p1096_p7), 1, %s4252_s15   ;;  %v5227_v0 = vld [vmem:[%s5947_s0] sm:$0xff] (!%p1096_p7)  ;;  %v5232_v1 = vld [vmem:[%s5947_s0 + $0x70] sm:$0xff] (!%p1096_p7) }
  0xf6   : > { %1099 = sbr.rel (%p1096_p7) target bundleno = 1372 (0x55c), region = 55  ;;  %v3992_v2 = vcombine.high (!%p1096_p7), %v5227_v0, %v5227_v0  ;;  %v4020_v3 = vcombine.high (!%p1096_p7), %v5232_v1, %v5232_v1 }
  0xf7   : > { %s4157_s9 = smul.u32 (!%p1096_p7), 3584, %s1102_s30 }
  0xf8   : > { %2752 = vmatprep.mubr.bf16.mxu1 (!%p1096_p7), %v3992_v2  ;;  %3326 = vmatprep.mubr.bf16.mxu0 (!%p1096_p7), %v4020_v3 }
  0xf9   : > { %s5238_s10 = scalar_lea.vmem (!%p1096_p7), [#allocation2], %s4157_s9 }
  0xfa   : > { %v1153_v4 = vld [vmem:[%s5238_s10 + $0x8] sm:$0xff] (!%p1096_p7)  ;;  %v1152_v6 = vld [vmem:[%s5238_s10] sm:$0xff] (!%p1096_p7)  ;;  %v1155_v14 = vld [vmem:[%s5238_s10 + $0x18] sm:$0xff] (!%p1096_p7) }
  0xfb   : > { %v1377_v5 = vld [vmem:[%s5238_s10 + $0x708] sm:$0xff] (!%p1096_p7)  ;;  %v1601_v7 = vunpack.c.l.s8.bf16 (!%p1096_p7), %v1153_v4  ;;  %v1603_v8 = vunpack.c.h.s8.bf16 (!%p1096_p7), %v1153_v4  ;;  %v1376_v11 = vld [vmem:[%s5238_s10 + $0x700] sm:$0xff] (!%p1096_p7)  ;;  %v1600_v12 = vunpack.c.l.s8.bf16 (!%p1096_p7), %v1152_v6  ;;  %v1379_v15 = vld [vmem:[%s5238_s10 + $0x718] sm:$0xff] (!%p1096_p7)  ;;  %v1602_v16 = vunpack.c.h.s8.bf16 (!%p1096_p7), %v1152_v6 }
  0xfc   : > { %v2049_v9 = vunpack.c.l.s8.bf16 (!%p1096_p7), %v1377_v5  ;;  %v2051_v10 = vunpack.c.h.s8.bf16 (!%p1096_p7), %v1377_v5  ;;  %v2048_v13 = vunpack.c.l.s8.bf16 (!%p1096_p7), %v1376_v11  ;;  %v2050_v17 = vunpack.c.h.s8.bf16 (!%p1096_p7), %v1376_v11  ;;  %v1154_v20 = vld [vmem:[%s5238_s10 + $0x10] sm:$0xff] (!%p1096_p7)  ;;  %v1157_v26 = vld [vmem:[%s5238_s10 + $0x28] sm:$0xff] (!%p1096_p7)  ;;  %v1156_v32 = vld [vmem:[%s5238_s10 + $0x20] sm:$0xff] (!%p1096_p7) }
  0xfd   : > { %2720 = vmatprep.subr.bf16.mxu1 %v1601_v7  ;;  %v1605_v18 = vunpack.c.l.s8.bf16 %v1155_v14  ;;  %v2053_v19 = vunpack.c.l.s8.bf16 %v1379_v15  ;;  %v1378_v21 = vld [vmem:[%s5238_s10 + $0x710] sm:$0xff]  ;;  %v1604_v22 = vunpack.c.l.s8.bf16 %v1154_v20  ;;  %v1607_v24 = vunpack.c.h.s8.bf16 %v1155_v14  ;;  %v1381_v27 = vld [vmem:[%s5238_s10 + $0x728] sm:$0xff]  ;;  %v1380_v33 = vld [vmem:[%s5238_s10 + $0x720] sm:$0xff] }
  0xfe   : > { %3294 = vmatprep.subr.bf16.mxu0 %v2049_v9  ;;  %2721 = vmatpush1.bf16.msra.mxu1 %v1600_v12  ;;  %v2052_v23 = vunpack.c.l.s8.bf16 %v1378_v21  ;;  %v2055_v25 = vunpack.c.h.s8.bf16 %v1379_v15  ;;  %v1606_v28 = vunpack.c.h.s8.bf16 %v1154_v20  ;;  %v2054_v29 = vunpack.c.h.s8.bf16 %v1378_v21  ;;  %v1159_v38 = vld [vmem:[%s5238_s10 + $0x38] sm:$0xff]  ;;  %v1158_v44 = vld [vmem:[%s5238_s10 + $0x30] sm:$0xff]  ;;  %v1161_v50 = vld [vmem:[%s5238_s10 + $0x48] sm:$0xff] }
  0xff   : > { %3295 = vmatpush1.bf16.msra.mxu0 %v2048_v13  ;;  %2722 = vmatprep.subr.bf16.mxu1 %v1603_v8  ;;  %v1609_v30 = vunpack.c.l.s8.bf16 %v1157_v26  ;;  %v2057_v31 = vunpack.c.l.s8.bf16 %v1381_v27  ;;  %v1608_v34 = vunpack.c.l.s8.bf16 %v1156_v32  ;;  %v2056_v35 = vunpack.c.l.s8.bf16 %v1380_v33  ;;  %v1383_v39 = vld [vmem:[%s5238_s10 + $0x738] sm:$0xff]  ;;  %v1382_v45 = vld [vmem:[%s5238_s10 + $0x730] sm:$0xff]  ;;  %v1385_v51 = vld [vmem:[%s5238_s10 + $0x748] sm:$0xff] }
 0x100   : > { %3296 = vmatprep.subr.bf16.mxu0 %v2051_v10  ;;  %v1611_v36 = vunpack.c.h.s8.bf16 %v1157_v26  ;;  %v2059_v37 = vunpack.c.h.s8.bf16 %v1381_v27  ;;  %v1610_v40 = vunpack.c.h.s8.bf16 %v1156_v32  ;;  %v2058_v41 = vunpack.c.h.s8.bf16 %v1380_v33  ;;  %v1160_v56 = vld [vmem:[%s5238_s10 + $0x40] sm:$0xff]  ;;  %v1163_v62 = vld [vmem:[%s5238_s10 + $0x58] sm:$0xff]  ;;  %v1162_v6 = vld [vmem:[%s5238_s10 + $0x50] sm:$0xff] }
 0x101   : > { %v1613_v42 = vunpack.c.l.s8.bf16 %v1159_v38  ;;  %v2061_v43 = vunpack.c.l.s8.bf16 %v1383_v39  ;;  %v1612_v46 = vunpack.c.l.s8.bf16 %v1158_v44  ;;  %v2060_v47 = vunpack.c.l.s8.bf16 %v1382_v45  ;;  %v1384_v57 = vld [vmem:[%s5238_s10 + $0x740] sm:$0xff]  ;;  %v1387_v63 = vld [vmem:[%s5238_s10 + $0x758] sm:$0xff]  ;;  %v1386_v7 = vld [vmem:[%s5238_s10 + $0x750] sm:$0xff] }
 0x102   : > { %2723 = vmatpush1.bf16.msra.mxu1 %v1602_v16  ;;  %v1615_v48 = vunpack.c.h.s8.bf16 %v1159_v38  ;;  %v2063_v49 = vunpack.c.h.s8.bf16 %v1383_v39  ;;  %v1614_v52 = vunpack.c.h.s8.bf16 %v1158_v44  ;;  %v2062_v53 = vunpack.c.h.s8.bf16 %v1382_v45  ;;  %v1165_v12 = vld [vmem:[%s5238_s10 + $0x68] sm:$0xff] }
 0x103   : > { %3297 = vmatpush1.bf16.msra.mxu0 %v2050_v17  ;;  %2724 = vmatprep.subr.bf16.mxu1 %v1605_v18  ;;  %v1617_v54 = vunpack.c.l.s8.bf16 %v1161_v50  ;;  %v2065_v55 = vunpack.c.l.s8.bf16 %v1385_v51  ;;  %v1616_v58 = vunpack.c.l.s8.bf16 %v1160_v56  ;;  %v2064_v59 = vunpack.c.l.s8.bf16 %v1384_v57  ;;  %v1389_v13 = vld [vmem:[%s5238_s10 + $0x768] sm:$0xff]  ;;  %v1164_v18 = vld [vmem:[%s5238_s10 + $0x60] sm:$0xff] }
 0x104   : > { %3298 = vmatprep.subr.bf16.mxu0 %v2053_v19  ;;  %v1619_v60 = vunpack.c.h.s8.bf16 %v1161_v50  ;;  %v2067_v61 = vunpack.c.h.s8.bf16 %v1385_v51  ;;  %v1618_v2 = vunpack.c.h.s8.bf16 %v1160_v56  ;;  %v2066_v3 = vunpack.c.h.s8.bf16 %v1384_v57  ;;  %v1388_v19 = vld [vmem:[%s5238_s10 + $0x760] sm:$0xff]  ;;  %v1395_v51 = vld [vmem:[%s5238_s10 + $0x798] sm:$0xff] }
 0x105   : > { %v1621_v4 = vunpack.c.l.s8.bf16 %v1163_v62  ;;  %v2069_v5 = vunpack.c.l.s8.bf16 %v1387_v63  ;;  %v1620_v8 = vunpack.c.l.s8.bf16 %v1162_v6  ;;  %v2068_v9 = vunpack.c.l.s8.bf16 %v1386_v7 }
 0x106   : > { %2725 = vmatpush1.bf16.msra.mxu1 %v1604_v22  ;;  %v1623_v10 = vunpack.c.h.s8.bf16 %v1163_v62  ;;  %v2071_v11 = vunpack.c.h.s8.bf16 %v1387_v63  ;;  %v1622_v14 = vunpack.c.h.s8.bf16 %v1162_v6  ;;  %v2070_v15 = vunpack.c.h.s8.bf16 %v1386_v7 }
 0x107   : > { %3299 = vmatpush1.bf16.msra.mxu0 %v2052_v23  ;;  %2726 = vmatprep.subr.bf16.mxu1 %v1607_v24  ;;  %v1625_v16 = vunpack.c.l.s8.bf16 %v1165_v12  ;;  %v2073_v17 = vunpack.c.l.s8.bf16 %v1389_v13  ;;  %v1624_v20 = vunpack.c.l.s8.bf16 %v1164_v18  ;;  %v2072_v21 = vunpack.c.l.s8.bf16 %v1388_v19  ;;  %v1167_v24 = vld [vmem:[%s5238_s10 + $0x78] sm:$0xff] }
 0x108   : > { %3300 = vmatprep.subr.bf16.mxu0 %v2055_v25  ;;  %v1627_v22 = vunpack.c.h.s8.bf16 %v1165_v12  ;;  %v2075_v23 = vunpack.c.h.s8.bf16 %v1389_v13  ;;  %v1391_v25 = vld [vmem:[%s5238_s10 + $0x778] sm:$0xff]  ;;  %v1626_v26 = vunpack.c.h.s8.bf16 %v1164_v18  ;;  %v2074_v27 = vunpack.c.h.s8.bf16 %v1388_v19 }
 0x109   : > { %v3991_v44 = vcombine.low %v5227_v0, %v5227_v0  ;;  %v4019_v45 = vcombine.low %v5232_v1, %v5232_v1  ;;  %v1171_v1 = vld [vmem:[%s5238_s10 + $0x98] sm:$0xff]  ;;  %v2085_v57 = vunpack.c.l.s8.bf16 %v1395_v51  ;;  %v2087_v63 = vunpack.c.h.s8.bf16 %v1395_v51  ;;  %v1405_v51 = vld [vmem:[%s5238_s10 + $0x7e8] sm:$0xff] }
 0x10a   : > { %2727 = vmatpush1.bf16.msra.mxu1 %v1606_v28  ;;  %v1629_v28 = vunpack.c.l.s8.bf16 %v1167_v24  ;;  %v1637_v56 = vunpack.c.l.s8.bf16 %v1171_v1  ;;  %v1639_v62 = vunpack.c.h.s8.bf16 %v1171_v1  ;;  %v1181_v1 = vld [vmem:[%s5238_s10 + $0xe8] sm:$0xff] }
 0x10b   : > { %3301 = vmatpush1.bf16.msra.mxu0 %v2054_v29  ;;  %2728 = vmatprep.subr.bf16.mxu1 %v1609_v30  ;;  %v2077_v29 = vunpack.c.l.s8.bf16 %v1391_v25  ;;  %v1166_v30 = vld [vmem:[%s5238_s10 + $0x70] sm:$0xff] }
 0x10c   : > { %3302 = vmatprep.subr.bf16.mxu0 %v2057_v31  ;;  %v1390_v31 = vld [vmem:[%s5238_s10 + $0x770] sm:$0xff]  ;;  %v1628_v32 = vunpack.c.l.s8.bf16 %v1166_v30  ;;  %v1630_v38 = vunpack.c.h.s8.bf16 %v1166_v30 }
 0x10d   : > { %v2076_v33 = vunpack.c.l.s8.bf16 %v1390_v31  ;;  %v2078_v39 = vunpack.c.h.s8.bf16 %v1390_v31 }
 0x10e   : > { %2729 = vmatpush1.bf16.msra.mxu1 %v1608_v34  ;;  %v1631_v34 = vunpack.c.h.s8.bf16 %v1167_v24 }
 0x10f   : > { %3303 = vmatpush1.bf16.msra.mxu0 %v2056_v35  ;;  %2730 = vmatprep.subr.bf16.mxu1 %v1611_v36  ;;  %v2079_v35 = vunpack.c.h.s8.bf16 %v1391_v25  ;;  %v1169_v36 = vld [vmem:[%s5238_s10 + $0x88] sm:$0xff] }
 0x110   : > { %3304 = vmatprep.subr.bf16.mxu0 %v2059_v37  ;;  %v1393_v37 = vld [vmem:[%s5238_s10 + $0x788] sm:$0xff]  ;;  %v1635_v0 = vunpack.c.h.s8.bf16 %v1169_v36 }
 0x111   : > { %v2083_v50 = vunpack.c.h.s8.bf16 %v1393_v37 }
 0x112   : > { %2731 = vmatpush1.bf16.msra.mxu1 %v1610_v40  ;;  %v1633_v40 = vunpack.c.l.s8.bf16 %v1169_v36 }
 0x113   : > { %3305 = vmatpush1.bf16.msra.mxu0 %v2058_v41  ;;  %2732 = vmatprep.subr.bf16.mxu1 %v1613_v42  ;;  %v2081_v41 = vunpack.c.l.s8.bf16 %v1393_v37  ;;  %v1168_v42 = vld [vmem:[%s5238_s10 + $0x80] sm:$0xff] }
 0x114   : > { %3306 = vmatprep.subr.bf16.mxu0 %v2061_v43  ;;  %v1392_v43 = vld [vmem:[%s5238_s10 + $0x780] sm:$0xff] }
 0x116   : > { %2733 = vmatpush1.bf16.msra.mxu1 %v1612_v46  ;;  %v5283_v46 = vld [vmem:[%s5947_s0 + $0x8] sm:$0xff] }
 0x117   : > { %3307 = vmatpush1.bf16.msra.mxu0 %v2060_v47  ;;  %2734 = vmatprep.subr.bf16.mxu1 %v1615_v48  ;;  %v5288_v47 = vld [vmem:[%s5947_s0 + $0x78] sm:$0xff]  ;;  %v1632_v48 = vunpack.c.l.s8.bf16 %v1168_v42 }
 0x118   : > { %3308 = vmatprep.subr.bf16.mxu0 %v2063_v49  ;;  %v2080_v49 = vunpack.c.l.s8.bf16 %v1392_v43 }
 0x11a   : > { %2735 = vmatpush1.bf16.msra.mxu1 %v1614_v52  ;;  %v3994_v52 = vcombine.high %v5283_v46, %v5283_v46 }
 0x11b   : > { %3309 = vmatpush1.bf16.msra.mxu0 %v2062_v53  ;;  %2736 = vmatprep.subr.bf16.mxu1 %v1617_v54  ;;  %v4022_v53 = vcombine.high %v5288_v47, %v5288_v47  ;;  %v1634_v54 = vunpack.c.h.s8.bf16 %v1168_v42 }
 0x11c   : > { %3310 = vmatprep.subr.bf16.mxu0 %v2065_v55  ;;  %v2082_v55 = vunpack.c.h.s8.bf16 %v1392_v43 }
 0x11e   : > { %2737 = vmatpush1.bf16.msra.mxu1 %v1616_v58  ;;  %v1170_v58 = vld [vmem:[%s5238_s10 + $0x90] sm:$0xff] }
 0x11f   : > { %3311 = vmatpush1.bf16.msra.mxu0 %v2064_v59  ;;  %2738 = vmatprep.subr.bf16.mxu1 %v1619_v60  ;;  %v1394_v59 = vld [vmem:[%s5238_s10 + $0x790] sm:$0xff]  ;;  %v1636_v60 = vunpack.c.l.s8.bf16 %v1170_v58 }
 0x120   : > { %3312 = vmatprep.subr.bf16.mxu0 %v2067_v61  ;;  %v2084_v61 = vunpack.c.l.s8.bf16 %v1394_v59 }
 0x122   : > { %2739 = vmatpush1.bf16.msra.mxu1 %v1618_v2  ;;  %v1173_v2 = vld [vmem:[%s5238_s10 + $0xa8] sm:$0xff] }
 0x123   : > { %3313 = vmatpush1.bf16.msra.mxu0 %v2066_v3  ;;  %2740 = vmatprep.subr.bf16.mxu1 %v1621_v4  ;;  %v1397_v3 = vld [vmem:[%s5238_s10 + $0x7a8] sm:$0xff]  ;;  %v1638_v4 = vunpack.c.h.s8.bf16 %v1170_v58  ;;  %v1641_v6 = vunpack.c.l.s8.bf16 %v1173_v2  ;;  %v1643_v12 = vunpack.c.h.s8.bf16 %v1173_v2 }
 0x124   : > { %3314 = vmatprep.subr.bf16.mxu0 %v2069_v5  ;;  %v2086_v5 = vunpack.c.h.s8.bf16 %v1394_v59  ;;  %v2089_v7 = vunpack.c.l.s8.bf16 %v1397_v3  ;;  %v2091_v13 = vunpack.c.h.s8.bf16 %v1397_v3 }
 0x126   : > { %2741 = vmatpush1.bf16.msra.mxu1 %v1620_v8  ;;  %v1172_v8 = vld [vmem:[%s5238_s10 + $0xa0] sm:$0xff] }
 0x127   : > { %3315 = vmatpush1.bf16.msra.mxu0 %v2068_v9  ;;  %2742 = vmatprep.subr.bf16.mxu1 %v1623_v10  ;;  %v1396_v9 = vld [vmem:[%s5238_s10 + $0x7a0] sm:$0xff]  ;;  %v1640_v10 = vunpack.c.l.s8.bf16 %v1172_v8 }
 0x128   : > { %3316 = vmatprep.subr.bf16.mxu0 %v2071_v11  ;;  %v2088_v11 = vunpack.c.l.s8.bf16 %v1396_v9 }
 0x12a   : > { %2743 = vmatpush1.bf16.msra.mxu1 %v1622_v14  ;;  %v1175_v14 = vld [vmem:[%s5238_s10 + $0xb8] sm:$0xff] }
 0x12b   : > { %3317 = vmatpush1.bf16.msra.mxu0 %v2070_v15  ;;  %2744 = vmatprep.subr.bf16.mxu1 %v1625_v16  ;;  %v1399_v15 = vld [vmem:[%s5238_s10 + $0x7b8] sm:$0xff]  ;;  %v1642_v16 = vunpack.c.h.s8.bf16 %v1172_v8  ;;  %v1645_v18 = vunpack.c.l.s8.bf16 %v1175_v14  ;;  %v1647_v24 = vunpack.c.h.s8.bf16 %v1175_v14 }
 0x12c   : > { %3318 = vmatprep.subr.bf16.mxu0 %v2073_v17  ;;  %v2090_v17 = vunpack.c.h.s8.bf16 %v1396_v9  ;;  %v2093_v19 = vunpack.c.l.s8.bf16 %v1399_v15  ;;  %v2095_v25 = vunpack.c.h.s8.bf16 %v1399_v15 }
 0x12e   : > { %2745 = vmatpush1.bf16.msra.mxu1 %v1624_v20  ;;  %v1174_v20 = vld [vmem:[%s5238_s10 + $0xb0] sm:$0xff] }
 0x12f   : > { %3319 = vmatpush1.bf16.msra.mxu0 %v2072_v21  ;;  %2746 = vmatprep.subr.bf16.mxu1 %v1627_v22  ;;  %v1398_v21 = vld [vmem:[%s5238_s10 + $0x7b0] sm:$0xff]  ;;  %v1644_v22 = vunpack.c.l.s8.bf16 %v1174_v20 }
 0x130   : > { %3320 = vmatprep.subr.bf16.mxu0 %v2075_v23  ;;  %v2092_v23 = vunpack.c.l.s8.bf16 %v1398_v21 }
 0x132   : > { %2747 = vmatpush1.bf16.msra.mxu1 %v1626_v26  ;;  %v1177_v26 = vld [vmem:[%s5238_s10 + $0xc8] sm:$0xff] }
 0x133   : > { %3321 = vmatpush1.bf16.msra.mxu0 %v2074_v27  ;;  %2748 = vmatprep.subr.bf16.mxu1 %v1629_v28  ;;  %v1401_v27 = vld [vmem:[%s5238_s10 + $0x7c8] sm:$0xff]  ;;  %v1646_v28 = vunpack.c.h.s8.bf16 %v1174_v20  ;;  %v1649_v30 = vunpack.c.l.s8.bf16 %v1177_v26  ;;  %v1651_v36 = vunpack.c.h.s8.bf16 %v1177_v26  ;;  %v3993_v20 = vcombine.low %v5283_v46, %v5283_v46 }
 0x134   : > { %3322 = vmatprep.subr.bf16.mxu0 %v2077_v29  ;;  %v2094_v29 = vunpack.c.h.s8.bf16 %v1398_v21  ;;  %v2097_v31 = vunpack.c.l.s8.bf16 %v1401_v27  ;;  %v2099_v37 = vunpack.c.h.s8.bf16 %v1401_v27  ;;  %v4021_v21 = vcombine.low %v5288_v47, %v5288_v47  ;;  %v1187_v47 = vld [vmem:[%s5238_s10 + $0x118] sm:$0xff] }
 0x135   : > { %v1411_v27 = vld [vmem:[%s5238_s10 + $0x818] sm:$0xff] }
 0x136   : > { %2749 = vmatpush1.bf16.msra.mxu1 %v1628_v32  ;;  %v1176_v32 = vld [vmem:[%s5238_s10 + $0xc0] sm:$0xff] }
 0x137   : > { %3323 = vmatpush1.bf16.msra.mxu0 %v2076_v33  ;;  %2750 = vmatprep.subr.bf16.mxu1 %v1631_v34  ;;  %v1400_v33 = vld [vmem:[%s5238_s10 + $0x7c0] sm:$0xff]  ;;  %v1648_v34 = vunpack.c.l.s8.bf16 %v1176_v32 }
 0x138   : > { %3324 = vmatprep.subr.bf16.mxu0 %v2079_v35  ;;  %v2096_v35 = vunpack.c.l.s8.bf16 %v1400_v33 }
 0x13a   : > { %2751 = vmatpush1.bf16.msra.mxu1 %v1630_v38  ;;  %v1179_v38 = vld [vmem:[%s5238_s10 + $0xd8] sm:$0xff] }
 0x13b   : > { %3325 = vmatpush1.bf16.msra.mxu0 %v2078_v39  ;;  %2761 = vmatprep.subr.bf16.mxu1 %v1633_v40  ;;  %v1403_v39 = vld [vmem:[%s5238_s10 + $0x7d8] sm:$0xff]  ;;  %v1650_v40 = vunpack.c.h.s8.bf16 %v1176_v32  ;;  %v1653_v42 = vunpack.c.l.s8.bf16 %v1179_v38  ;;  %v1669_v32 = vunpack.c.l.s8.bf16 %v1187_v47 }
 0x13c   : > { %3335 = vmatprep.subr.bf16.mxu0 %v2081_v41  ;;  %v2098_v41 = vunpack.c.h.s8.bf16 %v1400_v33  ;;  %v2101_v43 = vunpack.c.l.s8.bf16 %v1403_v39  ;;  %v2117_v33 = vunpack.c.l.s8.bf16 %v1411_v27 }
 0x13d   : > { %2753 = vmatmul.mubr.bf16.vlgmr.msra.gmra.mrb[0].mxu1 %v3991_v44  ;;  %v1178_v44 = vld [vmem:[%s5238_s10 + $0xd0] sm:$0xff] }
 0x13e   : > { %3327 = vmatmul.mubr.bf16.vlgmr.msra.gmra.mrb[0].mxu0 %v4019_v45  ;;  %2762 = vmatpush1.bf16.msra.mxu1 %v1632_v48  ;;  %v1402_v45 = vld [vmem:[%s5238_s10 + $0x7d0] sm:$0xff]  ;;  %v1652_v48 = vunpack.c.l.s8.bf16 %v1178_v44 }
 0x13f   : > { %3336 = vmatpush1.bf16.msra.mxu0 %v2080_v49  ;;  %2763 = vmatprep.subr.bf16.mxu1 %v1635_v0  ;;  %v2100_v49 = vunpack.c.l.s8.bf16 %v1402_v45  ;;  %v1655_v0 = vunpack.c.h.s8.bf16 %v1179_v38  ;;  %v1671_v38 = vunpack.c.h.s8.bf16 %v1187_v47  ;;  %v1197_v47 = vld [vmem:[%s5238_s10 + $0x168] sm:$0xff] }
 0x140   : > { %3337 = vmatprep.subr.bf16.mxu0 %v2083_v50  ;;  %2793 = vmatprep.mubr.bf16.mxu1 %v3994_v52  ;;  %v2103_v50 = vunpack.c.h.s8.bf16 %v1403_v39  ;;  %v1654_v52 = vunpack.c.h.s8.bf16 %v1178_v44  ;;  %v2119_v39 = vunpack.c.h.s8.bf16 %v1411_v27  ;;  %v1421_v27 = vld [vmem:[%s5238_s10 + $0x868] sm:$0xff] }
 0x141   : > { %3367 = vmatprep.mubr.bf16.mxu0 %v4022_v53  ;;  %v2102_v53 = vunpack.c.h.s8.bf16 %v1402_v45 }
 0x142   : > { %2764 = vmatpush1.bf16.msra.mxu1 %v1634_v54  ;;  %v1657_v54 = vunpack.c.l.s8.bf16 %v1181_v1 }
 0x143   : > { %3338 = vmatpush1.bf16.msra.mxu0 %v2082_v55  ;;  %2765 = vmatprep.subr.bf16.mxu1 %v1637_v56  ;;  %v2105_v55 = vunpack.c.l.s8.bf16 %v1405_v51  ;;  %v1180_v56 = vld [vmem:[%s5238_s10 + $0xe0] sm:$0xff] }
 0x144   : > { %3339 = vmatprep.subr.bf16.mxu0 %v2085_v57  ;;  %v1404_v57 = vld [vmem:[%s5238_s10 + $0x7e0] sm:$0xff]  ;;  %v1656_v58 = vunpack.c.l.s8.bf16 %v1180_v56  ;;  %v1658_v2 = vunpack.c.h.s8.bf16 %v1180_v56 }
 0x145   : > { %v2104_v59 = vunpack.c.l.s8.bf16 %v1404_v57  ;;  %v2106_v3 = vunpack.c.h.s8.bf16 %v1404_v57 }
 0x146   : > { %2766 = vmatpush1.bf16.msra.mxu1 %v1636_v60  ;;  %v1659_v60 = vunpack.c.h.s8.bf16 %v1181_v1 }
 0x147   : > { %3340 = vmatpush1.bf16.msra.mxu0 %v2084_v61  ;;  %2767 = vmatprep.subr.bf16.mxu1 %v1639_v62  ;;  %v2107_v61 = vunpack.c.h.s8.bf16 %v1405_v51  ;;  %v1183_v62 = vld [vmem:[%s5238_s10 + $0xf8] sm:$0xff] }
 0x148   : > { %3341 = vmatprep.subr.bf16.mxu0 %v2087_v63  ;;  %v1407_v63 = vld [vmem:[%s5238_s10 + $0x7f8] sm:$0xff] }
 0x14a   : > { %2768 = vmatpush1.bf16.msra.mxu1 %v1638_v4  ;;  %v1661_v4 = vunpack.c.l.s8.bf16 %v1183_v62 }
 0x14b   : > { %3342 = vmatpush1.bf16.msra.mxu0 %v2086_v5  ;;  %2769 = vmatprep.subr.bf16.mxu1 %v1641_v6  ;;  %v2109_v5 = vunpack.c.l.s8.bf16 %v1407_v63  ;;  %v1182_v6 = vld [vmem:[%s5238_s10 + $0xf0] sm:$0xff] }
 0x14c   : > { %3343 = vmatprep.subr.bf16.mxu0 %v2089_v7  ;;  %v1406_v7 = vld [vmem:[%s5238_s10 + $0x7f0] sm:$0xff]  ;;  %v1660_v8 = vunpack.c.l.s8.bf16 %v1182_v6  ;;  %v1662_v14 = vunpack.c.h.s8.bf16 %v1182_v6 }
 0x14d   : > { %v2108_v9 = vunpack.c.l.s8.bf16 %v1406_v7  ;;  %v2110_v15 = vunpack.c.h.s8.bf16 %v1406_v7 }
 0x14e   : > { %2770 = vmatpush1.bf16.msra.mxu1 %v1640_v10  ;;  %v1663_v10 = vunpack.c.h.s8.bf16 %v1183_v62 }
 0x14f   : > { %3344 = vmatpush1.bf16.msra.mxu0 %v2088_v11  ;;  %2771 = vmatprep.subr.bf16.mxu1 %v1643_v12  ;;  %v2111_v11 = vunpack.c.h.s8.bf16 %v1407_v63  ;;  %v1185_v12 = vld [vmem:[%s5238_s10 + $0x108] sm:$0xff] }
 0x150   : > { %3345 = vmatprep.subr.bf16.mxu0 %v2091_v13  ;;  %v1409_v13 = vld [vmem:[%s5238_s10 + $0x808] sm:$0xff]  ;;  %v1667_v46 = vunpack.c.h.s8.bf16 %v1185_v12 }
 0x151   : > { %v2115_v26 = vunpack.c.h.s8.bf16 %v1409_v13 }
 0x152   : > { %2772 = vmatpush1.bf16.msra.mxu1 %v1642_v16  ;;  %v1665_v16 = vunpack.c.l.s8.bf16 %v1185_v12 }
 0x153   : > { %3346 = vmatpush1.bf16.msra.mxu0 %v2090_v17  ;;  %2773 = vmatprep.subr.bf16.mxu1 %v1645_v18  ;;  %v2113_v17 = vunpack.c.l.s8.bf16 %v1409_v13  ;;  %v1184_v18 = vld [vmem:[%s5238_s10 + $0x100] sm:$0xff] }
 0x154   : > { %3347 = vmatprep.subr.bf16.mxu0 %v2093_v19  ;;  %v1408_v19 = vld [vmem:[%s5238_s10 + $0x800] sm:$0xff] }
 0x156   : > { %2774 = vmatpush1.bf16.msra.mxu1 %v1644_v22  ;;  %v5333_v22 = vld [vmem:[%s5947_s0 + $0x10] sm:$0xff] }
 0x157   : > { %3348 = vmatpush1.bf16.msra.mxu0 %v2092_v23  ;;  %2775 = vmatprep.subr.bf16.mxu1 %v1647_v24  ;;  %v5338_v23 = vld [vmem:[%s5947_s0 + $0x80] sm:$0xff]  ;;  %v1664_v24 = vunpack.c.l.s8.bf16 %v1184_v18 }
 0x158   : > { %3349 = vmatprep.subr.bf16.mxu0 %v2095_v25  ;;  %v2112_v25 = vunpack.c.l.s8.bf16 %v1408_v19 }
 0x15a   : > { %2776 = vmatpush1.bf16.msra.mxu1 %v1646_v28  ;;  %v3996_v28 = vcombine.high %v5333_v22, %v5333_v22 }
 0x15b   : > { %3350 = vmatpush1.bf16.msra.mxu0 %v2094_v29  ;;  %2777 = vmatprep.subr.bf16.mxu1 %v1649_v30  ;;  %v4024_v29 = vcombine.high %v5338_v23, %v5338_v23  ;;  %v1666_v30 = vunpack.c.h.s8.bf16 %v1184_v18 }
 0x15c   : > { %3351 = vmatprep.subr.bf16.mxu0 %v2097_v31  ;;  %v2114_v31 = vunpack.c.h.s8.bf16 %v1408_v19 }
 0x15e   : > { %2778 = vmatpush1.bf16.msra.mxu1 %v1648_v34  ;;  %v1186_v34 = vld [vmem:[%s5238_s10 + $0x110] sm:$0xff] }
 0x15f   : > { %3352 = vmatpush1.bf16.msra.mxu0 %v2096_v35  ;;  %2779 = vmatprep.subr.bf16.mxu1 %v1651_v36  ;;  %v1410_v35 = vld [vmem:[%s5238_s10 + $0x810] sm:$0xff]  ;;  %v1668_v36 = vunpack.c.l.s8.bf16 %v1186_v34 }
 0x160   : > { %3353 = vmatprep.subr.bf16.mxu0 %v2099_v37  ;;  %v2116_v37 = vunpack.c.l.s8.bf16 %v1410_v35 }
 0x162   : > { %2780 = vmatpush1.bf16.msra.mxu1 %v1650_v40  ;;  %v1189_v40 = vld [vmem:[%s5238_s10 + $0x128] sm:$0xff] }
 0x163   : > { %3354 = vmatpush1.bf16.msra.mxu0 %v2098_v41  ;;  %2781 = vmatprep.subr.bf16.mxu1 %v1653_v42  ;;  %v1413_v41 = vld [vmem:[%s5238_s10 + $0x828] sm:$0xff]  ;;  %v1670_v42 = vunpack.c.h.s8.bf16 %v1186_v34  ;;  %v1673_v44 = vunpack.c.l.s8.bf16 %v1189_v40  ;;  %v1675_v1 = vunpack.c.h.s8.bf16 %v1189_v40 }
 0x164   : > { %3355 = vmatprep.subr.bf16.mxu0 %v2101_v43  ;;  %v2118_v43 = vunpack.c.h.s8.bf16 %v1410_v35  ;;  %v2121_v45 = vunpack.c.l.s8.bf16 %v1413_v41  ;;  %v2123_v51 = vunpack.c.h.s8.bf16 %v1413_v41 }
 0x166   : > { %2782 = vmatpush1.bf16.msra.mxu1 %v1652_v48  ;;  %v1188_v48 = vld [vmem:[%s5238_s10 + $0x120] sm:$0xff] }
 0x167   : > { %3356 = vmatpush1.bf16.msra.mxu0 %v2100_v49  ;;  %2783 = vmatprep.subr.bf16.mxu1 %v1655_v0  ;;  %v1412_v49 = vld [vmem:[%s5238_s10 + $0x820] sm:$0xff]  ;;  %v1672_v0 = vunpack.c.l.s8.bf16 %v1188_v48 }
 0x168   : > { %3357 = vmatprep.subr.bf16.mxu0 %v2103_v50  ;;  %v2120_v50 = vunpack.c.l.s8.bf16 %v1412_v49 }
 0x16a   : > { %2784 = vmatpush1.bf16.msra.mxu1 %v1654_v52  ;;  %v1191_v52 = vld [vmem:[%s5238_s10 + $0x138] sm:$0xff] }
 0x16b   : > { %3358 = vmatpush1.bf16.msra.mxu0 %v2102_v53  ;;  %2785 = vmatprep.subr.bf16.mxu1 %v1657_v54  ;;  %v1415_v53 = vld [vmem:[%s5238_s10 + $0x838] sm:$0xff]  ;;  %v1674_v54 = vunpack.c.h.s8.bf16 %v1188_v48  ;;  %v1677_v56 = vunpack.c.l.s8.bf16 %v1191_v52  ;;  %v1679_v62 = vunpack.c.h.s8.bf16 %v1191_v52 }
 0x16c   : > { %3359 = vmatprep.subr.bf16.mxu0 %v2105_v55  ;;  %v2122_v55 = vunpack.c.h.s8.bf16 %v1412_v49  ;;  %v2125_v57 = vunpack.c.l.s8.bf16 %v1415_v53  ;;  %v2127_v63 = vunpack.c.h.s8.bf16 %v1415_v53 }
 0x16e   : > { %2786 = vmatpush1.bf16.msra.mxu1 %v1656_v58  ;;  %v1190_v58 = vld [vmem:[%s5238_s10 + $0x130] sm:$0xff] }
 0x16f   : > { %3360 = vmatpush1.bf16.msra.mxu0 %v2104_v59  ;;  %2787 = vmatprep.subr.bf16.mxu1 %v1659_v60  ;;  %v1414_v59 = vld [vmem:[%s5238_s10 + $0x830] sm:$0xff]  ;;  %v1676_v60 = vunpack.c.l.s8.bf16 %v1190_v58 }
 0x170   : > { %3361 = vmatprep.subr.bf16.mxu0 %v2107_v61  ;;  %v2124_v61 = vunpack.c.l.s8.bf16 %v1414_v59 }
 0x172   : > { %2788 = vmatpush1.bf16.msra.mxu1 %v1658_v2  ;;  %v1193_v2 = vld [vmem:[%s5238_s10 + $0x148] sm:$0xff] }
 0x173   : > { %3362 = vmatpush1.bf16.msra.mxu0 %v2106_v3  ;;  %2789 = vmatprep.subr.bf16.mxu1 %v1661_v4  ;;  %v1417_v3 = vld [vmem:[%s5238_s10 + $0x848] sm:$0xff]  ;;  %v1678_v4 = vunpack.c.h.s8.bf16 %v1190_v58  ;;  %v1681_v6 = vunpack.c.l.s8.bf16 %v1193_v2  ;;  %v1683_v12 = vunpack.c.h.s8.bf16 %v1193_v2  ;;  %v3995_v58 = vcombine.low %v5333_v22, %v5333_v22 }
 0x174   : > { %3363 = vmatprep.subr.bf16.mxu0 %v2109_v5  ;;  %v2126_v5 = vunpack.c.h.s8.bf16 %v1414_v59  ;;  %v2129_v7 = vunpack.c.l.s8.bf16 %v1417_v3  ;;  %v2131_v13 = vunpack.c.h.s8.bf16 %v1417_v3  ;;  %v4023_v59 = vcombine.low %v5338_v23, %v5338_v23  ;;  %v1203_v23 = vld [vmem:[%s5238_s10 + $0x198] sm:$0xff] }
 0x175   : > { %v1427_v3 = vld [vmem:[%s5238_s10 + $0x898] sm:$0xff] }
 0x176   : > { %2790 = vmatpush1.bf16.msra.mxu1 %v1660_v8  ;;  %v1192_v8 = vld [vmem:[%s5238_s10 + $0x140] sm:$0xff] }
 0x177   : > { %3364 = vmatpush1.bf16.msra.mxu0 %v2108_v9  ;;  %2791 = vmatprep.subr.bf16.mxu1 %v1663_v10  ;;  %v1416_v9 = vld [vmem:[%s5238_s10 + $0x840] sm:$0xff]  ;;  %v1680_v10 = vunpack.c.l.s8.bf16 %v1192_v8 }
 0x178   : > { %3365 = vmatprep.subr.bf16.mxu0 %v2111_v11  ;;  %v2128_v11 = vunpack.c.l.s8.bf16 %v1416_v9 }
 0x17a   : > { %2792 = vmatpush1.bf16.msra.mxu1 %v1662_v14  ;;  %v1195_v14 = vld [vmem:[%s5238_s10 + $0x158] sm:$0xff] }
 0x17b   : > { %3366 = vmatpush1.bf16.msra.mxu0 %v2110_v15  ;;  %2802 = vmatprep.subr.bf16.mxu1 %v1665_v16  ;;  %v1419_v15 = vld [vmem:[%s5238_s10 + $0x858] sm:$0xff]  ;;  %v1682_v16 = vunpack.c.h.s8.bf16 %v1192_v8  ;;  %v1685_v18 = vunpack.c.l.s8.bf16 %v1195_v14  ;;  %v1701_v8 = vunpack.c.l.s8.bf16 %v1203_v23 }
 0x17c   : > { %3376 = vmatprep.subr.bf16.mxu0 %v2113_v17  ;;  %v2130_v17 = vunpack.c.h.s8.bf16 %v1416_v9  ;;  %v2133_v19 = vunpack.c.l.s8.bf16 %v1419_v15  ;;  %v2149_v9 = vunpack.c.l.s8.bf16 %v1427_v3 }
 0x17d   : > { %2794 = vmatmul.mubr.bf16.vlgmr.msra.gmra.mrb[0].mxu1 %v3993_v20  ;;  %v1194_v20 = vld [vmem:[%s5238_s10 + $0x150] sm:$0xff] }
 0x17e   : > { %3368 = vmatmul.mubr.bf16.vlgmr.msra.gmra.mrb[0].mxu0 %v4021_v21  ;;  %2803 = vmatpush1.bf16.msra.mxu1 %v1664_v24  ;;  %v1418_v21 = vld [vmem:[%s5238_s10 + $0x850] sm:$0xff]  ;;  %v1684_v24 = vunpack.c.l.s8.bf16 %v1194_v20 }
 0x17f   : > { %3377 = vmatpush1.bf16.msra.mxu0 %v2112_v25  ;;  %2804 = vmatprep.subr.bf16.mxu1 %v1667_v46  ;;  %v2132_v25 = vunpack.c.l.s8.bf16 %v1418_v21  ;;  %v1687_v46 = vunpack.c.h.s8.bf16 %v1195_v14  ;;  %v1703_v14 = vunpack.c.h.s8.bf16 %v1203_v23  ;;  %v1213_v23 = vld [vmem:[%s5238_s10 + $0x1e8] sm:$0xff] }
 0x180   : > { %3378 = vmatprep.subr.bf16.mxu0 %v2115_v26  ;;  %2834 = vmatprep.mubr.bf16.mxu1 %v3996_v28  ;;  %v2135_v26 = vunpack.c.h.s8.bf16 %v1419_v15  ;;  %v1686_v28 = vunpack.c.h.s8.bf16 %v1194_v20  ;;  %v2151_v15 = vunpack.c.h.s8.bf16 %v1427_v3  ;;  %v1437_v3 = vld [vmem:[%s5238_s10 + $0x8e8] sm:$0xff] }
 0x181   : > { %3408 = vmatprep.mubr.bf16.mxu0 %v4024_v29  ;;  %v2134_v29 = vunpack.c.h.s8.bf16 %v1418_v21 }
 0x182   : > { %2805 = vmatpush1.bf16.msra.mxu1 %v1666_v30  ;;  %v1689_v30 = vunpack.c.l.s8.bf16 %v1197_v47 }
 0x183   : > { %3379 = vmatpush1.bf16.msra.mxu0 %v2114_v31  ;;  %2806 = vmatprep.subr.bf16.mxu1 %v1669_v32  ;;  %v2137_v31 = vunpack.c.l.s8.bf16 %v1421_v27  ;;  %v1196_v32 = vld [vmem:[%s5238_s10 + $0x160] sm:$0xff] }
 0x184   : > { %3380 = vmatprep.subr.bf16.mxu0 %v2117_v33  ;;  %v1420_v33 = vld [vmem:[%s5238_s10 + $0x860] sm:$0xff]  ;;  %v1688_v34 = vunpack.c.l.s8.bf16 %v1196_v32  ;;  %v1690_v40 = vunpack.c.h.s8.bf16 %v1196_v32 }
 0x185   : > { %v2136_v35 = vunpack.c.l.s8.bf16 %v1420_v33  ;;  %v2138_v41 = vunpack.c.h.s8.bf16 %v1420_v33 }
 0x186   : > { %2807 = vmatpush1.bf16.msra.mxu1 %v1668_v36  ;;  %v1691_v36 = vunpack.c.h.s8.bf16 %v1197_v47 }
 0x187   : > { %3381 = vmatpush1.bf16.msra.mxu0 %v2116_v37  ;;  %2808 = vmatprep.subr.bf16.mxu1 %v1671_v38  ;;  %v2139_v37 = vunpack.c.h.s8.bf16 %v1421_v27  ;;  %v1199_v38 = vld [vmem:[%s5238_s10 + $0x178] sm:$0xff] }
 0x188   : > { %3382 = vmatprep.subr.bf16.mxu0 %v2119_v39  ;;  %v1423_v39 = vld [vmem:[%s5238_s10 + $0x878] sm:$0xff] }
 0x18a   : > { %2809 = vmatpush1.bf16.msra.mxu1 %v1670_v42  ;;  %v1693_v42 = vunpack.c.l.s8.bf16 %v1199_v38 }
 0x18b   : > { %3383 = vmatpush1.bf16.msra.mxu0 %v2118_v43  ;;  %2810 = vmatprep.subr.bf16.mxu1 %v1673_v44  ;;  %v2141_v43 = vunpack.c.l.s8.bf16 %v1423_v39  ;;  %v1198_v44 = vld [vmem:[%s5238_s10 + $0x170] sm:$0xff] }
 0x18c   : > { %3384 = vmatprep.subr.bf16.mxu0 %v2121_v45  ;;  %v1422_v45 = vld [vmem:[%s5238_s10 + $0x870] sm:$0xff]  ;;  %v1692_v48 = vunpack.c.l.s8.bf16 %v1198_v44  ;;  %v1694_v52 = vunpack.c.h.s8.bf16 %v1198_v44 }
 0x18d   : > { %v2140_v49 = vunpack.c.l.s8.bf16 %v1422_v45  ;;  %v2142_v53 = vunpack.c.h.s8.bf16 %v1422_v45 }
 0x18e   : > { %2811 = vmatpush1.bf16.msra.mxu1 %v1672_v0  ;;  %v1695_v0 = vunpack.c.h.s8.bf16 %v1199_v38 }
 0x18f   : > { %3385 = vmatpush1.bf16.msra.mxu0 %v2120_v50  ;;  %2812 = vmatprep.subr.bf16.mxu1 %v1675_v1  ;;  %v2143_v50 = vunpack.c.h.s8.bf16 %v1423_v39  ;;  %v1201_v1 = vld [vmem:[%s5238_s10 + $0x188] sm:$0xff] }
 0x190   : > { %3386 = vmatprep.subr.bf16.mxu0 %v2123_v51  ;;  %v1425_v51 = vld [vmem:[%s5238_s10 + $0x888] sm:$0xff]  ;;  %v1699_v22 = vunpack.c.h.s8.bf16 %v1201_v1 }
 0x191   : > { %v2147_v2 = vunpack.c.h.s8.bf16 %v1425_v51 }
 0x192   : > { %2813 = vmatpush1.bf16.msra.mxu1 %v1674_v54  ;;  %v1697_v54 = vunpack.c.l.s8.bf16 %v1201_v1 }
 0x193   : > { %3387 = vmatpush1.bf16.msra.mxu0 %v2122_v55  ;;  %2814 = vmatprep.subr.bf16.mxu1 %v1677_v56  ;;  %v2145_v55 = vunpack.c.l.s8.bf16 %v1425_v51  ;;  %v1200_v56 = vld [vmem:[%s5238_s10 + $0x180] sm:$0xff] }
 0x194   : > { %3388 = vmatprep.subr.bf16.mxu0 %v2125_v57  ;;  %v1424_v57 = vld [vmem:[%s5238_s10 + $0x880] sm:$0xff] }
 0x196   : > { %2815 = vmatpush1.bf16.msra.mxu1 %v1676_v60  ;;  %v5383_v60 = vld [vmem:[%s5947_s0 + $0x18] sm:$0xff] }
 0x197   : > { %3389 = vmatpush1.bf16.msra.mxu0 %v2124_v61  ;;  %2816 = vmatprep.subr.bf16.mxu1 %v1679_v62  ;;  %v5388_v61 = vld [vmem:[%s5947_s0 + $0x88] sm:$0xff]  ;;  %v1696_v62 = vunpack.c.l.s8.bf16 %v1200_v56 }
 0x198   : > { %3390 = vmatprep.subr.bf16.mxu0 %v2127_v63  ;;  %v2144_v63 = vunpack.c.l.s8.bf16 %v1424_v57 }
 0x19a   : > { %2817 = vmatpush1.bf16.msra.mxu1 %v1678_v4  ;;  %v3998_v4 = vcombine.high %v5383_v60, %v5383_v60 }
 0x19b   : > { %3391 = vmatpush1.bf16.msra.mxu0 %v2126_v5  ;;  %2818 = vmatprep.subr.bf16.mxu1 %v1681_v6  ;;  %v4026_v5 = vcombine.high %v5388_v61, %v5388_v61  ;;  %v1698_v6 = vunpack.c.h.s8.bf16 %v1200_v56 }
 0x19c   : > { %3392 = vmatprep.subr.bf16.mxu0 %v2129_v7  ;;  %v2146_v7 = vunpack.c.h.s8.bf16 %v1424_v57 }
 0x19e   : > { %2819 = vmatpush1.bf16.msra.mxu1 %v1680_v10  ;;  %v1202_v10 = vld [vmem:[%s5238_s10 + $0x190] sm:$0xff] }
 0x19f   : > { %3393 = vmatpush1.bf16.msra.mxu0 %v2128_v11  ;;  %2820 = vmatprep.subr.bf16.mxu1 %v1683_v12  ;;  %v1426_v11 = vld [vmem:[%s5238_s10 + $0x890] sm:$0xff]  ;;  %v1700_v12 = vunpack.c.l.s8.bf16 %v1202_v10 }
 0x1a0   : > { %3394 = vmatprep.subr.bf16.mxu0 %v2131_v13  ;;  %v2148_v13 = vunpack.c.l.s8.bf16 %v1426_v11 }
 0x1a2   : > { %2821 = vmatpush1.bf16.msra.mxu1 %v1682_v16  ;;  %v1205_v16 = vld [vmem:[%s5238_s10 + $0x1a8] sm:$0xff] }
 0x1a3   : > { %3395 = vmatpush1.bf16.msra.mxu0 %v2130_v17  ;;  %2822 = vmatprep.subr.bf16.mxu1 %v1685_v18  ;;  %v1429_v17 = vld [vmem:[%s5238_s10 + $0x8a8] sm:$0xff]  ;;  %v1702_v18 = vunpack.c.h.s8.bf16 %v1202_v10  ;;  %v1705_v20 = vunpack.c.l.s8.bf16 %v1205_v16  ;;  %v1707_v47 = vunpack.c.h.s8.bf16 %v1205_v16 }
 0x1a4   : > { %3396 = vmatprep.subr.bf16.mxu0 %v2133_v19  ;;  %v2150_v19 = vunpack.c.h.s8.bf16 %v1426_v11  ;;  %v2153_v21 = vunpack.c.l.s8.bf16 %v1429_v17  ;;  %v2155_v27 = vunpack.c.h.s8.bf16 %v1429_v17 }
 0x1a6   : > { %2823 = vmatpush1.bf16.msra.mxu1 %v1684_v24  ;;  %v1204_v24 = vld [vmem:[%s5238_s10 + $0x1a0] sm:$0xff] }
 0x1a7   : > { %3397 = vmatpush1.bf16.msra.mxu0 %v2132_v25  ;;  %2824 = vmatprep.subr.bf16.mxu1 %v1687_v46  ;;  %v1428_v25 = vld [vmem:[%s5238_s10 + $0x8a0] sm:$0xff]  ;;  %v1704_v46 = vunpack.c.l.s8.bf16 %v1204_v24 }
 0x1a8   : > { %3398 = vmatprep.subr.bf16.mxu0 %v2135_v26  ;;  %v2152_v26 = vunpack.c.l.s8.bf16 %v1428_v25 }
 0x1aa   : > { %2825 = vmatpush1.bf16.msra.mxu1 %v1686_v28  ;;  %v1207_v28 = vld [vmem:[%s5238_s10 + $0x1b8] sm:$0xff] }
 0x1ab   : > { %3399 = vmatpush1.bf16.msra.mxu0 %v2134_v29  ;;  %2826 = vmatprep.subr.bf16.mxu1 %v1689_v30  ;;  %v1431_v29 = vld [vmem:[%s5238_s10 + $0x8b8] sm:$0xff]  ;;  %v1706_v30 = vunpack.c.h.s8.bf16 %v1204_v24  ;;  %v1709_v32 = vunpack.c.l.s8.bf16 %v1207_v28  ;;  %v1711_v38 = vunpack.c.h.s8.bf16 %v1207_v28 }
 0x1ac   : > { %3400 = vmatprep.subr.bf16.mxu0 %v2137_v31  ;;  %v2154_v31 = vunpack.c.h.s8.bf16 %v1428_v25  ;;  %v2157_v33 = vunpack.c.l.s8.bf16 %v1431_v29  ;;  %v2159_v39 = vunpack.c.h.s8.bf16 %v1431_v29 }
 0x1ae   : > { %2827 = vmatpush1.bf16.msra.mxu1 %v1688_v34  ;;  %v1206_v34 = vld [vmem:[%s5238_s10 + $0x1b0] sm:$0xff] }
 0x1af   : > { %3401 = vmatpush1.bf16.msra.mxu0 %v2136_v35  ;;  %2828 = vmatprep.subr.bf16.mxu1 %v1691_v36  ;;  %v1430_v35 = vld [vmem:[%s5238_s10 + $0x8b0] sm:$0xff]  ;;  %v1708_v36 = vunpack.c.l.s8.bf16 %v1206_v34 }
 0x1b0   : > { %3402 = vmatprep.subr.bf16.mxu0 %v2139_v37  ;;  %v2156_v37 = vunpack.c.l.s8.bf16 %v1430_v35 }
 0x1b2   : > { %2829 = vmatpush1.bf16.msra.mxu1 %v1690_v40  ;;  %v1209_v40 = vld [vmem:[%s5238_s10 + $0x1c8] sm:$0xff] }
 0x1b3   : > { %3403 = vmatpush1.bf16.msra.mxu0 %v2138_v41  ;;  %2830 = vmatprep.subr.bf16.mxu1 %v1693_v42  ;;  %v1433_v41 = vld [vmem:[%s5238_s10 + $0x8c8] sm:$0xff]  ;;  %v1710_v42 = vunpack.c.h.s8.bf16 %v1206_v34  ;;  %v1713_v44 = vunpack.c.l.s8.bf16 %v1209_v40  ;;  %v1715_v1 = vunpack.c.h.s8.bf16 %v1209_v40  ;;  %v3997_v34 = vcombine.low %v5383_v60, %v5383_v60 }
 0x1b4   : > { %3404 = vmatprep.subr.bf16.mxu0 %v2141_v43  ;;  %v2158_v43 = vunpack.c.h.s8.bf16 %v1430_v35  ;;  %v2161_v45 = vunpack.c.l.s8.bf16 %v1433_v41  ;;  %v2163_v51 = vunpack.c.h.s8.bf16 %v1433_v41  ;;  %v4025_v35 = vcombine.low %v5388_v61, %v5388_v61  ;;  %v1219_v61 = vld [vmem:[%s5238_s10 + $0x218] sm:$0xff] }
 0x1b5   : > { %v1443_v41 = vld [vmem:[%s5238_s10 + $0x918] sm:$0xff] }
 0x1b6   : > { %2831 = vmatpush1.bf16.msra.mxu1 %v1692_v48  ;;  %v1208_v48 = vld [vmem:[%s5238_s10 + $0x1c0] sm:$0xff] }
 0x1b7   : > { %3405 = vmatpush1.bf16.msra.mxu0 %v2140_v49  ;;  %2832 = vmatprep.subr.bf16.mxu1 %v1695_v0  ;;  %v1432_v49 = vld [vmem:[%s5238_s10 + $0x8c0] sm:$0xff]  ;;  %v1712_v0 = vunpack.c.l.s8.bf16 %v1208_v48 }
 0x1b8   : > { %3406 = vmatprep.subr.bf16.mxu0 %v2143_v50  ;;  %v2160_v50 = vunpack.c.l.s8.bf16 %v1432_v49 }
 0x1ba   : > { %2833 = vmatpush1.bf16.msra.mxu1 %v1694_v52  ;;  %v1211_v52 = vld [vmem:[%s5238_s10 + $0x1d8] sm:$0xff] }
 0x1bb   : > { %3407 = vmatpush1.bf16.msra.mxu0 %v2142_v53  ;;  %2843 = vmatprep.subr.bf16.mxu1 %v1697_v54  ;;  %v1435_v53 = vld [vmem:[%s5238_s10 + $0x8d8] sm:$0xff]  ;;  %v1714_v54 = vunpack.c.h.s8.bf16 %v1208_v48  ;;  %v1717_v56 = vunpack.c.l.s8.bf16 %v1211_v52  ;;  %v1733_v48 = vunpack.c.l.s8.bf16 %v1219_v61 }
 0x1bc   : > { %3417 = vmatprep.subr.bf16.mxu0 %v2145_v55  ;;  %v2162_v55 = vunpack.c.h.s8.bf16 %v1432_v49  ;;  %v2165_v57 = vunpack.c.l.s8.bf16 %v1435_v53  ;;  %v2181_v49 = vunpack.c.l.s8.bf16 %v1443_v41 }
 0x1bd   : > { %2835 = vmatmul.mubr.bf16.vlgmr.msra.gmra.mrb[0].mxu1 %v3995_v58  ;;  %v1210_v58 = vld [vmem:[%s5238_s10 + $0x1d0] sm:$0xff] }
 0x1be   : > { %3409 = vmatmul.mubr.bf16.vlgmr.msra.gmra.mrb[0].mxu0 %v4023_v59  ;;  %2844 = vmatpush1.bf16.msra.mxu1 %v1696_v62  ;;  %v1434_v59 = vld [vmem:[%s5238_s10 + $0x8d0] sm:$0xff]  ;;  %v1716_v62 = vunpack.c.l.s8.bf16 %v1210_v58 }
 0x1bf   : > { %3418 = vmatpush1.bf16.msra.mxu0 %v2144_v63  ;;  %2845 = vmatprep.subr.bf16.mxu1 %v1699_v22  ;;  %v2164_v63 = vunpack.c.l.s8.bf16 %v1434_v59  ;;  %v1719_v22 = vunpack.c.h.s8.bf16 %v1211_v52  ;;  %v1735_v52 = vunpack.c.h.s8.bf16 %v1219_v61  ;;  %v1229_v61 = vld [vmem:[%s5238_s10 + $0x268] sm:$0xff] }
 0x1c0   : > { %3419 = vmatprep.subr.bf16.mxu0 %v2147_v2  ;;  %2875 = vmatprep.mubr.bf16.mxu1 %v3998_v4  ;;  %v2167_v2 = vunpack.c.h.s8.bf16 %v1435_v53  ;;  %v1718_v4 = vunpack.c.h.s8.bf16 %v1210_v58  ;;  %v2183_v53 = vunpack.c.h.s8.bf16 %v1443_v41  ;;  %v1453_v41 = vld [vmem:[%s5238_s10 + $0x968] sm:$0xff] }
 0x1c1   : > { %3449 = vmatprep.mubr.bf16.mxu0 %v4026_v5  ;;  %v2166_v5 = vunpack.c.h.s8.bf16 %v1434_v59 }
 0x1c2   : > { %2846 = vmatpush1.bf16.msra.mxu1 %v1698_v6  ;;  %v1721_v6 = vunpack.c.l.s8.bf16 %v1213_v23 }
 0x1c3   : > { %3420 = vmatpush1.bf16.msra.mxu0 %v2146_v7  ;;  %2847 = vmatprep.subr.bf16.mxu1 %v1701_v8  ;;  %v2169_v7 = vunpack.c.l.s8.bf16 %v1437_v3  ;;  %v1212_v8 = vld [vmem:[%s5238_s10 + $0x1e0] sm:$0xff] }
 0x1c4   : > { %3421 = vmatprep.subr.bf16.mxu0 %v2149_v9  ;;  %v1436_v9 = vld [vmem:[%s5238_s10 + $0x8e0] sm:$0xff]  ;;  %v1720_v10 = vunpack.c.l.s8.bf16 %v1212_v8  ;;  %v1722_v16 = vunpack.c.h.s8.bf16 %v1212_v8 }
 0x1c5   : > { %v2168_v11 = vunpack.c.l.s8.bf16 %v1436_v9  ;;  %v2170_v17 = vunpack.c.h.s8.bf16 %v1436_v9 }
 0x1c6   : > { %2848 = vmatpush1.bf16.msra.mxu1 %v1700_v12  ;;  %v1723_v12 = vunpack.c.h.s8.bf16 %v1213_v23 }
 0x1c7   : > { %3422 = vmatpush1.bf16.msra.mxu0 %v2148_v13  ;;  %2849 = vmatprep.subr.bf16.mxu1 %v1703_v14  ;;  %v2171_v13 = vunpack.c.h.s8.bf16 %v1437_v3  ;;  %v1215_v14 = vld [vmem:[%s5238_s10 + $0x1f8] sm:$0xff] }
 0x1c8   : > { %3423 = vmatprep.subr.bf16.mxu0 %v2151_v15  ;;  %v1439_v15 = vld [vmem:[%s5238_s10 + $0x8f8] sm:$0xff] }
 0x1ca   : > { %2850 = vmatpush1.bf16.msra.mxu1 %v1702_v18  ;;  %v1725_v18 = vunpack.c.l.s8.bf16 %v1215_v14 }
 0x1cb   : > { %3424 = vmatpush1.bf16.msra.mxu0 %v2150_v19  ;;  %2851 = vmatprep.subr.bf16.mxu1 %v1705_v20  ;;  %v2173_v19 = vunpack.c.l.s8.bf16 %v1439_v15  ;;  %v1214_v20 = vld [vmem:[%s5238_s10 + $0x1f0] sm:$0xff] }
 0x1cc   : > { %3425 = vmatprep.subr.bf16.mxu0 %v2153_v21  ;;  %v1438_v21 = vld [vmem:[%s5238_s10 + $0x8f0] sm:$0xff]  ;;  %v1724_v24 = vunpack.c.l.s8.bf16 %v1214_v20  ;;  %v1726_v28 = vunpack.c.h.s8.bf16 %v1214_v20 }
 0x1cd   : > { %v2172_v25 = vunpack.c.l.s8.bf16 %v1438_v21  ;;  %v2174_v29 = vunpack.c.h.s8.bf16 %v1438_v21 }
 0x1ce   : > { %2852 = vmatpush1.bf16.msra.mxu1 %v1704_v46  ;;  %v1727_v46 = vunpack.c.h.s8.bf16 %v1215_v14 }
 0x1cf   : > { %3426 = vmatpush1.bf16.msra.mxu0 %v2152_v26  ;;  %2853 = vmatprep.subr.bf16.mxu1 %v1707_v47  ;;  %v2175_v26 = vunpack.c.h.s8.bf16 %v1439_v15  ;;  %v1217_v47 = vld [vmem:[%s5238_s10 + $0x208] sm:$0xff] }
 0x1d0   : > { %3427 = vmatprep.subr.bf16.mxu0 %v2155_v27  ;;  %v1441_v27 = vld [vmem:[%s5238_s10 + $0x908] sm:$0xff]  ;;  %v1731_v60 = vunpack.c.h.s8.bf16 %v1217_v47 }
 0x1d1   : > { %v2179_v40 = vunpack.c.h.s8.bf16 %v1441_v27 }
 0x1d2   : > { %2854 = vmatpush1.bf16.msra.mxu1 %v1706_v30  ;;  %v1729_v30 = vunpack.c.l.s8.bf16 %v1217_v47 }
 0x1d3   : > { %3428 = vmatpush1.bf16.msra.mxu0 %v2154_v31  ;;  %2855 = vmatprep.subr.bf16.mxu1 %v1709_v32  ;;  %v2177_v31 = vunpack.c.l.s8.bf16 %v1441_v27  ;;  %v1216_v32 = vld [vmem:[%s5238_s10 + $0x200] sm:$0xff] }
 0x1d4   : > { %3429 = vmatprep.subr.bf16.mxu0 %v2157_v33  ;;  %v1440_v33 = vld [vmem:[%s5238_s10 + $0x900] sm:$0xff] }
 0x1d6   : > { %2856 = vmatpush1.bf16.msra.mxu1 %v1708_v36  ;;  %v5433_v36 = vld [vmem:[%s5947_s0 + $0x20] sm:$0xff] }
 0x1d7   : > { %3430 = vmatpush1.bf16.msra.mxu0 %v2156_v37  ;;  %2857 = vmatprep.subr.bf16.mxu1 %v1711_v38  ;;  %v5438_v37 = vld [vmem:[%s5947_s0 + $0x90] sm:$0xff]  ;;  %v1728_v38 = vunpack.c.l.s8.bf16 %v1216_v32 }
 0x1d8   : > { %3431 = vmatprep.subr.bf16.mxu0 %v2159_v39  ;;  %v2176_v39 = vunpack.c.l.s8.bf16 %v1440_v33 }
 0x1da   : > { %2858 = vmatpush1.bf16.msra.mxu1 %v1710_v42  ;;  %v4000_v42 = vcombine.high %v5433_v36, %v5433_v36 }
 0x1db   : > { %3432 = vmatpush1.bf16.msra.mxu0 %v2158_v43  ;;  %2859 = vmatprep.subr.bf16.mxu1 %v1713_v44  ;;  %v4028_v43 = vcombine.high %v5438_v37, %v5438_v37  ;;  %v1730_v44 = vunpack.c.h.s8.bf16 %v1216_v32 }
 0x1dc   : > { %3433 = vmatprep.subr.bf16.mxu0 %v2161_v45  ;;  %v2178_v45 = vunpack.c.h.s8.bf16 %v1440_v33 }
 0x1de   : > { %2860 = vmatpush1.bf16.msra.mxu1 %v1712_v0  ;;  %v1218_v0 = vld [vmem:[%s5238_s10 + $0x210] sm:$0xff] }
 0x1df   : > { %3434 = vmatpush1.bf16.msra.mxu0 %v2160_v50  ;;  %2861 = vmatprep.subr.bf16.mxu1 %v1715_v1  ;;  %v1442_v50 = vld [vmem:[%s5238_s10 + $0x910] sm:$0xff]  ;;  %v1732_v1 = vunpack.c.l.s8.bf16 %v1218_v0 }
 0x1e0   : > { %3435 = vmatprep.subr.bf16.mxu0 %v2163_v51  ;;  %v2180_v51 = vunpack.c.l.s8.bf16 %v1442_v50 }
 0x1e2   : > { %2862 = vmatpush1.bf16.msra.mxu1 %v1714_v54  ;;  %v1221_v54 = vld [vmem:[%s5238_s10 + $0x228] sm:$0xff] }
 0x1e3   : > { %3436 = vmatpush1.bf16.msra.mxu0 %v2162_v55  ;;  %2863 = vmatprep.subr.bf16.mxu1 %v1717_v56  ;;  %v1445_v55 = vld [vmem:[%s5238_s10 + $0x928] sm:$0xff]  ;;  %v1734_v56 = vunpack.c.h.s8.bf16 %v1218_v0  ;;  %v1737_v58 = vunpack.c.l.s8.bf16 %v1221_v54  ;;  %v1739_v23 = vunpack.c.h.s8.bf16 %v1221_v54 }
 0x1e4   : > { %3437 = vmatprep.subr.bf16.mxu0 %v2165_v57  ;;  %v2182_v57 = vunpack.c.h.s8.bf16 %v1442_v50  ;;  %v2185_v59 = vunpack.c.l.s8.bf16 %v1445_v55  ;;  %v2187_v3 = vunpack.c.h.s8.bf16 %v1445_v55 }
 0x1e6   : > { %2864 = vmatpush1.bf16.msra.mxu1 %v1716_v62  ;;  %v1220_v62 = vld [vmem:[%s5238_s10 + $0x220] sm:$0xff] }
 0x1e7   : > { %3438 = vmatpush1.bf16.msra.mxu0 %v2164_v63  ;;  %2865 = vmatprep.subr.bf16.mxu1 %v1719_v22  ;;  %v1444_v63 = vld [vmem:[%s5238_s10 + $0x920] sm:$0xff]  ;;  %v1736_v22 = vunpack.c.l.s8.bf16 %v1220_v62 }
 0x1e8   : > { %3439 = vmatprep.subr.bf16.mxu0 %v2167_v2  ;;  %v2184_v2 = vunpack.c.l.s8.bf16 %v1444_v63 }
 0x1ea   : > { %2866 = vmatpush1.bf16.msra.mxu1 %v1718_v4  ;;  %v1223_v4 = vld [vmem:[%s5238_s10 + $0x238] sm:$0xff] }
 0x1eb   : > { %3440 = vmatpush1.bf16.msra.mxu0 %v2166_v5  ;;  %2867 = vmatprep.subr.bf16.mxu1 %v1721_v6  ;;  %v1447_v5 = vld [vmem:[%s5238_s10 + $0x938] sm:$0xff]  ;;  %v1738_v6 = vunpack.c.h.s8.bf16 %v1220_v62  ;;  %v1741_v8 = vunpack.c.l.s8.bf16 %v1223_v4  ;;  %v1743_v14 = vunpack.c.h.s8.bf16 %v1223_v4 }
 0x1ec   : > { %3441 = vmatprep.subr.bf16.mxu0 %v2169_v7  ;;  %v2186_v7 = vunpack.c.h.s8.bf16 %v1444_v63  ;;  %v2189_v9 = vunpack.c.l.s8.bf16 %v1447_v5  ;;  %v2191_v15 = vunpack.c.h.s8.bf16 %v1447_v5 }
 0x1ee   : > { %2868 = vmatpush1.bf16.msra.mxu1 %v1720_v10  ;;  %v1222_v10 = vld [vmem:[%s5238_s10 + $0x230] sm:$0xff] }
 0x1ef   : > { %3442 = vmatpush1.bf16.msra.mxu0 %v2168_v11  ;;  %2869 = vmatprep.subr.bf16.mxu1 %v1723_v12  ;;  %v1446_v11 = vld [vmem:[%s5238_s10 + $0x930] sm:$0xff]  ;;  %v1740_v12 = vunpack.c.l.s8.bf16 %v1222_v10 }
 0x1f0   : > { %3443 = vmatprep.subr.bf16.mxu0 %v2171_v13  ;;  %v2188_v13 = vunpack.c.l.s8.bf16 %v1446_v11 }
 0x1f2   : > { %2870 = vmatpush1.bf16.msra.mxu1 %v1722_v16  ;;  %v1225_v16 = vld [vmem:[%s5238_s10 + $0x248] sm:$0xff] }
 0x1f3   : > { %3444 = vmatpush1.bf16.msra.mxu0 %v2170_v17  ;;  %2871 = vmatprep.subr.bf16.mxu1 %v1725_v18  ;;  %v1449_v17 = vld [vmem:[%s5238_s10 + $0x948] sm:$0xff]  ;;  %v1742_v18 = vunpack.c.h.s8.bf16 %v1222_v10  ;;  %v1745_v20 = vunpack.c.l.s8.bf16 %v1225_v16  ;;  %v1747_v47 = vunpack.c.h.s8.bf16 %v1225_v16  ;;  %v3999_v10 = vcombine.low %v5433_v36, %v5433_v36 }
 0x1f4   : > { %3445 = vmatprep.subr.bf16.mxu0 %v2173_v19  ;;  %v2190_v19 = vunpack.c.h.s8.bf16 %v1446_v11  ;;  %v2193_v21 = vunpack.c.l.s8.bf16 %v1449_v17  ;;  %v2195_v27 = vunpack.c.h.s8.bf16 %v1449_v17  ;;  %v4027_v11 = vcombine.low %v5438_v37, %v5438_v37  ;;  %v1235_v37 = vld [vmem:[%s5238_s10 + $0x298] sm:$0xff] }
 0x1f5   : > { %v1459_v17 = vld [vmem:[%s5238_s10 + $0x998] sm:$0xff] }
 0x1f6   : > { %2872 = vmatpush1.bf16.msra.mxu1 %v1724_v24  ;;  %v1224_v24 = vld [vmem:[%s5238_s10 + $0x240] sm:$0xff] }
 0x1f7   : > { %3446 = vmatpush1.bf16.msra.mxu0 %v2172_v25  ;;  %2873 = vmatprep.subr.bf16.mxu1 %v1727_v46  ;;  %v1448_v25 = vld [vmem:[%s5238_s10 + $0x940] sm:$0xff]  ;;  %v1744_v46 = vunpack.c.l.s8.bf16 %v1224_v24 }
 0x1f8   : > { %3447 = vmatprep.subr.bf16.mxu0 %v2175_v26  ;;  %v2192_v26 = vunpack.c.l.s8.bf16 %v1448_v25 }
 0x1fa   : > { %2874 = vmatpush1.bf16.msra.mxu1 %v1726_v28  ;;  %v1227_v28 = vld [vmem:[%s5238_s10 + $0x258] sm:$0xff] }
 0x1fb   : > { %3448 = vmatpush1.bf16.msra.mxu0 %v2174_v29  ;;  %2884 = vmatprep.subr.bf16.mxu1 %v1729_v30  ;;  %v1451_v29 = vld [vmem:[%s5238_s10 + $0x958] sm:$0xff]  ;;  %v1746_v30 = vunpack.c.h.s8.bf16 %v1224_v24  ;;  %v1749_v32 = vunpack.c.l.s8.bf16 %v1227_v28  ;;  %v1765_v24 = vunpack.c.l.s8.bf16 %v1235_v37 }
 0x1fc   : > { %3458 = vmatprep.subr.bf16.mxu0 %v2177_v31  ;;  %v2194_v31 = vunpack.c.h.s8.bf16 %v1448_v25  ;;  %v2197_v33 = vunpack.c.l.s8.bf16 %v1451_v29  ;;  %v2213_v25 = vunpack.c.l.s8.bf16 %v1459_v17 }
 0x1fd   : > { %2876 = vmatmul.mubr.bf16.vlgmr.msra.gmra.mrb[0].mxu1 %v3997_v34  ;;  %v1226_v34 = vld [vmem:[%s5238_s10 + $0x250] sm:$0xff] }
 0x1fe   : > { %3450 = vmatmul.mubr.bf16.vlgmr.msra.gmra.mrb[0].mxu0 %v4025_v35  ;;  %2885 = vmatpush1.bf16.msra.mxu1 %v1728_v38  ;;  %v1450_v35 = vld [vmem:[%s5238_s10 + $0x950] sm:$0xff]  ;;  %v1748_v38 = vunpack.c.l.s8.bf16 %v1226_v34 }
 0x1ff   : > { %3459 = vmatpush1.bf16.msra.mxu0 %v2176_v39  ;;  %2886 = vmatprep.subr.bf16.mxu1 %v1731_v60  ;;  %v2196_v39 = vunpack.c.l.s8.bf16 %v1450_v35  ;;  %v1751_v60 = vunpack.c.h.s8.bf16 %v1227_v28  ;;  %v1767_v28 = vunpack.c.h.s8.bf16 %v1235_v37  ;;  %v1245_v37 = vld [vmem:[%s5238_s10 + $0x2e8] sm:$0xff] }
 0x200   : > { %3460 = vmatprep.subr.bf16.mxu0 %v2179_v40  ;;  %2916 = vmatprep.mubr.bf16.mxu1 %v4000_v42  ;;  %v2199_v40 = vunpack.c.h.s8.bf16 %v1451_v29  ;;  %v1750_v42 = vunpack.c.h.s8.bf16 %v1226_v34  ;;  %v2215_v29 = vunpack.c.h.s8.bf16 %v1459_v17  ;;  %v1469_v17 = vld [vmem:[%s5238_s10 + $0x9e8] sm:$0xff] }
 0x201   : > { %3490 = vmatprep.mubr.bf16.mxu0 %v4028_v43  ;;  %v2198_v43 = vunpack.c.h.s8.bf16 %v1450_v35 }
 0x202   : > { %2887 = vmatpush1.bf16.msra.mxu1 %v1730_v44  ;;  %v1753_v44 = vunpack.c.l.s8.bf16 %v1229_v61 }
 0x203   : > { %3461 = vmatpush1.bf16.msra.mxu0 %v2178_v45  ;;  %2888 = vmatprep.subr.bf16.mxu1 %v1733_v48  ;;  %v2201_v45 = vunpack.c.l.s8.bf16 %v1453_v41  ;;  %v1228_v48 = vld [vmem:[%s5238_s10 + $0x260] sm:$0xff] }
 0x204   : > { %3462 = vmatprep.subr.bf16.mxu0 %v2181_v49  ;;  %v1452_v49 = vld [vmem:[%s5238_s10 + $0x960] sm:$0xff]  ;;  %v1752_v0 = vunpack.c.l.s8.bf16 %v1228_v48  ;;  %v1754_v54 = vunpack.c.h.s8.bf16 %v1228_v48 }
 0x205   : > { %v2200_v50 = vunpack.c.l.s8.bf16 %v1452_v49  ;;  %v2202_v55 = vunpack.c.h.s8.bf16 %v1452_v49 }
 0x206   : > { %2889 = vmatpush1.bf16.msra.mxu1 %v1732_v1  ;;  %v1755_v1 = vunpack.c.h.s8.bf16 %v1229_v61 }
 0x207   : > { %3463 = vmatpush1.bf16.msra.mxu0 %v2180_v51  ;;  %2890 = vmatprep.subr.bf16.mxu1 %v1735_v52  ;;  %v2203_v51 = vunpack.c.h.s8.bf16 %v1453_v41  ;;  %v1231_v52 = vld [vmem:[%s5238_s10 + $0x278] sm:$0xff] }
 0x208   : > { %3464 = vmatprep.subr.bf16.mxu0 %v2183_v53  ;;  %v1455_v53 = vld [vmem:[%s5238_s10 + $0x978] sm:$0xff] }
 0x20a   : > { %2891 = vmatpush1.bf16.msra.mxu1 %v1734_v56  ;;  %v1757_v56 = vunpack.c.l.s8.bf16 %v1231_v52 }
 0x20b   : > { %3465 = vmatpush1.bf16.msra.mxu0 %v2182_v57  ;;  %2892 = vmatprep.subr.bf16.mxu1 %v1737_v58  ;;  %v2205_v57 = vunpack.c.l.s8.bf16 %v1455_v53  ;;  %v1230_v58 = vld [vmem:[%s5238_s10 + $0x270] sm:$0xff] }
 0x20c   : > { %3466 = vmatprep.subr.bf16.mxu0 %v2185_v59  ;;  %v1454_v59 = vld [vmem:[%s5238_s10 + $0x970] sm:$0xff]  ;;  %v1756_v62 = vunpack.c.l.s8.bf16 %v1230_v58  ;;  %v1758_v4 = vunpack.c.h.s8.bf16 %v1230_v58 }
 0x20d   : > { %v2204_v63 = vunpack.c.l.s8.bf16 %v1454_v59  ;;  %v2206_v5 = vunpack.c.h.s8.bf16 %v1454_v59 }
 0x20e   : > { %2893 = vmatpush1.bf16.msra.mxu1 %v1736_v22  ;;  %v1759_v22 = vunpack.c.h.s8.bf16 %v1231_v52 }
 0x20f   : > { %3467 = vmatpush1.bf16.msra.mxu0 %v2184_v2  ;;  %2894 = vmatprep.subr.bf16.mxu1 %v1739_v23  ;;  %v2207_v2 = vunpack.c.h.s8.bf16 %v1455_v53  ;;  %v1233_v23 = vld [vmem:[%s5238_s10 + $0x288] sm:$0xff] }
 0x210   : > { %3468 = vmatprep.subr.bf16.mxu0 %v2187_v3  ;;  %v1457_v3 = vld [vmem:[%s5238_s10 + $0x988] sm:$0xff]  ;;  %v1763_v36 = vunpack.c.h.s8.bf16 %v1233_v23 }
 0x211   : > { %v2211_v16 = vunpack.c.h.s8.bf16 %v1457_v3 }
 0x212   : > { %2895 = vmatpush1.bf16.msra.mxu1 %v1738_v6  ;;  %v1761_v6 = vunpack.c.l.s8.bf16 %v1233_v23 }
 0x213   : > { %3469 = vmatpush1.bf16.msra.mxu0 %v2186_v7  ;;  %2896 = vmatprep.subr.bf16.mxu1 %v1741_v8  ;;  %v2209_v7 = vunpack.c.l.s8.bf16 %v1457_v3  ;;  %v1232_v8 = vld [vmem:[%s5238_s10 + $0x280] sm:$0xff] }
 0x214   : > { %3470 = vmatprep.subr.bf16.mxu0 %v2189_v9  ;;  %v1456_v9 = vld [vmem:[%s5238_s10 + $0x980] sm:$0xff] }
 0x216   : > { %2897 = vmatpush1.bf16.msra.mxu1 %v1740_v12  ;;  %v5483_v12 = vld [vmem:[%s5947_s0 + $0x28] sm:$0xff] }
 0x217   : > { %3471 = vmatpush1.bf16.msra.mxu0 %v2188_v13  ;;  %2898 = vmatprep.subr.bf16.mxu1 %v1743_v14  ;;  %v5488_v13 = vld [vmem:[%s5947_s0 + $0x98] sm:$0xff]  ;;  %v1760_v14 = vunpack.c.l.s8.bf16 %v1232_v8 }
 0x218   : > { %3472 = vmatprep.subr.bf16.mxu0 %v2191_v15  ;;  %v2208_v15 = vunpack.c.l.s8.bf16 %v1456_v9 }
 0x21a   : > { %2899 = vmatpush1.bf16.msra.mxu1 %v1742_v18  ;;  %v4002_v18 = vcombine.high %v5483_v12, %v5483_v12 }
 0x21b   : > { %3473 = vmatpush1.bf16.msra.mxu0 %v2190_v19  ;;  %2900 = vmatprep.subr.bf16.mxu1 %v1745_v20  ;;  %v4030_v19 = vcombine.high %v5488_v13, %v5488_v13  ;;  %v1762_v20 = vunpack.c.h.s8.bf16 %v1232_v8 }
 0x21c   : > { %3474 = vmatprep.subr.bf16.mxu0 %v2193_v21  ;;  %v2210_v21 = vunpack.c.h.s8.bf16 %v1456_v9 }
 0x21e   : > { %2901 = vmatpush1.bf16.msra.mxu1 %v1744_v46  ;;  %v1234_v46 = vld [vmem:[%s5238_s10 + $0x290] sm:$0xff] }
 0x21f   : > { %3475 = vmatpush1.bf16.msra.mxu0 %v2192_v26  ;;  %2902 = vmatprep.subr.bf16.mxu1 %v1747_v47  ;;  %v1458_v26 = vld [vmem:[%s5238_s10 + $0x990] sm:$0xff]  ;;  %v1764_v47 = vunpack.c.l.s8.bf16 %v1234_v46 }
 0x220   : > { %3476 = vmatprep.subr.bf16.mxu0 %v2195_v27  ;;  %v2212_v27 = vunpack.c.l.s8.bf16 %v1458_v26 }
 0x222   : > { %2903 = vmatpush1.bf16.msra.mxu1 %v1746_v30  ;;  %v1237_v30 = vld [vmem:[%s5238_s10 + $0x2a8] sm:$0xff] }
 0x223   : > { %3477 = vmatpush1.bf16.msra.mxu0 %v2194_v31  ;;  %2904 = vmatprep.subr.bf16.mxu1 %v1749_v32  ;;  %v1461_v31 = vld [vmem:[%s5238_s10 + $0x9a8] sm:$0xff]  ;;  %v1766_v32 = vunpack.c.h.s8.bf16 %v1234_v46  ;;  %v1769_v34 = vunpack.c.l.s8.bf16 %v1237_v30  ;;  %v1771_v61 = vunpack.c.h.s8.bf16 %v1237_v30 }
 0x224   : > { %3478 = vmatprep.subr.bf16.mxu0 %v2197_v33  ;;  %v2214_v33 = vunpack.c.h.s8.bf16 %v1458_v26  ;;  %v2217_v35 = vunpack.c.l.s8.bf16 %v1461_v31  ;;  %v2219_v41 = vunpack.c.h.s8.bf16 %v1461_v31 }
 0x226   : > { %2905 = vmatpush1.bf16.msra.mxu1 %v1748_v38  ;;  %v1236_v38 = vld [vmem:[%s5238_s10 + $0x2a0] sm:$0xff] }
 0x227   : > { %3479 = vmatpush1.bf16.msra.mxu0 %v2196_v39  ;;  %2906 = vmatprep.subr.bf16.mxu1 %v1751_v60  ;;  %v1460_v39 = vld [vmem:[%s5238_s10 + $0x9a0] sm:$0xff]  ;;  %v1768_v60 = vunpack.c.l.s8.bf16 %v1236_v38 }
 0x228   : > { %3480 = vmatprep.subr.bf16.mxu0 %v2199_v40  ;;  %v2216_v40 = vunpack.c.l.s8.bf16 %v1460_v39 }
 0x22a   : > { %2907 = vmatpush1.bf16.msra.mxu1 %v1750_v42  ;;  %v1239_v42 = vld [vmem:[%s5238_s10 + $0x2b8] sm:$0xff] }
 0x22b   : > { %3481 = vmatpush1.bf16.msra.mxu0 %v2198_v43  ;;  %2908 = vmatprep.subr.bf16.mxu1 %v1753_v44  ;;  %v1463_v43 = vld [vmem:[%s5238_s10 + $0x9b8] sm:$0xff]  ;;  %v1770_v44 = vunpack.c.h.s8.bf16 %v1236_v38  ;;  %v1773_v48 = vunpack.c.l.s8.bf16 %v1239_v42  ;;  %v1775_v52 = vunpack.c.h.s8.bf16 %v1239_v42 }
 0x22c   : > { %3482 = vmatprep.subr.bf16.mxu0 %v2201_v45  ;;  %v2218_v45 = vunpack.c.h.s8.bf16 %v1460_v39  ;;  %v2221_v49 = vunpack.c.l.s8.bf16 %v1463_v43  ;;  %v2223_v53 = vunpack.c.h.s8.bf16 %v1463_v43 }
 0x22e   : > { %2909 = vmatpush1.bf16.msra.mxu1 %v1752_v0  ;;  %v1238_v0 = vld [vmem:[%s5238_s10 + $0x2b0] sm:$0xff] }
 0x22f   : > { %3483 = vmatpush1.bf16.msra.mxu0 %v2200_v50  ;;  %2910 = vmatprep.subr.bf16.mxu1 %v1755_v1  ;;  %v1462_v50 = vld [vmem:[%s5238_s10 + $0x9b0] sm:$0xff]  ;;  %v1772_v1 = vunpack.c.l.s8.bf16 %v1238_v0 }
 0x230   : > { %3484 = vmatprep.subr.bf16.mxu0 %v2203_v51  ;;  %v2220_v51 = vunpack.c.l.s8.bf16 %v1462_v50 }
 0x232   : > { %2911 = vmatpush1.bf16.msra.mxu1 %v1754_v54  ;;  %v1241_v54 = vld [vmem:[%s5238_s10 + $0x2c8] sm:$0xff] }
 0x233   : > { %3485 = vmatpush1.bf16.msra.mxu0 %v2202_v55  ;;  %2912 = vmatprep.subr.bf16.mxu1 %v1757_v56  ;;  %v1465_v55 = vld [vmem:[%s5238_s10 + $0x9c8] sm:$0xff]  ;;  %v1774_v56 = vunpack.c.h.s8.bf16 %v1238_v0  ;;  %v1777_v58 = vunpack.c.l.s8.bf16 %v1241_v54  ;;  %v1779_v23 = vunpack.c.h.s8.bf16 %v1241_v54  ;;  %v4001_v0 = vcombine.low %v5483_v12, %v5483_v12 }
 0x234   : > { %3486 = vmatprep.subr.bf16.mxu0 %v2205_v57  ;;  %v2222_v57 = vunpack.c.h.s8.bf16 %v1462_v50  ;;  %v2225_v59 = vunpack.c.l.s8.bf16 %v1465_v55  ;;  %v2227_v3 = vunpack.c.h.s8.bf16 %v1465_v55  ;;  %v4029_v50 = vcombine.low %v5488_v13, %v5488_v13  ;;  %v1251_v13 = vld [vmem:[%s5238_s10 + $0x318] sm:$0xff] }
 0x235   : > { %v1475_v55 = vld [vmem:[%s5238_s10 + $0xa18] sm:$0xff] }
 0x236   : > { %2913 = vmatpush1.bf16.msra.mxu1 %v1756_v62  ;;  %v1240_v62 = vld [vmem:[%s5238_s10 + $0x2c0] sm:$0xff] }
 0x237   : > { %3487 = vmatpush1.bf16.msra.mxu0 %v2204_v63  ;;  %2914 = vmatprep.subr.bf16.mxu1 %v1759_v22  ;;  %v1464_v63 = vld [vmem:[%s5238_s10 + $0x9c0] sm:$0xff]  ;;  %v1776_v22 = vunpack.c.l.s8.bf16 %v1240_v62 }
 0x238   : > { %3488 = vmatprep.subr.bf16.mxu0 %v2207_v2  ;;  %v2224_v2 = vunpack.c.l.s8.bf16 %v1464_v63 }
 0x23a   : > { %2915 = vmatpush1.bf16.msra.mxu1 %v1758_v4  ;;  %v1243_v4 = vld [vmem:[%s5238_s10 + $0x2d8] sm:$0xff] }
 0x23b   : > { %3489 = vmatpush1.bf16.msra.mxu0 %v2206_v5  ;;  %2925 = vmatprep.subr.bf16.mxu1 %v1761_v6  ;;  %v1467_v5 = vld [vmem:[%s5238_s10 + $0x9d8] sm:$0xff]  ;;  %v1778_v6 = vunpack.c.h.s8.bf16 %v1240_v62  ;;  %v1781_v8 = vunpack.c.l.s8.bf16 %v1243_v4  ;;  %v1797_v62 = vunpack.c.l.s8.bf16 %v1251_v13 }
 0x23c   : > { %3499 = vmatprep.subr.bf16.mxu0 %v2209_v7  ;;  %v2226_v7 = vunpack.c.h.s8.bf16 %v1464_v63  ;;  %v2229_v9 = vunpack.c.l.s8.bf16 %v1467_v5  ;;  %v2245_v63 = vunpack.c.l.s8.bf16 %v1475_v55 }
 0x23d   : > { %2917 = vmatmul.mubr.bf16.vlgmr.msra.gmra.mrb[0].mxu1 %v3999_v10  ;;  %v1242_v10 = vld [vmem:[%s5238_s10 + $0x2d0] sm:$0xff] }
 0x23e   : > { %3491 = vmatmul.mubr.bf16.vlgmr.msra.gmra.mrb[0].mxu0 %v4027_v11  ;;  %2926 = vmatpush1.bf16.msra.mxu1 %v1760_v14  ;;  %v1466_v11 = vld [vmem:[%s5238_s10 + $0x9d0] sm:$0xff]  ;;  %v1780_v14 = vunpack.c.l.s8.bf16 %v1242_v10 }
 0x23f   : > { %3500 = vmatpush1.bf16.msra.mxu0 %v2208_v15  ;;  %2927 = vmatprep.subr.bf16.mxu1 %v1763_v36  ;;  %v2228_v15 = vunpack.c.l.s8.bf16 %v1466_v11  ;;  %v1783_v36 = vunpack.c.h.s8.bf16 %v1243_v4  ;;  %v1799_v4 = vunpack.c.h.s8.bf16 %v1251_v13  ;;  %v1261_v13 = vld [vmem:[%s5238_s10 + $0x368] sm:$0xff] }
 0x240   : > { %3501 = vmatprep.subr.bf16.mxu0 %v2211_v16  ;;  %2957 = vmatprep.mubr.bf16.mxu1 %v4002_v18  ;;  %v2231_v16 = vunpack.c.h.s8.bf16 %v1467_v5  ;;  %v1782_v18 = vunpack.c.h.s8.bf16 %v1242_v10  ;;  %v2247_v5 = vunpack.c.h.s8.bf16 %v1475_v55  ;;  %v1485_v55 = vld [vmem:[%s5238_s10 + $0xa68] sm:$0xff] }
 0x241   : > { %3531 = vmatprep.mubr.bf16.mxu0 %v4030_v19  ;;  %v2230_v19 = vunpack.c.h.s8.bf16 %v1466_v11 }
 0x242   : > { %2928 = vmatpush1.bf16.msra.mxu1 %v1762_v20  ;;  %v1785_v20 = vunpack.c.l.s8.bf16 %v1245_v37 }
 0x243   : > { %3502 = vmatpush1.bf16.msra.mxu0 %v2210_v21  ;;  %2929 = vmatprep.subr.bf16.mxu1 %v1765_v24  ;;  %v2233_v21 = vunpack.c.l.s8.bf16 %v1469_v17  ;;  %v1244_v24 = vld [vmem:[%s5238_s10 + $0x2e0] sm:$0xff] }
 0x244   : > { %3503 = vmatprep.subr.bf16.mxu0 %v2213_v25  ;;  %v1468_v25 = vld [vmem:[%s5238_s10 + $0x9e0] sm:$0xff]  ;;  %v1784_v46 = vunpack.c.l.s8.bf16 %v1244_v24  ;;  %v1786_v30 = vunpack.c.h.s8.bf16 %v1244_v24 }
 0x245   : > { %v2232_v26 = vunpack.c.l.s8.bf16 %v1468_v25  ;;  %v2234_v31 = vunpack.c.h.s8.bf16 %v1468_v25 }
 0x246   : > { %2930 = vmatpush1.bf16.msra.mxu1 %v1764_v47  ;;  %v1787_v47 = vunpack.c.h.s8.bf16 %v1245_v37 }
 0x247   : > { %3504 = vmatpush1.bf16.msra.mxu0 %v2212_v27  ;;  %2931 = vmatprep.subr.bf16.mxu1 %v1767_v28  ;;  %v2235_v27 = vunpack.c.h.s8.bf16 %v1469_v17  ;;  %v1247_v28 = vld [vmem:[%s5238_s10 + $0x2f8] sm:$0xff] }
 0x248   : > { %3505 = vmatprep.subr.bf16.mxu0 %v2215_v29  ;;  %v1471_v29 = vld [vmem:[%s5238_s10 + $0x9f8] sm:$0xff] }
 0x24a   : > { %2932 = vmatpush1.bf16.msra.mxu1 %v1766_v32  ;;  %v1789_v32 = vunpack.c.l.s8.bf16 %v1247_v28 }
 0x24b   : > { %3506 = vmatpush1.bf16.msra.mxu0 %v2214_v33  ;;  %2933 = vmatprep.subr.bf16.mxu1 %v1769_v34  ;;  %v2237_v33 = vunpack.c.l.s8.bf16 %v1471_v29  ;;  %v1246_v34 = vld [vmem:[%s5238_s10 + $0x2f0] sm:$0xff] }
 0x24c   : > { %3507 = vmatprep.subr.bf16.mxu0 %v2217_v35  ;;  %v1470_v35 = vld [vmem:[%s5238_s10 + $0x9f0] sm:$0xff]  ;;  %v1788_v38 = vunpack.c.l.s8.bf16 %v1246_v34  ;;  %v1790_v42 = vunpack.c.h.s8.bf16 %v1246_v34 }
 0x24d   : > { %v2236_v39 = vunpack.c.l.s8.bf16 %v1470_v35  ;;  %v2238_v43 = vunpack.c.h.s8.bf16 %v1470_v35 }
 0x24e   : > { %2934 = vmatpush1.bf16.msra.mxu1 %v1768_v60  ;;  %v1791_v60 = vunpack.c.h.s8.bf16 %v1247_v28 }
 0x24f   : > { %3508 = vmatpush1.bf16.msra.mxu0 %v2216_v40  ;;  %2935 = vmatprep.subr.bf16.mxu1 %v1771_v61  ;;  %v2239_v40 = vunpack.c.h.s8.bf16 %v1471_v29  ;;  %v1249_v61 = vld [vmem:[%s5238_s10 + $0x308] sm:$0xff] }
 0x250   : > { %3509 = vmatprep.subr.bf16.mxu0 %v2219_v41  ;;  %v1473_v41 = vld [vmem:[%s5238_s10 + $0xa08] sm:$0xff]  ;;  %v1795_v12 = vunpack.c.h.s8.bf16 %v1249_v61 }
 0x251   : > { %v2243_v54 = vunpack.c.h.s8.bf16 %v1473_v41 }
 0x252   : > { %2936 = vmatpush1.bf16.msra.mxu1 %v1770_v44  ;;  %v1793_v44 = vunpack.c.l.s8.bf16 %v1249_v61 }
 0x253   : > { %3510 = vmatpush1.bf16.msra.mxu0 %v2218_v45  ;;  %2937 = vmatprep.subr.bf16.mxu1 %v1773_v48  ;;  %v2241_v45 = vunpack.c.l.s8.bf16 %v1473_v41  ;;  %v1248_v48 = vld [vmem:[%s5238_s10 + $0x300] sm:$0xff] }
 0x254   : > { %3511 = vmatprep.subr.bf16.mxu0 %v2221_v49  ;;  %v1472_v49 = vld [vmem:[%s5238_s10 + $0xa00] sm:$0xff] }
 0x256   : > { %2938 = vmatpush1.bf16.msra.mxu1 %v1772_v1  ;;  %v5533_v1 = vld [vmem:[%s5947_s0 + $0x30] sm:$0xff] }
 0x257   : > { %3512 = vmatpush1.bf16.msra.mxu0 %v2220_v51  ;;  %2939 = vmatprep.subr.bf16.mxu1 %v1775_v52  ;;  %v5538_v51 = vld [vmem:[%s5947_s0 + $0xa0] sm:$0xff]  ;;  %v1792_v52 = vunpack.c.l.s8.bf16 %v1248_v48 }
 0x258   : > { %3513 = vmatprep.subr.bf16.mxu0 %v2223_v53  ;;  %v2240_v53 = vunpack.c.l.s8.bf16 %v1472_v49 }
 0x25a   : > { %2940 = vmatpush1.bf16.msra.mxu1 %v1774_v56  ;;  %v4004_v56 = vcombine.high %v5533_v1, %v5533_v1 }
 0x25b   : > { %3514 = vmatpush1.bf16.msra.mxu0 %v2222_v57  ;;  %2941 = vmatprep.subr.bf16.mxu1 %v1777_v58  ;;  %v4032_v57 = vcombine.high %v5538_v51, %v5538_v51  ;;  %v1794_v58 = vunpack.c.h.s8.bf16 %v1248_v48 }
 0x25c   : > { %3515 = vmatprep.subr.bf16.mxu0 %v2225_v59  ;;  %v2242_v59 = vunpack.c.h.s8.bf16 %v1472_v49 }
 0x25e   : > { %2942 = vmatpush1.bf16.msra.mxu1 %v1776_v22  ;;  %v1250_v22 = vld [vmem:[%s5238_s10 + $0x310] sm:$0xff] }
 0x25f   : > { %3516 = vmatpush1.bf16.msra.mxu0 %v2224_v2  ;;  %2943 = vmatprep.subr.bf16.mxu1 %v1779_v23  ;;  %v1474_v2 = vld [vmem:[%s5238_s10 + $0xa10] sm:$0xff]  ;;  %v1796_v23 = vunpack.c.l.s8.bf16 %v1250_v22 }
 0x260   : > { %3517 = vmatprep.subr.bf16.mxu0 %v2227_v3  ;;  %v2244_v3 = vunpack.c.l.s8.bf16 %v1474_v2 }
 0x262   : > { %2944 = vmatpush1.bf16.msra.mxu1 %v1778_v6  ;;  %v1253_v6 = vld [vmem:[%s5238_s10 + $0x328] sm:$0xff] }
 0x263   : > { %3518 = vmatpush1.bf16.msra.mxu0 %v2226_v7  ;;  %2945 = vmatprep.subr.bf16.mxu1 %v1781_v8  ;;  %v1477_v7 = vld [vmem:[%s5238_s10 + $0xa28] sm:$0xff]  ;;  %v1798_v8 = vunpack.c.h.s8.bf16 %v1250_v22  ;;  %v1801_v10 = vunpack.c.l.s8.bf16 %v1253_v6  ;;  %v1803_v37 = vunpack.c.h.s8.bf16 %v1253_v6 }
 0x264   : > { %3519 = vmatprep.subr.bf16.mxu0 %v2229_v9  ;;  %v2246_v9 = vunpack.c.h.s8.bf16 %v1474_v2  ;;  %v2249_v11 = vunpack.c.l.s8.bf16 %v1477_v7  ;;  %v2251_v17 = vunpack.c.h.s8.bf16 %v1477_v7 }
 0x266   : > { %2946 = vmatpush1.bf16.msra.mxu1 %v1780_v14  ;;  %v1252_v14 = vld [vmem:[%s5238_s10 + $0x320] sm:$0xff] }
 0x267   : > { %3520 = vmatpush1.bf16.msra.mxu0 %v2228_v15  ;;  %2947 = vmatprep.subr.bf16.mxu1 %v1783_v36  ;;  %v1476_v15 = vld [vmem:[%s5238_s10 + $0xa20] sm:$0xff]  ;;  %v1800_v36 = vunpack.c.l.s8.bf16 %v1252_v14 }
 0x268   : > { %3521 = vmatprep.subr.bf16.mxu0 %v2231_v16  ;;  %v2248_v16 = vunpack.c.l.s8.bf16 %v1476_v15 }
 0x26a   : > { %2948 = vmatpush1.bf16.msra.mxu1 %v1782_v18  ;;  %v1255_v18 = vld [vmem:[%s5238_s10 + $0x338] sm:$0xff] }
 0x26b   : > { %3522 = vmatpush1.bf16.msra.mxu0 %v2230_v19  ;;  %2949 = vmatprep.subr.bf16.mxu1 %v1785_v20  ;;  %v1479_v19 = vld [vmem:[%s5238_s10 + $0xa38] sm:$0xff]  ;;  %v1802_v20 = vunpack.c.h.s8.bf16 %v1252_v14  ;;  %v1805_v24 = vunpack.c.l.s8.bf16 %v1255_v18  ;;  %v1807_v28 = vunpack.c.h.s8.bf16 %v1255_v18 }
 0x26c   : > { %3523 = vmatprep.subr.bf16.mxu0 %v2233_v21  ;;  %v2250_v21 = vunpack.c.h.s8.bf16 %v1476_v15  ;;  %v2253_v25 = vunpack.c.l.s8.bf16 %v1479_v19  ;;  %v2255_v29 = vunpack.c.h.s8.bf16 %v1479_v19 }
 0x26e   : > { %2950 = vmatpush1.bf16.msra.mxu1 %v1784_v46  ;;  %v1254_v46 = vld [vmem:[%s5238_s10 + $0x330] sm:$0xff] }
 0x26f   : > { %3524 = vmatpush1.bf16.msra.mxu0 %v2232_v26  ;;  %2951 = vmatprep.subr.bf16.mxu1 %v1787_v47  ;;  %v1478_v26 = vld [vmem:[%s5238_s10 + $0xa30] sm:$0xff]  ;;  %v1804_v47 = vunpack.c.l.s8.bf16 %v1254_v46 }
 0x270   : > { %3525 = vmatprep.subr.bf16.mxu0 %v2235_v27  ;;  %v2252_v27 = vunpack.c.l.s8.bf16 %v1478_v26 }
 0x272   : > { %2952 = vmatpush1.bf16.msra.mxu1 %v1786_v30  ;;  %v1257_v30 = vld [vmem:[%s5238_s10 + $0x348] sm:$0xff] }
 0x273   : > { %3526 = vmatpush1.bf16.msra.mxu0 %v2234_v31  ;;  %2953 = vmatprep.subr.bf16.mxu1 %v1789_v32  ;;  %v1481_v31 = vld [vmem:[%s5238_s10 + $0xa48] sm:$0xff]  ;;  %v1806_v32 = vunpack.c.h.s8.bf16 %v1254_v46  ;;  %v1809_v34 = vunpack.c.l.s8.bf16 %v1257_v30  ;;  %v1811_v61 = vunpack.c.h.s8.bf16 %v1257_v30  ;;  %v4003_v46 = vcombine.low %v5533_v1, %v5533_v1 }
 0x274   : > { %3527 = vmatprep.subr.bf16.mxu0 %v2237_v33  ;;  %v2254_v33 = vunpack.c.h.s8.bf16 %v1478_v26  ;;  %v2257_v35 = vunpack.c.l.s8.bf16 %v1481_v31  ;;  %v2259_v41 = vunpack.c.h.s8.bf16 %v1481_v31  ;;  %v4031_v26 = vcombine.low %v5538_v51, %v5538_v51  ;;  %v1267_v51 = vld [vmem:[%s5238_s10 + $0x398] sm:$0xff] }
 0x275   : > { %v1491_v31 = vld [vmem:[%s5238_s10 + $0xa98] sm:$0xff] }
 0x276   : > { %2954 = vmatpush1.bf16.msra.mxu1 %v1788_v38  ;;  %v1256_v38 = vld [vmem:[%s5238_s10 + $0x340] sm:$0xff] }
 0x277   : > { %3528 = vmatpush1.bf16.msra.mxu0 %v2236_v39  ;;  %2955 = vmatprep.subr.bf16.mxu1 %v1791_v60  ;;  %v1480_v39 = vld [vmem:[%s5238_s10 + $0xa40] sm:$0xff]  ;;  %v1808_v60 = vunpack.c.l.s8.bf16 %v1256_v38 }
 0x278   : > { %3529 = vmatprep.subr.bf16.mxu0 %v2239_v40  ;;  %v2256_v40 = vunpack.c.l.s8.bf16 %v1480_v39 }
 0x27a   : > { %2956 = vmatpush1.bf16.msra.mxu1 %v1790_v42  ;;  %v1259_v42 = vld [vmem:[%s5238_s10 + $0x358] sm:$0xff] }
 0x27b   : > { %3530 = vmatpush1.bf16.msra.mxu0 %v2238_v43  ;;  %2966 = vmatprep.subr.bf16.mxu1 %v1793_v44  ;;  %v1483_v43 = vld [vmem:[%s5238_s10 + $0xa58] sm:$0xff]  ;;  %v1810_v44 = vunpack.c.h.s8.bf16 %v1256_v38  ;;  %v1813_v48 = vunpack.c.l.s8.bf16 %v1259_v42  ;;  %v1829_v38 = vunpack.c.l.s8.bf16 %v1267_v51 }
 0x27c   : > { %3540 = vmatprep.subr.bf16.mxu0 %v2241_v45  ;;  %v2258_v45 = vunpack.c.h.s8.bf16 %v1480_v39  ;;  %v2261_v49 = vunpack.c.l.s8.bf16 %v1483_v43  ;;  %v2277_v39 = vunpack.c.l.s8.bf16 %v1491_v31 }
 0x27d   : > { %2958 = vmatmul.mubr.bf16.vlgmr.msra.gmra.mrb[0].mxu1 %v4001_v0  ;;  %v1258_v0 = vld [vmem:[%s5238_s10 + $0x350] sm:$0xff] }
 0x27e   : > { %3532 = vmatmul.mubr.bf16.vlgmr.msra.gmra.mrb[0].mxu0 %v4029_v50  ;;  %2967 = vmatpush1.bf16.msra.mxu1 %v1792_v52  ;;  %v1482_v50 = vld [vmem:[%s5238_s10 + $0xa50] sm:$0xff]  ;;  %v1812_v52 = vunpack.c.l.s8.bf16 %v1258_v0 }
 0x27f   : > { %3541 = vmatpush1.bf16.msra.mxu0 %v2240_v53  ;;  %2968 = vmatprep.subr.bf16.mxu1 %v1795_v12  ;;  %v2260_v53 = vunpack.c.l.s8.bf16 %v1482_v50  ;;  %v1815_v12 = vunpack.c.h.s8.bf16 %v1259_v42  ;;  %v1831_v42 = vunpack.c.h.s8.bf16 %v1267_v51  ;;  %v1277_v51 = vld [vmem:[%s5238_s10 + $0x3e8] sm:$0xff] }
 0x280   : > { %3542 = vmatprep.subr.bf16.mxu0 %v2243_v54  ;;  %2998 = vmatprep.mubr.bf16.mxu1 %v4004_v56  ;;  %v2263_v54 = vunpack.c.h.s8.bf16 %v1483_v43  ;;  %v1814_v56 = vunpack.c.h.s8.bf16 %v1258_v0  ;;  %v2279_v43 = vunpack.c.h.s8.bf16 %v1491_v31  ;;  %v1501_v31 = vld [vmem:[%s5238_s10 + $0xae8] sm:$0xff] }
 0x281   : > { %3572 = vmatprep.mubr.bf16.mxu0 %v4032_v57  ;;  %v2262_v57 = vunpack.c.h.s8.bf16 %v1482_v50 }
 0x282   : > { %2969 = vmatpush1.bf16.msra.mxu1 %v1794_v58  ;;  %v1817_v58 = vunpack.c.l.s8.bf16 %v1261_v13 }
 0x283   : > { %3543 = vmatpush1.bf16.msra.mxu0 %v2242_v59  ;;  %2970 = vmatprep.subr.bf16.mxu1 %v1797_v62  ;;  %v2265_v59 = vunpack.c.l.s8.bf16 %v1485_v55  ;;  %v1260_v62 = vld [vmem:[%s5238_s10 + $0x360] sm:$0xff] }
 0x284   : > { %3544 = vmatprep.subr.bf16.mxu0 %v2245_v63  ;;  %v1484_v63 = vld [vmem:[%s5238_s10 + $0xa60] sm:$0xff]  ;;  %v1816_v22 = vunpack.c.l.s8.bf16 %v1260_v62  ;;  %v1818_v6 = vunpack.c.h.s8.bf16 %v1260_v62 }
 0x285   : > { %v2264_v2 = vunpack.c.l.s8.bf16 %v1484_v63  ;;  %v2266_v7 = vunpack.c.h.s8.bf16 %v1484_v63 }
 0x286   : > { %2971 = vmatpush1.bf16.msra.mxu1 %v1796_v23  ;;  %v1819_v23 = vunpack.c.h.s8.bf16 %v1261_v13 }
 0x287   : > { %3545 = vmatpush1.bf16.msra.mxu0 %v2244_v3  ;;  %2972 = vmatprep.subr.bf16.mxu1 %v1799_v4  ;;  %v2267_v3 = vunpack.c.h.s8.bf16 %v1485_v55  ;;  %v1263_v4 = vld [vmem:[%s5238_s10 + $0x378] sm:$0xff] }
 0x288   : > { %3546 = vmatprep.subr.bf16.mxu0 %v2247_v5  ;;  %v1487_v5 = vld [vmem:[%s5238_s10 + $0xa78] sm:$0xff] }
 0x28a   : > { %2973 = vmatpush1.bf16.msra.mxu1 %v1798_v8  ;;  %v1821_v8 = vunpack.c.l.s8.bf16 %v1263_v4 }
 0x28b   : > { %3547 = vmatpush1.bf16.msra.mxu0 %v2246_v9  ;;  %2974 = vmatprep.subr.bf16.mxu1 %v1801_v10  ;;  %v2269_v9 = vunpack.c.l.s8.bf16 %v1487_v5  ;;  %v1262_v10 = vld [vmem:[%s5238_s10 + $0x370] sm:$0xff] }
 0x28c   : > { %3548 = vmatprep.subr.bf16.mxu0 %v2249_v11  ;;  %v1486_v11 = vld [vmem:[%s5238_s10 + $0xa70] sm:$0xff]  ;;  %v1820_v14 = vunpack.c.l.s8.bf16 %v1262_v10  ;;  %v1822_v18 = vunpack.c.h.s8.bf16 %v1262_v10 }
 0x28d   : > { %v2268_v15 = vunpack.c.l.s8.bf16 %v1486_v11  ;;  %v2270_v19 = vunpack.c.h.s8.bf16 %v1486_v11 }
 0x28e   : > { %2975 = vmatpush1.bf16.msra.mxu1 %v1800_v36  ;;  %v1823_v36 = vunpack.c.h.s8.bf16 %v1263_v4 }
 0x28f   : > { %3549 = vmatpush1.bf16.msra.mxu0 %v2248_v16  ;;  %2976 = vmatprep.subr.bf16.mxu1 %v1803_v37  ;;  %v2271_v16 = vunpack.c.h.s8.bf16 %v1487_v5  ;;  %v1265_v37 = vld [vmem:[%s5238_s10 + $0x388] sm:$0xff] }
 0x290   : > { %3550 = vmatprep.subr.bf16.mxu0 %v2251_v17  ;;  %v1489_v17 = vld [vmem:[%s5238_s10 + $0xa88] sm:$0xff]  ;;  %v1827_v1 = vunpack.c.h.s8.bf16 %v1265_v37 }
 0x291   : > { %v2275_v30 = vunpack.c.h.s8.bf16 %v1489_v17 }
 0x292   : > { %2977 = vmatpush1.bf16.msra.mxu1 %v1802_v20  ;;  %v1825_v20 = vunpack.c.l.s8.bf16 %v1265_v37 }
 0x293   : > { %3551 = vmatpush1.bf16.msra.mxu0 %v2250_v21  ;;  %2978 = vmatprep.subr.bf16.mxu1 %v1805_v24  ;;  %v2273_v21 = vunpack.c.l.s8.bf16 %v1489_v17  ;;  %v1264_v24 = vld [vmem:[%s5238_s10 + $0x380] sm:$0xff] }
 0x294   : > { %3552 = vmatprep.subr.bf16.mxu0 %v2253_v25  ;;  %v1488_v25 = vld [vmem:[%s5238_s10 + $0xa80] sm:$0xff] }
 0x296   : > { %2979 = vmatpush1.bf16.msra.mxu1 %v1804_v47  ;;  %v5583_v47 = vld [vmem:[%s5947_s0 + $0x38] sm:$0xff] }
 0x297   : > { %3553 = vmatpush1.bf16.msra.mxu0 %v2252_v27  ;;  %2980 = vmatprep.subr.bf16.mxu1 %v1807_v28  ;;  %v5588_v27 = vld [vmem:[%s5947_s0 + $0xa8] sm:$0xff]  ;;  %v1824_v28 = vunpack.c.l.s8.bf16 %v1264_v24 }
 0x298   : > { %3554 = vmatprep.subr.bf16.mxu0 %v2255_v29  ;;  %v2272_v29 = vunpack.c.l.s8.bf16 %v1488_v25 }
 0x29a   : > { %2981 = vmatpush1.bf16.msra.mxu1 %v1806_v32  ;;  %v4006_v32 = vcombine.high %v5583_v47, %v5583_v47 }
 0x29b   : > { %3555 = vmatpush1.bf16.msra.mxu0 %v2254_v33  ;;  %2982 = vmatprep.subr.bf16.mxu1 %v1809_v34  ;;  %v4034_v33 = vcombine.high %v5588_v27, %v5588_v27  ;;  %v1826_v34 = vunpack.c.h.s8.bf16 %v1264_v24 }
 0x29c   : > { %3556 = vmatprep.subr.bf16.mxu0 %v2257_v35  ;;  %v2274_v35 = vunpack.c.h.s8.bf16 %v1488_v25 }
 0x29e   : > { %2983 = vmatpush1.bf16.msra.mxu1 %v1808_v60  ;;  %v1266_v60 = vld [vmem:[%s5238_s10 + $0x390] sm:$0xff] }
 0x29f   : > { %3557 = vmatpush1.bf16.msra.mxu0 %v2256_v40  ;;  %2984 = vmatprep.subr.bf16.mxu1 %v1811_v61  ;;  %v1490_v40 = vld [vmem:[%s5238_s10 + $0xa90] sm:$0xff]  ;;  %v1828_v61 = vunpack.c.l.s8.bf16 %v1266_v60 }
 0x2a0   : > { %3558 = vmatprep.subr.bf16.mxu0 %v2259_v41  ;;  %v2276_v41 = vunpack.c.l.s8.bf16 %v1490_v40 }
 0x2a2   : > { %2985 = vmatpush1.bf16.msra.mxu1 %v1810_v44  ;;  %v1269_v44 = vld [vmem:[%s5238_s10 + $0x3a8] sm:$0xff] }
 0x2a3   : > { %3559 = vmatpush1.bf16.msra.mxu0 %v2258_v45  ;;  %2986 = vmatprep.subr.bf16.mxu1 %v1813_v48  ;;  %v1493_v45 = vld [vmem:[%s5238_s10 + $0xaa8] sm:$0xff]  ;;  %v1830_v48 = vunpack.c.h.s8.bf16 %v1266_v60  ;;  %v1833_v0 = vunpack.c.l.s8.bf16 %v1269_v44  ;;  %v1835_v13 = vunpack.c.h.s8.bf16 %v1269_v44 }
 0x2a4   : > { %3560 = vmatprep.subr.bf16.mxu0 %v2261_v49  ;;  %v2278_v49 = vunpack.c.h.s8.bf16 %v1490_v40  ;;  %v2281_v50 = vunpack.c.l.s8.bf16 %v1493_v45  ;;  %v2283_v55 = vunpack.c.h.s8.bf16 %v1493_v45 }
 0x2a6   : > { %2987 = vmatpush1.bf16.msra.mxu1 %v1812_v52  ;;  %v1268_v52 = vld [vmem:[%s5238_s10 + $0x3a0] sm:$0xff] }
 0x2a7   : > { %3561 = vmatpush1.bf16.msra.mxu0 %v2260_v53  ;;  %2988 = vmatprep.subr.bf16.mxu1 %v1815_v12  ;;  %v1492_v53 = vld [vmem:[%s5238_s10 + $0xaa0] sm:$0xff]  ;;  %v1832_v12 = vunpack.c.l.s8.bf16 %v1268_v52 }
 0x2a8   : > { %3562 = vmatprep.subr.bf16.mxu0 %v2263_v54  ;;  %v2280_v54 = vunpack.c.l.s8.bf16 %v1492_v53 }
 0x2aa   : > { %2989 = vmatpush1.bf16.msra.mxu1 %v1814_v56  ;;  %v1271_v56 = vld [vmem:[%s5238_s10 + $0x3b8] sm:$0xff] }
 0x2ab   : > { %3563 = vmatpush1.bf16.msra.mxu0 %v2262_v57  ;;  %2990 = vmatprep.subr.bf16.mxu1 %v1817_v58  ;;  %v1495_v57 = vld [vmem:[%s5238_s10 + $0xab8] sm:$0xff]  ;;  %v1834_v58 = vunpack.c.h.s8.bf16 %v1268_v52  ;;  %v1837_v62 = vunpack.c.l.s8.bf16 %v1271_v56  ;;  %v1839_v4 = vunpack.c.h.s8.bf16 %v1271_v56 }
 0x2ac   : > { %3564 = vmatprep.subr.bf16.mxu0 %v2265_v59  ;;  %v2282_v59 = vunpack.c.h.s8.bf16 %v1492_v53  ;;  %v2285_v63 = vunpack.c.l.s8.bf16 %v1495_v57  ;;  %v2287_v5 = vunpack.c.h.s8.bf16 %v1495_v57 }
 0x2ae   : > { %2991 = vmatpush1.bf16.msra.mxu1 %v1816_v22  ;;  %v1270_v22 = vld [vmem:[%s5238_s10 + $0x3b0] sm:$0xff] }
 0x2af   : > { %3565 = vmatpush1.bf16.msra.mxu0 %v2264_v2  ;;  %2992 = vmatprep.subr.bf16.mxu1 %v1819_v23  ;;  %v1494_v2 = vld [vmem:[%s5238_s10 + $0xab0] sm:$0xff]  ;;  %v1836_v23 = vunpack.c.l.s8.bf16 %v1270_v22 }
 0x2b0   : > { %3566 = vmatprep.subr.bf16.mxu0 %v2267_v3  ;;  %v2284_v3 = vunpack.c.l.s8.bf16 %v1494_v2 }
 0x2b2   : > { %2993 = vmatpush1.bf16.msra.mxu1 %v1818_v6  ;;  %v1273_v6 = vld [vmem:[%s5238_s10 + $0x3c8] sm:$0xff] }
 0x2b3   : > { %3567 = vmatpush1.bf16.msra.mxu0 %v2266_v7  ;;  %2994 = vmatprep.subr.bf16.mxu1 %v1821_v8  ;;  %v1497_v7 = vld [vmem:[%s5238_s10 + $0xac8] sm:$0xff]  ;;  %v1838_v8 = vunpack.c.h.s8.bf16 %v1270_v22  ;;  %v1841_v10 = vunpack.c.l.s8.bf16 %v1273_v6  ;;  %v1843_v37 = vunpack.c.h.s8.bf16 %v1273_v6  ;;  %v4005_v22 = vcombine.low %v5583_v47, %v5583_v47 }
 0x2b4   : > { %3568 = vmatprep.subr.bf16.mxu0 %v2269_v9  ;;  %v2286_v9 = vunpack.c.h.s8.bf16 %v1494_v2  ;;  %v2289_v11 = vunpack.c.l.s8.bf16 %v1497_v7  ;;  %v2291_v17 = vunpack.c.h.s8.bf16 %v1497_v7  ;;  %v4033_v2 = vcombine.low %v5588_v27, %v5588_v27  ;;  %v1283_v27 = vld [vmem:[%s5238_s10 + $0x418] sm:$0xff] }
 0x2b5   : > { %v1507_v7 = vld [vmem:[%s5238_s10 + $0xb18] sm:$0xff] }
 0x2b6   : > { %2995 = vmatpush1.bf16.msra.mxu1 %v1820_v14  ;;  %v1272_v14 = vld [vmem:[%s5238_s10 + $0x3c0] sm:$0xff] }
 0x2b7   : > { %3569 = vmatpush1.bf16.msra.mxu0 %v2268_v15  ;;  %2996 = vmatprep.subr.bf16.mxu1 %v1823_v36  ;;  %v1496_v15 = vld [vmem:[%s5238_s10 + $0xac0] sm:$0xff]  ;;  %v1840_v36 = vunpack.c.l.s8.bf16 %v1272_v14 }
 0x2b8   : > { %3570 = vmatprep.subr.bf16.mxu0 %v2271_v16  ;;  %v2288_v16 = vunpack.c.l.s8.bf16 %v1496_v15 }
 0x2ba   : > { %2997 = vmatpush1.bf16.msra.mxu1 %v1822_v18  ;;  %v1275_v18 = vld [vmem:[%s5238_s10 + $0x3d8] sm:$0xff] }
 0x2bb   : > { %3571 = vmatpush1.bf16.msra.mxu0 %v2270_v19  ;;  %3007 = vmatprep.subr.bf16.mxu1 %v1825_v20  ;;  %v1499_v19 = vld [vmem:[%s5238_s10 + $0xad8] sm:$0xff]  ;;  %v1842_v20 = vunpack.c.h.s8.bf16 %v1272_v14  ;;  %v1845_v24 = vunpack.c.l.s8.bf16 %v1275_v18  ;;  %v1861_v14 = vunpack.c.l.s8.bf16 %v1283_v27 }
 0x2bc   : > { %3581 = vmatprep.subr.bf16.mxu0 %v2273_v21  ;;  %v2290_v21 = vunpack.c.h.s8.bf16 %v1496_v15  ;;  %v2293_v25 = vunpack.c.l.s8.bf16 %v1499_v19  ;;  %v2309_v15 = vunpack.c.l.s8.bf16 %v1507_v7 }
 0x2bd   : > { %2999 = vmatmul.mubr.bf16.vlgmr.msra.gmra.mrb[0].mxu1 %v4003_v46  ;;  %v1274_v46 = vld [vmem:[%s5238_s10 + $0x3d0] sm:$0xff] }
 0x2be   : > { %3573 = vmatmul.mubr.bf16.vlgmr.msra.gmra.mrb[0].mxu0 %v4031_v26  ;;  %3008 = vmatpush1.bf16.msra.mxu1 %v1824_v28  ;;  %v1498_v26 = vld [vmem:[%s5238_s10 + $0xad0] sm:$0xff]  ;;  %v1844_v28 = vunpack.c.l.s8.bf16 %v1274_v46 }
 0x2bf   : > { %3582 = vmatpush1.bf16.msra.mxu0 %v2272_v29  ;;  %3009 = vmatprep.subr.bf16.mxu1 %v1827_v1  ;;  %v2292_v29 = vunpack.c.l.s8.bf16 %v1498_v26  ;;  %v1847_v1 = vunpack.c.h.s8.bf16 %v1275_v18  ;;  %v1863_v18 = vunpack.c.h.s8.bf16 %v1283_v27  ;;  %v1293_v27 = vld [vmem:[%s5238_s10 + $0x468] sm:$0xff] }
 0x2c0   : > { %3583 = vmatprep.subr.bf16.mxu0 %v2275_v30  ;;  %3039 = vmatprep.mubr.bf16.mxu1 %v4006_v32  ;;  %v2295_v30 = vunpack.c.h.s8.bf16 %v1499_v19  ;;  %v1846_v32 = vunpack.c.h.s8.bf16 %v1274_v46  ;;  %v2311_v19 = vunpack.c.h.s8.bf16 %v1507_v7  ;;  %v1517_v7 = vld [vmem:[%s5238_s10 + $0xb68] sm:$0xff] }
 0x2c1   : > { %3613 = vmatprep.mubr.bf16.mxu0 %v4034_v33  ;;  %v2294_v33 = vunpack.c.h.s8.bf16 %v1498_v26 }
 0x2c2   : > { %3010 = vmatpush1.bf16.msra.mxu1 %v1826_v34  ;;  %v1849_v34 = vunpack.c.l.s8.bf16 %v1277_v51 }
 0x2c3   : > { %3584 = vmatpush1.bf16.msra.mxu0 %v2274_v35  ;;  %3011 = vmatprep.subr.bf16.mxu1 %v1829_v38  ;;  %v2297_v35 = vunpack.c.l.s8.bf16 %v1501_v31  ;;  %v1276_v38 = vld [vmem:[%s5238_s10 + $0x3e0] sm:$0xff] }
 0x2c4   : > { %3585 = vmatprep.subr.bf16.mxu0 %v2277_v39  ;;  %v1500_v39 = vld [vmem:[%s5238_s10 + $0xae0] sm:$0xff]  ;;  %v1848_v60 = vunpack.c.l.s8.bf16 %v1276_v38  ;;  %v1850_v44 = vunpack.c.h.s8.bf16 %v1276_v38 }
 0x2c5   : > { %v2296_v40 = vunpack.c.l.s8.bf16 %v1500_v39  ;;  %v2298_v45 = vunpack.c.h.s8.bf16 %v1500_v39 }
 0x2c6   : > { %3012 = vmatpush1.bf16.msra.mxu1 %v1828_v61  ;;  %v1851_v61 = vunpack.c.h.s8.bf16 %v1277_v51 }
 0x2c7   : > { %3586 = vmatpush1.bf16.msra.mxu0 %v2276_v41  ;;  %3013 = vmatprep.subr.bf16.mxu1 %v1831_v42  ;;  %v2299_v41 = vunpack.c.h.s8.bf16 %v1501_v31  ;;  %v1279_v42 = vld [vmem:[%s5238_s10 + $0x3f8] sm:$0xff] }
 0x2c8   : > { %3587 = vmatprep.subr.bf16.mxu0 %v2279_v43  ;;  %v1503_v43 = vld [vmem:[%s5238_s10 + $0xaf8] sm:$0xff] }
 0x2ca   : > { %3014 = vmatpush1.bf16.msra.mxu1 %v1830_v48  ;;  %v1853_v48 = vunpack.c.l.s8.bf16 %v1279_v42 }
 0x2cb   : > { %3588 = vmatpush1.bf16.msra.mxu0 %v2278_v49  ;;  %3015 = vmatprep.subr.bf16.mxu1 %v1833_v0  ;;  %v2301_v49 = vunpack.c.l.s8.bf16 %v1503_v43  ;;  %v1278_v0 = vld [vmem:[%s5238_s10 + $0x3f0] sm:$0xff] }
 0x2cc   : > { %3589 = vmatprep.subr.bf16.mxu0 %v2281_v50  ;;  %v1502_v50 = vld [vmem:[%s5238_s10 + $0xaf0] sm:$0xff]  ;;  %v1852_v52 = vunpack.c.l.s8.bf16 %v1278_v0  ;;  %v1854_v56 = vunpack.c.h.s8.bf16 %v1278_v0 }
 0x2cd   : > { %v2300_v53 = vunpack.c.l.s8.bf16 %v1502_v50  ;;  %v2302_v57 = vunpack.c.h.s8.bf16 %v1502_v50 }
 0x2ce   : > { %3016 = vmatpush1.bf16.msra.mxu1 %v1832_v12  ;;  %v1855_v12 = vunpack.c.h.s8.bf16 %v1279_v42 }
 0x2cf   : > { %3590 = vmatpush1.bf16.msra.mxu0 %v2280_v54  ;;  %3017 = vmatprep.subr.bf16.mxu1 %v1835_v13  ;;  %v2303_v54 = vunpack.c.h.s8.bf16 %v1503_v43  ;;  %v1281_v13 = vld [vmem:[%s5238_s10 + $0x408] sm:$0xff] }
 0x2d0   : > { %3591 = vmatprep.subr.bf16.mxu0 %v2283_v55  ;;  %v1505_v55 = vld [vmem:[%s5238_s10 + $0xb08] sm:$0xff]  ;;  %v1859_v47 = vunpack.c.h.s8.bf16 %v1281_v13 }
 0x2d1   : > { %v2307_v6 = vunpack.c.h.s8.bf16 %v1505_v55 }
 0x2d2   : > { %3018 = vmatpush1.bf16.msra.mxu1 %v1834_v58  ;;  %v1857_v58 = vunpack.c.l.s8.bf16 %v1281_v13 }
 0x2d3   : > { %3592 = vmatpush1.bf16.msra.mxu0 %v2282_v59  ;;  %3019 = vmatprep.subr.bf16.mxu1 %v1837_v62  ;;  %v2305_v59 = vunpack.c.l.s8.bf16 %v1505_v55  ;;  %v1280_v62 = vld [vmem:[%s5238_s10 + $0x400] sm:$0xff] }
 0x2d4   : > { %3593 = vmatprep.subr.bf16.mxu0 %v2285_v63  ;;  %v1504_v63 = vld [vmem:[%s5238_s10 + $0xb00] sm:$0xff] }
 0x2d6   : > { %3020 = vmatpush1.bf16.msra.mxu1 %v1836_v23  ;;  %v5633_v23 = vld [vmem:[%s5947_s0 + $0x40] sm:$0xff] }
 0x2d7   : > { %3594 = vmatpush1.bf16.msra.mxu0 %v2284_v3  ;;  %3021 = vmatprep.subr.bf16.mxu1 %v1839_v4  ;;  %v5638_v3 = vld [vmem:[%s5947_s0 + $0xb0] sm:$0xff]  ;;  %v1856_v4 = vunpack.c.l.s8.bf16 %v1280_v62 }
 0x2d8   : > { %3595 = vmatprep.subr.bf16.mxu0 %v2287_v5  ;;  %v2304_v5 = vunpack.c.l.s8.bf16 %v1504_v63 }
 0x2da   : > { %3022 = vmatpush1.bf16.msra.mxu1 %v1838_v8  ;;  %v4008_v8 = vcombine.high %v5633_v23, %v5633_v23 }
 0x2db   : > { %3596 = vmatpush1.bf16.msra.mxu0 %v2286_v9  ;;  %3023 = vmatprep.subr.bf16.mxu1 %v1841_v10  ;;  %v4036_v9 = vcombine.high %v5638_v3, %v5638_v3  ;;  %v1858_v10 = vunpack.c.h.s8.bf16 %v1280_v62 }
 0x2dc   : > { %3597 = vmatprep.subr.bf16.mxu0 %v2289_v11  ;;  %v2306_v11 = vunpack.c.h.s8.bf16 %v1504_v63 }
 0x2de   : > { %3024 = vmatpush1.bf16.msra.mxu1 %v1840_v36  ;;  %v1282_v36 = vld [vmem:[%s5238_s10 + $0x410] sm:$0xff] }
 0x2df   : > { %3598 = vmatpush1.bf16.msra.mxu0 %v2288_v16  ;;  %3025 = vmatprep.subr.bf16.mxu1 %v1843_v37  ;;  %v1506_v16 = vld [vmem:[%s5238_s10 + $0xb10] sm:$0xff]  ;;  %v1860_v37 = vunpack.c.l.s8.bf16 %v1282_v36 }
 0x2e0   : > { %3599 = vmatprep.subr.bf16.mxu0 %v2291_v17  ;;  %v2308_v17 = vunpack.c.l.s8.bf16 %v1506_v16 }
 0x2e2   : > { %3026 = vmatpush1.bf16.msra.mxu1 %v1842_v20  ;;  %v1285_v20 = vld [vmem:[%s5238_s10 + $0x428] sm:$0xff] }
 0x2e3   : > { %3600 = vmatpush1.bf16.msra.mxu0 %v2290_v21  ;;  %3027 = vmatprep.subr.bf16.mxu1 %v1845_v24  ;;  %v1509_v21 = vld [vmem:[%s5238_s10 + $0xb28] sm:$0xff]  ;;  %v1862_v24 = vunpack.c.h.s8.bf16 %v1282_v36  ;;  %v1865_v46 = vunpack.c.l.s8.bf16 %v1285_v20  ;;  %v1867_v51 = vunpack.c.h.s8.bf16 %v1285_v20 }
 0x2e4   : > { %3601 = vmatprep.subr.bf16.mxu0 %v2293_v25  ;;  %v2310_v25 = vunpack.c.h.s8.bf16 %v1506_v16  ;;  %v2313_v26 = vunpack.c.l.s8.bf16 %v1509_v21  ;;  %v2315_v31 = vunpack.c.h.s8.bf16 %v1509_v21 }
 0x2e6   : > { %3028 = vmatpush1.bf16.msra.mxu1 %v1844_v28  ;;  %v1284_v28 = vld [vmem:[%s5238_s10 + $0x420] sm:$0xff] }
 0x2e7   : > { %3602 = vmatpush1.bf16.msra.mxu0 %v2292_v29  ;;  %3029 = vmatprep.subr.bf16.mxu1 %v1847_v1  ;;  %v1508_v29 = vld [vmem:[%s5238_s10 + $0xb20] sm:$0xff]  ;;  %v1864_v1 = vunpack.c.l.s8.bf16 %v1284_v28 }
 0x2e8   : > { %3603 = vmatprep.subr.bf16.mxu0 %v2295_v30  ;;  %v2312_v30 = vunpack.c.l.s8.bf16 %v1508_v29 }
 0x2ea   : > { %3030 = vmatpush1.bf16.msra.mxu1 %v1846_v32  ;;  %v1287_v32 = vld [vmem:[%s5238_s10 + $0x438] sm:$0xff] }
 0x2eb   : > { %3604 = vmatpush1.bf16.msra.mxu0 %v2294_v33  ;;  %3031 = vmatprep.subr.bf16.mxu1 %v1849_v34  ;;  %v1511_v33 = vld [vmem:[%s5238_s10 + $0xb38] sm:$0xff]  ;;  %v1866_v34 = vunpack.c.h.s8.bf16 %v1284_v28  ;;  %v1869_v38 = vunpack.c.l.s8.bf16 %v1287_v32  ;;  %v1871_v42 = vunpack.c.h.s8.bf16 %v1287_v32 }
 0x2ec   : > { %3605 = vmatprep.subr.bf16.mxu0 %v2297_v35  ;;  %v2314_v35 = vunpack.c.h.s8.bf16 %v1508_v29  ;;  %v2317_v39 = vunpack.c.l.s8.bf16 %v1511_v33  ;;  %v2319_v43 = vunpack.c.h.s8.bf16 %v1511_v33 }
 0x2ee   : > { %3032 = vmatpush1.bf16.msra.mxu1 %v1848_v60  ;;  %v1286_v60 = vld [vmem:[%s5238_s10 + $0x430] sm:$0xff] }
 0x2ef   : > { %3606 = vmatpush1.bf16.msra.mxu0 %v2296_v40  ;;  %3033 = vmatprep.subr.bf16.mxu1 %v1851_v61  ;;  %v1510_v40 = vld [vmem:[%s5238_s10 + $0xb30] sm:$0xff]  ;;  %v1868_v61 = vunpack.c.l.s8.bf16 %v1286_v60 }
 0x2f0   : > { %3607 = vmatprep.subr.bf16.mxu0 %v2299_v41  ;;  %v2316_v41 = vunpack.c.l.s8.bf16 %v1510_v40 }
 0x2f2   : > { %3034 = vmatpush1.bf16.msra.mxu1 %v1850_v44  ;;  %v1289_v44 = vld [vmem:[%s5238_s10 + $0x448] sm:$0xff] }
 0x2f3   : > { %3608 = vmatpush1.bf16.msra.mxu0 %v2298_v45  ;;  %3035 = vmatprep.subr.bf16.mxu1 %v1853_v48  ;;  %v1513_v45 = vld [vmem:[%s5238_s10 + $0xb48] sm:$0xff]  ;;  %v1870_v48 = vunpack.c.h.s8.bf16 %v1286_v60  ;;  %v1873_v0 = vunpack.c.l.s8.bf16 %v1289_v44  ;;  %v1875_v13 = vunpack.c.h.s8.bf16 %v1289_v44  ;;  %v4007_v60 = vcombine.low %v5633_v23, %v5633_v23 }
 0x2f4   : > { %3609 = vmatprep.subr.bf16.mxu0 %v2301_v49  ;;  %v2318_v49 = vunpack.c.h.s8.bf16 %v1510_v40  ;;  %v2321_v50 = vunpack.c.l.s8.bf16 %v1513_v45  ;;  %v2323_v55 = vunpack.c.h.s8.bf16 %v1513_v45  ;;  %v4035_v40 = vcombine.low %v5638_v3, %v5638_v3  ;;  %v1299_v3 = vld [vmem:[%s5238_s10 + $0x498] sm:$0xff] }
 0x2f5   : > { %v1523_v45 = vld [vmem:[%s5238_s10 + $0xb98] sm:$0xff] }
 0x2f6   : > { %3036 = vmatpush1.bf16.msra.mxu1 %v1852_v52  ;;  %v1288_v52 = vld [vmem:[%s5238_s10 + $0x440] sm:$0xff] }
 0x2f7   : > { %3610 = vmatpush1.bf16.msra.mxu0 %v2300_v53  ;;  %3037 = vmatprep.subr.bf16.mxu1 %v1855_v12  ;;  %v1512_v53 = vld [vmem:[%s5238_s10 + $0xb40] sm:$0xff]  ;;  %v1872_v12 = vunpack.c.l.s8.bf16 %v1288_v52 }
 0x2f8   : > { %3611 = vmatprep.subr.bf16.mxu0 %v2303_v54  ;;  %v2320_v54 = vunpack.c.l.s8.bf16 %v1512_v53 }
 0x2fa   : > { %3038 = vmatpush1.bf16.msra.mxu1 %v1854_v56  ;;  %v1291_v56 = vld [vmem:[%s5238_s10 + $0x458] sm:$0xff] }
 0x2fb   : > { %3612 = vmatpush1.bf16.msra.mxu0 %v2302_v57  ;;  %3048 = vmatprep.subr.bf16.mxu1 %v1857_v58  ;;  %v1515_v57 = vld [vmem:[%s5238_s10 + $0xb58] sm:$0xff]  ;;  %v1874_v58 = vunpack.c.h.s8.bf16 %v1288_v52  ;;  %v1877_v62 = vunpack.c.l.s8.bf16 %v1291_v56  ;;  %v1893_v52 = vunpack.c.l.s8.bf16 %v1299_v3 }
 0x2fc   : > { %3622 = vmatprep.subr.bf16.mxu0 %v2305_v59  ;;  %v2322_v59 = vunpack.c.h.s8.bf16 %v1512_v53  ;;  %v2325_v63 = vunpack.c.l.s8.bf16 %v1515_v57  ;;  %v2341_v53 = vunpack.c.l.s8.bf16 %v1523_v45 }
 0x2fd   : > { %3040 = vmatmul.mubr.bf16.vlgmr.msra.gmra.mrb[0].mxu1 %v4005_v22  ;;  %v1290_v22 = vld [vmem:[%s5238_s10 + $0x450] sm:$0xff] }
 0x2fe   : > { %3614 = vmatmul.mubr.bf16.vlgmr.msra.gmra.mrb[0].mxu0 %v4033_v2  ;;  %3049 = vmatpush1.bf16.msra.mxu1 %v1856_v4  ;;  %v1514_v2 = vld [vmem:[%s5238_s10 + $0xb50] sm:$0xff]  ;;  %v1876_v4 = vunpack.c.l.s8.bf16 %v1290_v22 }
 0x2ff   : > { %3623 = vmatpush1.bf16.msra.mxu0 %v2304_v5  ;;  %3050 = vmatprep.subr.bf16.mxu1 %v1859_v47  ;;  %v2324_v5 = vunpack.c.l.s8.bf16 %v1514_v2  ;;  %v1879_v47 = vunpack.c.h.s8.bf16 %v1291_v56  ;;  %v1895_v56 = vunpack.c.h.s8.bf16 %v1299_v3  ;;  %v1309_v3 = vld [vmem:[%s5238_s10 + $0x4e8] sm:$0xff] }
 0x300   : > { %3624 = vmatprep.subr.bf16.mxu0 %v2307_v6  ;;  %3080 = vmatprep.mubr.bf16.mxu1 %v4008_v8  ;;  %v2327_v6 = vunpack.c.h.s8.bf16 %v1515_v57  ;;  %v1878_v8 = vunpack.c.h.s8.bf16 %v1290_v22  ;;  %v2343_v57 = vunpack.c.h.s8.bf16 %v1523_v45  ;;  %v1533_v45 = vld [vmem:[%s5238_s10 + $0xbe8] sm:$0xff] }
 0x301   : > { %3654 = vmatprep.mubr.bf16.mxu0 %v4036_v9  ;;  %v2326_v9 = vunpack.c.h.s8.bf16 %v1514_v2 }
 0x302   : > { %3051 = vmatpush1.bf16.msra.mxu1 %v1858_v10  ;;  %v1881_v10 = vunpack.c.l.s8.bf16 %v1293_v27 }
 0x303   : > { %3625 = vmatpush1.bf16.msra.mxu0 %v2306_v11  ;;  %3052 = vmatprep.subr.bf16.mxu1 %v1861_v14  ;;  %v2329_v11 = vunpack.c.l.s8.bf16 %v1517_v7  ;;  %v1292_v14 = vld [vmem:[%s5238_s10 + $0x460] sm:$0xff] }
 0x304   : > { %3626 = vmatprep.subr.bf16.mxu0 %v2309_v15  ;;  %v1516_v15 = vld [vmem:[%s5238_s10 + $0xb60] sm:$0xff]  ;;  %v1880_v36 = vunpack.c.l.s8.bf16 %v1292_v14  ;;  %v1882_v20 = vunpack.c.h.s8.bf16 %v1292_v14 }
 0x305   : > { %v2328_v16 = vunpack.c.l.s8.bf16 %v1516_v15  ;;  %v2330_v21 = vunpack.c.h.s8.bf16 %v1516_v15 }
 0x306   : > { %3053 = vmatpush1.bf16.msra.mxu1 %v1860_v37  ;;  %v1883_v37 = vunpack.c.h.s8.bf16 %v1293_v27 }
 0x307   : > { %3627 = vmatpush1.bf16.msra.mxu0 %v2308_v17  ;;  %3054 = vmatprep.subr.bf16.mxu1 %v1863_v18  ;;  %v2331_v17 = vunpack.c.h.s8.bf16 %v1517_v7  ;;  %v1295_v18 = vld [vmem:[%s5238_s10 + $0x478] sm:$0xff] }
 0x308   : > { %3628 = vmatprep.subr.bf16.mxu0 %v2311_v19  ;;  %v1519_v19 = vld [vmem:[%s5238_s10 + $0xb78] sm:$0xff] }
 0x30a   : > { %3055 = vmatpush1.bf16.msra.mxu1 %v1862_v24  ;;  %v1885_v24 = vunpack.c.l.s8.bf16 %v1295_v18 }
 0x30b   : > { %3629 = vmatpush1.bf16.msra.mxu0 %v2310_v25  ;;  %3056 = vmatprep.subr.bf16.mxu1 %v1865_v46  ;;  %v2333_v25 = vunpack.c.l.s8.bf16 %v1519_v19  ;;  %v1294_v46 = vld [vmem:[%s5238_s10 + $0x470] sm:$0xff] }
 0x30c   : > { %3630 = vmatprep.subr.bf16.mxu0 %v2313_v26  ;;  %v1518_v26 = vld [vmem:[%s5238_s10 + $0xb70] sm:$0xff]  ;;  %v1884_v28 = vunpack.c.l.s8.bf16 %v1294_v46  ;;  %v1886_v32 = vunpack.c.h.s8.bf16 %v1294_v46 }
 0x30d   : > { %v2332_v29 = vunpack.c.l.s8.bf16 %v1518_v26  ;;  %v2334_v33 = vunpack.c.h.s8.bf16 %v1518_v26 }
 0x30e   : > { %3057 = vmatpush1.bf16.msra.mxu1 %v1864_v1  ;;  %v1887_v1 = vunpack.c.h.s8.bf16 %v1295_v18 }
 0x30f   : > { %3631 = vmatpush1.bf16.msra.mxu0 %v2312_v30  ;;  %3058 = vmatprep.subr.bf16.mxu1 %v1867_v51  ;;  %v2335_v30 = vunpack.c.h.s8.bf16 %v1519_v19  ;;  %v1297_v51 = vld [vmem:[%s5238_s10 + $0x488] sm:$0xff] }
 0x310   : > { %3632 = vmatprep.subr.bf16.mxu0 %v2315_v31  ;;  %v1521_v31 = vld [vmem:[%s5238_s10 + $0xb88] sm:$0xff]  ;;  %v1891_v23 = vunpack.c.h.s8.bf16 %v1297_v51 }
 0x311   : > { %v2339_v44 = vunpack.c.h.s8.bf16 %v1521_v31 }
 0x312   : > { %3059 = vmatpush1.bf16.msra.mxu1 %v1866_v34  ;;  %v1889_v34 = vunpack.c.l.s8.bf16 %v1297_v51 }
 0x313   : > { %3633 = vmatpush1.bf16.msra.mxu0 %v2314_v35  ;;  %3060 = vmatprep.subr.bf16.mxu1 %v1869_v38  ;;  %v2337_v35 = vunpack.c.l.s8.bf16 %v1521_v31  ;;  %v1296_v38 = vld [vmem:[%s5238_s10 + $0x480] sm:$0xff] }
 0x314   : > { %3634 = vmatprep.subr.bf16.mxu0 %v2317_v39  ;;  %v1520_v39 = vld [vmem:[%s5238_s10 + $0xb80] sm:$0xff] }
 0x316   : > { %3061 = vmatpush1.bf16.msra.mxu1 %v1868_v61  ;;  %v5683_v61 = vld [vmem:[%s5947_s0 + $0x48] sm:$0xff] }
 0x317   : > { %3635 = vmatpush1.bf16.msra.mxu0 %v2316_v41  ;;  %3062 = vmatprep.subr.bf16.mxu1 %v1871_v42  ;;  %v5688_v41 = vld [vmem:[%s5947_s0 + $0xb8] sm:$0xff]  ;;  %v1888_v42 = vunpack.c.l.s8.bf16 %v1296_v38 }
 0x318   : > { %3636 = vmatprep.subr.bf16.mxu0 %v2319_v43  ;;  %v2336_v43 = vunpack.c.l.s8.bf16 %v1520_v39 }
 0x31a   : > { %3063 = vmatpush1.bf16.msra.mxu1 %v1870_v48  ;;  %v4010_v48 = vcombine.high %v5683_v61, %v5683_v61 }
 0x31b   : > { %3637 = vmatpush1.bf16.msra.mxu0 %v2318_v49  ;;  %3064 = vmatprep.subr.bf16.mxu1 %v1873_v0  ;;  %v4038_v49 = vcombine.high %v5688_v41, %v5688_v41  ;;  %v1890_v0 = vunpack.c.h.s8.bf16 %v1296_v38 }
 0x31c   : > { %3638 = vmatprep.subr.bf16.mxu0 %v2321_v50  ;;  %v2338_v50 = vunpack.c.h.s8.bf16 %v1520_v39 }
 0x31e   : > { %3065 = vmatpush1.bf16.msra.mxu1 %v1872_v12  ;;  %v1298_v12 = vld [vmem:[%s5238_s10 + $0x490] sm:$0xff] }
 0x31f   : > { %3639 = vmatpush1.bf16.msra.mxu0 %v2320_v54  ;;  %3066 = vmatprep.subr.bf16.mxu1 %v1875_v13  ;;  %v1522_v54 = vld [vmem:[%s5238_s10 + $0xb90] sm:$0xff]  ;;  %v1892_v13 = vunpack.c.l.s8.bf16 %v1298_v12 }
 0x320   : > { %3640 = vmatprep.subr.bf16.mxu0 %v2323_v55  ;;  %v2340_v55 = vunpack.c.l.s8.bf16 %v1522_v54 }
 0x322   : > { %3067 = vmatpush1.bf16.msra.mxu1 %v1874_v58  ;;  %v1301_v58 = vld [vmem:[%s5238_s10 + $0x4a8] sm:$0xff] }
 0x323   : > { %3641 = vmatpush1.bf16.msra.mxu0 %v2322_v59  ;;  %3068 = vmatprep.subr.bf16.mxu1 %v1877_v62  ;;  %v1525_v59 = vld [vmem:[%s5238_s10 + $0xba8] sm:$0xff]  ;;  %v1894_v62 = vunpack.c.h.s8.bf16 %v1298_v12  ;;  %v1897_v22 = vunpack.c.l.s8.bf16 %v1301_v58  ;;  %v1899_v27 = vunpack.c.h.s8.bf16 %v1301_v58 }
 0x324   : > { %3642 = vmatprep.subr.bf16.mxu0 %v2325_v63  ;;  %v2342_v63 = vunpack.c.h.s8.bf16 %v1522_v54  ;;  %v2345_v2 = vunpack.c.l.s8.bf16 %v1525_v59  ;;  %v2347_v7 = vunpack.c.h.s8.bf16 %v1525_v59 }
 0x326   : > { %3069 = vmatpush1.bf16.msra.mxu1 %v1876_v4  ;;  %v1300_v4 = vld [vmem:[%s5238_s10 + $0x4a0] sm:$0xff] }
 0x327   : > { %3643 = vmatpush1.bf16.msra.mxu0 %v2324_v5  ;;  %3070 = vmatprep.subr.bf16.mxu1 %v1879_v47  ;;  %v1524_v5 = vld [vmem:[%s5238_s10 + $0xba0] sm:$0xff]  ;;  %v1896_v47 = vunpack.c.l.s8.bf16 %v1300_v4 }
 0x328   : > { %3644 = vmatprep.subr.bf16.mxu0 %v2327_v6  ;;  %v2344_v6 = vunpack.c.l.s8.bf16 %v1524_v5 }
 0x32a   : > { %3071 = vmatpush1.bf16.msra.mxu1 %v1878_v8  ;;  %v1303_v8 = vld [vmem:[%s5238_s10 + $0x4b8] sm:$0xff] }
 0x32b   : > { %3645 = vmatpush1.bf16.msra.mxu0 %v2326_v9  ;;  %3072 = vmatprep.subr.bf16.mxu1 %v1881_v10  ;;  %v1527_v9 = vld [vmem:[%s5238_s10 + $0xbb8] sm:$0xff]  ;;  %v1898_v10 = vunpack.c.h.s8.bf16 %v1300_v4  ;;  %v1901_v14 = vunpack.c.l.s8.bf16 %v1303_v8  ;;  %v1903_v18 = vunpack.c.h.s8.bf16 %v1303_v8 }
 0x32c   : > { %3646 = vmatprep.subr.bf16.mxu0 %v2329_v11  ;;  %v2346_v11 = vunpack.c.h.s8.bf16 %v1524_v5  ;;  %v2349_v15 = vunpack.c.l.s8.bf16 %v1527_v9  ;;  %v2351_v19 = vunpack.c.h.s8.bf16 %v1527_v9 }
 0x32e   : > { %3073 = vmatpush1.bf16.msra.mxu1 %v1880_v36  ;;  %v1302_v36 = vld [vmem:[%s5238_s10 + $0x4b0] sm:$0xff] }
 0x32f   : > { %3647 = vmatpush1.bf16.msra.mxu0 %v2328_v16  ;;  %3074 = vmatprep.subr.bf16.mxu1 %v1883_v37  ;;  %v1526_v16 = vld [vmem:[%s5238_s10 + $0xbb0] sm:$0xff]  ;;  %v1900_v37 = vunpack.c.l.s8.bf16 %v1302_v36 }
 0x330   : > { %3648 = vmatprep.subr.bf16.mxu0 %v2331_v17  ;;  %v2348_v17 = vunpack.c.l.s8.bf16 %v1526_v16 }
 0x332   : > { %3075 = vmatpush1.bf16.msra.mxu1 %v1882_v20  ;;  %v1305_v20 = vld [vmem:[%s5238_s10 + $0x4c8] sm:$0xff] }
 0x333   : > { %3649 = vmatpush1.bf16.msra.mxu0 %v2330_v21  ;;  %3076 = vmatprep.subr.bf16.mxu1 %v1885_v24  ;;  %v1529_v21 = vld [vmem:[%s5238_s10 + $0xbc8] sm:$0xff]  ;;  %v1902_v24 = vunpack.c.h.s8.bf16 %v1302_v36  ;;  %v1905_v46 = vunpack.c.l.s8.bf16 %v1305_v20  ;;  %v1907_v51 = vunpack.c.h.s8.bf16 %v1305_v20  ;;  %v4009_v36 = vcombine.low %v5683_v61, %v5683_v61 }
 0x334   : > { %3650 = vmatprep.subr.bf16.mxu0 %v2333_v25  ;;  %v2350_v25 = vunpack.c.h.s8.bf16 %v1526_v16  ;;  %v2353_v26 = vunpack.c.l.s8.bf16 %v1529_v21  ;;  %v2355_v31 = vunpack.c.h.s8.bf16 %v1529_v21  ;;  %v4037_v16 = vcombine.low %v5688_v41, %v5688_v41  ;;  %v1315_v41 = vld [vmem:[%s5238_s10 + $0x518] sm:$0xff] }
 0x335   : > { %v1539_v21 = vld [vmem:[%s5238_s10 + $0xc18] sm:$0xff] }
 0x336   : > { %3077 = vmatpush1.bf16.msra.mxu1 %v1884_v28  ;;  %v1304_v28 = vld [vmem:[%s5238_s10 + $0x4c0] sm:$0xff] }
 0x337   : > { %3651 = vmatpush1.bf16.msra.mxu0 %v2332_v29  ;;  %3078 = vmatprep.subr.bf16.mxu1 %v1887_v1  ;;  %v1528_v29 = vld [vmem:[%s5238_s10 + $0xbc0] sm:$0xff]  ;;  %v1904_v1 = vunpack.c.l.s8.bf16 %v1304_v28 }
 0x338   : > { %3652 = vmatprep.subr.bf16.mxu0 %v2335_v30  ;;  %v2352_v30 = vunpack.c.l.s8.bf16 %v1528_v29 }
 0x33a   : > { %3079 = vmatpush1.bf16.msra.mxu1 %v1886_v32  ;;  %v1307_v32 = vld [vmem:[%s5238_s10 + $0x4d8] sm:$0xff] }
 0x33b   : > { %3653 = vmatpush1.bf16.msra.mxu0 %v2334_v33  ;;  %3089 = vmatprep.subr.bf16.mxu1 %v1889_v34  ;;  %v1531_v33 = vld [vmem:[%s5238_s10 + $0xbd8] sm:$0xff]  ;;  %v1906_v34 = vunpack.c.h.s8.bf16 %v1304_v28  ;;  %v1909_v38 = vunpack.c.l.s8.bf16 %v1307_v32  ;;  %v1925_v28 = vunpack.c.l.s8.bf16 %v1315_v41 }
 0x33c   : > { %3663 = vmatprep.subr.bf16.mxu0 %v2337_v35  ;;  %v2354_v35 = vunpack.c.h.s8.bf16 %v1528_v29  ;;  %v2357_v39 = vunpack.c.l.s8.bf16 %v1531_v33  ;;  %v2373_v29 = vunpack.c.l.s8.bf16 %v1539_v21 }
 0x33d   : > { %3081 = vmatmul.mubr.bf16.vlgmr.msra.gmra.mrb[0].mxu1 %v4007_v60  ;;  %v1306_v60 = vld [vmem:[%s5238_s10 + $0x4d0] sm:$0xff] }
 0x33e   : > { %3655 = vmatmul.mubr.bf16.vlgmr.msra.gmra.mrb[0].mxu0 %v4035_v40  ;;  %3090 = vmatpush1.bf16.msra.mxu1 %v1888_v42  ;;  %v1530_v40 = vld [vmem:[%s5238_s10 + $0xbd0] sm:$0xff]  ;;  %v1908_v42 = vunpack.c.l.s8.bf16 %v1306_v60 }
 0x33f   : > { %3664 = vmatpush1.bf16.msra.mxu0 %v2336_v43  ;;  %3091 = vmatprep.subr.bf16.mxu1 %v1891_v23  ;;  %v2356_v43 = vunpack.c.l.s8.bf16 %v1530_v40  ;;  %v1911_v23 = vunpack.c.h.s8.bf16 %v1307_v32  ;;  %v1927_v32 = vunpack.c.h.s8.bf16 %v1315_v41  ;;  %v1325_v41 = vld [vmem:[%s5238_s10 + $0x568] sm:$0xff] }
 0x340   : > { %3665 = vmatprep.subr.bf16.mxu0 %v2339_v44  ;;  %3121 = vmatprep.mubr.bf16.mxu1 %v4010_v48  ;;  %v2359_v44 = vunpack.c.h.s8.bf16 %v1531_v33  ;;  %v1910_v48 = vunpack.c.h.s8.bf16 %v1306_v60  ;;  %v2375_v33 = vunpack.c.h.s8.bf16 %v1539_v21  ;;  %v1549_v21 = vld [vmem:[%s5238_s10 + $0xc68] sm:$0xff] }
 0x341   : > { %3695 = vmatprep.mubr.bf16.mxu0 %v4038_v49  ;;  %v2358_v49 = vunpack.c.h.s8.bf16 %v1530_v40 }
 0x342   : > { %3092 = vmatpush1.bf16.msra.mxu1 %v1890_v0  ;;  %v1913_v0 = vunpack.c.l.s8.bf16 %v1309_v3 }
 0x343   : > { %3666 = vmatpush1.bf16.msra.mxu0 %v2338_v50  ;;  %3093 = vmatprep.subr.bf16.mxu1 %v1893_v52  ;;  %v2361_v50 = vunpack.c.l.s8.bf16 %v1533_v45  ;;  %v1308_v52 = vld [vmem:[%s5238_s10 + $0x4e0] sm:$0xff] }
 0x344   : > { %3667 = vmatprep.subr.bf16.mxu0 %v2341_v53  ;;  %v1532_v53 = vld [vmem:[%s5238_s10 + $0xbe0] sm:$0xff]  ;;  %v1912_v12 = vunpack.c.l.s8.bf16 %v1308_v52  ;;  %v1914_v58 = vunpack.c.h.s8.bf16 %v1308_v52 }
 0x345   : > { %v2360_v54 = vunpack.c.l.s8.bf16 %v1532_v53  ;;  %v2362_v59 = vunpack.c.h.s8.bf16 %v1532_v53 }
 0x346   : > { %3094 = vmatpush1.bf16.msra.mxu1 %v1892_v13  ;;  %v1915_v13 = vunpack.c.h.s8.bf16 %v1309_v3 }
 0x347   : > { %3668 = vmatpush1.bf16.msra.mxu0 %v2340_v55  ;;  %3095 = vmatprep.subr.bf16.mxu1 %v1895_v56  ;;  %v2363_v55 = vunpack.c.h.s8.bf16 %v1533_v45  ;;  %v1311_v56 = vld [vmem:[%s5238_s10 + $0x4f8] sm:$0xff] }
 0x348   : > { %3669 = vmatprep.subr.bf16.mxu0 %v2343_v57  ;;  %v1535_v57 = vld [vmem:[%s5238_s10 + $0xbf8] sm:$0xff] }
 0x34a   : > { %3096 = vmatpush1.bf16.msra.mxu1 %v1894_v62  ;;  %v1917_v62 = vunpack.c.l.s8.bf16 %v1311_v56 }
 0x34b   : > { %3670 = vmatpush1.bf16.msra.mxu0 %v2342_v63  ;;  %3097 = vmatprep.subr.bf16.mxu1 %v1897_v22  ;;  %v2365_v63 = vunpack.c.l.s8.bf16 %v1535_v57  ;;  %v1310_v22 = vld [vmem:[%s5238_s10 + $0x4f0] sm:$0xff] }
 0x34c   : > { %3671 = vmatprep.subr.bf16.mxu0 %v2345_v2  ;;  %v1534_v2 = vld [vmem:[%s5238_s10 + $0xbf0] sm:$0xff]  ;;  %v1916_v4 = vunpack.c.l.s8.bf16 %v1310_v22  ;;  %v1918_v8 = vunpack.c.h.s8.bf16 %v1310_v22 }
 0x34d   : > { %v2364_v5 = vunpack.c.l.s8.bf16 %v1534_v2  ;;  %v2366_v9 = vunpack.c.h.s8.bf16 %v1534_v2 }
 0x34e   : > { %3098 = vmatpush1.bf16.msra.mxu1 %v1896_v47  ;;  %v1919_v47 = vunpack.c.h.s8.bf16 %v1311_v56 }
 0x34f   : > { %3672 = vmatpush1.bf16.msra.mxu0 %v2344_v6  ;;  %3099 = vmatprep.subr.bf16.mxu1 %v1899_v27  ;;  %v2367_v6 = vunpack.c.h.s8.bf16 %v1535_v57  ;;  %v1313_v27 = vld [vmem:[%s5238_s10 + $0x508] sm:$0xff] }
 0x350   : > { %3673 = vmatprep.subr.bf16.mxu0 %v2347_v7  ;;  %v1537_v7 = vld [vmem:[%s5238_s10 + $0xc08] sm:$0xff]  ;;  %v1923_v61 = vunpack.c.h.s8.bf16 %v1313_v27 }
 0x351   : > { %v2371_v20 = vunpack.c.h.s8.bf16 %v1537_v7 }
 0x352   : > { %3100 = vmatpush1.bf16.msra.mxu1 %v1898_v10  ;;  %v1921_v10 = vunpack.c.l.s8.bf16 %v1313_v27 }
 0x353   : > { %3674 = vmatpush1.bf16.msra.mxu0 %v2346_v11  ;;  %3101 = vmatprep.subr.bf16.mxu1 %v1901_v14  ;;  %v2369_v11 = vunpack.c.l.s8.bf16 %v1537_v7  ;;  %v1312_v14 = vld [vmem:[%s5238_s10 + $0x500] sm:$0xff] }
 0x354   : > { %3675 = vmatprep.subr.bf16.mxu0 %v2349_v15  ;;  %v1536_v15 = vld [vmem:[%s5238_s10 + $0xc00] sm:$0xff] }
 0x356   : > { %3102 = vmatpush1.bf16.msra.mxu1 %v1900_v37  ;;  %v5733_v37 = vld [vmem:[%s5947_s0 + $0x50] sm:$0xff] }
 0x357   : > { %3676 = vmatpush1.bf16.msra.mxu0 %v2348_v17  ;;  %3103 = vmatprep.subr.bf16.mxu1 %v1903_v18  ;;  %v5738_v17 = vld [vmem:[%s5947_s0 + $0xc0] sm:$0xff]  ;;  %v1920_v18 = vunpack.c.l.s8.bf16 %v1312_v14 }
 0x358   : > { %3677 = vmatprep.subr.bf16.mxu0 %v2351_v19  ;;  %v2368_v19 = vunpack.c.l.s8.bf16 %v1536_v15 }
 0x35a   : > { %3104 = vmatpush1.bf16.msra.mxu1 %v1902_v24  ;;  %v4012_v24 = vcombine.high %v5733_v37, %v5733_v37 }
 0x35b   : > { %3678 = vmatpush1.bf16.msra.mxu0 %v2350_v25  ;;  %3105 = vmatprep.subr.bf16.mxu1 %v1905_v46  ;;  %v4040_v25 = vcombine.high %v5738_v17, %v5738_v17  ;;  %v1922_v46 = vunpack.c.h.s8.bf16 %v1312_v14 }
 0x35c   : > { %3679 = vmatprep.subr.bf16.mxu0 %v2353_v26  ;;  %v2370_v26 = vunpack.c.h.s8.bf16 %v1536_v15 }
 0x35e   : > { %3106 = vmatpush1.bf16.msra.mxu1 %v1904_v1  ;;  %v1314_v1 = vld [vmem:[%s5238_s10 + $0x510] sm:$0xff] }
 0x35f   : > { %3680 = vmatpush1.bf16.msra.mxu0 %v2352_v30  ;;  %3107 = vmatprep.subr.bf16.mxu1 %v1907_v51  ;;  %v1538_v30 = vld [vmem:[%s5238_s10 + $0xc10] sm:$0xff]  ;;  %v1924_v51 = vunpack.c.l.s8.bf16 %v1314_v1 }
 0x360   : > { %3681 = vmatprep.subr.bf16.mxu0 %v2355_v31  ;;  %v2372_v31 = vunpack.c.l.s8.bf16 %v1538_v30 }
 0x362   : > { %3108 = vmatpush1.bf16.msra.mxu1 %v1906_v34  ;;  %v1317_v34 = vld [vmem:[%s5238_s10 + $0x528] sm:$0xff] }
 0x363   : > { %3682 = vmatpush1.bf16.msra.mxu0 %v2354_v35  ;;  %3109 = vmatprep.subr.bf16.mxu1 %v1909_v38  ;;  %v1541_v35 = vld [vmem:[%s5238_s10 + $0xc28] sm:$0xff]  ;;  %v1926_v38 = vunpack.c.h.s8.bf16 %v1314_v1  ;;  %v1929_v60 = vunpack.c.l.s8.bf16 %v1317_v34  ;;  %v1931_v3 = vunpack.c.h.s8.bf16 %v1317_v34 }
 0x364   : > { %3683 = vmatprep.subr.bf16.mxu0 %v2357_v39  ;;  %v2374_v39 = vunpack.c.h.s8.bf16 %v1538_v30  ;;  %v2377_v40 = vunpack.c.l.s8.bf16 %v1541_v35  ;;  %v2379_v45 = vunpack.c.h.s8.bf16 %v1541_v35 }
 0x366   : > { %3110 = vmatpush1.bf16.msra.mxu1 %v1908_v42  ;;  %v1316_v42 = vld [vmem:[%s5238_s10 + $0x520] sm:$0xff] }
 0x367   : > { %3684 = vmatpush1.bf16.msra.mxu0 %v2356_v43  ;;  %3111 = vmatprep.subr.bf16.mxu1 %v1911_v23  ;;  %v1540_v43 = vld [vmem:[%s5238_s10 + $0xc20] sm:$0xff]  ;;  %v1928_v23 = vunpack.c.l.s8.bf16 %v1316_v42 }
 0x368   : > { %3685 = vmatprep.subr.bf16.mxu0 %v2359_v44  ;;  %v2376_v44 = vunpack.c.l.s8.bf16 %v1540_v43 }
 0x36a   : > { %3112 = vmatpush1.bf16.msra.mxu1 %v1910_v48  ;;  %v1319_v48 = vld [vmem:[%s5238_s10 + $0x538] sm:$0xff] }
 0x36b   : > { %3686 = vmatpush1.bf16.msra.mxu0 %v2358_v49  ;;  %3113 = vmatprep.subr.bf16.mxu1 %v1913_v0  ;;  %v1543_v49 = vld [vmem:[%s5238_s10 + $0xc38] sm:$0xff]  ;;  %v1930_v0 = vunpack.c.h.s8.bf16 %v1316_v42  ;;  %v1933_v52 = vunpack.c.l.s8.bf16 %v1319_v48  ;;  %v1935_v56 = vunpack.c.h.s8.bf16 %v1319_v48 }
 0x36c   : > { %3687 = vmatprep.subr.bf16.mxu0 %v2361_v50  ;;  %v2378_v50 = vunpack.c.h.s8.bf16 %v1540_v43  ;;  %v2381_v53 = vunpack.c.l.s8.bf16 %v1543_v49  ;;  %v2383_v57 = vunpack.c.h.s8.bf16 %v1543_v49 }
 0x36e   : > { %3114 = vmatpush1.bf16.msra.mxu1 %v1912_v12  ;;  %v1318_v12 = vld [vmem:[%s5238_s10 + $0x530] sm:$0xff] }
 0x36f   : > { %3688 = vmatpush1.bf16.msra.mxu0 %v2360_v54  ;;  %3115 = vmatprep.subr.bf16.mxu1 %v1915_v13  ;;  %v1542_v54 = vld [vmem:[%s5238_s10 + $0xc30] sm:$0xff]  ;;  %v1932_v13 = vunpack.c.l.s8.bf16 %v1318_v12 }
 0x370   : > { %3689 = vmatprep.subr.bf16.mxu0 %v2363_v55  ;;  %v2380_v55 = vunpack.c.l.s8.bf16 %v1542_v54 }
 0x372   : > { %3116 = vmatpush1.bf16.msra.mxu1 %v1914_v58  ;;  %v1321_v58 = vld [vmem:[%s5238_s10 + $0x548] sm:$0xff] }
 0x373   : > { %3690 = vmatpush1.bf16.msra.mxu0 %v2362_v59  ;;  %3117 = vmatprep.subr.bf16.mxu1 %v1917_v62  ;;  %v1545_v59 = vld [vmem:[%s5238_s10 + $0xc48] sm:$0xff]  ;;  %v1934_v62 = vunpack.c.h.s8.bf16 %v1318_v12  ;;  %v1937_v22 = vunpack.c.l.s8.bf16 %v1321_v58  ;;  %v1939_v27 = vunpack.c.h.s8.bf16 %v1321_v58  ;;  %v4011_v12 = vcombine.low %v5733_v37, %v5733_v37 }
 0x374   : > { %3691 = vmatprep.subr.bf16.mxu0 %v2365_v63  ;;  %v2382_v63 = vunpack.c.h.s8.bf16 %v1542_v54  ;;  %v2385_v2 = vunpack.c.l.s8.bf16 %v1545_v59  ;;  %v2387_v7 = vunpack.c.h.s8.bf16 %v1545_v59  ;;  %v4039_v54 = vcombine.low %v5738_v17, %v5738_v17  ;;  %v1331_v17 = vld [vmem:[%s5238_s10 + $0x598] sm:$0xff] }
 0x375   : > { %v1555_v59 = vld [vmem:[%s5238_s10 + $0xc98] sm:$0xff] }
 0x376   : > { %3118 = vmatpush1.bf16.msra.mxu1 %v1916_v4  ;;  %v1320_v4 = vld [vmem:[%s5238_s10 + $0x540] sm:$0xff] }
 0x377   : > { %3692 = vmatpush1.bf16.msra.mxu0 %v2364_v5  ;;  %3119 = vmatprep.subr.bf16.mxu1 %v1919_v47  ;;  %v1544_v5 = vld [vmem:[%s5238_s10 + $0xc40] sm:$0xff]  ;;  %v1936_v47 = vunpack.c.l.s8.bf16 %v1320_v4 }
 0x378   : > { %3693 = vmatprep.subr.bf16.mxu0 %v2367_v6  ;;  %v2384_v6 = vunpack.c.l.s8.bf16 %v1544_v5 }
 0x37a   : > { %3120 = vmatpush1.bf16.msra.mxu1 %v1918_v8  ;;  %v1323_v8 = vld [vmem:[%s5238_s10 + $0x558] sm:$0xff] }
 0x37b   : > { %3694 = vmatpush1.bf16.msra.mxu0 %v2366_v9  ;;  %3130 = vmatprep.subr.bf16.mxu1 %v1921_v10  ;;  %v1547_v9 = vld [vmem:[%s5238_s10 + $0xc58] sm:$0xff]  ;;  %v1938_v10 = vunpack.c.h.s8.bf16 %v1320_v4  ;;  %v1941_v14 = vunpack.c.l.s8.bf16 %v1323_v8  ;;  %v1957_v4 = vunpack.c.l.s8.bf16 %v1331_v17 }
 0x37c   : > { %3704 = vmatprep.subr.bf16.mxu0 %v2369_v11  ;;  %v2386_v11 = vunpack.c.h.s8.bf16 %v1544_v5  ;;  %v2389_v15 = vunpack.c.l.s8.bf16 %v1547_v9  ;;  %v2405_v5 = vunpack.c.l.s8.bf16 %v1555_v59 }
 0x37d   : > { %3122 = vmatmul.mubr.bf16.vlgmr.msra.gmra.mrb[0].mxu1 %v4009_v36  ;;  %v1322_v36 = vld [vmem:[%s5238_s10 + $0x550] sm:$0xff] }
 0x37e   : > { %3696 = vmatmul.mubr.bf16.vlgmr.msra.gmra.mrb[0].mxu0 %v4037_v16  ;;  %3131 = vmatpush1.bf16.msra.mxu1 %v1920_v18  ;;  %v1546_v16 = vld [vmem:[%s5238_s10 + $0xc50] sm:$0xff]  ;;  %v1940_v18 = vunpack.c.l.s8.bf16 %v1322_v36 }
 0x37f   : > { %3705 = vmatpush1.bf16.msra.mxu0 %v2368_v19  ;;  %3132 = vmatprep.subr.bf16.mxu1 %v1923_v61  ;;  %v2388_v19 = vunpack.c.l.s8.bf16 %v1546_v16  ;;  %v1943_v61 = vunpack.c.h.s8.bf16 %v1323_v8  ;;  %v1959_v8 = vunpack.c.h.s8.bf16 %v1331_v17  ;;  %v1341_v17 = vld [vmem:[%s5238_s10 + $0x5e8] sm:$0xff] }
 0x380   : > { %3706 = vmatprep.subr.bf16.mxu0 %v2371_v20  ;;  %3162 = vmatprep.mubr.bf16.mxu1 %v4012_v24  ;;  %v2391_v20 = vunpack.c.h.s8.bf16 %v1547_v9  ;;  %v1942_v24 = vunpack.c.h.s8.bf16 %v1322_v36  ;;  %v2407_v9 = vunpack.c.h.s8.bf16 %v1555_v59  ;;  %v1565_v59 = vld [vmem:[%s5238_s10 + $0xce8] sm:$0xff] }
 0x381   : > { %3736 = vmatprep.mubr.bf16.mxu0 %v4040_v25  ;;  %v2390_v25 = vunpack.c.h.s8.bf16 %v1546_v16 }
 0x382   : > { %3133 = vmatpush1.bf16.msra.mxu1 %v1922_v46  ;;  %v1945_v46 = vunpack.c.l.s8.bf16 %v1325_v41 }
 0x383   : > { %3707 = vmatpush1.bf16.msra.mxu0 %v2370_v26  ;;  %3134 = vmatprep.subr.bf16.mxu1 %v1925_v28  ;;  %v2393_v26 = vunpack.c.l.s8.bf16 %v1549_v21  ;;  %v1324_v28 = vld [vmem:[%s5238_s10 + $0x560] sm:$0xff] }
 0x384   : > { %3708 = vmatprep.subr.bf16.mxu0 %v2373_v29  ;;  %v1548_v29 = vld [vmem:[%s5238_s10 + $0xc60] sm:$0xff]  ;;  %v1944_v1 = vunpack.c.l.s8.bf16 %v1324_v28  ;;  %v1946_v34 = vunpack.c.h.s8.bf16 %v1324_v28 }
 0x385   : > { %v2392_v30 = vunpack.c.l.s8.bf16 %v1548_v29  ;;  %v2394_v35 = vunpack.c.h.s8.bf16 %v1548_v29 }
 0x386   : > { %3135 = vmatpush1.bf16.msra.mxu1 %v1924_v51  ;;  %v1947_v51 = vunpack.c.h.s8.bf16 %v1325_v41 }
 0x387   : > { %3709 = vmatpush1.bf16.msra.mxu0 %v2372_v31  ;;  %3136 = vmatprep.subr.bf16.mxu1 %v1927_v32  ;;  %v2395_v31 = vunpack.c.h.s8.bf16 %v1549_v21  ;;  %v1327_v32 = vld [vmem:[%s5238_s10 + $0x578] sm:$0xff] }
 0x388   : > { %3710 = vmatprep.subr.bf16.mxu0 %v2375_v33  ;;  %v1551_v33 = vld [vmem:[%s5238_s10 + $0xc78] sm:$0xff] }
 0x38a   : > { %3137 = vmatpush1.bf16.msra.mxu1 %v1926_v38  ;;  %v1949_v38 = vunpack.c.l.s8.bf16 %v1327_v32 }
 0x38b   : > { %3711 = vmatpush1.bf16.msra.mxu0 %v2374_v39  ;;  %3138 = vmatprep.subr.bf16.mxu1 %v1929_v60  ;;  %v2397_v39 = vunpack.c.l.s8.bf16 %v1551_v33  ;;  %v1326_v60 = vld [vmem:[%s5238_s10 + $0x570] sm:$0xff] }
 0x38c   : > { %3712 = vmatprep.subr.bf16.mxu0 %v2377_v40  ;;  %v1550_v40 = vld [vmem:[%s5238_s10 + $0xc70] sm:$0xff]  ;;  %v1948_v42 = vunpack.c.l.s8.bf16 %v1326_v60  ;;  %v1950_v48 = vunpack.c.h.s8.bf16 %v1326_v60 }
 0x38d   : > { %v2396_v43 = vunpack.c.l.s8.bf16 %v1550_v40  ;;  %v2398_v49 = vunpack.c.h.s8.bf16 %v1550_v40 }
 0x38e   : > { %3139 = vmatpush1.bf16.msra.mxu1 %v1928_v23  ;;  %v1951_v23 = vunpack.c.h.s8.bf16 %v1327_v32 }
 0x38f   : > { %3713 = vmatpush1.bf16.msra.mxu0 %v2376_v44  ;;  %3140 = vmatprep.subr.bf16.mxu1 %v1931_v3  ;;  %v2399_v44 = vunpack.c.h.s8.bf16 %v1551_v33  ;;  %v1329_v3 = vld [vmem:[%s5238_s10 + $0x588] sm:$0xff] }
 0x390   : > { %3714 = vmatprep.subr.bf16.mxu0 %v2379_v45  ;;  %v1553_v45 = vld [vmem:[%s5238_s10 + $0xc88] sm:$0xff]  ;;  %v1955_v37 = vunpack.c.h.s8.bf16 %v1329_v3 }
 0x391   : > { %v2403_v58 = vunpack.c.h.s8.bf16 %v1553_v45 }
 0x392   : > { %3141 = vmatpush1.bf16.msra.mxu1 %v1930_v0  ;;  %v1953_v0 = vunpack.c.l.s8.bf16 %v1329_v3 }
 0x393   : > { %3715 = vmatpush1.bf16.msra.mxu0 %v2378_v50  ;;  %3142 = vmatprep.subr.bf16.mxu1 %v1933_v52  ;;  %v2401_v50 = vunpack.c.l.s8.bf16 %v1553_v45  ;;  %v1328_v52 = vld [vmem:[%s5238_s10 + $0x580] sm:$0xff] }
 0x394   : > { %3716 = vmatprep.subr.bf16.mxu0 %v2381_v53  ;;  %v1552_v53 = vld [vmem:[%s5238_s10 + $0xc80] sm:$0xff] }
 0x396   : > { %3143 = vmatpush1.bf16.msra.mxu1 %v1932_v13  ;;  %v5783_v13 = vld [vmem:[%s5947_s0 + $0x58] sm:$0xff] }
 0x397   : > { %3717 = vmatpush1.bf16.msra.mxu0 %v2380_v55  ;;  %3144 = vmatprep.subr.bf16.mxu1 %v1935_v56  ;;  %v5788_v55 = vld [vmem:[%s5947_s0 + $0xc8] sm:$0xff]  ;;  %v1952_v56 = vunpack.c.l.s8.bf16 %v1328_v52 }
 0x398   : > { %3718 = vmatprep.subr.bf16.mxu0 %v2383_v57  ;;  %v2400_v57 = vunpack.c.l.s8.bf16 %v1552_v53 }
 0x39a   : > { %3145 = vmatpush1.bf16.msra.mxu1 %v1934_v62  ;;  %v4014_v62 = vcombine.high %v5783_v13, %v5783_v13 }
 0x39b   : > { %3719 = vmatpush1.bf16.msra.mxu0 %v2382_v63  ;;  %3146 = vmatprep.subr.bf16.mxu1 %v1937_v22  ;;  %v4042_v63 = vcombine.high %v5788_v55, %v5788_v55  ;;  %v1954_v22 = vunpack.c.h.s8.bf16 %v1328_v52 }
 0x39c   : > { %3720 = vmatprep.subr.bf16.mxu0 %v2385_v2  ;;  %v2402_v2 = vunpack.c.h.s8.bf16 %v1552_v53 }
 0x39e   : > { %3147 = vmatpush1.bf16.msra.mxu1 %v1936_v47  ;;  %v1330_v47 = vld [vmem:[%s5238_s10 + $0x590] sm:$0xff] }
 0x39f   : > { %3721 = vmatpush1.bf16.msra.mxu0 %v2384_v6  ;;  %3148 = vmatprep.subr.bf16.mxu1 %v1939_v27  ;;  %v1554_v6 = vld [vmem:[%s5238_s10 + $0xc90] sm:$0xff]  ;;  %v1956_v27 = vunpack.c.l.s8.bf16 %v1330_v47 }
 0x3a0   : > { %3722 = vmatprep.subr.bf16.mxu0 %v2387_v7  ;;  %v2404_v7 = vunpack.c.l.s8.bf16 %v1554_v6 }
 0x3a2   : > { %3149 = vmatpush1.bf16.msra.mxu1 %v1938_v10  ;;  %v1333_v10 = vld [vmem:[%s5238_s10 + $0x5a8] sm:$0xff] }
 0x3a3   : > { %3723 = vmatpush1.bf16.msra.mxu0 %v2386_v11  ;;  %3150 = vmatprep.subr.bf16.mxu1 %v1941_v14  ;;  %v1557_v11 = vld [vmem:[%s5238_s10 + $0xca8] sm:$0xff]  ;;  %v1958_v14 = vunpack.c.h.s8.bf16 %v1330_v47  ;;  %v1961_v36 = vunpack.c.l.s8.bf16 %v1333_v10  ;;  %v1963_v41 = vunpack.c.h.s8.bf16 %v1333_v10 }
 0x3a4   : > { %3724 = vmatprep.subr.bf16.mxu0 %v2389_v15  ;;  %v2406_v15 = vunpack.c.h.s8.bf16 %v1554_v6  ;;  %v2409_v16 = vunpack.c.l.s8.bf16 %v1557_v11  ;;  %v2411_v21 = vunpack.c.h.s8.bf16 %v1557_v11 }
 0x3a6   : > { %3151 = vmatpush1.bf16.msra.mxu1 %v1940_v18  ;;  %v1332_v18 = vld [vmem:[%s5238_s10 + $0x5a0] sm:$0xff] }
 0x3a7   : > { %3725 = vmatpush1.bf16.msra.mxu0 %v2388_v19  ;;  %3152 = vmatprep.subr.bf16.mxu1 %v1943_v61  ;;  %v1556_v19 = vld [vmem:[%s5238_s10 + $0xca0] sm:$0xff]  ;;  %v1960_v61 = vunpack.c.l.s8.bf16 %v1332_v18 }
 0x3a8   : > { %3726 = vmatprep.subr.bf16.mxu0 %v2391_v20  ;;  %v2408_v20 = vunpack.c.l.s8.bf16 %v1556_v19 }
 0x3aa   : > { %3153 = vmatpush1.bf16.msra.mxu1 %v1942_v24  ;;  %v1335_v24 = vld [vmem:[%s5238_s10 + $0x5b8] sm:$0xff] }
 0x3ab   : > { %3727 = vmatpush1.bf16.msra.mxu0 %v2390_v25  ;;  %3154 = vmatprep.subr.bf16.mxu1 %v1945_v46  ;;  %v1559_v25 = vld [vmem:[%s5238_s10 + $0xcb8] sm:$0xff]  ;;  %v1962_v46 = vunpack.c.h.s8.bf16 %v1332_v18  ;;  %v1965_v28 = vunpack.c.l.s8.bf16 %v1335_v24  ;;  %v1967_v32 = vunpack.c.h.s8.bf16 %v1335_v24 }
 0x3ac   : > { %3728 = vmatprep.subr.bf16.mxu0 %v2393_v26  ;;  %v2410_v26 = vunpack.c.h.s8.bf16 %v1556_v19  ;;  %v2413_v29 = vunpack.c.l.s8.bf16 %v1559_v25  ;;  %v2415_v33 = vunpack.c.h.s8.bf16 %v1559_v25 }
 0x3ae   : > { %3155 = vmatpush1.bf16.msra.mxu1 %v1944_v1  ;;  %v1334_v1 = vld [vmem:[%s5238_s10 + $0x5b0] sm:$0xff] }
 0x3af   : > { %3729 = vmatpush1.bf16.msra.mxu0 %v2392_v30  ;;  %3156 = vmatprep.subr.bf16.mxu1 %v1947_v51  ;;  %v1558_v30 = vld [vmem:[%s5238_s10 + $0xcb0] sm:$0xff]  ;;  %v1964_v51 = vunpack.c.l.s8.bf16 %v1334_v1 }
 0x3b0   : > { %3730 = vmatprep.subr.bf16.mxu0 %v2395_v31  ;;  %v2412_v31 = vunpack.c.l.s8.bf16 %v1558_v30 }
 0x3b2   : > { %3157 = vmatpush1.bf16.msra.mxu1 %v1946_v34  ;;  %v1337_v34 = vld [vmem:[%s5238_s10 + $0x5c8] sm:$0xff] }
 0x3b3   : > { %3731 = vmatpush1.bf16.msra.mxu0 %v2394_v35  ;;  %3158 = vmatprep.subr.bf16.mxu1 %v1949_v38  ;;  %v1561_v35 = vld [vmem:[%s5238_s10 + $0xcc8] sm:$0xff]  ;;  %v1966_v38 = vunpack.c.h.s8.bf16 %v1334_v1  ;;  %v1969_v60 = vunpack.c.l.s8.bf16 %v1337_v34  ;;  %v1971_v3 = vunpack.c.h.s8.bf16 %v1337_v34  ;;  %v4013_v1 = vcombine.low %v5783_v13, %v5783_v13 }
 0x3b4   : > { %3732 = vmatprep.subr.bf16.mxu0 %v2397_v39  ;;  %v2414_v39 = vunpack.c.h.s8.bf16 %v1558_v30  ;;  %v2417_v40 = vunpack.c.l.s8.bf16 %v1561_v35  ;;  %v2419_v45 = vunpack.c.h.s8.bf16 %v1561_v35  ;;  %v4041_v30 = vcombine.low %v5788_v55, %v5788_v55  ;;  %v1347_v55 = vld [vmem:[%s5238_s10 + $0x618] sm:$0xff] }
 0x3b5   : > { %v1571_v35 = vld [vmem:[%s5238_s10 + $0xd18] sm:$0xff] }
 0x3b6   : > { %3159 = vmatpush1.bf16.msra.mxu1 %v1948_v42  ;;  %v1336_v42 = vld [vmem:[%s5238_s10 + $0x5c0] sm:$0xff] }
 0x3b7   : > { %3733 = vmatpush1.bf16.msra.mxu0 %v2396_v43  ;;  %3160 = vmatprep.subr.bf16.mxu1 %v1951_v23  ;;  %v1560_v43 = vld [vmem:[%s5238_s10 + $0xcc0] sm:$0xff]  ;;  %v1968_v23 = vunpack.c.l.s8.bf16 %v1336_v42 }
 0x3b8   : > { %3734 = vmatprep.subr.bf16.mxu0 %v2399_v44  ;;  %v2416_v44 = vunpack.c.l.s8.bf16 %v1560_v43 }
 0x3ba   : > { %3161 = vmatpush1.bf16.msra.mxu1 %v1950_v48  ;;  %v1339_v48 = vld [vmem:[%s5238_s10 + $0x5d8] sm:$0xff] }
 0x3bb   : > { %3735 = vmatpush1.bf16.msra.mxu0 %v2398_v49  ;;  %3171 = vmatprep.subr.bf16.mxu1 %v1953_v0  ;;  %v1563_v49 = vld [vmem:[%s5238_s10 + $0xcd8] sm:$0xff]  ;;  %v1970_v0 = vunpack.c.h.s8.bf16 %v1336_v42  ;;  %v1973_v52 = vunpack.c.l.s8.bf16 %v1339_v48  ;;  %v1989_v42 = vunpack.c.l.s8.bf16 %v1347_v55 }
 0x3bc   : > { %3745 = vmatprep.subr.bf16.mxu0 %v2401_v50  ;;  %v2418_v50 = vunpack.c.h.s8.bf16 %v1560_v43  ;;  %v2421_v53 = vunpack.c.l.s8.bf16 %v1563_v49  ;;  %v2437_v43 = vunpack.c.l.s8.bf16 %v1571_v35 }
 0x3bd   : > { %3163 = vmatmul.mubr.bf16.vlgmr.msra.gmra.mrb[0].mxu1 %v4011_v12  ;;  %v1338_v12 = vld [vmem:[%s5238_s10 + $0x5d0] sm:$0xff] }
 0x3be   : > { %3737 = vmatmul.mubr.bf16.vlgmr.msra.gmra.mrb[0].mxu0 %v4039_v54  ;;  %3172 = vmatpush1.bf16.msra.mxu1 %v1952_v56  ;;  %v1562_v54 = vld [vmem:[%s5238_s10 + $0xcd0] sm:$0xff]  ;;  %v1972_v56 = vunpack.c.l.s8.bf16 %v1338_v12 }
 0x3bf   : > { %3746 = vmatpush1.bf16.msra.mxu0 %v2400_v57  ;;  %3173 = vmatprep.subr.bf16.mxu1 %v1955_v37  ;;  %v2420_v57 = vunpack.c.l.s8.bf16 %v1562_v54  ;;  %v1975_v37 = vunpack.c.h.s8.bf16 %v1339_v48  ;;  %v1991_v48 = vunpack.c.h.s8.bf16 %v1347_v55  ;;  %v1357_v55 = vld [vmem:[%s5238_s10 + $0x668] sm:$0xff] }
 0x3c0   : > { %3747 = vmatprep.subr.bf16.mxu0 %v2403_v58  ;;  %3203 = vmatprep.mubr.bf16.mxu1 %v4014_v62  ;;  %v2423_v58 = vunpack.c.h.s8.bf16 %v1563_v49  ;;  %v1974_v62 = vunpack.c.h.s8.bf16 %v1338_v12  ;;  %v2439_v49 = vunpack.c.h.s8.bf16 %v1571_v35  ;;  %v1581_v35 = vld [vmem:[%s5238_s10 + $0xd68] sm:$0xff] }
 0x3c1   : > { %3777 = vmatprep.mubr.bf16.mxu0 %v4042_v63  ;;  %v2422_v63 = vunpack.c.h.s8.bf16 %v1562_v54 }
 0x3c2   : > { %3174 = vmatpush1.bf16.msra.mxu1 %v1954_v22  ;;  %v1977_v22 = vunpack.c.l.s8.bf16 %v1341_v17 }
 0x3c3   : > { %3748 = vmatpush1.bf16.msra.mxu0 %v2402_v2  ;;  %3175 = vmatprep.subr.bf16.mxu1 %v1957_v4  ;;  %v2425_v2 = vunpack.c.l.s8.bf16 %v1565_v59  ;;  %v1340_v4 = vld [vmem:[%s5238_s10 + $0x5e0] sm:$0xff] }
 0x3c4   : > { %3749 = vmatprep.subr.bf16.mxu0 %v2405_v5  ;;  %v1564_v5 = vld [vmem:[%s5238_s10 + $0xce0] sm:$0xff]  ;;  %v1976_v47 = vunpack.c.l.s8.bf16 %v1340_v4  ;;  %v1978_v10 = vunpack.c.h.s8.bf16 %v1340_v4 }
 0x3c5   : > { %v2424_v6 = vunpack.c.l.s8.bf16 %v1564_v5  ;;  %v2426_v11 = vunpack.c.h.s8.bf16 %v1564_v5 }
 0x3c6   : > { %3176 = vmatpush1.bf16.msra.mxu1 %v1956_v27  ;;  %v1979_v27 = vunpack.c.h.s8.bf16 %v1341_v17 }
 0x3c7   : > { %3750 = vmatpush1.bf16.msra.mxu0 %v2404_v7  ;;  %3177 = vmatprep.subr.bf16.mxu1 %v1959_v8  ;;  %v2427_v7 = vunpack.c.h.s8.bf16 %v1565_v59  ;;  %v1343_v8 = vld [vmem:[%s5238_s10 + $0x5f8] sm:$0xff] }
 0x3c8   : > { %3751 = vmatprep.subr.bf16.mxu0 %v2407_v9  ;;  %v1567_v9 = vld [vmem:[%s5238_s10 + $0xcf8] sm:$0xff] }
 0x3ca   : > { %3178 = vmatpush1.bf16.msra.mxu1 %v1958_v14  ;;  %v1981_v14 = vunpack.c.l.s8.bf16 %v1343_v8 }
 0x3cb   : > { %3752 = vmatpush1.bf16.msra.mxu0 %v2406_v15  ;;  %3179 = vmatprep.subr.bf16.mxu1 %v1961_v36  ;;  %v2429_v15 = vunpack.c.l.s8.bf16 %v1567_v9  ;;  %v1342_v36 = vld [vmem:[%s5238_s10 + $0x5f0] sm:$0xff] }
 0x3cc   : > { %3753 = vmatprep.subr.bf16.mxu0 %v2409_v16  ;;  %v1566_v16 = vld [vmem:[%s5238_s10 + $0xcf0] sm:$0xff]  ;;  %v1980_v18 = vunpack.c.l.s8.bf16 %v1342_v36  ;;  %v1982_v24 = vunpack.c.h.s8.bf16 %v1342_v36 }
 0x3cd   : > { %v2428_v19 = vunpack.c.l.s8.bf16 %v1566_v16  ;;  %v2430_v25 = vunpack.c.h.s8.bf16 %v1566_v16 }
 0x3ce   : > { %3180 = vmatpush1.bf16.msra.mxu1 %v1960_v61  ;;  %v1983_v61 = vunpack.c.h.s8.bf16 %v1343_v8 }
 0x3cf   : > { %3754 = vmatpush1.bf16.msra.mxu0 %v2408_v20  ;;  %3181 = vmatprep.subr.bf16.mxu1 %v1963_v41  ;;  %v2431_v20 = vunpack.c.h.s8.bf16 %v1567_v9  ;;  %v1345_v41 = vld [vmem:[%s5238_s10 + $0x608] sm:$0xff] }
 0x3d0   : > { %3755 = vmatprep.subr.bf16.mxu0 %v2411_v21  ;;  %v1569_v21 = vld [vmem:[%s5238_s10 + $0xd08] sm:$0xff]  ;;  %v1987_v13 = vunpack.c.h.s8.bf16 %v1345_v41 }
 0x3d1   : > { %v2435_v34 = vunpack.c.h.s8.bf16 %v1569_v21 }
 0x3d2   : > { %3182 = vmatpush1.bf16.msra.mxu1 %v1962_v46  ;;  %v1985_v46 = vunpack.c.l.s8.bf16 %v1345_v41 }
 0x3d3   : > { %3756 = vmatpush1.bf16.msra.mxu0 %v2410_v26  ;;  %3183 = vmatprep.subr.bf16.mxu1 %v1965_v28  ;;  %v2433_v26 = vunpack.c.l.s8.bf16 %v1569_v21  ;;  %v1344_v28 = vld [vmem:[%s5238_s10 + $0x600] sm:$0xff] }
 0x3d4   : > { %3757 = vmatprep.subr.bf16.mxu0 %v2413_v29  ;;  %v1568_v29 = vld [vmem:[%s5238_s10 + $0xd00] sm:$0xff] }
 0x3d6   : > { %3184 = vmatpush1.bf16.msra.mxu1 %v1964_v51  ;;  %v5833_v51 = vld [vmem:[%s5947_s0 + $0x60] sm:$0xff] }
 0x3d7   : > { %3758 = vmatpush1.bf16.msra.mxu0 %v2412_v31  ;;  %3185 = vmatprep.subr.bf16.mxu1 %v1967_v32  ;;  %v5838_v31 = vld [vmem:[%s5947_s0 + $0xd0] sm:$0xff]  ;;  %v1984_v32 = vunpack.c.l.s8.bf16 %v1344_v28 }
 0x3d8   : > { %3759 = vmatprep.subr.bf16.mxu0 %v2415_v33  ;;  %v2432_v33 = vunpack.c.l.s8.bf16 %v1568_v29 }
 0x3da   : > { %3186 = vmatpush1.bf16.msra.mxu1 %v1966_v38  ;;  %v4016_v38 = vcombine.high %v5833_v51, %v5833_v51 }
 0x3db   : > { %3760 = vmatpush1.bf16.msra.mxu0 %v2414_v39  ;;  %3187 = vmatprep.subr.bf16.mxu1 %v1969_v60  ;;  %v4044_v39 = vcombine.high %v5838_v31, %v5838_v31  ;;  %v1986_v60 = vunpack.c.h.s8.bf16 %v1344_v28 }
 0x3dc   : > { %3761 = vmatprep.subr.bf16.mxu0 %v2417_v40  ;;  %v2434_v40 = vunpack.c.h.s8.bf16 %v1568_v29 }
 0x3de   : > { %3188 = vmatpush1.bf16.msra.mxu1 %v1968_v23  ;;  %v1346_v23 = vld [vmem:[%s5238_s10 + $0x610] sm:$0xff] }
 0x3df   : > { %3762 = vmatpush1.bf16.msra.mxu0 %v2416_v44  ;;  %3189 = vmatprep.subr.bf16.mxu1 %v1971_v3  ;;  %v1570_v44 = vld [vmem:[%s5238_s10 + $0xd10] sm:$0xff]  ;;  %v1988_v3 = vunpack.c.l.s8.bf16 %v1346_v23 }
 0x3e0   : > { %3763 = vmatprep.subr.bf16.mxu0 %v2419_v45  ;;  %v2436_v45 = vunpack.c.l.s8.bf16 %v1570_v44 }
 0x3e2   : > { %3190 = vmatpush1.bf16.msra.mxu1 %v1970_v0  ;;  %v1349_v0 = vld [vmem:[%s5238_s10 + $0x628] sm:$0xff] }
 0x3e3   : > { %3764 = vmatpush1.bf16.msra.mxu0 %v2418_v50  ;;  %3191 = vmatprep.subr.bf16.mxu1 %v1973_v52  ;;  %v1573_v50 = vld [vmem:[%s5238_s10 + $0xd28] sm:$0xff]  ;;  %v1990_v52 = vunpack.c.h.s8.bf16 %v1346_v23  ;;  %v1993_v12 = vunpack.c.l.s8.bf16 %v1349_v0  ;;  %v1995_v17 = vunpack.c.h.s8.bf16 %v1349_v0 }
 0x3e4   : > { %3765 = vmatprep.subr.bf16.mxu0 %v2421_v53  ;;  %v2438_v53 = vunpack.c.h.s8.bf16 %v1570_v44  ;;  %v2441_v54 = vunpack.c.l.s8.bf16 %v1573_v50  ;;  %v2443_v59 = vunpack.c.h.s8.bf16 %v1573_v50 }
 0x3e6   : > { %3192 = vmatpush1.bf16.msra.mxu1 %v1972_v56  ;;  %v1348_v56 = vld [vmem:[%s5238_s10 + $0x620] sm:$0xff] }
 0x3e7   : > { %3766 = vmatpush1.bf16.msra.mxu0 %v2420_v57  ;;  %3193 = vmatprep.subr.bf16.mxu1 %v1975_v37  ;;  %v1572_v57 = vld [vmem:[%s5238_s10 + $0xd20] sm:$0xff]  ;;  %v1992_v37 = vunpack.c.l.s8.bf16 %v1348_v56 }
 0x3e8   : > { %3767 = vmatprep.subr.bf16.mxu0 %v2423_v58  ;;  %v2440_v58 = vunpack.c.l.s8.bf16 %v1572_v57 }
 0x3ea   : > { %3194 = vmatpush1.bf16.msra.mxu1 %v1974_v62  ;;  %v1351_v62 = vld [vmem:[%s5238_s10 + $0x638] sm:$0xff] }
 0x3eb   : > { %3768 = vmatpush1.bf16.msra.mxu0 %v2422_v63  ;;  %3195 = vmatprep.subr.bf16.mxu1 %v1977_v22  ;;  %v1575_v63 = vld [vmem:[%s5238_s10 + $0xd38] sm:$0xff]  ;;  %v1994_v22 = vunpack.c.h.s8.bf16 %v1348_v56  ;;  %v1997_v4 = vunpack.c.l.s8.bf16 %v1351_v62  ;;  %v1999_v8 = vunpack.c.h.s8.bf16 %v1351_v62 }
 0x3ec   : > { %3769 = vmatprep.subr.bf16.mxu0 %v2425_v2  ;;  %v2442_v2 = vunpack.c.h.s8.bf16 %v1572_v57  ;;  %v2445_v5 = vunpack.c.l.s8.bf16 %v1575_v63  ;;  %v2447_v9 = vunpack.c.h.s8.bf16 %v1575_v63 }
 0x3ee   : > { %3196 = vmatpush1.bf16.msra.mxu1 %v1976_v47  ;;  %v1350_v47 = vld [vmem:[%s5238_s10 + $0x630] sm:$0xff] }
 0x3ef   : > { %3770 = vmatpush1.bf16.msra.mxu0 %v2424_v6  ;;  %3197 = vmatprep.subr.bf16.mxu1 %v1979_v27  ;;  %v1574_v6 = vld [vmem:[%s5238_s10 + $0xd30] sm:$0xff]  ;;  %v1996_v27 = vunpack.c.l.s8.bf16 %v1350_v47 }
 0x3f0   : > { %3771 = vmatprep.subr.bf16.mxu0 %v2427_v7  ;;  %v2444_v7 = vunpack.c.l.s8.bf16 %v1574_v6 }
 0x3f2   : > { %3198 = vmatpush1.bf16.msra.mxu1 %v1978_v10  ;;  %v1353_v10 = vld [vmem:[%s5238_s10 + $0x648] sm:$0xff] }
 0x3f3   : > { %3772 = vmatpush1.bf16.msra.mxu0 %v2426_v11  ;;  %3199 = vmatprep.subr.bf16.mxu1 %v1981_v14  ;;  %v1577_v11 = vld [vmem:[%s5238_s10 + $0xd48] sm:$0xff]  ;;  %v1998_v14 = vunpack.c.h.s8.bf16 %v1350_v47  ;;  %v2001_v36 = vunpack.c.l.s8.bf16 %v1353_v10  ;;  %v2003_v41 = vunpack.c.h.s8.bf16 %v1353_v10  ;;  %v4015_v47 = vcombine.low %v5833_v51, %v5833_v51 }
 0x3f4   : > { %3773 = vmatprep.subr.bf16.mxu0 %v2429_v15  ;;  %v2446_v15 = vunpack.c.h.s8.bf16 %v1574_v6  ;;  %v2449_v16 = vunpack.c.l.s8.bf16 %v1577_v11  ;;  %v2451_v21 = vunpack.c.h.s8.bf16 %v1577_v11  ;;  %v4043_v6 = vcombine.low %v5838_v31, %v5838_v31  ;;  %v1363_v31 = vld [vmem:[%s5238_s10 + $0x698] sm:$0xff] }
 0x3f5   : > { %v1587_v11 = vld [vmem:[%s5238_s10 + $0xd98] sm:$0xff] }
 0x3f6   : > { %3200 = vmatpush1.bf16.msra.mxu1 %v1980_v18  ;;  %v1352_v18 = vld [vmem:[%s5238_s10 + $0x640] sm:$0xff] }
 0x3f7   : > { %3774 = vmatpush1.bf16.msra.mxu0 %v2428_v19  ;;  %3201 = vmatprep.subr.bf16.mxu1 %v1983_v61  ;;  %v1576_v19 = vld [vmem:[%s5238_s10 + $0xd40] sm:$0xff]  ;;  %v2000_v61 = vunpack.c.l.s8.bf16 %v1352_v18 }
 0x3f8   : > { %3775 = vmatprep.subr.bf16.mxu0 %v2431_v20  ;;  %v2448_v20 = vunpack.c.l.s8.bf16 %v1576_v19 }
 0x3fa   : > { %3202 = vmatpush1.bf16.msra.mxu1 %v1982_v24  ;;  %v1355_v24 = vld [vmem:[%s5238_s10 + $0x658] sm:$0xff] }
 0x3fb   : > { %3776 = vmatpush1.bf16.msra.mxu0 %v2430_v25  ;;  %3212 = vmatprep.subr.bf16.mxu1 %v1985_v46  ;;  %v1579_v25 = vld [vmem:[%s5238_s10 + $0xd58] sm:$0xff]  ;;  %v2002_v46 = vunpack.c.h.s8.bf16 %v1352_v18  ;;  %v2005_v28 = vunpack.c.l.s8.bf16 %v1355_v24  ;;  %v2021_v18 = vunpack.c.l.s8.bf16 %v1363_v31 }
 0x3fc   : > { %3786 = vmatprep.subr.bf16.mxu0 %v2433_v26  ;;  %v2450_v26 = vunpack.c.h.s8.bf16 %v1576_v19  ;;  %v2453_v29 = vunpack.c.l.s8.bf16 %v1579_v25  ;;  %v2469_v19 = vunpack.c.l.s8.bf16 %v1587_v11 }
 0x3fd   : > { %3204 = vmatmul.mubr.bf16.vlgmr.msra.gmra.mrb[0].mxu1 %v4013_v1  ;;  %v1354_v1 = vld [vmem:[%s5238_s10 + $0x650] sm:$0xff] }
 0x3fe   : > { %3778 = vmatmul.mubr.bf16.vlgmr.msra.gmra.mrb[0].mxu0 %v4041_v30  ;;  %3213 = vmatpush1.bf16.msra.mxu1 %v1984_v32  ;;  %v1578_v30 = vld [vmem:[%s5238_s10 + $0xd50] sm:$0xff]  ;;  %v2004_v32 = vunpack.c.l.s8.bf16 %v1354_v1 }
 0x3ff   : > { %3787 = vmatpush1.bf16.msra.mxu0 %v2432_v33  ;;  %3214 = vmatprep.subr.bf16.mxu1 %v1987_v13  ;;  %v2452_v33 = vunpack.c.l.s8.bf16 %v1578_v30  ;;  %v2007_v13 = vunpack.c.h.s8.bf16 %v1355_v24  ;;  %v2023_v24 = vunpack.c.h.s8.bf16 %v1363_v31  ;;  %v1373_v31 = vld [vmem:[%s5238_s10 + $0x6e8] sm:$0xff] }
 0x400   : > { %3788 = vmatprep.subr.bf16.mxu0 %v2435_v34  ;;  %3244 = vmatprep.mubr.bf16.mxu1 %v4016_v38  ;;  %v2455_v34 = vunpack.c.h.s8.bf16 %v1579_v25  ;;  %v2006_v38 = vunpack.c.h.s8.bf16 %v1354_v1  ;;  %v2471_v25 = vunpack.c.h.s8.bf16 %v1587_v11  ;;  %v1597_v11 = vld [vmem:[%s5238_s10 + $0xde8] sm:$0xff] }
 0x401   : > { %3818 = vmatprep.mubr.bf16.mxu0 %v4044_v39  ;;  %v2454_v39 = vunpack.c.h.s8.bf16 %v1578_v30 }
 0x402   : > { %3215 = vmatpush1.bf16.msra.mxu1 %v1986_v60  ;;  %v2009_v60 = vunpack.c.l.s8.bf16 %v1357_v55 }
 0x403   : > { %3789 = vmatpush1.bf16.msra.mxu0 %v2434_v40  ;;  %3216 = vmatprep.subr.bf16.mxu1 %v1989_v42  ;;  %v2457_v40 = vunpack.c.l.s8.bf16 %v1581_v35  ;;  %v1356_v42 = vld [vmem:[%s5238_s10 + $0x660] sm:$0xff] }
 0x404   : > { %3790 = vmatprep.subr.bf16.mxu0 %v2437_v43  ;;  %v1580_v43 = vld [vmem:[%s5238_s10 + $0xd60] sm:$0xff]  ;;  %v2008_v23 = vunpack.c.l.s8.bf16 %v1356_v42  ;;  %v2010_v0 = vunpack.c.h.s8.bf16 %v1356_v42 }
 0x405   : > { %v2456_v44 = vunpack.c.l.s8.bf16 %v1580_v43  ;;  %v2458_v50 = vunpack.c.h.s8.bf16 %v1580_v43 }
 0x406   : > { %3217 = vmatpush1.bf16.msra.mxu1 %v1988_v3  ;;  %v2011_v3 = vunpack.c.h.s8.bf16 %v1357_v55 }
 0x407   : > { %3791 = vmatpush1.bf16.msra.mxu0 %v2436_v45  ;;  %3218 = vmatprep.subr.bf16.mxu1 %v1991_v48  ;;  %v2459_v45 = vunpack.c.h.s8.bf16 %v1581_v35  ;;  %v1359_v48 = vld [vmem:[%s5238_s10 + $0x678] sm:$0xff] }
 0x408   : > { %3792 = vmatprep.subr.bf16.mxu0 %v2439_v49  ;;  %v1583_v49 = vld [vmem:[%s5238_s10 + $0xd78] sm:$0xff] }
 0x40a   : > { %3219 = vmatpush1.bf16.msra.mxu1 %v1990_v52  ;;  %v2013_v52 = vunpack.c.l.s8.bf16 %v1359_v48 }
 0x40b   : > { %3793 = vmatpush1.bf16.msra.mxu0 %v2438_v53  ;;  %3220 = vmatprep.subr.bf16.mxu1 %v1993_v12  ;;  %v2461_v53 = vunpack.c.l.s8.bf16 %v1583_v49  ;;  %v1358_v12 = vld [vmem:[%s5238_s10 + $0x670] sm:$0xff] }
 0x40c   : > { %3794 = vmatprep.subr.bf16.mxu0 %v2441_v54  ;;  %v1582_v54 = vld [vmem:[%s5238_s10 + $0xd70] sm:$0xff]  ;;  %v2012_v56 = vunpack.c.l.s8.bf16 %v1358_v12  ;;  %v2014_v62 = vunpack.c.h.s8.bf16 %v1358_v12 }
 0x40d   : > { %v2460_v57 = vunpack.c.l.s8.bf16 %v1582_v54  ;;  %v2462_v63 = vunpack.c.h.s8.bf16 %v1582_v54 }
 0x40e   : > { %3221 = vmatpush1.bf16.msra.mxu1 %v1992_v37  ;;  %v2015_v37 = vunpack.c.h.s8.bf16 %v1359_v48 }
 0x40f   : > { %3795 = vmatpush1.bf16.msra.mxu0 %v2440_v58  ;;  %3222 = vmatprep.subr.bf16.mxu1 %v1995_v17  ;;  %v2463_v58 = vunpack.c.h.s8.bf16 %v1583_v49  ;;  %v1361_v17 = vld [vmem:[%s5238_s10 + $0x688] sm:$0xff] }
 0x410   : > { %3796 = vmatprep.subr.bf16.mxu0 %v2443_v59  ;;  %v1585_v59 = vld [vmem:[%s5238_s10 + $0xd88] sm:$0xff]  ;;  %v2019_v51 = vunpack.c.h.s8.bf16 %v1361_v17 }
 0x411   : > { %v2467_v10 = vunpack.c.h.s8.bf16 %v1585_v59 }
 0x412   : > { %3223 = vmatpush1.bf16.msra.mxu1 %v1994_v22  ;;  %v2017_v22 = vunpack.c.l.s8.bf16 %v1361_v17 }
 0x413   : > { %3797 = vmatpush1.bf16.msra.mxu0 %v2442_v2  ;;  %3224 = vmatprep.subr.bf16.mxu1 %v1997_v4  ;;  %v2465_v2 = vunpack.c.l.s8.bf16 %v1585_v59  ;;  %v1360_v4 = vld [vmem:[%s5238_s10 + $0x680] sm:$0xff] }
 0x414   : > { %3798 = vmatprep.subr.bf16.mxu0 %v2445_v5  ;;  %v1584_v5 = vld [vmem:[%s5238_s10 + $0xd80] sm:$0xff] }
 0x416   : > { %3225 = vmatpush1.bf16.msra.mxu1 %v1996_v27  ;;  %v5883_v27 = vld [vmem:[%s5947_s0 + $0x68] sm:$0xff] }
 0x417   : > { %3799 = vmatpush1.bf16.msra.mxu0 %v2444_v7  ;;  %3226 = vmatprep.subr.bf16.mxu1 %v1999_v8  ;;  %v5888_v7 = vld [vmem:[%s5947_s0 + $0xd8] sm:$0xff]  ;;  %v2016_v8 = vunpack.c.l.s8.bf16 %v1360_v4 }
 0x418   : > { %3800 = vmatprep.subr.bf16.mxu0 %v2447_v9  ;;  %v2464_v9 = vunpack.c.l.s8.bf16 %v1584_v5 }
 0x41a   : > { %3227 = vmatpush1.bf16.msra.mxu1 %v1998_v14  ;;  %v4018_v14 = vcombine.high %v5883_v27, %v5883_v27 }
 0x41b   : > { %3801 = vmatpush1.bf16.msra.mxu0 %v2446_v15  ;;  %3228 = vmatprep.subr.bf16.mxu1 %v2001_v36  ;;  %v4046_v15 = vcombine.high %v5888_v7, %v5888_v7  ;;  %v2018_v36 = vunpack.c.h.s8.bf16 %v1360_v4 }
 0x41c   : > { %3802 = vmatprep.subr.bf16.mxu0 %v2449_v16  ;;  %v2466_v16 = vunpack.c.h.s8.bf16 %v1584_v5 }
 0x41e   : > { %3229 = vmatpush1.bf16.msra.mxu1 %v2000_v61  ;;  %v1362_v61 = vld [vmem:[%s5238_s10 + $0x690] sm:$0xff] }
 0x41f   : > { %3803 = vmatpush1.bf16.msra.mxu0 %v2448_v20  ;;  %3230 = vmatprep.subr.bf16.mxu1 %v2003_v41  ;;  %v1586_v20 = vld [vmem:[%s5238_s10 + $0xd90] sm:$0xff]  ;;  %v2020_v41 = vunpack.c.l.s8.bf16 %v1362_v61 }
 0x420   : > { %3804 = vmatprep.subr.bf16.mxu0 %v2451_v21  ;;  %v2468_v21 = vunpack.c.l.s8.bf16 %v1586_v20 }
 0x422   : > { %3231 = vmatpush1.bf16.msra.mxu1 %v2002_v46  ;;  %v1365_v46 = vld [vmem:[%s5238_s10 + $0x6a8] sm:$0xff] }
 0x423   : > { %3805 = vmatpush1.bf16.msra.mxu0 %v2450_v26  ;;  %3232 = vmatprep.subr.bf16.mxu1 %v2005_v28  ;;  %v1589_v26 = vld [vmem:[%s5238_s10 + $0xda8] sm:$0xff]  ;;  %v2022_v28 = vunpack.c.h.s8.bf16 %v1362_v61  ;;  %v2025_v1 = vunpack.c.l.s8.bf16 %v1365_v46  ;;  %v2027_v55 = vunpack.c.h.s8.bf16 %v1365_v46 }
 0x424   : > { %3806 = vmatprep.subr.bf16.mxu0 %v2453_v29  ;;  %v2470_v29 = vunpack.c.h.s8.bf16 %v1586_v20  ;;  %v2473_v30 = vunpack.c.l.s8.bf16 %v1589_v26  ;;  %v2475_v35 = vunpack.c.h.s8.bf16 %v1589_v26 }
 0x426   : > { %3233 = vmatpush1.bf16.msra.mxu1 %v2004_v32  ;;  %v1364_v32 = vld [vmem:[%s5238_s10 + $0x6a0] sm:$0xff] }
 0x427   : > { %3807 = vmatpush1.bf16.msra.mxu0 %v2452_v33  ;;  %3234 = vmatprep.subr.bf16.mxu1 %v2007_v13  ;;  %v1588_v33 = vld [vmem:[%s5238_s10 + $0xda0] sm:$0xff]  ;;  %v2024_v13 = vunpack.c.l.s8.bf16 %v1364_v32 }
 0x428   : > { %3808 = vmatprep.subr.bf16.mxu0 %v2455_v34  ;;  %v2472_v34 = vunpack.c.l.s8.bf16 %v1588_v33 }
 0x42a   : > { %3235 = vmatpush1.bf16.msra.mxu1 %v2006_v38  ;;  %v1367_v38 = vld [vmem:[%s5238_s10 + $0x6b8] sm:$0xff] }
 0x42b   : > { %3809 = vmatpush1.bf16.msra.mxu0 %v2454_v39  ;;  %3236 = vmatprep.subr.bf16.mxu1 %v2009_v60  ;;  %v1591_v39 = vld [vmem:[%s5238_s10 + $0xdb8] sm:$0xff]  ;;  %v2026_v60 = vunpack.c.h.s8.bf16 %v1364_v32  ;;  %v2029_v42 = vunpack.c.l.s8.bf16 %v1367_v38  ;;  %v2031_v48 = vunpack.c.h.s8.bf16 %v1367_v38  ;;  %v4017_v38 = vcombine.low %v5883_v27, %v5883_v27 }
 0x42c   : > { %3810 = vmatprep.subr.bf16.mxu0 %v2457_v40  ;;  %v2474_v40 = vunpack.c.h.s8.bf16 %v1588_v33  ;;  %v2477_v43 = vunpack.c.l.s8.bf16 %v1591_v39  ;;  %v2479_v49 = vunpack.c.h.s8.bf16 %v1591_v39  ;;  %v4045_v39 = vcombine.low %v5888_v7, %v5888_v7 }
 0x42e   : > { %3237 = vmatpush1.bf16.msra.mxu1 %v2008_v23  ;;  %v1366_v23 = vld [vmem:[%s5238_s10 + $0x6b0] sm:$0xff] }
 0x42f   : > { %3811 = vmatpush1.bf16.msra.mxu0 %v2456_v44  ;;  %3238 = vmatprep.subr.bf16.mxu1 %v2011_v3  ;;  %v1590_v44 = vld [vmem:[%s5238_s10 + $0xdb0] sm:$0xff]  ;;  %v2028_v3 = vunpack.c.l.s8.bf16 %v1366_v23 }
 0x430   : > { %3812 = vmatprep.subr.bf16.mxu0 %v2459_v45  ;;  %v2476_v45 = vunpack.c.l.s8.bf16 %v1590_v44 }
 0x432   : > { %3239 = vmatpush1.bf16.msra.mxu1 %v2010_v0  ;;  %v1369_v0 = vld [vmem:[%s5238_s10 + $0x6c8] sm:$0xff] }
 0x433   : > { %3813 = vmatpush1.bf16.msra.mxu0 %v2458_v50  ;;  %3240 = vmatprep.subr.bf16.mxu1 %v2013_v52  ;;  %v1593_v50 = vld [vmem:[%s5238_s10 + $0xdc8] sm:$0xff]  ;;  %v2030_v52 = vunpack.c.h.s8.bf16 %v1366_v23  ;;  %v2033_v12 = vunpack.c.l.s8.bf16 %v1369_v0  ;;  %v2035_v17 = vunpack.c.h.s8.bf16 %v1369_v0 }
 0x434   : > { %3814 = vmatprep.subr.bf16.mxu0 %v2461_v53  ;;  %v2478_v53 = vunpack.c.h.s8.bf16 %v1590_v44  ;;  %v2481_v54 = vunpack.c.l.s8.bf16 %v1593_v50  ;;  %v2483_v59 = vunpack.c.h.s8.bf16 %v1593_v50 }
 0x436   : > { %3241 = vmatpush1.bf16.msra.mxu1 %v2012_v56  ;;  %v1368_v56 = vld [vmem:[%s5238_s10 + $0x6c0] sm:$0xff] }
 0x437   : > { %3815 = vmatpush1.bf16.msra.mxu0 %v2460_v57  ;;  %3242 = vmatprep.subr.bf16.mxu1 %v2015_v37  ;;  %v1592_v57 = vld [vmem:[%s5238_s10 + $0xdc0] sm:$0xff]  ;;  %v2032_v37 = vunpack.c.l.s8.bf16 %v1368_v56 }
 0x438   : > { %3816 = vmatprep.subr.bf16.mxu0 %v2463_v58  ;;  %v2480_v58 = vunpack.c.l.s8.bf16 %v1592_v57 }
 0x43a   : > { %3243 = vmatpush1.bf16.msra.mxu1 %v2014_v62  ;;  %v1371_v62 = vld [vmem:[%s5238_s10 + $0x6d8] sm:$0xff] }
 0x43b   : > { %3817 = vmatpush1.bf16.msra.mxu0 %v2462_v63  ;;  %3253 = vmatprep.subr.bf16.mxu1 %v2017_v22  ;;  %v1595_v63 = vld [vmem:[%s5238_s10 + $0xdd8] sm:$0xff]  ;;  %v2034_v22 = vunpack.c.h.s8.bf16 %v1368_v56  ;;  %v2037_v4 = vunpack.c.l.s8.bf16 %v1371_v62 }
 0x43c   : > { %3827 = vmatprep.subr.bf16.mxu0 %v2465_v2  ;;  %v2482_v2 = vunpack.c.h.s8.bf16 %v1592_v57  ;;  %v2485_v5 = vunpack.c.l.s8.bf16 %v1595_v63 }
 0x43d   : > { %3245 = vmatmul.mubr.bf16.vlgmr.msra.gmra.mrb[0].mxu1 %v4015_v47  ;;  %v1370_v47 = vld [vmem:[%s5238_s10 + $0x6d0] sm:$0xff] }
 0x43e   : > { %3819 = vmatmul.mubr.bf16.vlgmr.msra.gmra.mrb[0].mxu0 %v4043_v6  ;;  %3254 = vmatpush1.bf16.msra.mxu1 %v2016_v8  ;;  %v1594_v6 = vld [vmem:[%s5238_s10 + $0xdd0] sm:$0xff]  ;;  %v2036_v8 = vunpack.c.l.s8.bf16 %v1370_v47 }
 0x43f   : > { %3828 = vmatpush1.bf16.msra.mxu0 %v2464_v9  ;;  %3255 = vmatprep.subr.bf16.mxu1 %v2019_v51  ;;  %v2484_v9 = vunpack.c.l.s8.bf16 %v1594_v6  ;;  %v2039_v51 = vunpack.c.h.s8.bf16 %v1371_v62 }
 0x440   : > { %3829 = vmatprep.subr.bf16.mxu0 %v2467_v10  ;;  %3285 = vmatprep.mubr.bf16.mxu1 %v4018_v14  ;;  %v2487_v10 = vunpack.c.h.s8.bf16 %v1595_v63  ;;  %v2038_v14 = vunpack.c.h.s8.bf16 %v1370_v47 }
 0x441   : > { %3859 = vmatprep.mubr.bf16.mxu0 %v4046_v15  ;;  %v2486_v15 = vunpack.c.h.s8.bf16 %v1594_v6 }
 0x442   : > { %3256 = vmatpush1.bf16.msra.mxu1 %v2018_v36  ;;  %v2041_v36 = vunpack.c.l.s8.bf16 %v1373_v31 }
 0x443   : > { %3830 = vmatpush1.bf16.msra.mxu0 %v2466_v16  ;;  %3257 = vmatprep.subr.bf16.mxu1 %v2021_v18  ;;  %v2489_v16 = vunpack.c.l.s8.bf16 %v1597_v11  ;;  %v1372_v18 = vld [vmem:[%s5238_s10 + $0x6e0] sm:$0xff] }
 0x444   : > { %3831 = vmatprep.subr.bf16.mxu0 %v2469_v19  ;;  %v1596_v19 = vld [vmem:[%s5238_s10 + $0xde0] sm:$0xff]  ;;  %v2040_v61 = vunpack.c.l.s8.bf16 %v1372_v18  ;;  %v2042_v46 = vunpack.c.h.s8.bf16 %v1372_v18 }
 0x445   : > { %v2488_v20 = vunpack.c.l.s8.bf16 %v1596_v19  ;;  %v2490_v26 = vunpack.c.h.s8.bf16 %v1596_v19 }
 0x446   : > { %3258 = vmatpush1.bf16.msra.mxu1 %v2020_v41  ;;  %v2043_v41 = vunpack.c.h.s8.bf16 %v1373_v31 }
 0x447   : > { %3832 = vmatpush1.bf16.msra.mxu0 %v2468_v21  ;;  %3259 = vmatprep.subr.bf16.mxu1 %v2023_v24  ;;  %v2491_v21 = vunpack.c.h.s8.bf16 %v1597_v11  ;;  %v1375_v24 = vld [vmem:[%s5238_s10 + $0x6f8] sm:$0xff] }
 0x448   : > { %3833 = vmatprep.subr.bf16.mxu0 %v2471_v25  ;;  %v1599_v25 = vld [vmem:[%s5238_s10 + $0xdf8] sm:$0xff] }
 0x44a   : > { %3260 = vmatpush1.bf16.msra.mxu1 %v2022_v28  ;;  %v2045_v28 = vunpack.c.l.s8.bf16 %v1375_v24 }
 0x44b   : > { %3834 = vmatpush1.bf16.msra.mxu0 %v2470_v29  ;;  %3261 = vmatprep.subr.bf16.mxu1 %v2025_v1  ;;  %v2493_v29 = vunpack.c.l.s8.bf16 %v1599_v25  ;;  %v1374_v1 = vld [vmem:[%s5238_s10 + $0x6f0] sm:$0xff] }
 0x44c   : > { %3835 = vmatprep.subr.bf16.mxu0 %v2473_v30  ;;  %v1598_v30 = vld [vmem:[%s5238_s10 + $0xdf0] sm:$0xff]  ;;  %v2044_v32 = vunpack.c.l.s8.bf16 %v1374_v1  ;;  %s3987_s10 = sshll.u32 %s3980_s18, 1 }
 0x44d   : > { %v2492_v33 = vunpack.c.l.s8.bf16 %v1598_v30  ;;  %p1137_p8 = scmp.lt.s32.totalorder %s3987_s10, 3 }
 0x44e   : > { %3262 = vmatpush1.bf16.msra.mxu1 %v2024_v13  ;;  %v2047_v13 = vunpack.c.h.s8.bf16 %v1375_v24 }
 0x44f   : > { %3836 = vmatpush1.bf16.msra.mxu0 %v2472_v34  ;;  %3263 = vmatprep.subr.bf16.mxu1 %v2027_v55  ;;  %v2495_v34 = vunpack.c.h.s8.bf16 %v1599_v25  ;;  %v2046_v55 = vunpack.c.h.s8.bf16 %v1374_v1  ;;  %s5956_s10 = smov (!%p1137_p8, %s3987_s10), 3 }
 0x450   : > { %3837 = vmatprep.subr.bf16.mxu0 %v2475_v35  ;;  %v2494_v35 = vunpack.c.h.s8.bf16 %v1598_v30  ;;  %s1139_s30 = scalar_lea.vmem %s5949_s2, %s5956_s10  ;;  %s1144_s7 = scalar_lea.vmem %s5950_s3, %s5956_s10 }
 0x451   : > { %v3868_v7 = vld [vmem:[%s1139_s30] sm:$0x3]  ;;  %s3990_s17 = sshll.u32 %s5956_s10, 3 }
 0x452   : > { %3264 = vmatpush1.bf16.msra.mxu1 %v2026_v60  ;;  %v3870_v60 = vlaneseq  ;;  %s1150_s9 = scalar_lea.vmem %s5951_s4, %s3990_s17 }
 0x453   : > { %3838 = vmatpush1.bf16.msra.mxu0 %v2474_v40  ;;  %3265 = vmatprep.subr.bf16.mxu1 %v2029_v42 }
 0x454   : > { %3839 = vmatprep.subr.bf16.mxu0 %v2477_v43  ;;  %v3871_v40 = vshrl.u32 %v3870_v60, 7  ;;  %v3882_v43 = vld [vmem:[%s1144_s7] sm:$0x3] }
 0x456   : > { %3266 = vmatpush1.bf16.msra.mxu1 %v2028_v3  ;;  %v3872_v27 = vsub.s32 0, %v3871_v40  ;;  %v3876_v42 = vsub.s32 1, %v3871_v40 }
 0x457   : > { %3840 = vmatpush1.bf16.msra.mxu0 %v2476_v45  ;;  %3267 = vmatprep.subr.bf16.mxu1 %v2031_v48 }
 0x458   : > { %3841 = vmatprep.subr.bf16.mxu0 %v2479_v49  ;;  %v3873_v23 = vrot.slane %v3868_v7, %v3872_v27  ;;  %v3877_v45 = vrot.slane %v3868_v7, %v3876_v42  ;;  %v3887_v49 = vrot.slane %v3882_v43, %v3872_v27 }
 0x45a   : > { %3268 = vmatpush1.bf16.msra.mxu1 %v2030_v52 }
 0x45b   : > { %3842 = vmatpush1.bf16.msra.mxu0 %v2478_v53  ;;  %3269 = vmatprep.subr.bf16.mxu1 %v2033_v12  ;;  %v3891_v53 = vrot.slane %v3882_v43, %v3876_v42 }
 0x45c   : > { %3843 = vmatprep.subr.bf16.mxu0 %v2481_v54 }
 0x45e   : > { %3270 = vmatpush1.bf16.msra.mxu1 %v2032_v37 }
 0x45f   : > { %3844 = vmatpush1.bf16.msra.mxu0 %v2480_v58  ;;  %3271 = vmatprep.subr.bf16.mxu1 %v2035_v17 }
 0x460   : > { %3845 = vmatprep.subr.bf16.mxu0 %v2483_v59 }
 0x462   : > { %3272 = vmatpush1.bf16.msra.mxu1 %v2034_v22 }
 0x463   : > { %3846 = vmatpush1.bf16.msra.mxu0 %v2482_v2  ;;  %3273 = vmatprep.subr.bf16.mxu1 %v2037_v4 }
 0x464   : > { %3847 = vmatprep.subr.bf16.mxu0 %v2485_v5 }
 0x466   : > { %3274 = vmatpush1.bf16.msra.mxu1 %v2036_v8 }
 0x467   : > { %3848 = vmatpush1.bf16.msra.mxu0 %v2484_v9  ;;  %3275 = vmatprep.subr.bf16.mxu1 %v2039_v51 }
 0x468   : > { %3849 = vmatprep.subr.bf16.mxu0 %v2487_v10 }
 0x46a   : > { %3276 = vmatpush1.bf16.msra.mxu1 %v2038_v14 }
 0x46b   : > { %3850 = vmatpush1.bf16.msra.mxu0 %v2486_v15  ;;  %3277 = vmatprep.subr.bf16.mxu1 %v2041_v36 }
 0x46c   : > { %3851 = vmatprep.subr.bf16.mxu0 %v2489_v16 }
 0x46e   : > { %3278 = vmatpush1.bf16.msra.mxu1 %v2040_v61 }
 0x46f   : > { %3852 = vmatpush1.bf16.msra.mxu0 %v2488_v20  ;;  %3279 = vmatprep.subr.bf16.mxu1 %v2043_v41 }
 0x470   : > { %3853 = vmatprep.subr.bf16.mxu0 %v2491_v21 }
 0x472   : > { %3280 = vmatpush1.bf16.msra.mxu1 %v2042_v46 }
 0x473   : > { %3854 = vmatpush1.bf16.msra.mxu0 %v2490_v26  ;;  %3281 = vmatprep.subr.bf16.mxu1 %v2045_v28 }
 0x474   : > { %3855 = vmatprep.subr.bf16.mxu0 %v2493_v29 }
 0x476   : > { %3282 = vmatpush1.bf16.msra.mxu1 %v2044_v32 }
 0x477   : > { %3856 = vmatpush1.bf16.msra.mxu0 %v2492_v33  ;;  %3283 = vmatprep.subr.bf16.mxu1 %v2047_v13 }
 0x478   : > { %3857 = vmatprep.subr.bf16.mxu0 %v2495_v34 }
 0x47a   : > { %3284 = vmatpush1.bf16.msra.mxu1 %v2046_v55 }
 0x47b   : > { %3858 = vmatpush1.bf16.msra.mxu0 %v2494_v35 }
 0x47d   : > { %3286 = vmatmul.mubr.bf16.vlgmr.msra.gmra.mrb[0].mxu1 %v4017_v38 }
 0x47e   : > { %3860 = vmatmul.mubr.bf16.vlgmr.msra.gmra.mrb[0].mxu0 %v4045_v39 }
 0x550   : > { %v3287_v44 = vpop.f32.mrb[0].mxu1 }
 0x551   : > { %v3861_v3 = vpop.f32.mrb[0].mxu0  ;;  %v3289_v0 = vpop.f32.mrb[1].mxu1 }
 0x552   : > { %v4050_v48 = vadd.f32 %v3861_v3, %v3287_v44  ;;  %v3863_v50 = vpop.f32.mrb[1].mxu0  ;;  %v3291_v12 = vpop.f32.mrb[2].mxu1 }
 0x553   : > { %v4051_v52 = vadd.f32 %v3863_v50, %v3289_v0  ;;  %v3865_v54 = vpop.f32.mrb[2].mxu0  ;;  %v3292_v57 = vpop.f32.mrb[3].mxu1 }
 0x554   : > { %v3880_v56 = vmul.f32 %v4050_v48, %v3873_v23  ;;  %v3866_v37 = vpop.f32.mrb[3].mxu0 }
 0x555   : > { %v3881_v58 = vmul.f32 %v4051_v52, %v3877_v45 }
 0x556   : > { %v3894_v17 = vadd.f32 %v3887_v49, %v3880_v56 }
 0x557   : > { %v3895_v59 = vadd.f32 %v3891_v53, %v3881_v58 }
 0x558   : > { %v3896_v62 = vmax.f32 %v3894_v17, 0.0 }
 0x559   : > { %v3897_v63 = vmax.f32 %v3895_v59, 0.0 }
 0x55a   : > { %3898 = vst [vmem:[%s1150_s9] sm:$0xff] %v3896_v62 }
 0x55b   : > { %3899 = vst [vmem:[%s1150_s9 + $0x8] sm:$0xff] %v3897_v63 }
 0x55c PF: > { %p11_p9 = scmp.ge.s32.totalorder %s4304_s19, 4   ;;  %s5952_s15 = smov %s4256_s16 }
 0x55d   : > { %s5953_s16 = smov %s4313_s22  ;;  %s5954_s17 = smov %s4304_s19 }
 0x55e   :  { %13 = sbr.rel (!%p11_p9) target bundleno = 2 (0x2), region = 100 }

</bundles_post_ra>
